<compile_context>
chip_gen: v7x
topology: tpu7x:2x2x1
jax: 0.10.0
libtpu: 0.0.40
codegen_flags: <defaults>
</compile_context>

<pallas_src>
import functools

import jax
import jax.numpy as jnp
from jax.experimental import pallas as pl
from jax.experimental.pallas import tpu as pltpu


# ----------------------------------------------------------------------------
# Pallas kernels
# ----------------------------------------------------------------------------

def _attn_rnn_kernel(xf_ref, wih_ref, whh_ref, bg_ref, wa_ref, ba_ref,
                     out_ref, xg_ref, *, K):
    """LSTM + attention-over-last-K-hiddens recurrence for one batch block.

    xf_ref:  (NB*T, E) bf16  flattened (n-major) inputs for NB sequences
    wih_ref: (E, 4H)   bf16  input->gates
    whh_ref: (H, 4H)   bf16  hidden->gates
    bg_ref:  (1, 4H)   f32   gate bias
    wa_ref:  (H, H)    bf16  attention output projection
    ba_ref:  (1, H)    f32   attention output bias
    out_ref: (1, NB, T*H) f32  lane-dense per-sequence outputs
    xg_ref:  (NB, T, 4H)  f32  VMEM scratch: hoisted input projection
    """
    NB, T, G = xg_ref.shape
    H = G // 4

    wih = wih_ref[...]
    whh = whh_ref[...]
    wa = wa_ref[...]
    bg = bg_ref[...]
    ba_b = jnp.broadcast_to(ba_ref[...], (NB, H))       # hoisted broadcast
    inv_sqrt_h = float(H) ** -0.5

    # ---- hoisted input projection: one MXU matmul for every (n, t) ---------
    xg_all = jnp.dot(xf_ref[...], wih,
                     preferred_element_type=jnp.float32) + bg     # (NB*T, 4H)
    for n in range(NB):                                 # stage per-sequence slabs
        xg_ref[n] = xg_all[n * T:(n + 1) * T]           # (T, 4H)

    h = jnp.zeros((NB, H), jnp.float32)
    c = jnp.zeros((NB, H), jnp.float32)
    hist = []    # python-managed window of the last K hidden states (SSA values)
    outs = []

    # Time loop fully unrolled: T is a small static max_word_len/max_sentence_len,
    # which lets the scheduler overlap step t attention with step t+1 MXU work.
    # TODO(synk): for long sequences switch to lax.fori_loop + ring-buffer scratch.
    for t in range(T):
        gates = xg_ref[:, t, :] + jnp.dot(
            h.astype(jnp.bfloat16), whh, preferred_element_type=jnp.float32)
        i_g = jax.nn.sigmoid(gates[:, 0 * H:1 * H])
        f_g = jax.nn.sigmoid(gates[:, 1 * H:2 * H])
        g_g = jnp.tanh(gates[:, 2 * H:3 * H])
        o_g = jax.nn.sigmoid(gates[:, 3 * H:4 * H])
        c = f_g * c + i_g * g_g
        h = o_g * jnp.tanh(c)

        # Scaled dot-product attention of h_t over the last K hidden states.
        hist.append(h)
        window = hist[-K:]                               # only valid states
        scores = [jnp.sum(hj * h, axis=-1, keepdims=True) * inv_sqrt_h
                  for hj in window]                      # each (NB, 1), f32
        m = scores[0]
        for s in scores[1:]:
            m = jnp.maximum(m, s)
        exps = [jnp.exp(s - m) for s in scores]
        denom = exps[0]
        for e in exps[1:]:
            denom = denom + e
        ctx = exps[0] * window[0]
        for e, hj in zip(exps[1:], window[1:]):
            ctx = ctx + e * hj
        ctx = ctx * pl.reciprocal(denom, approx=True)    # EUP, not VPU divide

        out_t = jnp.tanh(jnp.dot(ctx.astype(jnp.bfloat16), wa,
                                 preferred_element_type=jnp.float32) + ba_b)
        outs.append(out_t)

    # Single lane-dense store of the whole block: (NB, T*H).
    out_ref[0] = jnp.concatenate(outs, axis=-1)


def _linear_kernel(x_ref, w_ref, b_ref, o_ref):
    o_ref[...] = (
        jnp.dot(x_ref[...], w_ref[...], preferred_element_type=jnp.float32)
        + b_ref[...])


# ----------------------------------------------------------------------------
# pallas_call wrappers
# ----------------------------------------------------------------------------

def _pick_batch_block(n_seq, t_len, target=8):
    """Largest divisor of n_seq (<= target) whose block keeps (8,128) tiling legal."""
    if n_seq <= target:
        return n_seq
    for nb in range(min(n_seq - 1, target), 0, -1):
        if n_seq % nb == 0 and (nb * t_len) % 8 == 0:
            return nb
    return n_seq


def attn_rnn(x_flat, wih, whh, bg, wa, ba, *, n_seq, t_len, K):
    """Run the AttnRNN over n_seq sequences of length t_len.

    x_flat: (n_seq * t_len, E) rows in n-major order.
    Returns (n_seq, t_len * H) lane-dense per-sequence outputs (== torch view(batch,-1)).
    """
    NT, E = x_flat.shape
    assert NT == n_seq * t_len
    H = whh.shape[0]
    G = 4 * H
    NB = _pick_batch_block(n_seq, t_len)
    nblk = n_seq // NB

    # bf16 MXU operands (f32 accumulate inside the kernel); biases stay f32.
    x_bf = x_flat.astype(jnp.bfloat16)
    wih_bf = wih.astype(jnp.bfloat16)
    whh_bf = whh.astype(jnp.bfloat16)
    wa_bf = wa.astype(jnp.bfloat16)

    kernel = functools.partial(_attn_rnn_kernel, K=K)
    out = pl.pallas_call(
        kernel,
        out_shape=jax.ShapeDtypeStruct((nblk, NB, t_len * H), jnp.float32),
        grid=(nblk,),
        in_specs=[
            pl.BlockSpec((NB * t_len, E), lambda n: (n, 0)),
            pl.BlockSpec((E, G), lambda n: (0, 0)),
            pl.BlockSpec((H, G), lambda n: (0, 0)),
            pl.BlockSpec((1, G), lambda n: (0, 0)),
            pl.BlockSpec((H, H), lambda n: (0, 0)),
            pl.BlockSpec((1, H), lambda n: (0, 0)),
        ],
        out_specs=pl.BlockSpec((1, NB, t_len * H), lambda n: (n, 0, 0)),
        scratch_shapes=[pltpu.VMEM((NB, t_len, G), jnp.float32)],
        compiler_params=pltpu.CompilerParams(
            dimension_semantics=("parallel",),        # independent sequences -> 2 TCs on v7x
            vmem_limit_bytes=32 * 1024 * 1024),
    )(x_bf, wih_bf, whh_bf, bg, wa_bf, ba)
    return out.reshape(n_seq, t_len * H)


def linear(x, w, b):
    B, D = x.shape
    C = w.shape[1]
    return pl.pallas_call(
        _linear_kernel,
        out_shape=jax.ShapeDtypeStruct((B, C), jnp.float32),
        grid=(1,),
        in_specs=[pl.BlockSpec((B, D), lambda i: (0, 0)),
                  pl.BlockSpec((D, C), lambda i: (0, 0)),
                  pl.BlockSpec((1, C), lambda i: (0, 0))],
        out_specs=pl.BlockSpec((B, C), lambda i: (0, 0)),
        compiler_params=pltpu.CompilerParams(dimension_semantics=("arbitrary",)),
    )(x, w, b)


# ----------------------------------------------------------------------------
# Full model forward (glue in plain JAX, hot loops in Pallas)
# ----------------------------------------------------------------------------

def hier_attn_rnn_forward(x_tok, params, K):
    """x_tok: (B, S, W) int32 character ids.  Returns (B, num_classes) logits."""
    B, S, W = x_tok.shape
    emb = params["emb"]                                    # (V, E)
    E = emb.shape[1]

    # Character embedding lookup (gather glue, plain XLA).
    chars = jnp.take(emb, x_tok, axis=0)                   # (B, S, W, E)

    # Low-level AttnRNN over the characters of every word (all B*S words batched).
    x_low = chars.reshape(B * S * W, E)                    # n-major rows, free reshape
    low_out = attn_rnn(x_low, params["low_wih"], params["low_whh"],
                       params["low_bg"], params["low_wa"], params["low_ba"],
                       n_seq=B * S, t_len=W, K=K)          # (B*S, W*Hl) == word_repr rows

    # High-level AttnRNN over the sentence of word representations.
    # low_out rows are already (b*S + s)-ordered -> feed directly, no transpose.
    high_out = attn_rnn(low_out, params["high_wih"], params["high_whh"],
                        params["high_bg"], params["high_wa"], params["high_ba"],
                        n_seq=B, t_len=S, K=K)             # (B, S*Hh) == sentence_repr.view(B,-1)

    # Output classifier.
    return linear(high_out, params["out_w"], params["out_b"])


def init_params(key, vocab_size, embedding_dim, low_hidden, high_hidden,
                num_classes, max_word_len, max_sentence_len):
    keys = jax.random.split(key, 13)
    scale = 0.1

    def rnd(k, shape):
        return (scale * jax.random.normal(k, shape)).astype(jnp.float32)

    low_in = embedding_dim
    high_in = low_hidden * max_word_len
    return {
        "emb":      rnd(keys[0], (vocab_size, embedding_dim)),
        "low_wih":  rnd(keys[1], (low_in, 4 * low_hidden)),
        "low_whh":  rnd(keys[2], (low_hidden, 4 * low_hidden)),
        "low_bg":   rnd(keys[3], (1, 4 * low_hidden)),
        "low_wa":   rnd(keys[4], (low_hidden, low_hidden)),
        "low_ba":   rnd(keys[5], (1, low_hidden)),
        "high_wih": rnd(keys[6], (high_in, 4 * high_hidden)),
        "high_whh": rnd(keys[7], (high_hidden, 4 * high_hidden)),
        "high_bg":  rnd(keys[8], (1, 4 * high_hidden)),
        "high_wa":  rnd(keys[9], (high_hidden, high_hidden)),
        "high_ba":  rnd(keys[10], (1, high_hidden)),
        "out_w":    rnd(keys[11], (high_hidden * max_sentence_len, num_classes)),
        "out_b":    rnd(keys[12], (1, num_classes)),
    }


if __name__ == "__main__":
    # Small config consistent with the module's __init__.
    VOCAB = 50
    EMB = 16
    LOW_H = 32
    HIGH_H = 32
    NUM_CLASSES = 8
    K = 3
    MAX_WORD_LEN = 8      # max_word_len
    MAX_SENT_LEN = 6      # max_sentence_len
    B = 2

    key = jax.random.PRNGKey(0)
    k_params, k_tok = jax.random.split(key)
    params = init_params(k_params, VOCAB, EMB, LOW_H, HIGH_H, NUM_CLASSES,
                         MAX_WORD_LEN, MAX_SENT_LEN)

    x_tok = jax.random.randint(k_tok, (B, MAX_SENT_LEN, MAX_WORD_LEN), 0, VOCAB,
                               dtype=jnp.int32)

    logits = jax.jit(functools.partial(hier_attn_rnn_forward, K=K))(x_tok, params)
    jax.block_until_ready(logits)
    assert logits.shape == (B, NUM_CLASSES)
    assert bool(jnp.all(jnp.isfinite(logits)))
    print("KERNEL_OK")
</pallas_src>

<mosaic_0001>
module attributes {stable_mosaic.version = 11 : i64} {
  func.func @_linear_kernel(%arg0: i32, %arg1: memref<2x192xf32, #tpu.memory_space<vmem>>, %arg2: memref<192x8xf32, #tpu.memory_space<vmem>>, %arg3: memref<1x8xf32, #tpu.memory_space<vmem>>, %arg4: memref<2x8xf32, #tpu.memory_space<vmem>>) attributes {dimension_semantics = [#tpu.dimension_semantics<arbitrary>], iteration_bounds = array<i64: 1>, scalar_prefetch = 0 : i64, scratch_operands = 0 : i64, tpu.core_type = #tpu.core_type<tc>, window_params = [{pipeline_mode = #tpu.pipeline_mode<synchronous>, transform_indices = @transform_0, window_bounds = array<i64: 2, 192>}, {pipeline_mode = #tpu.pipeline_mode<synchronous>, transform_indices = @transform_1, window_bounds = array<i64: 192, 8>}, {pipeline_mode = #tpu.pipeline_mode<synchronous>, transform_indices = @transform_2, window_bounds = array<i64: 1, 8>}, {pipeline_mode = #tpu.pipeline_mode<synchronous>, transform_indices = @transform_3, window_bounds = array<i64: 2, 8>}]} {
    %c0 = arith.constant 0 : index
    %c0_0 = arith.constant 0 : index
    %0 = vector.load %arg1[%c0, %c0_0] : memref<2x192xf32, #tpu.memory_space<vmem>>, vector<2x192xf32>
    %c0_1 = arith.constant 0 : index
    %c0_2 = arith.constant 0 : index
    %1 = vector.load %arg2[%c0_1, %c0_2] : memref<192x8xf32, #tpu.memory_space<vmem>>, vector<192x8xf32>
    %cst = arith.constant dense<0.000000e+00> : vector<2x8xf32>
    %2 = tpu.matmul %0, %1, %cst {dimension_numbers = #tpu.dot_dimension_numbers<[1], [0], [0], [1], [0, 0, 1, 1], [], []>} : vector<2x192xf32>, vector<192x8xf32>, vector<2x8xf32> -> vector<2x8xf32>
    %c0_3 = arith.constant 0 : index
    %c0_4 = arith.constant 0 : index
    %3 = vector.load %arg3[%c0_3, %c0_4] : memref<1x8xf32, #tpu.memory_space<vmem>>, vector<1x8xf32>
    %4 = vector.broadcast %3 : vector<1x8xf32> to vector<2x8xf32>
    %5 = arith.addf %2, %4 : vector<2x8xf32>
    %c0_5 = arith.constant 0 : index
    %c0_6 = arith.constant 0 : index
    %6 = vector.load %arg4[%c0_5, %c0_6] : memref<2x8xf32, #tpu.memory_space<vmem>>, vector<2x8xf32>
    tpu.vector_store %arg4[%c0_5, %c0_6], %5 {strides = array<i32>} : memref<2x8xf32, #tpu.memory_space<vmem>>, vector<2x8xf32>,
    return
  }
  func.func @transform_0(%arg0: i32) -> (i32, i32) {
    %c0_i32 = arith.constant 0 : i32
    %c0_i32_0 = arith.constant 0 : i32
    %c0_i32_1 = arith.constant 0 : i32
    return %c0_i32, %c0_i32_0 : i32, i32
  }
  func.func @transform_1(%arg0: i32) -> (i32, i32) {
    %c0_i32 = arith.constant 0 : i32
    %c0_i32_0 = arith.constant 0 : i32
    %c0_i32_1 = arith.constant 0 : i32
    return %c0_i32, %c0_i32_0 : i32, i32
  }
  func.func @transform_2(%arg0: i32) -> (i32, i32) {
    %c0_i32 = arith.constant 0 : i32
    %c0_i32_0 = arith.constant 0 : i32
    %c0_i32_1 = arith.constant 0 : i32
    return %c0_i32, %c0_i32_0 : i32, i32
  }
  func.func @transform_3(%arg0: i32) -> (i32, i32) {
    %c0_i32 = arith.constant 0 : i32
    %c0_i32_0 = arith.constant 0 : i32
    %c0_i32_1 = arith.constant 0 : i32
    return %c0_i32, %c0_i32_0 : i32, i32
  }
}

module attributes {stable_mosaic.version = 11 : i64} {
  func.func @_attn_rnn_kernel(%arg0: i32, %arg1: memref<48x16xbf16, #tpu.memory_space<vmem>>, %arg2: memref<16x128xbf16, #tpu.memory_space<vmem>>, %arg3: memref<32x128xbf16, #tpu.memory_space<vmem>>, %arg4: memref<1x128xf32, #tpu.memory_space<vmem>>, %arg5: memref<32x32xbf16, #tpu.memory_space<vmem>>, %arg6: memref<1x32xf32, #tpu.memory_space<vmem>>, %arg7: memref<1x6x256xf32, #tpu.memory_space<vmem>>, %arg8: memref<6x8x128xf32, #tpu.memory_space<vmem>>) attributes {dimension_semantics = [#tpu.dimension_semantics<parallel>], iteration_bounds = array<i64: 2>, scalar_prefetch = 0 : i64, scratch_operands = 1 : i64, tpu.core_type = #tpu.core_type<tc>, window_params = [{transform_indices = @transform_0, window_bounds = array<i64: 48, 16>}, {pipeline_mode = #tpu.pipeline_mode<synchronous>, transform_indices = @transform_1, window_bounds = array<i64: 16, 128>}, {pipeline_mode = #tpu.pipeline_mode<synchronous>, transform_indices = @transform_2, window_bounds = array<i64: 32, 128>}, {pipeline_mode = #tpu.pipeline_mode<synchronous>, transform_indices = @transform_3, window_bounds = array<i64: 1, 128>}, {pipeline_mode = #tpu.pipeline_mode<synchronous>, transform_indices = @transform_4, window_bounds = array<i64: 32, 32>}, {pipeline_mode = #tpu.pipeline_mode<synchronous>, transform_indices = @transform_5, window_bounds = array<i64: 1, 32>}, {transform_indices = @transform_6, window_bounds = array<i64: 1, 6, 256>}]} {
    %c0 = arith.constant 0 : index
    %c0_0 = arith.constant 0 : index
    %0 = vector.load %arg2[%c0, %c0_0] : memref<16x128xbf16, #tpu.memory_space<vmem>>, vector<16x128xbf16>
    %c0_1 = arith.constant 0 : index
    %c0_2 = arith.constant 0 : index
    %1 = vector.load %arg3[%c0_1, %c0_2] : memref<32x128xbf16, #tpu.memory_space<vmem>>, vector<32x128xbf16>
    %c0_3 = arith.constant 0 : index
    %c0_4 = arith.constant 0 : index
    %2 = vector.load %arg5[%c0_3, %c0_4] : memref<32x32xbf16, #tpu.memory_space<vmem>>, vector<32x32xbf16>
    %c0_5 = arith.constant 0 : index
    %c0_6 = arith.constant 0 : index
    %3 = vector.load %arg4[%c0_5, %c0_6] : memref<1x128xf32, #tpu.memory_space<vmem>>, vector<1x128xf32>
    %c0_7 = arith.constant 0 : index
    %c0_8 = arith.constant 0 : index
    %4 = vector.load %arg6[%c0_7, %c0_8] : memref<1x32xf32, #tpu.memory_space<vmem>>, vector<1x32xf32>
    %5 = vector.shape_cast %4 : vector<1x32xf32> to vector<1x32xf32>
    %6 = vector.broadcast %5 : vector<1x32xf32> to vector<6x32xf32>
    %c0_9 = arith.constant 0 : index
    %c0_10 = arith.constant 0 : index
    %7 = vector.load %arg1[%c0_9, %c0_10] : memref<48x16xbf16, #tpu.memory_space<vmem>>, vector<48x16xbf16>
    %cst = arith.constant dense<0.000000e+00> : vector<48x128xf32>
    %8 = tpu.matmul %7, %0, %cst {dimension_numbers = #tpu.dot_dimension_numbers<[1], [0], [0], [1], [0, 0, 1, 1], [], []>} : vector<48x16xbf16>, vector<16x128xbf16>, vector<48x128xf32> -> vector<48x128xf32>
    %9 = vector.broadcast %3 : vector<1x128xf32> to vector<48x128xf32>
    %10 = arith.addf %8, %9 : vector<48x128xf32>
    %11 = vector.extract_strided_slice %10 {offsets = [0, 0], sizes = [8, 128], strides = [1, 1]} : vector<48x128xf32> to vector<8x128xf32>
    %c0_11 = arith.constant 0 : index
    %c0_12 = arith.constant 0 : index
    %c0_13 = arith.constant 0 : index
    %12 = vector.load %arg8[%c0_11, %c0_12, %c0_13] : memref<6x8x128xf32, #tpu.memory_space<vmem>>, vector<1x8x128xf32>
    %13 = vector.shape_cast %12 : vector<1x8x128xf32> to vector<8x128xf32>
    %14 = vector.shape_cast %11 : vector<8x128xf32> to vector<1x8x128xf32>
    tpu.vector_store %arg8[%c0_11, %c0_12, %c0_13], %14 {strides = array<i32>} : memref<6x8x128xf32, #tpu.memory_space<vmem>>, vector<1x8x128xf32>,
    %15 = vector.extract_strided_slice %10 {offsets = [8, 0], sizes = [8, 128], strides = [1, 1]} : vector<48x128xf32> to vector<8x128xf32>
    %c1 = arith.constant 1 : index
    %c0_14 = arith.constant 0 : index
    %c0_15 = arith.constant 0 : index
    %16 = vector.load %arg8[%c1, %c0_14, %c0_15] : memref<6x8x128xf32, #tpu.memory_space<vmem>>, vector<1x8x128xf32>
    %17 = vector.shape_cast %16 : vector<1x8x128xf32> to vector<8x128xf32>
    %18 = vector.shape_cast %15 : vector<8x128xf32> to vector<1x8x128xf32>
    tpu.vector_store %arg8[%c1, %c0_14, %c0_15], %18 {strides = array<i32>} : memref<6x8x128xf32, #tpu.memory_space<vmem>>, vector<1x8x128xf32>,
    %19 = vector.extract_strided_slice %10 {offsets = [16, 0], sizes = [8, 128], strides = [1, 1]} : vector<48x128xf32> to vector<8x128xf32>
    %c2 = arith.constant 2 : index
    %c0_16 = arith.constant 0 : index
    %c0_17 = arith.constant 0 : index
    %20 = vector.load %arg8[%c2, %c0_16, %c0_17] : memref<6x8x128xf32, #tpu.memory_space<vmem>>, vector<1x8x128xf32>
    %21 = vector.shape_cast %20 : vector<1x8x128xf32> to vector<8x128xf32>
    %22 = vector.shape_cast %19 : vector<8x128xf32> to vector<1x8x128xf32>
    tpu.vector_store %arg8[%c2, %c0_16, %c0_17], %22 {strides = array<i32>} : memref<6x8x128xf32, #tpu.memory_space<vmem>>, vector<1x8x128xf32>,
    %23 = vector.extract_strided_slice %10 {offsets = [24, 0], sizes = [8, 128], strides = [1, 1]} : vector<48x128xf32> to vector<8x128xf32>
    %c3 = arith.constant 3 : index
    %c0_18 = arith.constant 0 : index
    %c0_19 = arith.constant 0 : index
    %24 = vector.load %arg8[%c3, %c0_18, %c0_19] : memref<6x8x128xf32, #tpu.memory_space<vmem>>, vector<1x8x128xf32>
    %25 = vector.shape_cast %24 : vector<1x8x128xf32> to vector<8x128xf32>
    %26 = vector.shape_cast %23 : vector<8x128xf32> to vector<1x8x128xf32>
    tpu.vector_store %arg8[%c3, %c0_18, %c0_19], %26 {strides = array<i32>} : memref<6x8x128xf32, #tpu.memory_space<vmem>>, vector<1x8x128xf32>,
    %27 = vector.extract_strided_slice %10 {offsets = [32, 0], sizes = [8, 128], strides = [1, 1]} : vector<48x128xf32> to vector<8x128xf32>
    %c4 = arith.constant 4 : index
    %c0_20 = arith.constant 0 : index
    %c0_21 = arith.constant 0 : index
    %28 = vector.load %arg8[%c4, %c0_20, %c0_21] : memref<6x8x128xf32, #tpu.memory_space<vmem>>, vector<1x8x128xf32>
    %29 = vector.shape_cast %28 : vector<1x8x128xf32> to vector<8x128xf32>
    %30 = vector.shape_cast %27 : vector<8x128xf32> to vector<1x8x128xf32>
    tpu.vector_store %arg8[%c4, %c0_20, %c0_21], %30 {strides = array<i32>} : memref<6x8x128xf32, #tpu.memory_space<vmem>>, vector<1x8x128xf32>,
    %31 = vector.extract_strided_slice %10 {offsets = [40, 0], sizes = [8, 128], strides = [1, 1]} : vector<48x128xf32> to vector<8x128xf32>
    %c5 = arith.constant 5 : index
    %c0_22 = arith.constant 0 : index
    %c0_23 = arith.constant 0 : index
    %32 = vector.load %arg8[%c5, %c0_22, %c0_23] : memref<6x8x128xf32, #tpu.memory_space<vmem>>, vector<1x8x128xf32>
    %33 = vector.shape_cast %32 : vector<1x8x128xf32> to vector<8x128xf32>
    %34 = vector.shape_cast %31 : vector<8x128xf32> to vector<1x8x128xf32>
    tpu.vector_store %arg8[%c5, %c0_22, %c0_23], %34 {strides = array<i32>} : memref<6x8x128xf32, #tpu.memory_space<vmem>>, vector<1x8x128xf32>,
    %cst_24 = arith.constant 0.000000e+00 : f32
    %35 = vector.broadcast %cst_24 : f32 to vector<6x32xf32>
    %cst_25 = arith.constant 0.000000e+00 : f32
    %36 = vector.broadcast %cst_25 : f32 to vector<6x32xf32>
    %c0_26 = arith.constant 0 : index
    %c0_27 = arith.constant 0 : index
    %c0_28 = arith.constant 0 : index
    %37 = vector.load %arg8[%c0_26, %c0_27, %c0_28] : memref<6x8x128xf32, #tpu.memory_space<vmem>>, vector<6x1x128xf32>
    %38 = vector.shape_cast %37 : vector<6x1x128xf32> to vector<6x128xf32>
    %39 = arith.truncf %35 : vector<6x32xf32> to vector<6x32xbf16>
    %cst_29 = arith.constant dense<0.000000e+00> : vector<6x128xf32>
    %40 = tpu.matmul %39, %1, %cst_29 {dimension_numbers = #tpu.dot_dimension_numbers<[1], [0], [0], [1], [0, 0, 1, 1], [], []>} : vector<6x32xbf16>, vector<32x128xbf16>, vector<6x128xf32> -> vector<6x128xf32>
    %41 = arith.addf %38, %40 : vector<6x128xf32>
    %42 = vector.extract_strided_slice %41 {offsets = [0, 0], sizes = [6, 32], strides = [1, 1]} : vector<6x128xf32> to vector<6x32xf32>
    %43 = arith.negf %42 : vector<6x32xf32>
    %44 = math.exp %43 : vector<6x32xf32>
    %cst_30 = arith.constant 1.000000e+00 : f32
    %45 = vector.broadcast %cst_30 : f32 to vector<6x32xf32>
    %46 = arith.addf %45, %44 : vector<6x32xf32>
    %47 = arith.divf %45, %46 : vector<6x32xf32>
    %48 = vector.extract_strided_slice %41 {offsets = [0, 32], sizes = [6, 32], strides = [1, 1]} : vector<6x128xf32> to vector<6x32xf32>
    %49 = arith.negf %48 : vector<6x32xf32>
    %50 = math.exp %49 : vector<6x32xf32>
    %cst_31 = arith.constant 1.000000e+00 : f32
    %51 = vector.broadcast %cst_31 : f32 to vector<6x32xf32>
    %52 = arith.addf %51, %50 : vector<6x32xf32>
    %53 = arith.divf %51, %52 : vector<6x32xf32>
    %54 = vector.extract_strided_slice %41 {offsets = [0, 64], sizes = [6, 32], strides = [1, 1]} : vector<6x128xf32> to vector<6x32xf32>
    %55 = math.tanh %54 : vector<6x32xf32>
    %56 = vector.extract_strided_slice %41 {offsets = [0, 96], sizes = [6, 32], strides = [1, 1]} : vector<6x128xf32> to vector<6x32xf32>
    %57 = arith.negf %56 : vector<6x32xf32>
    %58 = math.exp %57 : vector<6x32xf32>
    %cst_32 = arith.constant 1.000000e+00 : f32
    %59 = vector.broadcast %cst_32 : f32 to vector<6x32xf32>
    %60 = arith.addf %59, %58 : vector<6x32xf32>
    %61 = arith.divf %59, %60 : vector<6x32xf32>
    %62 = arith.mulf %53, %36 : vector<6x32xf32>
    %63 = arith.mulf %47, %55 : vector<6x32xf32>
    %64 = arith.addf %62, %63 : vector<6x32xf32>
    %65 = math.tanh %64 : vector<6x32xf32>
    %66 = arith.mulf %61, %65 : vector<6x32xf32>
    %67 = arith.mulf %66, %66 : vector<6x32xf32>
    %cst_33 = arith.constant dense<0.000000e+00> : vector<6xf32>
    %68 = vector.multi_reduction <add>, %67, %cst_33 [1] : vector<6x32xf32> to vector<6xf32>
    %69 = vector.shape_cast %68 : vector<6xf32> to vector<6x1xf32>
    %cst_34 = arith.constant 0.176776692 : f32
    %70 = vector.broadcast %cst_34 : f32 to vector<6x1xf32>
    %71 = arith.mulf %69, %70 : vector<6x1xf32>
    %72 = arith.subf %71, %71 : vector<6x1xf32>
    %73 = math.exp %72 : vector<6x1xf32>
    %74 = vector.broadcast %73 : vector<6x1xf32> to vector<6x32xf32>
    %75 = arith.mulf %74, %66 : vector<6x32xf32>
    %76 = tpu.reciprocal %73 {approx = true} : vector<6x1xf32> -> vector<6x1xf32>
    %77 = vector.broadcast %76 : vector<6x1xf32> to vector<6x32xf32>
    %78 = arith.mulf %75, %77 : vector<6x32xf32>
    %79 = arith.truncf %78 : vector<6x32xf32> to vector<6x32xbf16>
    %cst_35 = arith.constant dense<0.000000e+00> : vector<6x32xf32>
    %80 = tpu.matmul %79, %2, %cst_35 {dimension_numbers = #tpu.dot_dimension_numbers<[1], [0], [0], [1], [0, 0, 1, 1], [], []>} : vector<6x32xbf16>, vector<32x32xbf16>, vector<6x32xf32> -> vector<6x32xf32>
    %81 = arith.addf %80, %6 : vector<6x32xf32>
    %82 = math.tanh %81 : vector<6x32xf32>
    %c0_36 = arith.constant 0 : index
    %c1_37 = arith.constant 1 : index
    %c0_38 = arith.constant 0 : index
    %83 = vector.load %arg8[%c0_36, %c1_37, %c0_38] : memref<6x8x128xf32, #tpu.memory_space<vmem>>, vector<6x1x128xf32>
    %84 = vector.shape_cast %83 : vector<6x1x128xf32> to vector<6x128xf32>
    %85 = arith.truncf %66 : vector<6x32xf32> to vector<6x32xbf16>
    %cst_39 = arith.constant dense<0.000000e+00> : vector<6x128xf32>
    %86 = tpu.matmul %85, %1, %cst_39 {dimension_numbers = #tpu.dot_dimension_numbers<[1], [0], [0], [1], [0, 0, 1, 1], [], []>} : vector<6x32xbf16>, vector<32x128xbf16>, vector<6x128xf32> -> vector<6x128xf32>
    %87 = arith.addf %84, %86 : vector<6x128xf32>
    %88 = vector.extract_strided_slice %87 {offsets = [0, 0], sizes = [6, 32], strides = [1, 1]} : vector<6x128xf32> to vector<6x32xf32>
    %89 = arith.negf %88 : vector<6x32xf32>
    %90 = math.exp %89 : vector<6x32xf32>
    %cst_40 = arith.constant 1.000000e+00 : f32
    %91 = vector.broadcast %cst_40 : f32 to vector<6x32xf32>
    %92 = arith.addf %91, %90 : vector<6x32xf32>
    %93 = arith.divf %91, %92 : vector<6x32xf32>
    %94 = vector.extract_strided_slice %87 {offsets = [0, 32], sizes = [6, 32], strides = [1, 1]} : vector<6x128xf32> to vector<6x32xf32>
    %95 = arith.negf %94 : vector<6x32xf32>
    %96 = math.exp %95 : vector<6x32xf32>
    %cst_41 = arith.constant 1.000000e+00 : f32
    %97 = vector.broadcast %cst_41 : f32 to vector<6x32xf32>
    %98 = arith.addf %97, %96 : vector<6x32xf32>
    %99 = arith.divf %97, %98 : vector<6x32xf32>
    %100 = vector.extract_strided_slice %87 {offsets = [0, 64], sizes = [6, 32], strides = [1, 1]} : vector<6x128xf32> to vector<6x32xf32>
    %101 = math.tanh %100 : vector<6x32xf32>
    %102 = vector.extract_strided_slice %87 {offsets = [0, 96], sizes = [6, 32], strides = [1, 1]} : vector<6x128xf32> to vector<6x32xf32>
    %103 = arith.negf %102 : vector<6x32xf32>
    %104 = math.exp %103 : vector<6x32xf32>
    %cst_42 = arith.constant 1.000000e+00 : f32
    %105 = vector.broadcast %cst_42 : f32 to vector<6x32xf32>
    %106 = arith.addf %105, %104 : vector<6x32xf32>
    %107 = arith.divf %105, %106 : vector<6x32xf32>
    %108 = arith.mulf %99, %64 : vector<6x32xf32>
    %109 = arith.mulf %93, %101 : vector<6x32xf32>
    %110 = arith.addf %108, %109 : vector<6x32xf32>
    %111 = math.tanh %110 : vector<6x32xf32>
    %112 = arith.mulf %107, %111 : vector<6x32xf32>
    %113 = arith.mulf %66, %112 : vector<6x32xf32>
    %cst_43 = arith.constant dense<0.000000e+00> : vector<6xf32>
    %114 = vector.multi_reduction <add>, %113, %cst_43 [1] : vector<6x32xf32> to vector<6xf32>
    %115 = vector.shape_cast %114 : vector<6xf32> to vector<6x1xf32>
    %cst_44 = arith.constant 0.176776692 : f32
    %116 = vector.broadcast %cst_44 : f32 to vector<6x1xf32>
    %117 = arith.mulf %115, %116 : vector<6x1xf32>
    %118 = arith.mulf %112, %112 : vector<6x32xf32>
    %cst_45 = arith.constant dense<0.000000e+00> : vector<6xf32>
    %119 = vector.multi_reduction <add>, %118, %cst_45 [1] : vector<6x32xf32> to vector<6xf32>
    %120 = vector.shape_cast %119 : vector<6xf32> to vector<6x1xf32>
    %cst_46 = arith.constant 0.176776692 : f32
    %121 = vector.broadcast %cst_46 : f32 to vector<6x1xf32>
    %122 = arith.mulf %120, %121 : vector<6x1xf32>
    %123 = arith.maximumf %117, %122 : vector<6x1xf32>
    %124 = arith.subf %117, %123 : vector<6x1xf32>
    %125 = math.exp %124 : vector<6x1xf32>
    %126 = arith.subf %122, %123 : vector<6x1xf32>
    %127 = math.exp %126 : vector<6x1xf32>
    %128 = arith.addf %125, %127 : vector<6x1xf32>
    %129 = vector.broadcast %125 : vector<6x1xf32> to vector<6x32xf32>
    %130 = arith.mulf %129, %66 : vector<6x32xf32>
    %131 = vector.broadcast %127 : vector<6x1xf32> to vector<6x32xf32>
    %132 = arith.mulf %131, %112 : vector<6x32xf32>
    %133 = arith.addf %130, %132 : vector<6x32xf32>
    %134 = tpu.reciprocal %128 {approx = true} : vector<6x1xf32> -> vector<6x1xf32>
    %135 = vector.broadcast %134 : vector<6x1xf32> to vector<6x32xf32>
    %136 = arith.mulf %133, %135 : vector<6x32xf32>
    %137 = arith.truncf %136 : vector<6x32xf32> to vector<6x32xbf16>
    %cst_47 = arith.constant dense<0.000000e+00> : vector<6x32xf32>
    %138 = tpu.matmul %137, %2, %cst_47 {dimension_numbers = #tpu.dot_dimension_numbers<[1], [0], [0], [1], [0, 0, 1, 1], [], []>} : vector<6x32xbf16>, vector<32x32xbf16>, vector<6x32xf32> -> vector<6x32xf32>
    %139 = arith.addf %138, %6 : vector<6x32xf32>
    %140 = math.tanh %139 : vector<6x32xf32>
    %c0_48 = arith.constant 0 : index
    %c2_49 = arith.constant 2 : index
    %c0_50 = arith.constant 0 : index
    %141 = vector.load %arg8[%c0_48, %c2_49, %c0_50] : memref<6x8x128xf32, #tpu.memory_space<vmem>>, vector<6x1x128xf32>
    %142 = vector.shape_cast %141 : vector<6x1x128xf32> to vector<6x128xf32>
    %143 = arith.truncf %112 : vector<6x32xf32> to vector<6x32xbf16>
    %cst_51 = arith.constant dense<0.000000e+00> : vector<6x128xf32>
    %144 = tpu.matmul %143, %1, %cst_51 {dimension_numbers = #tpu.dot_dimension_numbers<[1], [0], [0], [1], [0, 0, 1, 1], [], []>} : vector<6x32xbf16>, vector<32x128xbf16>, vector<6x128xf32> -> vector<6x128xf32>
    %145 = arith.addf %142, %144 : vector<6x128xf32>
    %146 = vector.extract_strided_slice %145 {offsets = [0, 0], sizes = [6, 32], strides = [1, 1]} : vector<6x128xf32> to vector<6x32xf32>
    %147 = arith.negf %146 : vector<6x32xf32>
    %148 = math.exp %147 : vector<6x32xf32>
    %cst_52 = arith.constant 1.000000e+00 : f32
    %149 = vector.broadcast %cst_52 : f32 to vector<6x32xf32>
    %150 = arith.addf %149, %148 : vector<6x32xf32>
    %151 = arith.divf %149, %150 : vector<6x32xf32>
    %152 = vector.extract_strided_slice %145 {offsets = [0, 32], sizes = [6, 32], strides = [1, 1]} : vector<6x128xf32> to vector<6x32xf32>
    %153 = arith.negf %152 : vector<6x32xf32>
    %154 = math.exp %153 : vector<6x32xf32>
    %cst_53 = arith.constant 1.000000e+00 : f32
    %155 = vector.broadcast %cst_53 : f32 to vector<6x32xf32>
    %156 = arith.addf %155, %154 : vector<6x32xf32>
    %157 = arith.divf %155, %156 : vector<6x32xf32>
    %158 = vector.extract_strided_slice %145 {offsets = [0, 64], sizes = [6, 32], strides = [1, 1]} : vector<6x128xf32> to vector<6x32xf32>
    %159 = math.tanh %158 : vector<6x32xf32>
    %160 = vector.extract_strided_slice %145 {offsets = [0, 96], sizes = [6, 32], strides = [1, 1]} : vector<6x128xf32> to vector<6x32xf32>
    %161 = arith.negf %160 : vector<6x32xf32>
    %162 = math.exp %161 : vector<6x32xf32>
    %cst_54 = arith.constant 1.000000e+00 : f32
    %163 = vector.broadcast %cst_54 : f32 to vector<6x32xf32>
    %164 = arith.addf %163, %162 : vector<6x32xf32>
    %165 = arith.divf %163, %164 : vector<6x32xf32>
    %166 = arith.mulf %157, %110 : vector<6x32xf32>
    %167 = arith.mulf %151, %159 : vector<6x32xf32>
    %168 = arith.addf %166, %167 : vector<6x32xf32>
    %169 = math.tanh %168 : vector<6x32xf32>
    %170 = arith.mulf %165, %169 : vector<6x32xf32>
    %171 = arith.mulf %66, %170 : vector<6x32xf32>
    %cst_55 = arith.constant dense<0.000000e+00> : vector<6xf32>
    %172 = vector.multi_reduction <add>, %171, %cst_55 [1] : vector<6x32xf32> to vector<6xf32>
    %173 = vector.shape_cast %172 : vector<6xf32> to vector<6x1xf32>
    %cst_56 = arith.constant 0.176776692 : f32
    %174 = vector.broadcast %cst_56 : f32 to vector<6x1xf32>
    %175 = arith.mulf %173, %174 : vector<6x1xf32>
    %176 = arith.mulf %112, %170 : vector<6x32xf32>
    %cst_57 = arith.constant dense<0.000000e+00> : vector<6xf32>
    %177 = vector.multi_reduction <add>, %176, %cst_57 [1] : vector<6x32xf32> to vector<6xf32>
    %178 = vector.shape_cast %177 : vector<6xf32> to vector<6x1xf32>
    %cst_58 = arith.constant 0.176776692 : f32
    %179 = vector.broadcast %cst_58 : f32 to vector<6x1xf32>
    %180 = arith.mulf %178, %179 : vector<6x1xf32>
    %181 = arith.mulf %170, %170 : vector<6x32xf32>
    %cst_59 = arith.constant dense<0.000000e+00> : vector<6xf32>
    %182 = vector.multi_reduction <add>, %181, %cst_59 [1] : vector<6x32xf32> to vector<6xf32>
    %183 = vector.shape_cast %182 : vector<6xf32> to vector<6x1xf32>
    %cst_60 = arith.constant 0.176776692 : f32
    %184 = vector.broadcast %cst_60 : f32 to vector<6x1xf32>
    %185 = arith.mulf %183, %184 : vector<6x1xf32>
    %186 = arith.maximumf %175, %180 : vector<6x1xf32>
    %187 = arith.maximumf %186, %185 : vector<6x1xf32>
    %188 = arith.subf %175, %187 : vector<6x1xf32>
    %189 = math.exp %188 : vector<6x1xf32>
    %190 = arith.subf %180, %187 : vector<6x1xf32>
    %191 = math.exp %190 : vector<6x1xf32>
    %192 = arith.subf %185, %187 : vector<6x1xf32>
    %193 = math.exp %192 : vector<6x1xf32>
    %194 = arith.addf %189, %191 : vector<6x1xf32>
    %195 = arith.addf %194, %193 : vector<6x1xf32>
    %196 = vector.broadcast %189 : vector<6x1xf32> to vector<6x32xf32>
    %197 = arith.mulf %196, %66 : vector<6x32xf32>
    %198 = vector.broadcast %191 : vector<6x1xf32> to vector<6x32xf32>
    %199 = arith.mulf %198, %112 : vector<6x32xf32>
    %200 = arith.addf %197, %199 : vector<6x32xf32>
    %201 = vector.broadcast %193 : vector<6x1xf32> to vector<6x32xf32>
    %202 = arith.mulf %201, %170 : vector<6x32xf32>
    %203 = arith.addf %200, %202 : vector<6x32xf32>
    %204 = tpu.reciprocal %195 {approx = true} : vector<6x1xf32> -> vector<6x1xf32>
    %205 = vector.broadcast %204 : vector<6x1xf32> to vector<6x32xf32>
    %206 = arith.mulf %203, %205 : vector<6x32xf32>
    %207 = arith.truncf %206 : vector<6x32xf32> to vector<6x32xbf16>
    %cst_61 = arith.constant dense<0.000000e+00> : vector<6x32xf32>
    %208 = tpu.matmul %207, %2, %cst_61 {dimension_numbers = #tpu.dot_dimension_numbers<[1], [0], [0], [1], [0, 0, 1, 1], [], []>} : vector<6x32xbf16>, vector<32x32xbf16>, vector<6x32xf32> -> vector<6x32xf32>
    %209 = arith.addf %208, %6 : vector<6x32xf32>
    %210 = math.tanh %209 : vector<6x32xf32>
    %c0_62 = arith.constant 0 : index
    %c3_63 = arith.constant 3 : index
    %c0_64 = arith.constant 0 : index
    %211 = vector.load %arg8[%c0_62, %c3_63, %c0_64] : memref<6x8x128xf32, #tpu.memory_space<vmem>>, vector<6x1x128xf32>
    %212 = vector.shape_cast %211 : vector<6x1x128xf32> to vector<6x128xf32>
    %213 = arith.truncf %170 : vector<6x32xf32> to vector<6x32xbf16>
    %cst_65 = arith.constant dense<0.000000e+00> : vector<6x128xf32>
    %214 = tpu.matmul %213, %1, %cst_65 {dimension_numbers = #tpu.dot_dimension_numbers<[1], [0], [0], [1], [0, 0, 1, 1], [], []>} : vector<6x32xbf16>, vector<32x128xbf16>, vector<6x128xf32> -> vector<6x128xf32>
    %215 = arith.addf %212, %214 : vector<6x128xf32>
    %216 = vector.extract_strided_slice %215 {offsets = [0, 0], sizes = [6, 32], strides = [1, 1]} : vector<6x128xf32> to vector<6x32xf32>
    %217 = arith.negf %216 : vector<6x32xf32>
    %218 = math.exp %217 : vector<6x32xf32>
    %cst_66 = arith.constant 1.000000e+00 : f32
    %219 = vector.broadcast %cst_66 : f32 to vector<6x32xf32>
    %220 = arith.addf %219, %218 : vector<6x32xf32>
    %221 = arith.divf %219, %220 : vector<6x32xf32>
    %222 = vector.extract_strided_slice %215 {offsets = [0, 32], sizes = [6, 32], strides = [1, 1]} : vector<6x128xf32> to vector<6x32xf32>
    %223 = arith.negf %222 : vector<6x32xf32>
    %224 = math.exp %223 : vector<6x32xf32>
    %cst_67 = arith.constant 1.000000e+00 : f32
    %225 = vector.broadcast %cst_67 : f32 to vector<6x32xf32>
    %226 = arith.addf %225, %224 : vector<6x32xf32>
    %227 = arith.divf %225, %226 : vector<6x32xf32>
    %228 = vector.extract_strided_slice %215 {offsets = [0, 64], sizes = [6, 32], strides = [1, 1]} : vector<6x128xf32> to vector<6x32xf32>
    %229 = math.tanh %228 : vector<6x32xf32>
    %230 = vector.extract_strided_slice %215 {offsets = [0, 96], sizes = [6, 32], strides = [1, 1]} : vector<6x128xf32> to vector<6x32xf32>
    %231 = arith.negf %230 : vector<6x32xf32>
    %232 = math.exp %231 : vector<6x32xf32>
    %cst_68 = arith.constant 1.000000e+00 : f32
    %233 = vector.broadcast %cst_68 : f32 to vector<6x32xf32>
    %234 = arith.addf %233, %232 : vector<6x32xf32>
    %235 = arith.divf %233, %234 : vector<6x32xf32>
    %236 = arith.mulf %227, %168 : vector<6x32xf32>
    %237 = arith.mulf %221, %229 : vector<6x32xf32>
    %238 = arith.addf %236, %237 : vector<6x32xf32>
    %239 = math.tanh %238 : vector<6x32xf32>
    %240 = arith.mulf %235, %239 : vector<6x32xf32>
    %241 = arith.mulf %112, %240 : vector<6x32xf32>
    %cst_69 = arith.constant dense<0.000000e+00> : vector<6xf32>
    %242 = vector.multi_reduction <add>, %241, %cst_69 [1] : vector<6x32xf32> to vector<6xf32>
    %243 = vector.shape_cast %242 : vector<6xf32> to vector<6x1xf32>
    %cst_70 = arith.constant 0.176776692 : f32
    %244 = vector.broadcast %cst_70 : f32 to vector<6x1xf32>
    %245 = arith.mulf %243, %244 : vector<6x1xf32>
    %246 = arith.mulf %170, %240 : vector<6x32xf32>
    %cst_71 = arith.constant dense<0.000000e+00> : vector<6xf32>
    %247 = vector.multi_reduction <add>, %246, %cst_71 [1] : vector<6x32xf32> to vector<6xf32>
    %248 = vector.shape_cast %247 : vector<6xf32> to vector<6x1xf32>
    %cst_72 = arith.constant 0.176776692 : f32
    %249 = vector.broadcast %cst_72 : f32 to vector<6x1xf32>
    %250 = arith.mulf %248, %249 : vector<6x1xf32>
    %251 = arith.mulf %240, %240 : vector<6x32xf32>
    %cst_73 = arith.constant dense<0.000000e+00> : vector<6xf32>
    %252 = vector.multi_reduction <add>, %251, %cst_73 [1] : vector<6x32xf32> to vector<6xf32>
    %253 = vector.shape_cast %252 : vector<6xf32> to vector<6x1xf32>
    %cst_74 = arith.constant 0.176776692 : f32
    %254 = vector.broadcast %cst_74 : f32 to vector<6x1xf32>
    %255 = arith.mulf %253, %254 : vector<6x1xf32>
    %256 = arith.maximumf %245, %250 : vector<6x1xf32>
    %257 = arith.maximumf %256, %255 : vector<6x1xf32>
    %258 = arith.subf %245, %257 : vector<6x1xf32>
    %259 = math.exp %258 : vector<6x1xf32>
    %260 = arith.subf %250, %257 : vector<6x1xf32>
    %261 = math.exp %260 : vector<6x1xf32>
    %262 = arith.subf %255, %257 : vector<6x1xf32>
    %263 = math.exp %262 : vector<6x1xf32>
    %264 = arith.addf %259, %261 : vector<6x1xf32>
    %265 = arith.addf %264, %263 : vector<6x1xf32>
    %266 = vector.broadcast %259 : vector<6x1xf32> to vector<6x32xf32>
    %267 = arith.mulf %266, %112 : vector<6x32xf32>
    %268 = vector.broadcast %261 : vector<6x1xf32> to vector<6x32xf32>
    %269 = arith.mulf %268, %170 : vector<6x32xf32>
    %270 = arith.addf %267, %269 : vector<6x32xf32>
    %271 = vector.broadcast %263 : vector<6x1xf32> to vector<6x32xf32>
    %272 = arith.mulf %271, %240 : vector<6x32xf32>
    %273 = arith.addf %270, %272 : vector<6x32xf32>
    %274 = tpu.reciprocal %265 {approx = true} : vector<6x1xf32> -> vector<6x1xf32>
    %275 = vector.broadcast %274 : vector<6x1xf32> to vector<6x32xf32>
    %276 = arith.mulf %273, %275 : vector<6x32xf32>
    %277 = arith.truncf %276 : vector<6x32xf32> to vector<6x32xbf16>
    %cst_75 = arith.constant dense<0.000000e+00> : vector<6x32xf32>
    %278 = tpu.matmul %277, %2, %cst_75 {dimension_numbers = #tpu.dot_dimension_numbers<[1], [0], [0], [1], [0, 0, 1, 1], [], []>} : vector<6x32xbf16>, vector<32x32xbf16>, vector<6x32xf32> -> vector<6x32xf32>
    %279 = arith.addf %278, %6 : vector<6x32xf32>
    %280 = math.tanh %279 : vector<6x32xf32>
    %c0_76 = arith.constant 0 : index
    %c4_77 = arith.constant 4 : index
    %c0_78 = arith.constant 0 : index
    %281 = vector.load %arg8[%c0_76, %c4_77, %c0_78] : memref<6x8x128xf32, #tpu.memory_space<vmem>>, vector<6x1x128xf32>
    %282 = vector.shape_cast %281 : vector<6x1x128xf32> to vector<6x128xf32>
    %283 = arith.truncf %240 : vector<6x32xf32> to vector<6x32xbf16>
    %cst_79 = arith.constant dense<0.000000e+00> : vector<6x128xf32>
    %284 = tpu.matmul %283, %1, %cst_79 {dimension_numbers = #tpu.dot_dimension_numbers<[1], [0], [0], [1], [0, 0, 1, 1], [], []>} : vector<6x32xbf16>, vector<32x128xbf16>, vector<6x128xf32> -> vector<6x128xf32>
    %285 = arith.addf %282, %284 : vector<6x128xf32>
    %286 = vector.extract_strided_slice %285 {offsets = [0, 0], sizes = [6, 32], strides = [1, 1]} : vector<6x128xf32> to vector<6x32xf32>
    %287 = arith.negf %286 : vector<6x32xf32>
    %288 = math.exp %287 : vector<6x32xf32>
    %cst_80 = arith.constant 1.000000e+00 : f32
    %289 = vector.broadcast %cst_80 : f32 to vector<6x32xf32>
    %290 = arith.addf %289, %288 : vector<6x32xf32>
    %291 = arith.divf %289, %290 : vector<6x32xf32>
    %292 = vector.extract_strided_slice %285 {offsets = [0, 32], sizes = [6, 32], strides = [1, 1]} : vector<6x128xf32> to vector<6x32xf32>
    %293 = arith.negf %292 : vector<6x32xf32>
    %294 = math.exp %293 : vector<6x32xf32>
    %cst_81 = arith.constant 1.000000e+00 : f32
    %295 = vector.broadcast %cst_81 : f32 to vector<6x32xf32>
    %296 = arith.addf %295, %294 : vector<6x32xf32>
    %297 = arith.divf %295, %296 : vector<6x32xf32>
    %298 = vector.extract_strided_slice %285 {offsets = [0, 64], sizes = [6, 32], strides = [1, 1]} : vector<6x128xf32> to vector<6x32xf32>
    %299 = math.tanh %298 : vector<6x32xf32>
    %300 = vector.extract_strided_slice %285 {offsets = [0, 96], sizes = [6, 32], strides = [1, 1]} : vector<6x128xf32> to vector<6x32xf32>
    %301 = arith.negf %300 : vector<6x32xf32>
    %302 = math.exp %301 : vector<6x32xf32>
    %cst_82 = arith.constant 1.000000e+00 : f32
    %303 = vector.broadcast %cst_82 : f32 to vector<6x32xf32>
    %304 = arith.addf %303, %302 : vector<6x32xf32>
    %305 = arith.divf %303, %304 : vector<6x32xf32>
    %306 = arith.mulf %297, %238 : vector<6x32xf32>
    %307 = arith.mulf %291, %299 : vector<6x32xf32>
    %308 = arith.addf %306, %307 : vector<6x32xf32>
    %309 = math.tanh %308 : vector<6x32xf32>
    %310 = arith.mulf %305, %309 : vector<6x32xf32>
    %311 = arith.mulf %170, %310 : vector<6x32xf32>
    %cst_83 = arith.constant dense<0.000000e+00> : vector<6xf32>
    %312 = vector.multi_reduction <add>, %311, %cst_83 [1] : vector<6x32xf32> to vector<6xf32>
    %313 = vector.shape_cast %312 : vector<6xf32> to vector<6x1xf32>
    %cst_84 = arith.constant 0.176776692 : f32
    %314 = vector.broadcast %cst_84 : f32 to vector<6x1xf32>
    %315 = arith.mulf %313, %314 : vector<6x1xf32>
    %316 = arith.mulf %240, %310 : vector<6x32xf32>
    %cst_85 = arith.constant dense<0.000000e+00> : vector<6xf32>
    %317 = vector.multi_reduction <add>, %316, %cst_85 [1] : vector<6x32xf32> to vector<6xf32>
    %318 = vector.shape_cast %317 : vector<6xf32> to vector<6x1xf32>
    %cst_86 = arith.constant 0.176776692 : f32
    %319 = vector.broadcast %cst_86 : f32 to vector<6x1xf32>
    %320 = arith.mulf %318, %319 : vector<6x1xf32>
    %321 = arith.mulf %310, %310 : vector<6x32xf32>
    %cst_87 = arith.constant dense<0.000000e+00> : vector<6xf32>
    %322 = vector.multi_reduction <add>, %321, %cst_87 [1] : vector<6x32xf32> to vector<6xf32>
    %323 = vector.shape_cast %322 : vector<6xf32> to vector<6x1xf32>
    %cst_88 = arith.constant 0.176776692 : f32
    %324 = vector.broadcast %cst_88 : f32 to vector<6x1xf32>
    %325 = arith.mulf %323, %324 : vector<6x1xf32>
    %326 = arith.maximumf %315, %320 : vector<6x1xf32>
    %327 = arith.maximumf %326, %325 : vector<6x1xf32>
    %328 = arith.subf %315, %327 : vector<6x1xf32>
    %329 = math.exp %328 : vector<6x1xf32>
    %330 = arith.subf %320, %327 : vector<6x1xf32>
    %331 = math.exp %330 : vector<6x1xf32>
    %332 = arith.subf %325, %327 : vector<6x1xf32>
    %333 = math.exp %332 : vector<6x1xf32>
    %334 = arith.addf %329, %331 : vector<6x1xf32>
    %335 = arith.addf %334, %333 : vector<6x1xf32>
    %336 = vector.broadcast %329 : vector<6x1xf32> to vector<6x32xf32>
    %337 = arith.mulf %336, %170 : vector<6x32xf32>
    %338 = vector.broadcast %331 : vector<6x1xf32> to vector<6x32xf32>
    %339 = arith.mulf %338, %240 : vector<6x32xf32>
    %340 = arith.addf %337, %339 : vector<6x32xf32>
    %341 = vector.broadcast %333 : vector<6x1xf32> to vector<6x32xf32>
    %342 = arith.mulf %341, %310 : vector<6x32xf32>
    %343 = arith.addf %340, %342 : vector<6x32xf32>
    %344 = tpu.reciprocal %335 {approx = true} : vector<6x1xf32> -> vector<6x1xf32>
    %345 = vector.broadcast %344 : vector<6x1xf32> to vector<6x32xf32>
    %346 = arith.mulf %343, %345 : vector<6x32xf32>
    %347 = arith.truncf %346 : vector<6x32xf32> to vector<6x32xbf16>
    %cst_89 = arith.constant dense<0.000000e+00> : vector<6x32xf32>
    %348 = tpu.matmul %347, %2, %cst_89 {dimension_numbers = #tpu.dot_dimension_numbers<[1], [0], [0], [1], [0, 0, 1, 1], [], []>} : vector<6x32xbf16>, vector<32x32xbf16>, vector<6x32xf32> -> vector<6x32xf32>
    %349 = arith.addf %348, %6 : vector<6x32xf32>
    %350 = math.tanh %349 : vector<6x32xf32>
    %c0_90 = arith.constant 0 : index
    %c5_91 = arith.constant 5 : index
    %c0_92 = arith.constant 0 : index
    %351 = vector.load %arg8[%c0_90, %c5_91, %c0_92] : memref<6x8x128xf32, #tpu.memory_space<vmem>>, vector<6x1x128xf32>
    %352 = vector.shape_cast %351 : vector<6x1x128xf32> to vector<6x128xf32>
    %353 = arith.truncf %310 : vector<6x32xf32> to vector<6x32xbf16>
    %cst_93 = arith.constant dense<0.000000e+00> : vector<6x128xf32>
    %354 = tpu.matmul %353, %1, %cst_93 {dimension_numbers = #tpu.dot_dimension_numbers<[1], [0], [0], [1], [0, 0, 1, 1], [], []>} : vector<6x32xbf16>, vector<32x128xbf16>, vector<6x128xf32> -> vector<6x128xf32>
    %355 = arith.addf %352, %354 : vector<6x128xf32>
    %356 = vector.extract_strided_slice %355 {offsets = [0, 0], sizes = [6, 32], strides = [1, 1]} : vector<6x128xf32> to vector<6x32xf32>
    %357 = arith.negf %356 : vector<6x32xf32>
    %358 = math.exp %357 : vector<6x32xf32>
    %cst_94 = arith.constant 1.000000e+00 : f32
    %359 = vector.broadcast %cst_94 : f32 to vector<6x32xf32>
    %360 = arith.addf %359, %358 : vector<6x32xf32>
    %361 = arith.divf %359, %360 : vector<6x32xf32>
    %362 = vector.extract_strided_slice %355 {offsets = [0, 32], sizes = [6, 32], strides = [1, 1]} : vector<6x128xf32> to vector<6x32xf32>
    %363 = arith.negf %362 : vector<6x32xf32>
    %364 = math.exp %363 : vector<6x32xf32>
    %cst_95 = arith.constant 1.000000e+00 : f32
    %365 = vector.broadcast %cst_95 : f32 to vector<6x32xf32>
    %366 = arith.addf %365, %364 : vector<6x32xf32>
    %367 = arith.divf %365, %366 : vector<6x32xf32>
    %368 = vector.extract_strided_slice %355 {offsets = [0, 64], sizes = [6, 32], strides = [1, 1]} : vector<6x128xf32> to vector<6x32xf32>
    %369 = math.tanh %368 : vector<6x32xf32>
    %370 = vector.extract_strided_slice %355 {offsets = [0, 96], sizes = [6, 32], strides = [1, 1]} : vector<6x128xf32> to vector<6x32xf32>
    %371 = arith.negf %370 : vector<6x32xf32>
    %372 = math.exp %371 : vector<6x32xf32>
    %cst_96 = arith.constant 1.000000e+00 : f32
    %373 = vector.broadcast %cst_96 : f32 to vector<6x32xf32>
    %374 = arith.addf %373, %372 : vector<6x32xf32>
    %375 = arith.divf %373, %374 : vector<6x32xf32>
    %376 = arith.mulf %367, %308 : vector<6x32xf32>
    %377 = arith.mulf %361, %369 : vector<6x32xf32>
    %378 = arith.addf %376, %377 : vector<6x32xf32>
    %379 = math.tanh %378 : vector<6x32xf32>
    %380 = arith.mulf %375, %379 : vector<6x32xf32>
    %381 = arith.mulf %240, %380 : vector<6x32xf32>
    %cst_97 = arith.constant dense<0.000000e+00> : vector<6xf32>
    %382 = vector.multi_reduction <add>, %381, %cst_97 [1] : vector<6x32xf32> to vector<6xf32>
    %383 = vector.shape_cast %382 : vector<6xf32> to vector<6x1xf32>
    %cst_98 = arith.constant 0.176776692 : f32
    %384 = vector.broadcast %cst_98 : f32 to vector<6x1xf32>
    %385 = arith.mulf %383, %384 : vector<6x1xf32>
    %386 = arith.mulf %310, %380 : vector<6x32xf32>
    %cst_99 = arith.constant dense<0.000000e+00> : vector<6xf32>
    %387 = vector.multi_reduction <add>, %386, %cst_99 [1] : vector<6x32xf32> to vector<6xf32>
    %388 = vector.shape_cast %387 : vector<6xf32> to vector<6x1xf32>
    %cst_100 = arith.constant 0.176776692 : f32
    %389 = vector.broadcast %cst_100 : f32 to vector<6x1xf32>
    %390 = arith.mulf %388, %389 : vector<6x1xf32>
    %391 = arith.mulf %380, %380 : vector<6x32xf32>
    %cst_101 = arith.constant dense<0.000000e+00> : vector<6xf32>
    %392 = vector.multi_reduction <add>, %391, %cst_101 [1] : vector<6x32xf32> to vector<6xf32>
    %393 = vector.shape_cast %392 : vector<6xf32> to vector<6x1xf32>
    %cst_102 = arith.constant 0.176776692 : f32
    %394 = vector.broadcast %cst_102 : f32 to vector<6x1xf32>
    %395 = arith.mulf %393, %394 : vector<6x1xf32>
    %396 = arith.maximumf %385, %390 : vector<6x1xf32>
    %397 = arith.maximumf %396, %395 : vector<6x1xf32>
    %398 = arith.subf %385, %397 : vector<6x1xf32>
    %399 = math.exp %398 : vector<6x1xf32>
    %400 = arith.subf %390, %397 : vector<6x1xf32>
    %401 = math.exp %400 : vector<6x1xf32>
    %402 = arith.subf %395, %397 : vector<6x1xf32>
    %403 = math.exp %402 : vector<6x1xf32>
    %404 = arith.addf %399, %401 : vector<6x1xf32>
    %405 = arith.addf %404, %403 : vector<6x1xf32>
    %406 = vector.broadcast %399 : vector<6x1xf32> to vector<6x32xf32>
    %407 = arith.mulf %406, %240 : vector<6x32xf32>
    %408 = vector.broadcast %401 : vector<6x1xf32> to vector<6x32xf32>
    %409 = arith.mulf %408, %310 : vector<6x32xf32>
    %410 = arith.addf %407, %409 : vector<6x32xf32>
    %411 = vector.broadcast %403 : vector<6x1xf32> to vector<6x32xf32>
    %412 = arith.mulf %411, %380 : vector<6x32xf32>
    %413 = arith.addf %410, %412 : vector<6x32xf32>
    %414 = tpu.reciprocal %405 {approx = true} : vector<6x1xf32> -> vector<6x1xf32>
    %415 = vector.broadcast %414 : vector<6x1xf32> to vector<6x32xf32>
    %416 = arith.mulf %413, %415 : vector<6x32xf32>
    %417 = arith.truncf %416 : vector<6x32xf32> to vector<6x32xbf16>
    %cst_103 = arith.constant dense<0.000000e+00> : vector<6x32xf32>
    %418 = tpu.matmul %417, %2, %cst_103 {dimension_numbers = #tpu.dot_dimension_numbers<[1], [0], [0], [1], [0, 0, 1, 1], [], []>} : vector<6x32xbf16>, vector<32x32xbf16>, vector<6x32xf32> -> vector<6x32xf32>
    %419 = arith.addf %418, %6 : vector<6x32xf32>
    %420 = math.tanh %419 : vector<6x32xf32>
    %c0_104 = arith.constant 0 : index
    %c6 = arith.constant 6 : index
    %c0_105 = arith.constant 0 : index
    %421 = vector.load %arg8[%c0_104, %c6, %c0_105] : memref<6x8x128xf32, #tpu.memory_space<vmem>>, vector<6x1x128xf32>
    %422 = vector.shape_cast %421 : vector<6x1x128xf32> to vector<6x128xf32>
    %423 = arith.truncf %380 : vector<6x32xf32> to vector<6x32xbf16>
    %cst_106 = arith.constant dense<0.000000e+00> : vector<6x128xf32>
    %424 = tpu.matmul %423, %1, %cst_106 {dimension_numbers = #tpu.dot_dimension_numbers<[1], [0], [0], [1], [0, 0, 1, 1], [], []>} : vector<6x32xbf16>, vector<32x128xbf16>, vector<6x128xf32> -> vector<6x128xf32>
    %425 = arith.addf %422, %424 : vector<6x128xf32>
    %426 = vector.extract_strided_slice %425 {offsets = [0, 0], sizes = [6, 32], strides = [1, 1]} : vector<6x128xf32> to vector<6x32xf32>
    %427 = arith.negf %426 : vector<6x32xf32>
    %428 = math.exp %427 : vector<6x32xf32>
    %cst_107 = arith.constant 1.000000e+00 : f32
    %429 = vector.broadcast %cst_107 : f32 to vector<6x32xf32>
    %430 = arith.addf %429, %428 : vector<6x32xf32>
    %431 = arith.divf %429, %430 : vector<6x32xf32>
    %432 = vector.extract_strided_slice %425 {offsets = [0, 32], sizes = [6, 32], strides = [1, 1]} : vector<6x128xf32> to vector<6x32xf32>
    %433 = arith.negf %432 : vector<6x32xf32>
    %434 = math.exp %433 : vector<6x32xf32>
    %cst_108 = arith.constant 1.000000e+00 : f32
    %435 = vector.broadcast %cst_108 : f32 to vector<6x32xf32>
    %436 = arith.addf %435, %434 : vector<6x32xf32>
    %437 = arith.divf %435, %436 : vector<6x32xf32>
    %438 = vector.extract_strided_slice %425 {offsets = [0, 64], sizes = [6, 32], strides = [1, 1]} : vector<6x128xf32> to vector<6x32xf32>
    %439 = math.tanh %438 : vector<6x32xf32>
    %440 = vector.extract_strided_slice %425 {offsets = [0, 96], sizes = [6, 32], strides = [1, 1]} : vector<6x128xf32> to vector<6x32xf32>
    %441 = arith.negf %440 : vector<6x32xf32>
    %442 = math.exp %441 : vector<6x32xf32>
    %cst_109 = arith.constant 1.000000e+00 : f32
    %443 = vector.broadcast %cst_109 : f32 to vector<6x32xf32>
    %444 = arith.addf %443, %442 : vector<6x32xf32>
    %445 = arith.divf %443, %444 : vector<6x32xf32>
    %446 = arith.mulf %437, %378 : vector<6x32xf32>
    %447 = arith.mulf %431, %439 : vector<6x32xf32>
    %448 = arith.addf %446, %447 : vector<6x32xf32>
    %449 = math.tanh %448 : vector<6x32xf32>
    %450 = arith.mulf %445, %449 : vector<6x32xf32>
    %451 = arith.mulf %310, %450 : vector<6x32xf32>
    %cst_110 = arith.constant dense<0.000000e+00> : vector<6xf32>
    %452 = vector.multi_reduction <add>, %451, %cst_110 [1] : vector<6x32xf32> to vector<6xf32>
    %453 = vector.shape_cast %452 : vector<6xf32> to vector<6x1xf32>
    %cst_111 = arith.constant 0.176776692 : f32
    %454 = vector.broadcast %cst_111 : f32 to vector<6x1xf32>
    %455 = arith.mulf %453, %454 : vector<6x1xf32>
    %456 = arith.mulf %380, %450 : vector<6x32xf32>
    %cst_112 = arith.constant dense<0.000000e+00> : vector<6xf32>
    %457 = vector.multi_reduction <add>, %456, %cst_112 [1] : vector<6x32xf32> to vector<6xf32>
    %458 = vector.shape_cast %457 : vector<6xf32> to vector<6x1xf32>
    %cst_113 = arith.constant 0.176776692 : f32
    %459 = vector.broadcast %cst_113 : f32 to vector<6x1xf32>
    %460 = arith.mulf %458, %459 : vector<6x1xf32>
    %461 = arith.mulf %450, %450 : vector<6x32xf32>
    %cst_114 = arith.constant dense<0.000000e+00> : vector<6xf32>
    %462 = vector.multi_reduction <add>, %461, %cst_114 [1] : vector<6x32xf32> to vector<6xf32>
    %463 = vector.shape_cast %462 : vector<6xf32> to vector<6x1xf32>
    %cst_115 = arith.constant 0.176776692 : f32
    %464 = vector.broadcast %cst_115 : f32 to vector<6x1xf32>
    %465 = arith.mulf %463, %464 : vector<6x1xf32>
    %466 = arith.maximumf %455, %460 : vector<6x1xf32>
    %467 = arith.maximumf %466, %465 : vector<6x1xf32>
    %468 = arith.subf %455, %467 : vector<6x1xf32>
    %469 = math.exp %468 : vector<6x1xf32>
    %470 = arith.subf %460, %467 : vector<6x1xf32>
    %471 = math.exp %470 : vector<6x1xf32>
    %472 = arith.subf %465, %467 : vector<6x1xf32>
    %473 = math.exp %472 : vector<6x1xf32>
    %474 = arith.addf %469, %471 : vector<6x1xf32>
    %475 = arith.addf %474, %473 : vector<6x1xf32>
    %476 = vector.broadcast %469 : vector<6x1xf32> to vector<6x32xf32>
    %477 = arith.mulf %476, %310 : vector<6x32xf32>
    %478 = vector.broadcast %471 : vector<6x1xf32> to vector<6x32xf32>
    %479 = arith.mulf %478, %380 : vector<6x32xf32>
    %480 = arith.addf %477, %479 : vector<6x32xf32>
    %481 = vector.broadcast %473 : vector<6x1xf32> to vector<6x32xf32>
    %482 = arith.mulf %481, %450 : vector<6x32xf32>
    %483 = arith.addf %480, %482 : vector<6x32xf32>
    %484 = tpu.reciprocal %475 {approx = true} : vector<6x1xf32> -> vector<6x1xf32>
    %485 = vector.broadcast %484 : vector<6x1xf32> to vector<6x32xf32>
    %486 = arith.mulf %483, %485 : vector<6x32xf32>
    %487 = arith.truncf %486 : vector<6x32xf32> to vector<6x32xbf16>
    %cst_116 = arith.constant dense<0.000000e+00> : vector<6x32xf32>
    %488 = tpu.matmul %487, %2, %cst_116 {dimension_numbers = #tpu.dot_dimension_numbers<[1], [0], [0], [1], [0, 0, 1, 1], [], []>} : vector<6x32xbf16>, vector<32x32xbf16>, vector<6x32xf32> -> vector<6x32xf32>
    %489 = arith.addf %488, %6 : vector<6x32xf32>
    %490 = math.tanh %489 : vector<6x32xf32>
    %c0_117 = arith.constant 0 : index
    %c7 = arith.constant 7 : index
    %c0_118 = arith.constant 0 : index
    %491 = vector.load %arg8[%c0_117, %c7, %c0_118] : memref<6x8x128xf32, #tpu.memory_space<vmem>>, vector<6x1x128xf32>
    %492 = vector.shape_cast %491 : vector<6x1x128xf32> to vector<6x128xf32>
    %493 = arith.truncf %450 : vector<6x32xf32> to vector<6x32xbf16>
    %cst_119 = arith.constant dense<0.000000e+00> : vector<6x128xf32>
    %494 = tpu.matmul %493, %1, %cst_119 {dimension_numbers = #tpu.dot_dimension_numbers<[1], [0], [0], [1], [0, 0, 1, 1], [], []>} : vector<6x32xbf16>, vector<32x128xbf16>, vector<6x128xf32> -> vector<6x128xf32>
    %495 = arith.addf %492, %494 : vector<6x128xf32>
    %496 = vector.extract_strided_slice %495 {offsets = [0, 0], sizes = [6, 32], strides = [1, 1]} : vector<6x128xf32> to vector<6x32xf32>
    %497 = arith.negf %496 : vector<6x32xf32>
    %498 = math.exp %497 : vector<6x32xf32>
    %cst_120 = arith.constant 1.000000e+00 : f32
    %499 = vector.broadcast %cst_120 : f32 to vector<6x32xf32>
    %500 = arith.addf %499, %498 : vector<6x32xf32>
    %501 = arith.divf %499, %500 : vector<6x32xf32>
    %502 = vector.extract_strided_slice %495 {offsets = [0, 32], sizes = [6, 32], strides = [1, 1]} : vector<6x128xf32> to vector<6x32xf32>
    %503 = arith.negf %502 : vector<6x32xf32>
    %504 = math.exp %503 : vector<6x32xf32>
    %cst_121 = arith.constant 1.000000e+00 : f32
    %505 = vector.broadcast %cst_121 : f32 to vector<6x32xf32>
    %506 = arith.addf %505, %504 : vector<6x32xf32>
    %507 = arith.divf %505, %506 : vector<6x32xf32>
    %508 = vector.extract_strided_slice %495 {offsets = [0, 64], sizes = [6, 32], strides = [1, 1]} : vector<6x128xf32> to vector<6x32xf32>
    %509 = math.tanh %508 : vector<6x32xf32>
    %510 = vector.extract_strided_slice %495 {offsets = [0, 96], sizes = [6, 32], strides = [1, 1]} : vector<6x128xf32> to vector<6x32xf32>
    %511 = arith.negf %510 : vector<6x32xf32>
    %512 = math.exp %511 : vector<6x32xf32>
    %cst_122 = arith.constant 1.000000e+00 : f32
    %513 = vector.broadcast %cst_122 : f32 to vector<6x32xf32>
    %514 = arith.addf %513, %512 : vector<6x32xf32>
    %515 = arith.divf %513, %514 : vector<6x32xf32>
    %516 = arith.mulf %507, %448 : vector<6x32xf32>
    %517 = arith.mulf %501, %509 : vector<6x32xf32>
    %518 = arith.addf %516, %517 : vector<6x32xf32>
    %519 = math.tanh %518 : vector<6x32xf32>
    %520 = arith.mulf %515, %519 : vector<6x32xf32>
    %521 = arith.mulf %380, %520 : vector<6x32xf32>
    %cst_123 = arith.constant dense<0.000000e+00> : vector<6xf32>
    %522 = vector.multi_reduction <add>, %521, %cst_123 [1] : vector<6x32xf32> to vector<6xf32>
    %523 = vector.shape_cast %522 : vector<6xf32> to vector<6x1xf32>
    %cst_124 = arith.constant 0.176776692 : f32
    %524 = vector.broadcast %cst_124 : f32 to vector<6x1xf32>
    %525 = arith.mulf %523, %524 : vector<6x1xf32>
    %526 = arith.mulf %450, %520 : vector<6x32xf32>
    %cst_125 = arith.constant dense<0.000000e+00> : vector<6xf32>
    %527 = vector.multi_reduction <add>, %526, %cst_125 [1] : vector<6x32xf32> to vector<6xf32>
    %528 = vector.shape_cast %527 : vector<6xf32> to vector<6x1xf32>
    %cst_126 = arith.constant 0.176776692 : f32
    %529 = vector.broadcast %cst_126 : f32 to vector<6x1xf32>
    %530 = arith.mulf %528, %529 : vector<6x1xf32>
    %531 = arith.mulf %520, %520 : vector<6x32xf32>
    %cst_127 = arith.constant dense<0.000000e+00> : vector<6xf32>
    %532 = vector.multi_reduction <add>, %531, %cst_127 [1] : vector<6x32xf32> to vector<6xf32>
    %533 = vector.shape_cast %532 : vector<6xf32> to vector<6x1xf32>
    %cst_128 = arith.constant 0.176776692 : f32
    %534 = vector.broadcast %cst_128 : f32 to vector<6x1xf32>
    %535 = arith.mulf %533, %534 : vector<6x1xf32>
    %536 = arith.maximumf %525, %530 : vector<6x1xf32>
    %537 = arith.maximumf %536, %535 : vector<6x1xf32>
    %538 = arith.subf %525, %537 : vector<6x1xf32>
    %539 = math.exp %538 : vector<6x1xf32>
    %540 = arith.subf %530, %537 : vector<6x1xf32>
    %541 = math.exp %540 : vector<6x1xf32>
    %542 = arith.subf %535, %537 : vector<6x1xf32>
    %543 = math.exp %542 : vector<6x1xf32>
    %544 = arith.addf %539, %541 : vector<6x1xf32>
    %545 = arith.addf %544, %543 : vector<6x1xf32>
    %546 = vector.broadcast %539 : vector<6x1xf32> to vector<6x32xf32>
    %547 = arith.mulf %546, %380 : vector<6x32xf32>
    %548 = vector.broadcast %541 : vector<6x1xf32> to vector<6x32xf32>
    %549 = arith.mulf %548, %450 : vector<6x32xf32>
    %550 = arith.addf %547, %549 : vector<6x32xf32>
    %551 = vector.broadcast %543 : vector<6x1xf32> to vector<6x32xf32>
    %552 = arith.mulf %551, %520 : vector<6x32xf32>
    %553 = arith.addf %550, %552 : vector<6x32xf32>
    %554 = tpu.reciprocal %545 {approx = true} : vector<6x1xf32> -> vector<6x1xf32>
    %555 = vector.broadcast %554 : vector<6x1xf32> to vector<6x32xf32>
    %556 = arith.mulf %553, %555 : vector<6x32xf32>
    %557 = arith.truncf %556 : vector<6x32xf32> to vector<6x32xbf16>
    %cst_129 = arith.constant dense<0.000000e+00> : vector<6x32xf32>
    %558 = tpu.matmul %557, %2, %cst_129 {dimension_numbers = #tpu.dot_dimension_numbers<[1], [0], [0], [1], [0, 0, 1, 1], [], []>} : vector<6x32xbf16>, vector<32x32xbf16>, vector<6x32xf32> -> vector<6x32xf32>
    %559 = arith.addf %558, %6 : vector<6x32xf32>
    %560 = math.tanh %559 : vector<6x32xf32>
    %561 = tpu.concatenate %82, %140, %210, %280, %350, %420, %490, %560 in 1 : vector<6x32xf32>, vector<6x32xf32>, vector<6x32xf32>, vector<6x32xf32>, vector<6x32xf32>, vector<6x32xf32>, vector<6x32xf32>, vector<6x32xf32> -> vector<6x256xf32>
    %c0_130 = arith.constant 0 : index
    %c0_131 = arith.constant 0 : index
    %c0_132 = arith.constant 0 : index
    %562 = vector.load %arg7[%c0_130, %c0_131, %c0_132] : memref<1x6x256xf32, #tpu.memory_space<vmem>>, vector<1x6x256xf32>
    %563 = vector.shape_cast %562 : vector<1x6x256xf32> to vector<6x256xf32>
    %564 = vector.shape_cast %561 : vector<6x256xf32> to vector<1x6x256xf32>
    tpu.vector_store %arg7[%c0_130, %c0_131, %c0_132], %564 {strides = array<i32>} : memref<1x6x256xf32, #tpu.memory_space<vmem>>, vector<1x6x256xf32>,
    return
  }
  func.func @transform_0(%arg0: i32) -> (i32, i32) {
    %c0_i32 = arith.constant 0 : i32
    %c0_i32_0 = arith.constant 0 : i32
    return %arg0, %c0_i32 : i32, i32
  }
  func.func @transform_1(%arg0: i32) -> (i32, i32) {
    %c0_i32 = arith.constant 0 : i32
    %c0_i32_0 = arith.constant 0 : i32
    %c0_i32_1 = arith.constant 0 : i32
    return %c0_i32, %c0_i32_0 : i32, i32
  }
  func.func @transform_2(%arg0: i32) -> (i32, i32) {
    %c0_i32 = arith.constant 0 : i32
    %c0_i32_0 = arith.constant 0 : i32
    %c0_i32_1 = arith.constant 0 : i32
    return %c0_i32, %c0_i32_0 : i32, i32
  }
  func.func @transform_3(%arg0: i32) -> (i32, i32) {
    %c0_i32 = arith.constant 0 : i32
    %c0_i32_0 = arith.constant 0 : i32
    %c0_i32_1 = arith.constant 0 : i32
    return %c0_i32, %c0_i32_0 : i32, i32
  }
  func.func @transform_4(%arg0: i32) -> (i32, i32) {
    %c0_i32 = arith.constant 0 : i32
    %c0_i32_0 = arith.constant 0 : i32
    %c0_i32_1 = arith.constant 0 : i32
    return %c0_i32, %c0_i32_0 : i32, i32
  }
  func.func @transform_5(%arg0: i32) -> (i32, i32) {
    %c0_i32 = arith.constant 0 : i32
    %c0_i32_0 = arith.constant 0 : i32
    %c0_i32_1 = arith.constant 0 : i32
    return %c0_i32, %c0_i32_0 : i32, i32
  }
  func.func @transform_6(%arg0: i32) -> (i32, i32, i32) {
    %c0_i32 = arith.constant 0 : i32
    %c0_i32_0 = arith.constant 0 : i32
    %c0_i32_1 = arith.constant 0 : i32
    return %arg0, %c0_i32, %c0_i32_0 : i32, i32, i32
  }
}

module attributes {stable_mosaic.version = 11 : i64} {
  func.func @_attn_rnn_kernel(%arg0: i32, %arg1: memref<12x256xbf16, #tpu.memory_space<vmem>>, %arg2: memref<256x128xbf16, #tpu.memory_space<vmem>>, %arg3: memref<32x128xbf16, #tpu.memory_space<vmem>>, %arg4: memref<1x128xf32, #tpu.memory_space<vmem>>, %arg5: memref<32x32xbf16, #tpu.memory_space<vmem>>, %arg6: memref<1x32xf32, #tpu.memory_space<vmem>>, %arg7: memref<1x2x192xf32, #tpu.memory_space<vmem>>, %arg8: memref<2x6x128xf32, #tpu.memory_space<vmem>>) attributes {dimension_semantics = [#tpu.dimension_semantics<parallel>], iteration_bounds = array<i64: 1>, scalar_prefetch = 0 : i64, scratch_operands = 1 : i64, tpu.core_type = #tpu.core_type<tc>, window_params = [{transform_indices = @transform_0, window_bounds = array<i64: 12, 256>}, {pipeline_mode = #tpu.pipeline_mode<synchronous>, transform_indices = @transform_1, window_bounds = array<i64: 256, 128>}, {pipeline_mode = #tpu.pipeline_mode<synchronous>, transform_indices = @transform_2, window_bounds = array<i64: 32, 128>}, {pipeline_mode = #tpu.pipeline_mode<synchronous>, transform_indices = @transform_3, window_bounds = array<i64: 1, 128>}, {pipeline_mode = #tpu.pipeline_mode<synchronous>, transform_indices = @transform_4, window_bounds = array<i64: 32, 32>}, {pipeline_mode = #tpu.pipeline_mode<synchronous>, transform_indices = @transform_5, window_bounds = array<i64: 1, 32>}, {transform_indices = @transform_6, window_bounds = array<i64: 1, 2, 192>}]} {
    %c0 = arith.constant 0 : index
    %c0_0 = arith.constant 0 : index
    %0 = vector.load %arg2[%c0, %c0_0] : memref<256x128xbf16, #tpu.memory_space<vmem>>, vector<256x128xbf16>
    %c0_1 = arith.constant 0 : index
    %c0_2 = arith.constant 0 : index
    %1 = vector.load %arg3[%c0_1, %c0_2] : memref<32x128xbf16, #tpu.memory_space<vmem>>, vector<32x128xbf16>
    %c0_3 = arith.constant 0 : index
    %c0_4 = arith.constant 0 : index
    %2 = vector.load %arg5[%c0_3, %c0_4] : memref<32x32xbf16, #tpu.memory_space<vmem>>, vector<32x32xbf16>
    %c0_5 = arith.constant 0 : index
    %c0_6 = arith.constant 0 : index
    %3 = vector.load %arg4[%c0_5, %c0_6] : memref<1x128xf32, #tpu.memory_space<vmem>>, vector<1x128xf32>
    %c0_7 = arith.constant 0 : index
    %c0_8 = arith.constant 0 : index
    %4 = vector.load %arg6[%c0_7, %c0_8] : memref<1x32xf32, #tpu.memory_space<vmem>>, vector<1x32xf32>
    %5 = vector.shape_cast %4 : vector<1x32xf32> to vector<1x32xf32>
    %6 = vector.broadcast %5 : vector<1x32xf32> to vector<2x32xf32>
    %c0_9 = arith.constant 0 : index
    %c0_10 = arith.constant 0 : index
    %7 = vector.load %arg1[%c0_9, %c0_10] : memref<12x256xbf16, #tpu.memory_space<vmem>>, vector<12x256xbf16>
    %cst = arith.constant dense<0.000000e+00> : vector<12x128xf32>
    %8 = tpu.matmul %7, %0, %cst {dimension_numbers = #tpu.dot_dimension_numbers<[1], [0], [0], [1], [0, 0, 1, 1], [], []>} : vector<12x256xbf16>, vector<256x128xbf16>, vector<12x128xf32> -> vector<12x128xf32>
    %9 = vector.broadcast %3 : vector<1x128xf32> to vector<12x128xf32>
    %10 = arith.addf %8, %9 : vector<12x128xf32>
    %11 = vector.extract_strided_slice %10 {offsets = [0, 0], sizes = [6, 128], strides = [1, 1]} : vector<12x128xf32> to vector<6x128xf32>
    %c0_11 = arith.constant 0 : index
    %c0_12 = arith.constant 0 : index
    %c0_13 = arith.constant 0 : index
    %12 = vector.load %arg8[%c0_11, %c0_12, %c0_13] : memref<2x6x128xf32, #tpu.memory_space<vmem>>, vector<1x6x128xf32>
    %13 = vector.shape_cast %12 : vector<1x6x128xf32> to vector<6x128xf32>
    %14 = vector.shape_cast %11 : vector<6x128xf32> to vector<1x6x128xf32>
    tpu.vector_store %arg8[%c0_11, %c0_12, %c0_13], %14 {strides = array<i32>} : memref<2x6x128xf32, #tpu.memory_space<vmem>>, vector<1x6x128xf32>,
    %15 = vector.extract_strided_slice %10 {offsets = [6, 0], sizes = [6, 128], strides = [1, 1]} : vector<12x128xf32> to vector<6x128xf32>
    %c1 = arith.constant 1 : index
    %c0_14 = arith.constant 0 : index
    %c0_15 = arith.constant 0 : index
    %16 = vector.load %arg8[%c1, %c0_14, %c0_15] : memref<2x6x128xf32, #tpu.memory_space<vmem>>, vector<1x6x128xf32>
    %17 = vector.shape_cast %16 : vector<1x6x128xf32> to vector<6x128xf32>
    %18 = vector.shape_cast %15 : vector<6x128xf32> to vector<1x6x128xf32>
    tpu.vector_store %arg8[%c1, %c0_14, %c0_15], %18 {strides = array<i32>} : memref<2x6x128xf32, #tpu.memory_space<vmem>>, vector<1x6x128xf32>,
    %cst_16 = arith.constant 0.000000e+00 : f32
    %19 = vector.broadcast %cst_16 : f32 to vector<2x32xf32>
    %cst_17 = arith.constant 0.000000e+00 : f32
    %20 = vector.broadcast %cst_17 : f32 to vector<2x32xf32>
    %c0_18 = arith.constant 0 : index
    %c0_19 = arith.constant 0 : index
    %c0_20 = arith.constant 0 : index
    %21 = vector.load %arg8[%c0_18, %c0_19, %c0_20] : memref<2x6x128xf32, #tpu.memory_space<vmem>>, vector<2x1x128xf32>
    %22 = vector.shape_cast %21 : vector<2x1x128xf32> to vector<2x128xf32>
    %23 = arith.truncf %19 : vector<2x32xf32> to vector<2x32xbf16>
    %cst_21 = arith.constant dense<0.000000e+00> : vector<2x128xf32>
    %24 = tpu.matmul %23, %1, %cst_21 {dimension_numbers = #tpu.dot_dimension_numbers<[1], [0], [0], [1], [0, 0, 1, 1], [], []>} : vector<2x32xbf16>, vector<32x128xbf16>, vector<2x128xf32> -> vector<2x128xf32>
    %25 = arith.addf %22, %24 : vector<2x128xf32>
    %26 = vector.extract_strided_slice %25 {offsets = [0, 0], sizes = [2, 32], strides = [1, 1]} : vector<2x128xf32> to vector<2x32xf32>
    %27 = arith.negf %26 : vector<2x32xf32>
    %28 = math.exp %27 : vector<2x32xf32>
    %cst_22 = arith.constant 1.000000e+00 : f32
    %29 = vector.broadcast %cst_22 : f32 to vector<2x32xf32>
    %30 = arith.addf %29, %28 : vector<2x32xf32>
    %31 = arith.divf %29, %30 : vector<2x32xf32>
    %32 = vector.extract_strided_slice %25 {offsets = [0, 32], sizes = [2, 32], strides = [1, 1]} : vector<2x128xf32> to vector<2x32xf32>
    %33 = arith.negf %32 : vector<2x32xf32>
    %34 = math.exp %33 : vector<2x32xf32>
    %cst_23 = arith.constant 1.000000e+00 : f32
    %35 = vector.broadcast %cst_23 : f32 to vector<2x32xf32>
    %36 = arith.addf %35, %34 : vector<2x32xf32>
    %37 = arith.divf %35, %36 : vector<2x32xf32>
    %38 = vector.extract_strided_slice %25 {offsets = [0, 64], sizes = [2, 32], strides = [1, 1]} : vector<2x128xf32> to vector<2x32xf32>
    %39 = math.tanh %38 : vector<2x32xf32>
    %40 = vector.extract_strided_slice %25 {offsets = [0, 96], sizes = [2, 32], strides = [1, 1]} : vector<2x128xf32> to vector<2x32xf32>
    %41 = arith.negf %40 : vector<2x32xf32>
    %42 = math.exp %41 : vector<2x32xf32>
    %cst_24 = arith.constant 1.000000e+00 : f32
    %43 = vector.broadcast %cst_24 : f32 to vector<2x32xf32>
    %44 = arith.addf %43, %42 : vector<2x32xf32>
    %45 = arith.divf %43, %44 : vector<2x32xf32>
    %46 = arith.mulf %37, %20 : vector<2x32xf32>
    %47 = arith.mulf %31, %39 : vector<2x32xf32>
    %48 = arith.addf %46, %47 : vector<2x32xf32>
    %49 = math.tanh %48 : vector<2x32xf32>
    %50 = arith.mulf %45, %49 : vector<2x32xf32>
    %51 = arith.mulf %50, %50 : vector<2x32xf32>
    %cst_25 = arith.constant dense<0.000000e+00> : vector<2xf32>
    %52 = vector.multi_reduction <add>, %51, %cst_25 [1] : vector<2x32xf32> to vector<2xf32>
    %53 = vector.shape_cast %52 : vector<2xf32> to vector<2x1xf32>
    %cst_26 = arith.constant 0.176776692 : f32
    %54 = vector.broadcast %cst_26 : f32 to vector<2x1xf32>
    %55 = arith.mulf %53, %54 : vector<2x1xf32>
    %56 = arith.subf %55, %55 : vector<2x1xf32>
    %57 = math.exp %56 : vector<2x1xf32>
    %58 = vector.broadcast %57 : vector<2x1xf32> to vector<2x32xf32>
    %59 = arith.mulf %58, %50 : vector<2x32xf32>
    %60 = tpu.reciprocal %57 {approx = true} : vector<2x1xf32> -> vector<2x1xf32>
    %61 = vector.broadcast %60 : vector<2x1xf32> to vector<2x32xf32>
    %62 = arith.mulf %59, %61 : vector<2x32xf32>
    %63 = arith.truncf %62 : vector<2x32xf32> to vector<2x32xbf16>
    %cst_27 = arith.constant dense<0.000000e+00> : vector<2x32xf32>
    %64 = tpu.matmul %63, %2, %cst_27 {dimension_numbers = #tpu.dot_dimension_numbers<[1], [0], [0], [1], [0, 0, 1, 1], [], []>} : vector<2x32xbf16>, vector<32x32xbf16>, vector<2x32xf32> -> vector<2x32xf32>
    %65 = arith.addf %64, %6 : vector<2x32xf32>
    %66 = math.tanh %65 : vector<2x32xf32>
    %c0_28 = arith.constant 0 : index
    %c1_29 = arith.constant 1 : index
    %c0_30 = arith.constant 0 : index
    %67 = vector.load %arg8[%c0_28, %c1_29, %c0_30] : memref<2x6x128xf32, #tpu.memory_space<vmem>>, vector<2x1x128xf32>
    %68 = vector.shape_cast %67 : vector<2x1x128xf32> to vector<2x128xf32>
    %69 = arith.truncf %50 : vector<2x32xf32> to vector<2x32xbf16>
    %cst_31 = arith.constant dense<0.000000e+00> : vector<2x128xf32>
    %70 = tpu.matmul %69, %1, %cst_31 {dimension_numbers = #tpu.dot_dimension_numbers<[1], [0], [0], [1], [0, 0, 1, 1], [], []>} : vector<2x32xbf16>, vector<32x128xbf16>, vector<2x128xf32> -> vector<2x128xf32>
    %71 = arith.addf %68, %70 : vector<2x128xf32>
    %72 = vector.extract_strided_slice %71 {offsets = [0, 0], sizes = [2, 32], strides = [1, 1]} : vector<2x128xf32> to vector<2x32xf32>
    %73 = arith.negf %72 : vector<2x32xf32>
    %74 = math.exp %73 : vector<2x32xf32>
    %cst_32 = arith.constant 1.000000e+00 : f32
    %75 = vector.broadcast %cst_32 : f32 to vector<2x32xf32>
    %76 = arith.addf %75, %74 : vector<2x32xf32>
    %77 = arith.divf %75, %76 : vector<2x32xf32>
    %78 = vector.extract_strided_slice %71 {offsets = [0, 32], sizes = [2, 32], strides = [1, 1]} : vector<2x128xf32> to vector<2x32xf32>
    %79 = arith.negf %78 : vector<2x32xf32>
    %80 = math.exp %79 : vector<2x32xf32>
    %cst_33 = arith.constant 1.000000e+00 : f32
    %81 = vector.broadcast %cst_33 : f32 to vector<2x32xf32>
    %82 = arith.addf %81, %80 : vector<2x32xf32>
    %83 = arith.divf %81, %82 : vector<2x32xf32>
    %84 = vector.extract_strided_slice %71 {offsets = [0, 64], sizes = [2, 32], strides = [1, 1]} : vector<2x128xf32> to vector<2x32xf32>
    %85 = math.tanh %84 : vector<2x32xf32>
    %86 = vector.extract_strided_slice %71 {offsets = [0, 96], sizes = [2, 32], strides = [1, 1]} : vector<2x128xf32> to vector<2x32xf32>
    %87 = arith.negf %86 : vector<2x32xf32>
    %88 = math.exp %87 : vector<2x32xf32>
    %cst_34 = arith.constant 1.000000e+00 : f32
    %89 = vector.broadcast %cst_34 : f32 to vector<2x32xf32>
    %90 = arith.addf %89, %88 : vector<2x32xf32>
    %91 = arith.divf %89, %90 : vector<2x32xf32>
    %92 = arith.mulf %83, %48 : vector<2x32xf32>
    %93 = arith.mulf %77, %85 : vector<2x32xf32>
    %94 = arith.addf %92, %93 : vector<2x32xf32>
    %95 = math.tanh %94 : vector<2x32xf32>
    %96 = arith.mulf %91, %95 : vector<2x32xf32>
    %97 = arith.mulf %50, %96 : vector<2x32xf32>
    %cst_35 = arith.constant dense<0.000000e+00> : vector<2xf32>
    %98 = vector.multi_reduction <add>, %97, %cst_35 [1] : vector<2x32xf32> to vector<2xf32>
    %99 = vector.shape_cast %98 : vector<2xf32> to vector<2x1xf32>
    %cst_36 = arith.constant 0.176776692 : f32
    %100 = vector.broadcast %cst_36 : f32 to vector<2x1xf32>
    %101 = arith.mulf %99, %100 : vector<2x1xf32>
    %102 = arith.mulf %96, %96 : vector<2x32xf32>
    %cst_37 = arith.constant dense<0.000000e+00> : vector<2xf32>
    %103 = vector.multi_reduction <add>, %102, %cst_37 [1] : vector<2x32xf32> to vector<2xf32>
    %104 = vector.shape_cast %103 : vector<2xf32> to vector<2x1xf32>
    %cst_38 = arith.constant 0.176776692 : f32
    %105 = vector.broadcast %cst_38 : f32 to vector<2x1xf32>
    %106 = arith.mulf %104, %105 : vector<2x1xf32>
    %107 = arith.maximumf %101, %106 : vector<2x1xf32>
    %108 = arith.subf %101, %107 : vector<2x1xf32>
    %109 = math.exp %108 : vector<2x1xf32>
    %110 = arith.subf %106, %107 : vector<2x1xf32>
    %111 = math.exp %110 : vector<2x1xf32>
    %112 = arith.addf %109, %111 : vector<2x1xf32>
    %113 = vector.broadcast %109 : vector<2x1xf32> to vector<2x32xf32>
    %114 = arith.mulf %113, %50 : vector<2x32xf32>
    %115 = vector.broadcast %111 : vector<2x1xf32> to vector<2x32xf32>
    %116 = arith.mulf %115, %96 : vector<2x32xf32>
    %117 = arith.addf %114, %116 : vector<2x32xf32>
    %118 = tpu.reciprocal %112 {approx = true} : vector<2x1xf32> -> vector<2x1xf32>
    %119 = vector.broadcast %118 : vector<2x1xf32> to vector<2x32xf32>
    %120 = arith.mulf %117, %119 : vector<2x32xf32>
    %121 = arith.truncf %120 : vector<2x32xf32> to vector<2x32xbf16>
    %cst_39 = arith.constant dense<0.000000e+00> : vector<2x32xf32>
    %122 = tpu.matmul %121, %2, %cst_39 {dimension_numbers = #tpu.dot_dimension_numbers<[1], [0], [0], [1], [0, 0, 1, 1], [], []>} : vector<2x32xbf16>, vector<32x32xbf16>, vector<2x32xf32> -> vector<2x32xf32>
    %123 = arith.addf %122, %6 : vector<2x32xf32>
    %124 = math.tanh %123 : vector<2x32xf32>
    %c0_40 = arith.constant 0 : index
    %c2 = arith.constant 2 : index
    %c0_41 = arith.constant 0 : index
    %125 = vector.load %arg8[%c0_40, %c2, %c0_41] : memref<2x6x128xf32, #tpu.memory_space<vmem>>, vector<2x1x128xf32>
    %126 = vector.shape_cast %125 : vector<2x1x128xf32> to vector<2x128xf32>
    %127 = arith.truncf %96 : vector<2x32xf32> to vector<2x32xbf16>
    %cst_42 = arith.constant dense<0.000000e+00> : vector<2x128xf32>
    %128 = tpu.matmul %127, %1, %cst_42 {dimension_numbers = #tpu.dot_dimension_numbers<[1], [0], [0], [1], [0, 0, 1, 1], [], []>} : vector<2x32xbf16>, vector<32x128xbf16>, vector<2x128xf32> -> vector<2x128xf32>
    %129 = arith.addf %126, %128 : vector<2x128xf32>
    %130 = vector.extract_strided_slice %129 {offsets = [0, 0], sizes = [2, 32], strides = [1, 1]} : vector<2x128xf32> to vector<2x32xf32>
    %131 = arith.negf %130 : vector<2x32xf32>
    %132 = math.exp %131 : vector<2x32xf32>
    %cst_43 = arith.constant 1.000000e+00 : f32
    %133 = vector.broadcast %cst_43 : f32 to vector<2x32xf32>
    %134 = arith.addf %133, %132 : vector<2x32xf32>
    %135 = arith.divf %133, %134 : vector<2x32xf32>
    %136 = vector.extract_strided_slice %129 {offsets = [0, 32], sizes = [2, 32], strides = [1, 1]} : vector<2x128xf32> to vector<2x32xf32>
    %137 = arith.negf %136 : vector<2x32xf32>
    %138 = math.exp %137 : vector<2x32xf32>
    %cst_44 = arith.constant 1.000000e+00 : f32
    %139 = vector.broadcast %cst_44 : f32 to vector<2x32xf32>
    %140 = arith.addf %139, %138 : vector<2x32xf32>
    %141 = arith.divf %139, %140 : vector<2x32xf32>
    %142 = vector.extract_strided_slice %129 {offsets = [0, 64], sizes = [2, 32], strides = [1, 1]} : vector<2x128xf32> to vector<2x32xf32>
    %143 = math.tanh %142 : vector<2x32xf32>
    %144 = vector.extract_strided_slice %129 {offsets = [0, 96], sizes = [2, 32], strides = [1, 1]} : vector<2x128xf32> to vector<2x32xf32>
    %145 = arith.negf %144 : vector<2x32xf32>
    %146 = math.exp %145 : vector<2x32xf32>
    %cst_45 = arith.constant 1.000000e+00 : f32
    %147 = vector.broadcast %cst_45 : f32 to vector<2x32xf32>
    %148 = arith.addf %147, %146 : vector<2x32xf32>
    %149 = arith.divf %147, %148 : vector<2x32xf32>
    %150 = arith.mulf %141, %94 : vector<2x32xf32>
    %151 = arith.mulf %135, %143 : vector<2x32xf32>
    %152 = arith.addf %150, %151 : vector<2x32xf32>
    %153 = math.tanh %152 : vector<2x32xf32>
    %154 = arith.mulf %149, %153 : vector<2x32xf32>
    %155 = arith.mulf %50, %154 : vector<2x32xf32>
    %cst_46 = arith.constant dense<0.000000e+00> : vector<2xf32>
    %156 = vector.multi_reduction <add>, %155, %cst_46 [1] : vector<2x32xf32> to vector<2xf32>
    %157 = vector.shape_cast %156 : vector<2xf32> to vector<2x1xf32>
    %cst_47 = arith.constant 0.176776692 : f32
    %158 = vector.broadcast %cst_47 : f32 to vector<2x1xf32>
    %159 = arith.mulf %157, %158 : vector<2x1xf32>
    %160 = arith.mulf %96, %154 : vector<2x32xf32>
    %cst_48 = arith.constant dense<0.000000e+00> : vector<2xf32>
    %161 = vector.multi_reduction <add>, %160, %cst_48 [1] : vector<2x32xf32> to vector<2xf32>
    %162 = vector.shape_cast %161 : vector<2xf32> to vector<2x1xf32>
    %cst_49 = arith.constant 0.176776692 : f32
    %163 = vector.broadcast %cst_49 : f32 to vector<2x1xf32>
    %164 = arith.mulf %162, %163 : vector<2x1xf32>
    %165 = arith.mulf %154, %154 : vector<2x32xf32>
    %cst_50 = arith.constant dense<0.000000e+00> : vector<2xf32>
    %166 = vector.multi_reduction <add>, %165, %cst_50 [1] : vector<2x32xf32> to vector<2xf32>
    %167 = vector.shape_cast %166 : vector<2xf32> to vector<2x1xf32>
    %cst_51 = arith.constant 0.176776692 : f32
    %168 = vector.broadcast %cst_51 : f32 to vector<2x1xf32>
    %169 = arith.mulf %167, %168 : vector<2x1xf32>
    %170 = arith.maximumf %159, %164 : vector<2x1xf32>
    %171 = arith.maximumf %170, %169 : vector<2x1xf32>
    %172 = arith.subf %159, %171 : vector<2x1xf32>
    %173 = math.exp %172 : vector<2x1xf32>
    %174 = arith.subf %164, %171 : vector<2x1xf32>
    %175 = math.exp %174 : vector<2x1xf32>
    %176 = arith.subf %169, %171 : vector<2x1xf32>
    %177 = math.exp %176 : vector<2x1xf32>
    %178 = arith.addf %173, %175 : vector<2x1xf32>
    %179 = arith.addf %178, %177 : vector<2x1xf32>
    %180 = vector.broadcast %173 : vector<2x1xf32> to vector<2x32xf32>
    %181 = arith.mulf %180, %50 : vector<2x32xf32>
    %182 = vector.broadcast %175 : vector<2x1xf32> to vector<2x32xf32>
    %183 = arith.mulf %182, %96 : vector<2x32xf32>
    %184 = arith.addf %181, %183 : vector<2x32xf32>
    %185 = vector.broadcast %177 : vector<2x1xf32> to vector<2x32xf32>
    %186 = arith.mulf %185, %154 : vector<2x32xf32>
    %187 = arith.addf %184, %186 : vector<2x32xf32>
    %188 = tpu.reciprocal %179 {approx = true} : vector<2x1xf32> -> vector<2x1xf32>
    %189 = vector.broadcast %188 : vector<2x1xf32> to vector<2x32xf32>
    %190 = arith.mulf %187, %189 : vector<2x32xf32>
    %191 = arith.truncf %190 : vector<2x32xf32> to vector<2x32xbf16>
    %cst_52 = arith.constant dense<0.000000e+00> : vector<2x32xf32>
    %192 = tpu.matmul %191, %2, %cst_52 {dimension_numbers = #tpu.dot_dimension_numbers<[1], [0], [0], [1], [0, 0, 1, 1], [], []>} : vector<2x32xbf16>, vector<32x32xbf16>, vector<2x32xf32> -> vector<2x32xf32>
    %193 = arith.addf %192, %6 : vector<2x32xf32>
    %194 = math.tanh %193 : vector<2x32xf32>
    %c0_53 = arith.constant 0 : index
    %c3 = arith.constant 3 : index
    %c0_54 = arith.constant 0 : index
    %195 = vector.load %arg8[%c0_53, %c3, %c0_54] : memref<2x6x128xf32, #tpu.memory_space<vmem>>, vector<2x1x128xf32>
    %196 = vector.shape_cast %195 : vector<2x1x128xf32> to vector<2x128xf32>
    %197 = arith.truncf %154 : vector<2x32xf32> to vector<2x32xbf16>
    %cst_55 = arith.constant dense<0.000000e+00> : vector<2x128xf32>
    %198 = tpu.matmul %197, %1, %cst_55 {dimension_numbers = #tpu.dot_dimension_numbers<[1], [0], [0], [1], [0, 0, 1, 1], [], []>} : vector<2x32xbf16>, vector<32x128xbf16>, vector<2x128xf32> -> vector<2x128xf32>
    %199 = arith.addf %196, %198 : vector<2x128xf32>
    %200 = vector.extract_strided_slice %199 {offsets = [0, 0], sizes = [2, 32], strides = [1, 1]} : vector<2x128xf32> to vector<2x32xf32>
    %201 = arith.negf %200 : vector<2x32xf32>
    %202 = math.exp %201 : vector<2x32xf32>
    %cst_56 = arith.constant 1.000000e+00 : f32
    %203 = vector.broadcast %cst_56 : f32 to vector<2x32xf32>
    %204 = arith.addf %203, %202 : vector<2x32xf32>
    %205 = arith.divf %203, %204 : vector<2x32xf32>
    %206 = vector.extract_strided_slice %199 {offsets = [0, 32], sizes = [2, 32], strides = [1, 1]} : vector<2x128xf32> to vector<2x32xf32>
    %207 = arith.negf %206 : vector<2x32xf32>
    %208 = math.exp %207 : vector<2x32xf32>
    %cst_57 = arith.constant 1.000000e+00 : f32
    %209 = vector.broadcast %cst_57 : f32 to vector<2x32xf32>
    %210 = arith.addf %209, %208 : vector<2x32xf32>
    %211 = arith.divf %209, %210 : vector<2x32xf32>
    %212 = vector.extract_strided_slice %199 {offsets = [0, 64], sizes = [2, 32], strides = [1, 1]} : vector<2x128xf32> to vector<2x32xf32>
    %213 = math.tanh %212 : vector<2x32xf32>
    %214 = vector.extract_strided_slice %199 {offsets = [0, 96], sizes = [2, 32], strides = [1, 1]} : vector<2x128xf32> to vector<2x32xf32>
    %215 = arith.negf %214 : vector<2x32xf32>
    %216 = math.exp %215 : vector<2x32xf32>
    %cst_58 = arith.constant 1.000000e+00 : f32
    %217 = vector.broadcast %cst_58 : f32 to vector<2x32xf32>
    %218 = arith.addf %217, %216 : vector<2x32xf32>
    %219 = arith.divf %217, %218 : vector<2x32xf32>
    %220 = arith.mulf %211, %152 : vector<2x32xf32>
    %221 = arith.mulf %205, %213 : vector<2x32xf32>
    %222 = arith.addf %220, %221 : vector<2x32xf32>
    %223 = math.tanh %222 : vector<2x32xf32>
    %224 = arith.mulf %219, %223 : vector<2x32xf32>
    %225 = arith.mulf %96, %224 : vector<2x32xf32>
    %cst_59 = arith.constant dense<0.000000e+00> : vector<2xf32>
    %226 = vector.multi_reduction <add>, %225, %cst_59 [1] : vector<2x32xf32> to vector<2xf32>
    %227 = vector.shape_cast %226 : vector<2xf32> to vector<2x1xf32>
    %cst_60 = arith.constant 0.176776692 : f32
    %228 = vector.broadcast %cst_60 : f32 to vector<2x1xf32>
    %229 = arith.mulf %227, %228 : vector<2x1xf32>
    %230 = arith.mulf %154, %224 : vector<2x32xf32>
    %cst_61 = arith.constant dense<0.000000e+00> : vector<2xf32>
    %231 = vector.multi_reduction <add>, %230, %cst_61 [1] : vector<2x32xf32> to vector<2xf32>
    %232 = vector.shape_cast %231 : vector<2xf32> to vector<2x1xf32>
    %cst_62 = arith.constant 0.176776692 : f32
    %233 = vector.broadcast %cst_62 : f32 to vector<2x1xf32>
    %234 = arith.mulf %232, %233 : vector<2x1xf32>
    %235 = arith.mulf %224, %224 : vector<2x32xf32>
    %cst_63 = arith.constant dense<0.000000e+00> : vector<2xf32>
    %236 = vector.multi_reduction <add>, %235, %cst_63 [1] : vector<2x32xf32> to vector<2xf32>
    %237 = vector.shape_cast %236 : vector<2xf32> to vector<2x1xf32>
    %cst_64 = arith.constant 0.176776692 : f32
    %238 = vector.broadcast %cst_64 : f32 to vector<2x1xf32>
    %239 = arith.mulf %237, %238 : vector<2x1xf32>
    %240 = arith.maximumf %229, %234 : vector<2x1xf32>
    %241 = arith.maximumf %240, %239 : vector<2x1xf32>
    %242 = arith.subf %229, %241 : vector<2x1xf32>
    %243 = math.exp %242 : vector<2x1xf32>
    %244 = arith.subf %234, %241 : vector<2x1xf32>
    %245 = math.exp %244 : vector<2x1xf32>
    %246 = arith.subf %239, %241 : vector<2x1xf32>
    %247 = math.exp %246 : vector<2x1xf32>
    %248 = arith.addf %243, %245 : vector<2x1xf32>
    %249 = arith.addf %248, %247 : vector<2x1xf32>
    %250 = vector.broadcast %243 : vector<2x1xf32> to vector<2x32xf32>
    %251 = arith.mulf %250, %96 : vector<2x32xf32>
    %252 = vector.broadcast %245 : vector<2x1xf32> to vector<2x32xf32>
    %253 = arith.mulf %252, %154 : vector<2x32xf32>
    %254 = arith.addf %251, %253 : vector<2x32xf32>
    %255 = vector.broadcast %247 : vector<2x1xf32> to vector<2x32xf32>
    %256 = arith.mulf %255, %224 : vector<2x32xf32>
    %257 = arith.addf %254, %256 : vector<2x32xf32>
    %258 = tpu.reciprocal %249 {approx = true} : vector<2x1xf32> -> vector<2x1xf32>
    %259 = vector.broadcast %258 : vector<2x1xf32> to vector<2x32xf32>
    %260 = arith.mulf %257, %259 : vector<2x32xf32>
    %261 = arith.truncf %260 : vector<2x32xf32> to vector<2x32xbf16>
    %cst_65 = arith.constant dense<0.000000e+00> : vector<2x32xf32>
    %262 = tpu.matmul %261, %2, %cst_65 {dimension_numbers = #tpu.dot_dimension_numbers<[1], [0], [0], [1], [0, 0, 1, 1], [], []>} : vector<2x32xbf16>, vector<32x32xbf16>, vector<2x32xf32> -> vector<2x32xf32>
    %263 = arith.addf %262, %6 : vector<2x32xf32>
    %264 = math.tanh %263 : vector<2x32xf32>
    %c0_66 = arith.constant 0 : index
    %c4 = arith.constant 4 : index
    %c0_67 = arith.constant 0 : index
    %265 = vector.load %arg8[%c0_66, %c4, %c0_67] : memref<2x6x128xf32, #tpu.memory_space<vmem>>, vector<2x1x128xf32>
    %266 = vector.shape_cast %265 : vector<2x1x128xf32> to vector<2x128xf32>
    %267 = arith.truncf %224 : vector<2x32xf32> to vector<2x32xbf16>
    %cst_68 = arith.constant dense<0.000000e+00> : vector<2x128xf32>
    %268 = tpu.matmul %267, %1, %cst_68 {dimension_numbers = #tpu.dot_dimension_numbers<[1], [0], [0], [1], [0, 0, 1, 1], [], []>} : vector<2x32xbf16>, vector<32x128xbf16>, vector<2x128xf32> -> vector<2x128xf32>
    %269 = arith.addf %266, %268 : vector<2x128xf32>
    %270 = vector.extract_strided_slice %269 {offsets = [0, 0], sizes = [2, 32], strides = [1, 1]} : vector<2x128xf32> to vector<2x32xf32>
    %271 = arith.negf %270 : vector<2x32xf32>
    %272 = math.exp %271 : vector<2x32xf32>
    %cst_69 = arith.constant 1.000000e+00 : f32
    %273 = vector.broadcast %cst_69 : f32 to vector<2x32xf32>
    %274 = arith.addf %273, %272 : vector<2x32xf32>
    %275 = arith.divf %273, %274 : vector<2x32xf32>
    %276 = vector.extract_strided_slice %269 {offsets = [0, 32], sizes = [2, 32], strides = [1, 1]} : vector<2x128xf32> to vector<2x32xf32>
    %277 = arith.negf %276 : vector<2x32xf32>
    %278 = math.exp %277 : vector<2x32xf32>
    %cst_70 = arith.constant 1.000000e+00 : f32
    %279 = vector.broadcast %cst_70 : f32 to vector<2x32xf32>
    %280 = arith.addf %279, %278 : vector<2x32xf32>
    %281 = arith.divf %279, %280 : vector<2x32xf32>
    %282 = vector.extract_strided_slice %269 {offsets = [0, 64], sizes = [2, 32], strides = [1, 1]} : vector<2x128xf32> to vector<2x32xf32>
    %283 = math.tanh %282 : vector<2x32xf32>
    %284 = vector.extract_strided_slice %269 {offsets = [0, 96], sizes = [2, 32], strides = [1, 1]} : vector<2x128xf32> to vector<2x32xf32>
    %285 = arith.negf %284 : vector<2x32xf32>
    %286 = math.exp %285 : vector<2x32xf32>
    %cst_71 = arith.constant 1.000000e+00 : f32
    %287 = vector.broadcast %cst_71 : f32 to vector<2x32xf32>
    %288 = arith.addf %287, %286 : vector<2x32xf32>
    %289 = arith.divf %287, %288 : vector<2x32xf32>
    %290 = arith.mulf %281, %222 : vector<2x32xf32>
    %291 = arith.mulf %275, %283 : vector<2x32xf32>
    %292 = arith.addf %290, %291 : vector<2x32xf32>
    %293 = math.tanh %292 : vector<2x32xf32>
    %294 = arith.mulf %289, %293 : vector<2x32xf32>
    %295 = arith.mulf %154, %294 : vector<2x32xf32>
    %cst_72 = arith.constant dense<0.000000e+00> : vector<2xf32>
    %296 = vector.multi_reduction <add>, %295, %cst_72 [1] : vector<2x32xf32> to vector<2xf32>
    %297 = vector.shape_cast %296 : vector<2xf32> to vector<2x1xf32>
    %cst_73 = arith.constant 0.176776692 : f32
    %298 = vector.broadcast %cst_73 : f32 to vector<2x1xf32>
    %299 = arith.mulf %297, %298 : vector<2x1xf32>
    %300 = arith.mulf %224, %294 : vector<2x32xf32>
    %cst_74 = arith.constant dense<0.000000e+00> : vector<2xf32>
    %301 = vector.multi_reduction <add>, %300, %cst_74 [1] : vector<2x32xf32> to vector<2xf32>
    %302 = vector.shape_cast %301 : vector<2xf32> to vector<2x1xf32>
    %cst_75 = arith.constant 0.176776692 : f32
    %303 = vector.broadcast %cst_75 : f32 to vector<2x1xf32>
    %304 = arith.mulf %302, %303 : vector<2x1xf32>
    %305 = arith.mulf %294, %294 : vector<2x32xf32>
    %cst_76 = arith.constant dense<0.000000e+00> : vector<2xf32>
    %306 = vector.multi_reduction <add>, %305, %cst_76 [1] : vector<2x32xf32> to vector<2xf32>
    %307 = vector.shape_cast %306 : vector<2xf32> to vector<2x1xf32>
    %cst_77 = arith.constant 0.176776692 : f32
    %308 = vector.broadcast %cst_77 : f32 to vector<2x1xf32>
    %309 = arith.mulf %307, %308 : vector<2x1xf32>
    %310 = arith.maximumf %299, %304 : vector<2x1xf32>
    %311 = arith.maximumf %310, %309 : vector<2x1xf32>
    %312 = arith.subf %299, %311 : vector<2x1xf32>
    %313 = math.exp %312 : vector<2x1xf32>
    %314 = arith.subf %304, %311 : vector<2x1xf32>
    %315 = math.exp %314 : vector<2x1xf32>
    %316 = arith.subf %309, %311 : vector<2x1xf32>
    %317 = math.exp %316 : vector<2x1xf32>
    %318 = arith.addf %313, %315 : vector<2x1xf32>
    %319 = arith.addf %318, %317 : vector<2x1xf32>
    %320 = vector.broadcast %313 : vector<2x1xf32> to vector<2x32xf32>
    %321 = arith.mulf %320, %154 : vector<2x32xf32>
    %322 = vector.broadcast %315 : vector<2x1xf32> to vector<2x32xf32>
    %323 = arith.mulf %322, %224 : vector<2x32xf32>
    %324 = arith.addf %321, %323 : vector<2x32xf32>
    %325 = vector.broadcast %317 : vector<2x1xf32> to vector<2x32xf32>
    %326 = arith.mulf %325, %294 : vector<2x32xf32>
    %327 = arith.addf %324, %326 : vector<2x32xf32>
    %328 = tpu.reciprocal %319 {approx = true} : vector<2x1xf32> -> vector<2x1xf32>
    %329 = vector.broadcast %328 : vector<2x1xf32> to vector<2x32xf32>
    %330 = arith.mulf %327, %329 : vector<2x32xf32>
    %331 = arith.truncf %330 : vector<2x32xf32> to vector<2x32xbf16>
    %cst_78 = arith.constant dense<0.000000e+00> : vector<2x32xf32>
    %332 = tpu.matmul %331, %2, %cst_78 {dimension_numbers = #tpu.dot_dimension_numbers<[1], [0], [0], [1], [0, 0, 1, 1], [], []>} : vector<2x32xbf16>, vector<32x32xbf16>, vector<2x32xf32> -> vector<2x32xf32>
    %333 = arith.addf %332, %6 : vector<2x32xf32>
    %334 = math.tanh %333 : vector<2x32xf32>
    %c0_79 = arith.constant 0 : index
    %c5 = arith.constant 5 : index
    %c0_80 = arith.constant 0 : index
    %335 = vector.load %arg8[%c0_79, %c5, %c0_80] : memref<2x6x128xf32, #tpu.memory_space<vmem>>, vector<2x1x128xf32>
    %336 = vector.shape_cast %335 : vector<2x1x128xf32> to vector<2x128xf32>
    %337 = arith.truncf %294 : vector<2x32xf32> to vector<2x32xbf16>
    %cst_81 = arith.constant dense<0.000000e+00> : vector<2x128xf32>
    %338 = tpu.matmul %337, %1, %cst_81 {dimension_numbers = #tpu.dot_dimension_numbers<[1], [0], [0], [1], [0, 0, 1, 1], [], []>} : vector<2x32xbf16>, vector<32x128xbf16>, vector<2x128xf32> -> vector<2x128xf32>
    %339 = arith.addf %336, %338 : vector<2x128xf32>
    %340 = vector.extract_strided_slice %339 {offsets = [0, 0], sizes = [2, 32], strides = [1, 1]} : vector<2x128xf32> to vector<2x32xf32>
    %341 = arith.negf %340 : vector<2x32xf32>
    %342 = math.exp %341 : vector<2x32xf32>
    %cst_82 = arith.constant 1.000000e+00 : f32
    %343 = vector.broadcast %cst_82 : f32 to vector<2x32xf32>
    %344 = arith.addf %343, %342 : vector<2x32xf32>
    %345 = arith.divf %343, %344 : vector<2x32xf32>
    %346 = vector.extract_strided_slice %339 {offsets = [0, 32], sizes = [2, 32], strides = [1, 1]} : vector<2x128xf32> to vector<2x32xf32>
    %347 = arith.negf %346 : vector<2x32xf32>
    %348 = math.exp %347 : vector<2x32xf32>
    %cst_83 = arith.constant 1.000000e+00 : f32
    %349 = vector.broadcast %cst_83 : f32 to vector<2x32xf32>
    %350 = arith.addf %349, %348 : vector<2x32xf32>
    %351 = arith.divf %349, %350 : vector<2x32xf32>
    %352 = vector.extract_strided_slice %339 {offsets = [0, 64], sizes = [2, 32], strides = [1, 1]} : vector<2x128xf32> to vector<2x32xf32>
    %353 = math.tanh %352 : vector<2x32xf32>
    %354 = vector.extract_strided_slice %339 {offsets = [0, 96], sizes = [2, 32], strides = [1, 1]} : vector<2x128xf32> to vector<2x32xf32>
    %355 = arith.negf %354 : vector<2x32xf32>
    %356 = math.exp %355 : vector<2x32xf32>
    %cst_84 = arith.constant 1.000000e+00 : f32
    %357 = vector.broadcast %cst_84 : f32 to vector<2x32xf32>
    %358 = arith.addf %357, %356 : vector<2x32xf32>
    %359 = arith.divf %357, %358 : vector<2x32xf32>
    %360 = arith.mulf %351, %292 : vector<2x32xf32>
    %361 = arith.mulf %345, %353 : vector<2x32xf32>
    %362 = arith.addf %360, %361 : vector<2x32xf32>
    %363 = math.tanh %362 : vector<2x32xf32>
    %364 = arith.mulf %359, %363 : vector<2x32xf32>
    %365 = arith.mulf %224, %364 : vector<2x32xf32>
    %cst_85 = arith.constant dense<0.000000e+00> : vector<2xf32>
    %366 = vector.multi_reduction <add>, %365, %cst_85 [1] : vector<2x32xf32> to vector<2xf32>
    %367 = vector.shape_cast %366 : vector<2xf32> to vector<2x1xf32>
    %cst_86 = arith.constant 0.176776692 : f32
    %368 = vector.broadcast %cst_86 : f32 to vector<2x1xf32>
    %369 = arith.mulf %367, %368 : vector<2x1xf32>
    %370 = arith.mulf %294, %364 : vector<2x32xf32>
    %cst_87 = arith.constant dense<0.000000e+00> : vector<2xf32>
    %371 = vector.multi_reduction <add>, %370, %cst_87 [1] : vector<2x32xf32> to vector<2xf32>
    %372 = vector.shape_cast %371 : vector<2xf32> to vector<2x1xf32>
    %cst_88 = arith.constant 0.176776692 : f32
    %373 = vector.broadcast %cst_88 : f32 to vector<2x1xf32>
    %374 = arith.mulf %372, %373 : vector<2x1xf32>
    %375 = arith.mulf %364, %364 : vector<2x32xf32>
    %cst_89 = arith.constant dense<0.000000e+00> : vector<2xf32>
    %376 = vector.multi_reduction <add>, %375, %cst_89 [1] : vector<2x32xf32> to vector<2xf32>
    %377 = vector.shape_cast %376 : vector<2xf32> to vector<2x1xf32>
    %cst_90 = arith.constant 0.176776692 : f32
    %378 = vector.broadcast %cst_90 : f32 to vector<2x1xf32>
    %379 = arith.mulf %377, %378 : vector<2x1xf32>
    %380 = arith.maximumf %369, %374 : vector<2x1xf32>
    %381 = arith.maximumf %380, %379 : vector<2x1xf32>
    %382 = arith.subf %369, %381 : vector<2x1xf32>
    %383 = math.exp %382 : vector<2x1xf32>
    %384 = arith.subf %374, %381 : vector<2x1xf32>
    %385 = math.exp %384 : vector<2x1xf32>
    %386 = arith.subf %379, %381 : vector<2x1xf32>
    %387 = math.exp %386 : vector<2x1xf32>
    %388 = arith.addf %383, %385 : vector<2x1xf32>
    %389 = arith.addf %388, %387 : vector<2x1xf32>
    %390 = vector.broadcast %383 : vector<2x1xf32> to vector<2x32xf32>
    %391 = arith.mulf %390, %224 : vector<2x32xf32>
    %392 = vector.broadcast %385 : vector<2x1xf32> to vector<2x32xf32>
    %393 = arith.mulf %392, %294 : vector<2x32xf32>
    %394 = arith.addf %391, %393 : vector<2x32xf32>
    %395 = vector.broadcast %387 : vector<2x1xf32> to vector<2x32xf32>
    %396 = arith.mulf %395, %364 : vector<2x32xf32>
    %397 = arith.addf %394, %396 : vector<2x32xf32>
    %398 = tpu.reciprocal %389 {approx = true} : vector<2x1xf32> -> vector<2x1xf32>
    %399 = vector.broadcast %398 : vector<2x1xf32> to vector<2x32xf32>
    %400 = arith.mulf %397, %399 : vector<2x32xf32>
    %401 = arith.truncf %400 : vector<2x32xf32> to vector<2x32xbf16>
    %cst_91 = arith.constant dense<0.000000e+00> : vector<2x32xf32>
    %402 = tpu.matmul %401, %2, %cst_91 {dimension_numbers = #tpu.dot_dimension_numbers<[1], [0], [0], [1], [0, 0, 1, 1], [], []>} : vector<2x32xbf16>, vector<32x32xbf16>, vector<2x32xf32> -> vector<2x32xf32>
    %403 = arith.addf %402, %6 : vector<2x32xf32>
    %404 = math.tanh %403 : vector<2x32xf32>
    %405 = tpu.concatenate %66, %124, %194, %264, %334, %404 in 1 : vector<2x32xf32>, vector<2x32xf32>, vector<2x32xf32>, vector<2x32xf32>, vector<2x32xf32>, vector<2x32xf32> -> vector<2x192xf32>
    %c0_92 = arith.constant 0 : index
    %c0_93 = arith.constant 0 : index
    %c0_94 = arith.constant 0 : index
    %406 = vector.load %arg7[%c0_92, %c0_93, %c0_94] : memref<1x2x192xf32, #tpu.memory_space<vmem>>, vector<1x2x192xf32>
    %407 = vector.shape_cast %406 : vector<1x2x192xf32> to vector<2x192xf32>
    %408 = vector.shape_cast %405 : vector<2x192xf32> to vector<1x2x192xf32>
    tpu.vector_store %arg7[%c0_92, %c0_93, %c0_94], %408 {strides = array<i32>} : memref<1x2x192xf32, #tpu.memory_space<vmem>>, vector<1x2x192xf32>,
    return
  }
  func.func @transform_0(%arg0: i32) -> (i32, i32) {
    %c0_i32 = arith.constant 0 : i32
    %c0_i32_0 = arith.constant 0 : i32
    return %arg0, %c0_i32 : i32, i32
  }
  func.func @transform_1(%arg0: i32) -> (i32, i32) {
    %c0_i32 = arith.constant 0 : i32
    %c0_i32_0 = arith.constant 0 : i32
    %c0_i32_1 = arith.constant 0 : i32
    return %c0_i32, %c0_i32_0 : i32, i32
  }
  func.func @transform_2(%arg0: i32) -> (i32, i32) {
    %c0_i32 = arith.constant 0 : i32
    %c0_i32_0 = arith.constant 0 : i32
    %c0_i32_1 = arith.constant 0 : i32
    return %c0_i32, %c0_i32_0 : i32, i32
  }
  func.func @transform_3(%arg0: i32) -> (i32, i32) {
    %c0_i32 = arith.constant 0 : i32
    %c0_i32_0 = arith.constant 0 : i32
    %c0_i32_1 = arith.constant 0 : i32
    return %c0_i32, %c0_i32_0 : i32, i32
  }
  func.func @transform_4(%arg0: i32) -> (i32, i32) {
    %c0_i32 = arith.constant 0 : i32
    %c0_i32_0 = arith.constant 0 : i32
    %c0_i32_1 = arith.constant 0 : i32
    return %c0_i32, %c0_i32_0 : i32, i32
  }
  func.func @transform_5(%arg0: i32) -> (i32, i32) {
    %c0_i32 = arith.constant 0 : i32
    %c0_i32_0 = arith.constant 0 : i32
    %c0_i32_1 = arith.constant 0 : i32
    return %c0_i32, %c0_i32_0 : i32, i32
  }
  func.func @transform_6(%arg0: i32) -> (i32, i32, i32) {
    %c0_i32 = arith.constant 0 : i32
    %c0_i32_0 = arith.constant 0 : i32
    %c0_i32_1 = arith.constant 0 : i32
    return %arg0, %c0_i32, %c0_i32_0 : i32, i32, i32
  }
}

</mosaic_0001>

<bundles_post_ra>
// kernel: hier_attn_rnn_forward.5
= control target key start
LH: loop header
LB: loop body
LE: loop exit
PB: predicated region body
PF: predicated region fallthrough
CT: control target
= control target key end

     0   :  { %v211_v3 = vmov 0.0|0.0   ;;  %vm57_vm0 = vcmask 523264   ;;  %s323_s0 = inlined_call_operand.vmem [shape: f32[2,192], index: 0, kind: input, shape index: {}]   ;;  %s324_s1 = inlined_call_operand.vmem [shape: f32[192,8], index: 1, kind: input, shape index: {}]   ;;  %s325_s2 = inlined_call_operand.vmem [shape: f32[1,8], index: 2, kind: input, shape index: {}]   ;;  %s326_s3 = inlined_call_operand.hbm [shape: f32[2,8], index: 3, kind: output, shape index: {}]  }
   0x1   :  { %v16_v0 = vld [vmem:[%s324_s1] sm:$0xff]  ;;  %v17_v1 = vld [vmem:[%s324_s1 + $0x8] sm:$0xff]  ;;  %v18_v2 = vld [vmem:[%s324_s1 + $0x10] sm:$0xff]  ;;  %149 = vmatprep.subr.bf16.mxu0 %v211_v3 }
   0x2   :  { %v150_v4 = vpack.c.bf16 %v17_v1, %v16_v0  ;;  %v19_v5 = vld [vmem:[%s324_s1 + $0x18] sm:$0xff]  ;;  %v20_v7 = vld [vmem:[%s324_s1 + $0x20] sm:$0xff]  ;;  %v21_v8 = vld [vmem:[%s324_s1 + $0x28] sm:$0xff] }
   0x3   :  { %v153_v6 = vpack.c.bf16 %v19_v5, %v18_v2  ;;  %v156_v9 = vpack.c.bf16 %v21_v8, %v20_v7  ;;  %v22_v10 = vld [vmem:[%s324_s1 + $0x30] sm:$0xff]  ;;  %v23_v11 = vld [vmem:[%s324_s1 + $0x38] sm:$0xff]  ;;  %v147_v12 = vld.sshfl [vmem:[%s323_s0] sm:$0x33 pattern:$0x76325410] }
   0x4   :  { %151 = vmatpush1.bf16.msra.mxu0 %v150_v4  ;;  %v55_v13 = vcombine.high %v147_v12, %v147_v12 }
   0x5   :  { %152 = vmatprep.subr.bf16.mxu0 %v211_v3 }
   0x8   :  { %154 = vmatpush1.bf16.msra.mxu0 %v153_v6 }
   0x9   :  { %155 = vmatprep.subr.bf16.mxu0 %v211_v3 }
   0xa   :  { %8 = vsyncpa [#allocation3], 0  ;;  %v159_v14 = vpack.c.bf16 %v23_v11, %v22_v10  ;;  %148 = vmatprep.mubr.msk.f32.mxu0 %vm57_vm0, %v55_v13  ;;  %v24_v15 = vld [vmem:[%s324_s1 + $0x40] sm:$0xff]  ;;  %v25_v16 = vld [vmem:[%s324_s1 + $0x48] sm:$0xff]  ;;  %s212_s0 = smov [#allocation2]   ;;  %vm130_vm1 = vcmask 58368  }
   0xb   :  { %v162_v17 = vpack.c.bf16 %v25_v16, %v24_v15  ;;  %v26_v18 = vld [vmem:[%s324_s1 + $0x50] sm:$0xff]  ;;  %v27_v19 = vld [vmem:[%s324_s1 + $0x58] sm:$0xff]  ;;  %v28_v21 = vld [vmem:[%s324_s1 + $0x60] sm:$0xff]  ;;  %s138_s9 = sshll.u32 %s212_s0, 4  ;;  %s139_s9 = int_to_ptr.vmem [resolvable:$true] %s138_s9 }
   0xc   :  { %157 = vmatpush1.bf16.msra.mxu0 %v156_v9  ;;  %v165_v20 = vpack.c.bf16 %v27_v19, %v26_v18  ;;  %v29_v22 = vld [vmem:[%s324_s1 + $0x68] sm:$0xff]  ;;  %v30_v24 = vld [vmem:[%s324_s1 + $0x70] sm:$0xff]  ;;  %v31_v25 = vld [vmem:[%s324_s1 + $0x78] sm:$0xff]  ;;  %s187_s10 = scalar_lea.vmem %s139_s9, 32  ;;  %p192_p1 = scmp.lt.s32.totalorder %s139_s9, %s139_s9 }
   0xd   :  { %158 = vmatprep.subr.bf16.mxu0 %v211_v3  ;;  %v168_v23 = vpack.c.bf16 %v29_v22, %v28_v21  ;;  %v171_v26 = vpack.c.bf16 %v31_v25, %v30_v24  ;;  %v32_v27 = vld [vmem:[%s324_s1 + $0x80] sm:$0xff]  ;;  %v33_v28 = vld [vmem:[%s324_s1 + $0x88] sm:$0xff]  ;;  %v34_v30 = vld [vmem:[%s324_s1 + $0x90] sm:$0xff]  ;;  %p188_p0 = scmp.ne.s32.totalorder %s139_s9, %s187_s10  ;;  %p193_p2 = scmp.lt.s32.totalorder %s187_s10, %s187_s10 }
   0xe   :  { %v174_v29 = vpack.c.bf16 %v33_v28, %v32_v27  ;;  %v35_v31 = vld [vmem:[%s324_s1 + $0x98] sm:$0xff]  ;;  %v36_v33 = vld [vmem:[%s324_s1 + $0xa0] sm:$0xff]  ;;  %v37_v34 = vld [vmem:[%s324_s1 + $0xa8] sm:$0xff] }
   0xf   :  { %v177_v32 = vpack.c.bf16 %v35_v31, %v34_v30  ;;  %v180_v35 = vpack.c.bf16 %v37_v34, %v36_v33  ;;  %v38_v36 = vld [vmem:[%s324_s1 + $0xb0] sm:$0xff]  ;;  %v39_v37 = vld [vmem:[%s324_s1 + $0xb8] sm:$0xff]  ;;  %v146_v39 = vld [vmem:[%s325_s2] ss:$0 sm:$0xff]  ;;  %p194_p3 = por %p193_p2, %p192_p1 }
  0x10   :  { %160 = vmatpush1.bf16.msra.mxu0 %v159_v14  ;;  %v183_v38 = vpack.c.bf16 %v39_v37, %v38_v36 }
  0x11   :  { %161 = vmatprep.subr.bf16.mxu0 %v211_v3  ;;  %p195_p4 = pnand %p194_p3, %p188_p0 }
  0x14   :  { %163 = vmatpush1.bf16.msra.mxu0 %v162_v17 }
  0x15   :  { %164 = vmatprep.subr.bf16.mxu0 %v211_v3 }
  0x18   :  { %166 = vmatpush1.bf16.msra.mxu0 %v165_v20 }
  0x19   :  { %167 = vmatprep.subr.bf16.mxu0 %v211_v3 }
  0x1c   :  { %169 = vmatpush1.bf16.msra.mxu0 %v168_v23 }
  0x1d   :  { %170 = vmatprep.subr.bf16.mxu0 %v211_v3 }
  0x20   :  { %172 = vmatpush1.bf16.msra.mxu0 %v171_v26 }
  0x21   :  { %173 = vmatprep.subr.bf16.mxu0 %v211_v3 }
  0x24   :  { %175 = vmatpush1.bf16.msra.mxu0 %v174_v29 }
  0x25   :  { %176 = vmatprep.subr.bf16.mxu0 %v211_v3 }
  0x28   :  { %178 = vmatpush1.bf16.msra.mxu0 %v177_v32 }
  0x29   :  { %179 = vmatprep.subr.bf16.mxu0 %v211_v3 }
  0x2c   :  { %181 = vmatpush1.bf16.msra.mxu0 %v180_v35 }
  0x2d   :  { %182 = vmatprep.subr.bf16.mxu0 %v211_v3 }
  0x30   :  { %184 = vmatpush1.bf16.msra.mxu0 %v183_v38 }
  0x33   :  { %125 = vmatmul.mubr.f32.vlgmr.msra.gmra.mrb[0].mxu0 %v147_v12 }
 0x106   :  { %v126_v40 = vpop.f32.mrb[0].mxu0 }
 0x107   :  { %v127_v41 = vadd.f32 %v146_v39, %v126_v40  ;;  %v128_v42 = vpop.f32.mrb[1].mxu0 }
 0x109   :  { %131 = vst.msk [vmem:[#allocation2] sm:$0x3] %vm130_vm1, %v127_v41 }
 0x10a   :  { %198 = shalt.err (!%p195_p4)
}
 0x10b   :  { %s199_s12 = scalar_lea.hbm %s326_s3, 32 }
 0x10c   :  { %p200_p5 = scmp.ne.s32.totalorder %s326_s3, %s199_s12  ;;  %p203_p6 = scmp.lt.u32.totalorder %s199_s12, %s326_s3 }
 0x10e   :  { %p205_p7 = pnand %p203_p6, %p200_p5 }
 0x110   :  { %208 = shalt.err (!%p205_p7)
}
 0x111   :  { %141 = dma.vmem_to_hbm [thread:$0]  %s139_s9, 32, %s326_s3, [#allocation3]  }
 0x112   :  { %209 = dma.done.wait [#allocation3], 32  }
 0x113   :  { %210 = vsyncadd [#allocation3], 4294967264 }
 0x114   :  { %145 = vsyncpa [#allocation3], 1 }

// kernel: hier_attn_rnn_forward.4
= control target key start
LH: loop header
LB: loop body
LE: loop exit
PB: predicated region body
PF: predicated region fallthrough
CT: control target
= control target key end

     0   :  { %v1937_v1 = vmov 0.0   ;;  %vm1938_vm0 = vmmov 0   ;;  %v1939_v20 = vmov 0   ;;  %s1940_s12 = smov 64   ;;  %vm348_vm1 = vcmask 1041409   ;;  %s2414_s1 = inlined_call_operand.vmem [shape: bf16[256,128], index: 1, kind: input, shape index: {}]   ;;  %s2415_s0 = inlined_call_operand.vmem [shape: bf16[12,256], index: 0, kind: input, shape index: {}]   ;;  %s2416_s2 = inlined_call_operand.vmem [shape: bf16[32,128], index: 2, kind: input, shape index: {}]   ;;  %s2417_s3 = inlined_call_operand.vmem [shape: f32[1,128], index: 3, kind: input, shape index: {}]   ;;  %s2418_s4 = inlined_call_operand.vmem [shape: bf16[32,32], index: 4, kind: input, shape index: {}]   ;;  %s2419_s5 = inlined_call_operand.vmem [shape: f32[1,32], index: 5, kind: input, shape index: {}]   ;;  %s2420_s6 = inlined_call_operand.vmem [shape: f32[1,2,192], index: 6, kind: output, shape index: {}]  }
   0x1   :  { %v1762_v0 = vld [vmem:[%s2414_s1 + $0x40] sm:$0xff]   ;;  %1659 = vmatprep.subr.bf16.mxu1 %v1937_v1  ;;  %1663 = vmatprep.mubr.msk.bf16.mxu1 %vm1938_vm0, %v1937_v1  ;;  %v1764_v3 = vld [vmem:[%s2414_s1 + $0x48] sm:$0xff]   ;;  %v1766_v5 = vld [vmem:[%s2414_s1 + $0x50] sm:$0xff]   ;;  %vm353_vm2 = vcmask 254976   ;;  %vm245_vm3 = vcmask 261120   ;;  %vm1530_vm4 = vcmask 523264  }
   0x2   :  { %v1763_v2 = vld [vmem:[%s2414_s1] sm:$0xff]   ;;  %1601 = vmatprep.subr.bf16.mxu0 %v1762_v0  ;;  %v1765_v4 = vld [vmem:[%s2414_s1 + $0x8] sm:$0xff]   ;;  %v1767_v6 = vld [vmem:[%s2414_s1 + $0x10] sm:$0xff]   ;;  %vm1532_vm5 = vcmask 785408   ;;  %vm1546_vm6 = vcmask 1041408   ;;  %vm1547_vm7 = vcmask 519170  }
   0x3   :  { %1602 = vmatpush3.bf16.msra.mxu0 %v1763_v2  ;;  %v1768_v7 = vld [vmem:[%s2414_s1 + $0x58] sm:$0xff]   ;;  %v1770_v9 = vld [vmem:[%s2414_s1 + $0x60] sm:$0xff]   ;;  %v1772_v11 = vld [vmem:[%s2414_s1 + $0x68] sm:$0xff]  }
   0x4   :  { %1603 = vmatprep.subr.bf16.mxu0 %v1764_v3  ;;  %v1769_v8 = vld [vmem:[%s2414_s1 + $0x18] sm:$0xff]   ;;  %v1771_v10 = vld [vmem:[%s2414_s1 + $0x20] sm:$0xff]   ;;  %v1773_v14 = vld [vmem:[%s2414_s1 + $0x28] sm:$0xff]  }
   0x5   :  { %v1780_v12 = vld [vmem:[%s2415_s0 + $0x4] ss:$8 sps:$4 sm:$0x3f]   ;;  %v1774_v15 = vld [vmem:[%s2414_s1 + $0x70] sm:$0xff]   ;;  %v1776_v18 = vld [vmem:[%s2414_s1 + $0x78] sm:$0xff]  }
   0x6   :  { %v2021_v13 = vld [vmem:[%s2416_s2] sm:$0xff]   ;;  %218 = vmatprep.mubr.bf16.mxu0 %v1780_v12  ;;  %v2033_v16 = vld [vmem:[%s2416_s2 + $0x8] sm:$0xff]   ;;  %v1775_v17 = vld [vmem:[%s2414_s1 + $0x30] sm:$0xff]  }
   0x7   :  { %1604 = vmatpush3.bf16.msra.mxu0 %v1765_v4  ;;  %1660 = vmatpush3.bf16.msra.mxu1 %v2021_v13  ;;  %v1777_v19 = vld [vmem:[%s2414_s1 + $0x38] sm:$0xff]   ;;  %v1778_v21 = vld [vmem:[%s2415_s0] ss:$8 sps:$4 sm:$0x3f]   ;;  %vm1548_vm8 = vmor %vm1547_vm7, %vm1546_vm6 }
   0x8   :  { %1605 = vmatprep.subr.bf16.mxu0 %v1766_v5  ;;  %1661 = vmatprep.subr.bf16.mxu1 %v1937_v1  ;;  %v1555_v27 = vld [vmem:[%s2417_s3] ss:$0 sm:$0xff]  ;;  %s1941_s3 = smov 32  }
   0xb   :  { %1606 = vmatpush3.bf16.msra.mxu0 %v1767_v6  ;;  %1662 = vmatpush3.bf16.msra.mxu1 %v2033_v16 }
   0xc   :  { %1607 = vmatprep.subr.bf16.mxu0 %v1768_v7  ;;  %1667 = vmatprep.subr.bf16.mxu1 %v1937_v1 }
   0xe   :  { %1664 = vmatmul.mubr.bf16.vlgmr.msra.gmra.mrb[0].mxu1 %v1939_v20  ;;  %v1783_v20 = vld [vmem:[%s2418_s4] sm:$0xff]  }
   0xf   :  { %1608 = vmatpush3.bf16.msra.mxu0 %v1769_v8  ;;  %1671 = vmatprep.mubr.msk.bf16.mxu1 %vm1938_vm0, %v1937_v1 }
  0x10   :  { %1609 = vmatprep.subr.bf16.mxu0 %v1770_v9  ;;  %1668 = vmatpush3.bf16.msra.mxu1 %v1783_v20 }
  0x11   :  { %1669 = vmatprep.subr.bf16.mxu1 %v1937_v1 }
  0x13   :  { %1610 = vmatpush3.bf16.msra.mxu0 %v1771_v10 }
  0x14   :  { %1611 = vmatprep.subr.bf16.mxu0 %v1772_v11 }
  0x17   :  { %1612 = vmatpush3.bf16.msra.mxu0 %v1773_v14 }
  0x18   :  { %1613 = vmatprep.subr.bf16.mxu0 %v1774_v15 }
  0x1b   :  { %1614 = vmatpush3.bf16.msra.mxu0 %v1775_v17 }
  0x1c   :  { %1615 = vmatprep.subr.bf16.mxu0 %v1776_v18 }
  0x1f   :  { %1616 = vmatpush3.bf16.msra.mxu0 %v1777_v19 }
  0x20   :  { %1691 = vmatprep.subr.bf16.mxu0 %v1937_v1 }
  0x22   :  { %219 = vmatmul.mubr.bf16.vlgmr.msra.gmra.mrb[0].mxu0 %v1778_v21  ;;  %v1784_v21 = vld [vmem:[%s2418_s4 + $0x8] sm:$0xff]  }
  0x23   :  { %1692 = vmatpush3.bf16.msra.mxu0 %v2021_v13  ;;  %1695 = vmatprep.mubr.msk.bf16.mxu0 %vm1938_vm0, %v1937_v1 }
  0x24   :  { %1693 = vmatprep.subr.bf16.mxu0 %v1937_v1  ;;  %1670 = vmatpush3.bf16.msra.mxu1 %v1784_v21 }
  0x25   :  { %1675 = vmatprep.subr.bf16.mxu1 %v1937_v1 }
  0x27   :  { %1694 = vmatpush3.bf16.msra.mxu0 %v2033_v16 }
  0x28   :  { %1707 = vmatprep.subr.bf16.mxu0 %v1937_v1 }
  0xe1   :  { %v283_v22 = vpop.f32.mrb[0].mxu1 }
  0xe2   :  { %v1665_v23 = vpop.f32.mrb[1].mxu1  ;;  %v290_v35 = vrot.slane %v283_v22, 1 }
  0xe3   :  { %v286_v24 = vpop.f32.mrb[2].mxu1 }
  0xe4   :  { %v1666_v25 = vpop.f32.mrb[3].mxu1 }
  0xf5   :  { %v1617_v26 = vpop.f32.mrb[0].mxu0 }
  0xf6   :  { %v1618_v28 = vpop.f32.mrb[1].mxu0 }
  0xf7   :  { %v1619_v29 = vadd.f32 %v1618_v28, %v1617_v26  ;;  %v1620_v30 = vpop.f32.mrb[2].mxu0 }
  0xf8   :  { %v1621_v31 = vpop.f32.mrb[3].mxu0 }
  0xf9   :  { %v221_v32 = vadd.f32 %v1619_v29, %v1555_v27  ;;  %v1622_v33 = vadd.f32 %v1621_v31, %v1620_v30 }
  0xfb   :  { %227 = vst [vmem:[#allocation2] sm:$0x3f] %v221_v32  ;;  %229 = vst [vmem:[#allocation2 + $0x2] sm:$0xc0] %v221_v32  ;;  %v224_v34 = vadd.f32 %v1622_v33, %v1555_v27 }
  0xfd   :  { %230 = vst [vmem:[#allocation2 + $0xa] sm:$0xf] %v224_v34 }
 0x102   :  { %v232_v36 = vld [vmem:[#allocation2 + $0x8] sm:$0x1]  ;;  %v231_v37 = vld [vmem:[#allocation2] sm:$0x1] }
 0x103   :  { %v294_v38 = vadd.f32 %v290_v35, %v232_v36  ;;  %v293_v39 = vadd.f32 %v283_v22, %v231_v37 }
 0x105   :  { %1785 = vtanh.f32 %v294_v38  ;;  %v1577_v42 = vmul.f32 -1.442695, %v294_v38  ;;  %v1576_v43 = vmul.f32 -1.442695, %v293_v39 }
 0x106   :  { %1787 = vtanh.f32 %v293_v39 }
 0x107   :  { %1789 = vpow2.f32 %v1577_v42 }
 0x108   :  { %1791 = vpow2.f32 %v1576_v43 }
 0x10f   :  { %v1786_v40 = vpop.eup %1785 }
 0x110   :  { %315 = vrot.lane.b32.xlu0 %v1786_v40, %s1940_s12  ;;  %v1788_v41 = vpop.eup %1787  ;;  %v429_v40 = vld [vmem:[#allocation2 + $0x9] sm:$0x1] }
 0x111   :  { %v1790_v44 = vpop.eup %1789 }
 0x112   :  { %v302_v45 = vadd.f32 1.0, %v1790_v44  ;;  %v1792_v46 = vpop.eup %1791  ;;  %v428_v44 = vld [vmem:[#allocation2 + $0x1] sm:$0x1] }
 0x113   :  { %v301_v47 = vadd.f32 1.0, %v1792_v46 }
 0x114   :  { %313 = vrot.lane.b32.xlu0 %v1788_v41, %s1940_s12  ;;  %1793 = vrcp.f32 %v302_v45 }
 0x115   :  { %1795 = vrcp.f32 %v301_v47 }
 0x11e   :  { %v1794_v48 = vpop.eup %1793 }
 0x11f   :  { %v1796_v51 = vpop.eup %1795  ;;  %v310_v54 = vmul.f32 0.0, %v1794_v48 }
 0x120   :  { %v309_v57 = vmul.f32 0.0, %v1796_v51 }
 0x182   :  { %v316_v49 = vpop.permute.xlu0 %315 }
 0x183   :  { %v320_v50 = vmul.f32 %v1794_v48, %v316_v49 }
 0x185   :  { %325 = vrot.lane.b32.xlu1 %v320_v50, %s1941_s3 }
 0x186   :  { %v314_v52 = vpop.permute.xlu0 %313 }
 0x187   :  { %v319_v53 = vmul.f32 %v1796_v51, %v314_v52 }
 0x189   :  { %323 = vrot.lane.b32.xlu1 %v319_v53, %s1941_s3 }
 0x1f7   :  { %v326_v55 = vpop.permute.xlu1 %325 }
 0x1f8   :  { %v2066_v56 = vadd.f32 %v326_v55, %v310_v54 }
 0x1fa   :  { %1797 = vtanh.f32 %v2066_v56 }
 0x1fb   :  { %v324_v58 = vpop.permute.xlu1 %323 }
 0x1fc   :  { %v2069_v59 = vadd.f32 %v324_v58, %v309_v57 }
 0x1fe   :  { %1799 = vtanh.f32 %v2069_v59 }
 0x204   :  { %v1798_v60 = vpop.eup %1797 }
 0x205   :  { %337 = vrot.lane.b32.xlu0 %v1798_v60, %s1940_s12 }
 0x208   :  { %v1800_v61 = vpop.eup %1799 }
 0x209   :  { %335 = vrot.lane.b32.xlu1 %v1800_v61, %s1940_s12 }
 0x277   :  { %v338_v62 = vpop.permute.xlu0 %337 }
 0x278   :  { %v2074_v63 = vmul.f32 %v1794_v48, %v338_v62 }
 0x27a   :  { %v344_v0 = vmul.f32 %v2074_v63, %v2074_v63  ;;  %v431_v2 = vpack.c.bf16 %v2074_v63, %v2074_v63  ;;  %v363_v11 = vrot.slane %v2074_v63, 7 }
 0x27b   :  { %v336_v3 = vpop.permute.xlu1 %335 }
 0x27c   :  { %v2080_v4 = vmul.f32 %v1796_v51, %v336_v3  ;;  %v347_v6 = vrot.slane %v344_v0, 7  ;;  %v435_v8 = vunpack.c.l.b16 %v431_v2 }
 0x27e   :  { %v343_v5 = vmul.f32 %v2080_v4, %v2080_v4  ;;  %v430_v7 = vpack.c.bf16 %v2080_v4, %v2080_v4  ;;  %v436_v12 = vrot.slane %v435_v8, 7  ;;  %v364_v14 = vsel %vm348_vm1, %v363_v11, %v2080_v4 }
 0x280   :  { %v349_v9 = vsel %vm348_vm1, %v347_v6, %v343_v5  ;;  %v434_v10 = vunpack.c.l.b16 %v430_v7 }
 0x281   :  { %350 = vrot.lane.b32.xlu0 %v349_v9, %s1941_s3 }
 0x282   :  { %v437_v15 = vsel %vm348_vm1, %v436_v12, %v434_v10 }
 0x283   :  { %v438_v17 = vpack.c.b16 %v437_v15, %v437_v15 }
 0x285   :  { %365 = vrot.lane.b32.xlu0 %v364_v14, %s1941_s3 }
 0x289   :  { %439 = vrot.lane.b32.xlu0 %v438_v17, %s1941_s3 }
 0x2f3   :  { %v351_v18 = vpop.permute.xlu0 %350 }
 0x2f4   :  { %v354_v19 = vsel %vm353_vm2, %v351_v18, 0.0 }
 0x2f5   :  { %355 = vadd.xlane.f32.xlu1 %v354_v19 }
 0x2f7   :  { %v2103_v27 = vpop.permute.xlu0 %365 }
 0x2fb   :  { %v440_v32 = vpop.permute.xlu0 %439 }
 0x382   :  { %v356_v22 = vpop.xlane.xlu1 %355 }
 0x383   :  { %v357_v23 = vmul.f32 0.17677669, %v356_v22 }
 0x385   :  { %v358_v24 = vsub.f32 %v357_v23, %v357_v23 }
 0x387   :  { %v359_v25 = vmul.f32 1.442695, %v358_v24 }
 0x389   :  { %1801 = vpow2.f32 %v359_v25 }
 0x393   :  { %v1802_v26 = vpop.eup %1801 }
 0x394   :  { %1803 = vrcp.f32 %v1802_v26  ;;  %v368_v28 = vmul.f32 %v1802_v26, %v2103_v27  ;;  %v630_v26 = vld [vmem:[#allocation2 + $0xa] sm:$0x1] }
 0x39e   :  { %v1804_v29 = vpop.eup %1803 }
 0x39f   :  { %v370_v30 = vmul.f32 %v1804_v29, %v368_v28 }
 0x3a1   :  { %v371_v31 = vpack.c.bf16 %v370_v30, %v370_v30 }
 0x3a3   :  { %1672 = vmatmul.mubr.msk.bf16.vlgmr.msra.gmra.mrb[4].mxu1 %vm245_vm3, %v371_v31 }
 0x3a4   :  { %1676 = vmatpush3.bf16.msra.mxu1 %v2021_v13  ;;  %1679 = vmatprep.mubr.msk.bf16.mxu1 %vm1938_vm0, %v1937_v1 }
 0x3a5   :  { %1677 = vmatprep.subr.bf16.mxu1 %v1937_v1 }
 0x3a8   :  { %1678 = vmatpush3.bf16.msra.mxu1 %v2033_v16 }
 0x3a9   :  { %1683 = vmatprep.subr.bf16.mxu1 %v1937_v1 }
 0x3ab   :  { %1680 = vmatmul.mubr.msk.bf16.vlgmr.msra.gmra.mrb[8].mxu1 %vm245_vm3, %v440_v32 }
 0x3ac   :  { %1684 = vmatpush3.bf16.msra.mxu1 %v1783_v20  ;;  %1687 = vmatprep.mubr.msk.bf16.mxu1 %vm1938_vm0, %v1937_v1 }
 0x3ad   :  { %1685 = vmatprep.subr.bf16.mxu1 %v1937_v1 }
 0x3b0   :  { %1686 = vmatpush3.bf16.msra.mxu1 %v1784_v21  ;;  %v629_v21 = vld [vmem:[#allocation2 + $0x2] sm:$0x1] }
 0x3b1   :  { %1699 = vmatprep.subr.bf16.mxu1 %v1937_v1 }
 0x476   :  { %v2118_v33 = vpop.f32.mrb[4].mxu1 }
 0x477   :  { %v1673_v34 = vpop.f32.mrb[5].mxu1 }
 0x478   :  { %v424_v35 = vpop.f32.mrb[6].mxu1 }
 0x479   :  { %v1674_v36 = vpop.f32.mrb[7].mxu1 }
 0x47e   :  { %v478_v37 = vpop.f32.mrb[8].mxu1 }
 0x47f   :  { %v485_v38 = vrot.slane %v478_v37, 1  ;;  %v1681_v39 = vpop.f32.mrb[9].mxu1  ;;  %v488_v45 = vadd.f32 %v478_v37, %v428_v44 }
 0x480   :  { %v481_v41 = vpop.f32.mrb[10].mxu1 }
 0x481   :  { %v489_v42 = vadd.f32 %v485_v38, %v429_v40  ;;  %v1682_v43 = vpop.f32.mrb[11].mxu1  ;;  %v1582_v49 = vmul.f32 -1.442695, %v488_v45 }
 0x483   :  { %1805 = vtanh.f32 %v489_v42  ;;  %v1583_v48 = vmul.f32 -1.442695, %v489_v42 }
 0x484   :  { %1807 = vtanh.f32 %v488_v45 }
 0x485   :  { %1809 = vpow2.f32 %v1583_v48 }
 0x486   :  { %1811 = vpow2.f32 %v1582_v49 }
 0x48d   :  { %v1806_v46 = vpop.eup %1805 }
 0x48e   :  { %510 = vrot.lane.b32.xlu0 %v1806_v46, %s1940_s12  ;;  %v1808_v47 = vpop.eup %1807 }
 0x48f   :  { %v1810_v50 = vpop.eup %1809 }
 0x490   :  { %v497_v51 = vadd.f32 1.0, %v1810_v50  ;;  %v1812_v52 = vpop.eup %1811 }
 0x491   :  { %v496_v53 = vadd.f32 1.0, %v1812_v52 }
 0x492   :  { %508 = vrot.lane.b32.xlu0 %v1808_v47, %s1940_s12  ;;  %1813 = vrcp.f32 %v497_v51 }
 0x493   :  { %1815 = vrcp.f32 %v496_v53 }
 0x49c   :  { %v1814_v54 = vpop.eup %1813 }
 0x49d   :  { %v1816_v58 = vpop.eup %1815  ;;  %v505_v62 = vmul.f32 %v1814_v54, %v2066_v56 }
 0x49e   :  { %v504_v3 = vmul.f32 %v1816_v58, %v2069_v59 }
 0x500   :  { %v511_v55 = vpop.permute.xlu0 %510 }
 0x501   :  { %v515_v57 = vmul.f32 %v1814_v54, %v511_v55 }
 0x503   :  { %520 = vrot.lane.b32.xlu0 %v515_v57, %s1941_s3 }
 0x504   :  { %v509_v60 = vpop.permute.xlu0 %508 }
 0x505   :  { %v514_v61 = vmul.f32 %v1816_v58, %v509_v60 }
 0x507   :  { %518 = vrot.lane.b32.xlu0 %v514_v61, %s1941_s3 }
 0x575   :  { %v521_v0 = vpop.permute.xlu0 %520 }
 0x576   :  { %v525_v2 = vadd.f32 %v521_v0, %v505_v62 }
 0x578   :  { %1817 = vtanh.f32 %v525_v2 }
 0x579   :  { %v519_v5 = vpop.permute.xlu0 %518 }
 0x57a   :  { %v524_v6 = vadd.f32 %v519_v5, %v504_v3 }
 0x57c   :  { %1819 = vtanh.f32 %v524_v6 }
 0x582   :  { %v1818_v7 = vpop.eup %1817 }
 0x583   :  { %532 = vrot.lane.b32.xlu0 %v1818_v7, %s1940_s12  ;;  %v850_v7 = vld [vmem:[#allocation2 + $0x3] sm:$0x1] }
 0x586   :  { %v1820_v8 = vpop.eup %1819 }
 0x587   :  { %530 = vrot.lane.b32.xlu0 %v1820_v8, %s1940_s12 }
 0x5f5   :  { %v533_v9 = vpop.permute.xlu0 %532 }
 0x5f6   :  { %v2128_v10 = vmul.f32 %v1814_v54, %v533_v9 }
 0x5f8   :  { %v632_v56 = vpack.c.bf16 %v2128_v10, %v2128_v10 }
 0x5f9   :  { %v531_v11 = vpop.permute.xlu0 %530 }
 0x5fa   :  { %v2132_v12 = vmul.f32 %v1816_v58, %v531_v11  ;;  %v636_v14 = vunpack.c.l.b16 %v632_v56 }
 0x5fc   :  { %v631_v59 = vpack.c.bf16 %v2132_v12, %v2132_v12  ;;  %v637_v17 = vrot.slane %v636_v14, 7  ;;  %v851_v14 = vld [vmem:[#allocation2 + $0xb] sm:$0x1] }
 0x5fe   :  { %v635_v15 = vunpack.c.l.b16 %v631_v59 }
 0x600   :  { %v638_v18 = vsel %vm348_vm1, %v637_v17, %v635_v15 }
 0x601   :  { %v639_v19 = vpack.c.b16 %v638_v18, %v638_v18 }
 0x603   :  { %640 = vrot.lane.b32.xlu0 %v639_v19, %s1941_s3 }
 0x675   :  { %v641_v20 = vpop.permute.xlu0 %640 }
 0x676   :  { %1696 = vmatmul.mubr.msk.bf16.vlgmr.msra.gmra.mrb[4].mxu0 %vm245_vm3, %v641_v20 }
 0x677   :  { %1708 = vmatpush3.bf16.msra.mxu0 %v2021_v13  ;;  %1711 = vmatprep.mubr.msk.bf16.mxu0 %vm1938_vm0, %v1937_v1 }
 0x678   :  { %1709 = vmatprep.subr.bf16.mxu0 %v1937_v1 }
 0x67b   :  { %1710 = vmatpush3.bf16.msra.mxu0 %v2033_v16 }
 0x67c   :  { %1723 = vmatprep.subr.bf16.mxu0 %v1937_v1 }
 0x749   :  { %v679_v22 = vpop.f32.mrb[4].mxu0 }
 0x74a   :  { %v686_v23 = vrot.slane %v679_v22, 1  ;;  %v689_v24 = vadd.f32 %v679_v22, %v629_v21  ;;  %v1697_v25 = vpop.f32.mrb[5].mxu0 }
 0x74b   :  { %v682_v28 = vpop.f32.mrb[6].mxu0 }
 0x74c   :  { %v690_v29 = vadd.f32 %v686_v23, %v630_v26  ;;  %1821 = vtanh.f32 %v689_v24  ;;  %v1698_v30 = vpop.f32.mrb[7].mxu0  ;;  %v1586_v35 = vmul.f32 -1.442695, %v689_v24 }
 0x74e   :  { %1823 = vtanh.f32 %v690_v29  ;;  %v1587_v34 = vmul.f32 -1.442695, %v690_v29 }
 0x750   :  { %1825 = vpow2.f32 %v1587_v34 }
 0x751   :  { %1827 = vpow2.f32 %v1586_v35 }
 0x756   :  { %v1822_v31 = vpop.eup %1821 }
 0x757   :  { %709 = vrot.lane.b32.xlu0 %v1822_v31, %s1940_s12 }
 0x758   :  { %v1824_v32 = vpop.eup %1823 }
 0x759   :  { %711 = vrot.lane.b32.xlu1 %v1824_v32, %s1940_s12 }
 0x75a   :  { %v1826_v36 = vpop.eup %1825 }
 0x75b   :  { %v698_v37 = vadd.f32 1.0, %v1826_v36  ;;  %v1828_v38 = vpop.eup %1827 }
 0x75c   :  { %v697_v39 = vadd.f32 1.0, %v1828_v38 }
 0x75d   :  { %1829 = vrcp.f32 %v698_v37 }
 0x75e   :  { %1831 = vrcp.f32 %v697_v39 }
 0x767   :  { %v1830_v40 = vpop.eup %1829 }
 0x768   :  { %v1832_v44 = vpop.eup %1831  ;;  %v706_v46 = vmul.f32 %v1830_v40, %v525_v2 }
 0x769   :  { %v705_v49 = vmul.f32 %v1832_v44, %v524_v6 }
 0x7c9   :  { %v710_v43 = vpop.permute.xlu0 %709 }
 0x7ca   :  { %v715_v45 = vmul.f32 %v1832_v44, %v710_v43 }
 0x7cb   :  { %v712_v41 = vpop.permute.xlu1 %711 }
 0x7cc   :  { %v716_v42 = vmul.f32 %v1830_v40, %v712_v41 }
 0x7ce   :  { %721 = vrot.lane.b32.xlu0 %v716_v42, %s1941_s3 }
 0x7d2   :  { %719 = vrot.lane.b32.xlu0 %v715_v45, %s1941_s3 }
 0x840   :  { %v722_v47 = vpop.permute.xlu0 %721 }
 0x841   :  { %v2149_v48 = vadd.f32 %v722_v47, %v706_v46 }
 0x843   :  { %1833 = vtanh.f32 %v2149_v48 }
 0x844   :  { %v720_v50 = vpop.permute.xlu0 %719 }
 0x845   :  { %v725_v51 = vadd.f32 %v720_v50, %v705_v49 }
 0x847   :  { %1835 = vtanh.f32 %v725_v51 }
 0x84d   :  { %v1834_v52 = vpop.eup %1833 }
 0x84e   :  { %733 = vrot.lane.b32.xlu0 %v1834_v52, %s1940_s12 }
 0x851   :  { %v1836_v53 = vpop.eup %1835 }
 0x852   :  { %731 = vrot.lane.b32.xlu1 %v1836_v53, %s1940_s12 }
 0x8c0   :  { %v734_v54 = vpop.permute.xlu0 %733 }
 0x8c1   :  { %v2154_v55 = vmul.f32 %v1830_v40, %v734_v54  ;;  %v1071_v54 = vld [vmem:[#allocation2 + $0x4] sm:$0x1] }
 0x8c3   :  { %v853_v57 = vpack.c.bf16 %v2154_v55, %v2154_v55 }
 0x8c4   :  { %v732_v58 = vpop.permute.xlu1 %731 }
 0x8c5   :  { %v2158_v60 = vmul.f32 %v1832_v44, %v732_v58  ;;  %v857_v61 = vunpack.c.l.b16 %v853_v57 }
 0x8c7   :  { %v852_v62 = vpack.c.bf16 %v2158_v60, %v2158_v60  ;;  %v858_v2 = vrot.slane %v857_v61, 7 }
 0x8c9   :  { %v856_v0 = vunpack.c.l.b16 %v852_v62 }
 0x8cb   :  { %v859_v3 = vsel %vm348_vm1, %v858_v2, %v856_v0  ;;  %v1072_v0 = vld [vmem:[#allocation2 + $0xc] sm:$0x1] }
 0x8cc   :  { %v860_v5 = vpack.c.b16 %v859_v3, %v859_v3 }
 0x8ce   :  { %861 = vrot.lane.b32.xlu0 %v860_v5, %s1941_s3 }
 0x940   :  { %v862_v6 = vpop.permute.xlu0 %861 }
 0x941   :  { %1712 = vmatmul.mubr.msk.bf16.vlgmr.msra.gmra.mrb[8].mxu0 %vm245_vm3, %v862_v6 }
 0x942   :  { %1724 = vmatpush3.bf16.msra.mxu0 %v2021_v13  ;;  %1727 = vmatprep.mubr.msk.bf16.mxu0 %vm1938_vm0, %v1937_v1 }
 0x943   :  { %1725 = vmatprep.subr.bf16.mxu0 %v1937_v1 }
 0x946   :  { %1726 = vmatpush3.bf16.msra.mxu0 %v2033_v16 }
 0x947   :  { %1739 = vmatprep.subr.bf16.mxu0 %v1937_v1 }
 0xa14   :  { %v900_v8 = vpop.f32.mrb[8].mxu0 }
 0xa15   :  { %v907_v9 = vrot.slane %v900_v8, 1  ;;  %v910_v56 = vadd.f32 %v900_v8, %v850_v7  ;;  %v1713_v11 = vpop.f32.mrb[9].mxu0 }
 0xa16   :  { %v903_v59 = vpop.f32.mrb[10].mxu0 }
 0xa17   :  { %v911_v15 = vadd.f32 %v907_v9, %v851_v14  ;;  %1837 = vtanh.f32 %v910_v56  ;;  %v1714_v17 = vpop.f32.mrb[11].mxu0  ;;  %v1590_v20 = vmul.f32 -1.442695, %v910_v56 }
 0xa19   :  { %1839 = vtanh.f32 %v911_v15  ;;  %v1591_v21 = vmul.f32 -1.442695, %v911_v15 }
 0xa1a   :  { %1841 = vpow2.f32 %v1590_v20 }
 0xa1b   :  { %1843 = vpow2.f32 %v1591_v21 }
 0xa21   :  { %v1838_v18 = vpop.eup %1837 }
 0xa22   :  { %930 = vrot.lane.b32.xlu0 %v1838_v18, %s1940_s12 }
 0xa23   :  { %v1840_v19 = vpop.eup %1839 }
 0xa24   :  { %932 = vrot.lane.b32.xlu1 %v1840_v19, %s1940_s12  ;;  %v1842_v22 = vpop.eup %1841 }
 0xa25   :  { %v1844_v23 = vpop.eup %1843  ;;  %v918_v24 = vadd.f32 1.0, %v1842_v22 }
 0xa26   :  { %v919_v25 = vadd.f32 1.0, %v1844_v23 }
 0xa27   :  { %1845 = vrcp.f32 %v918_v24 }
 0xa28   :  { %1847 = vrcp.f32 %v919_v25 }
 0xa31   :  { %v1846_v26 = vpop.eup %1845 }
 0xa32   :  { %v1848_v30 = vpop.eup %1847  ;;  %v926_v34 = vmul.f32 %v1846_v26, %v725_v51 }
 0xa33   :  { %v927_v37 = vmul.f32 %v1848_v30, %v2149_v48 }
 0xa94   :  { %v931_v28 = vpop.permute.xlu0 %930 }
 0xa95   :  { %v936_v29 = vmul.f32 %v1846_v26, %v931_v28 }
 0xa96   :  { %v933_v31 = vpop.permute.xlu1 %932 }
 0xa97   :  { %940 = vrot.lane.b32.xlu0 %v936_v29, %s1941_s3  ;;  %v937_v32 = vmul.f32 %v1848_v30, %v933_v31 }
 0xa99   :  { %942 = vrot.lane.b32.xlu1 %v937_v32, %s1941_s3 }
 0xb09   :  { %v941_v35 = vpop.permute.xlu0 %940 }
 0xb0a   :  { %v946_v36 = vadd.f32 %v941_v35, %v926_v34 }
 0xb0b   :  { %v943_v38 = vpop.permute.xlu1 %942 }
 0xb0c   :  { %1849 = vtanh.f32 %v946_v36  ;;  %v947_v39 = vadd.f32 %v943_v38, %v927_v37 }
 0xb0e   :  { %1851 = vtanh.f32 %v947_v39 }
 0xb16   :  { %v1850_v40 = vpop.eup %1849 }
 0xb17   :  { %952 = vrot.lane.b32.xlu0 %v1850_v40, %s1940_s12 }
 0xb18   :  { %v1852_v41 = vpop.eup %1851 }
 0xb19   :  { %954 = vrot.lane.b32.xlu1 %v1852_v41, %s1940_s12 }
 0xb89   :  { %v953_v42 = vpop.permute.xlu0 %952 }
 0xb8a   :  { %v2178_v43 = vmul.f32 %v1846_v26, %v953_v42  ;;  %v1292_v42 = vld [vmem:[#allocation2 + $0x5] sm:$0x1] }
 0xb8b   :  { %v955_v44 = vpop.permute.xlu1 %954 }
 0xb8c   :  { %v2180_v45 = vmul.f32 %v1848_v30, %v955_v44  ;;  %v1073_v46 = vpack.c.bf16 %v2178_v43, %v2178_v43 }
 0xb8e   :  { %v1074_v47 = vpack.c.bf16 %v2180_v45, %v2180_v45  ;;  %v1077_v49 = vunpack.c.l.b16 %v1073_v46 }
 0xb90   :  { %v1078_v48 = vunpack.c.l.b16 %v1074_v47 }
 0xb92   :  { %v1079_v50 = vrot.slane %v1078_v48, 7 }
 0xb94   :  { %v1080_v51 = vsel %vm348_vm1, %v1079_v50, %v1077_v49  ;;  %v1293_v49 = vld [vmem:[#allocation2 + $0xd] sm:$0x1] }
 0xb95   :  { %v1081_v52 = vpack.c.b16 %v1080_v51, %v1080_v51 }
 0xb97   :  { %1082 = vrot.lane.b32.xlu1 %v1081_v52, %s1941_s3 }
 0xc09   :  { %v1083_v53 = vpop.permute.xlu1 %1082 }
 0xc0a   :  { %1728 = vmatmul.mubr.msk.bf16.vlgmr.msra.gmra.mrb[12].mxu0 %vm245_vm3, %v1083_v53 }
 0xc0b   :  { %1740 = vmatpush3.bf16.msra.mxu0 %v2021_v13  ;;  %1743 = vmatprep.mubr.msk.bf16.mxu0 %vm1938_vm0, %v1937_v1 }
 0xc0c   :  { %1741 = vmatprep.subr.bf16.mxu0 %v1937_v1 }
 0xc0f   :  { %1742 = vmatpush3.bf16.msra.mxu0 %v2033_v16 }
 0xcdd   :  { %v1121_v57 = vpop.f32.mrb[12].mxu0 }
 0xcde   :  { %v1128_v58 = vrot.slane %v1121_v57, 1  ;;  %v1131_v61 = vadd.f32 %v1121_v57, %v1071_v54  ;;  %v1729_v62 = vpop.f32.mrb[13].mxu0 }
 0xcdf   :  { %v1124_v2 = vpop.f32.mrb[14].mxu0 }
 0xce0   :  { %v1132_v3 = vadd.f32 %v1128_v58, %v1072_v0  ;;  %1853 = vtanh.f32 %v1131_v61  ;;  %v1730_v5 = vpop.f32.mrb[15].mxu0  ;;  %v1594_v7 = vmul.f32 -1.442695, %v1131_v61 }
 0xce2   :  { %1855 = vtanh.f32 %v1132_v3  ;;  %v1595_v8 = vmul.f32 -1.442695, %v1132_v3 }
 0xce3   :  { %1857 = vpow2.f32 %v1594_v7  ;;  %v551_v7 = vmul.f32 %v2132_v12, %v2132_v12 }
 0xce4   :  { %1859 = vpow2.f32 %v1595_v8 }
 0xcea   :  { %v1854_v6 = vpop.eup %1853 }
 0xceb   :  { %1151 = vrot.lane.b32.xlu1 %v1854_v6, %s1940_s12  ;;  %v552_v6 = vmul.f32 %v2128_v10, %v2128_v10 }
 0xcec   :  { %v1856_v13 = vpop.eup %1855 }
 0xced   :  { %1153 = vrot.lane.b32.xlu0 %v1856_v13, %s1940_s12  ;;  %v1858_v16 = vpop.eup %1857 }
 0xcee   :  { %v1860_v9 = vpop.eup %1859  ;;  %v1139_v56 = vadd.f32 1.0, %v1858_v16 }
 0xcef   :  { %v1140_v11 = vadd.f32 1.0, %v1860_v9  ;;  %v539_v9 = vmul.f32 %v2128_v10, %v2074_v63 }
 0xcf0   :  { %1861 = vrcp.f32 %v1139_v56 }
 0xcf1   :  { %1863 = vrcp.f32 %v1140_v11  ;;  %v555_v11 = vrot.slane %v552_v6, 7 }
 0xcfa   :  { %v1862_v14 = vpop.eup %1861 }
 0xcfb   :  { %v1864_v17 = vpop.eup %1863  ;;  %v1147_v20 = vmul.f32 %v1862_v14, %v946_v36 }
 0xcfc   :  { %v1148_v23 = vmul.f32 %v1864_v17, %v947_v39 }
 0xd5d   :  { %v1152_v59 = vpop.permute.xlu1 %1151 }
 0xd5e   :  { %v1157_v15 = vmul.f32 %v1862_v14, %v1152_v59  ;;  %v538_v59 = vmul.f32 %v2132_v12, %v2080_v4 }
 0xd5f   :  { %v1154_v18 = vpop.permute.xlu0 %1153 }
 0xd60   :  { %1161 = vrot.lane.b32.xlu1 %v1157_v15, %s1941_s3  ;;  %v1158_v19 = vmul.f32 %v1864_v17, %v1154_v18  ;;  %v556_v15 = vsel %vm348_vm1, %v555_v11, %v551_v7  ;;  %v961_v18 = vmul.f32 %v2180_v45, %v2128_v10 }
 0xd62   :  { %1163 = vrot.lane.b32.xlu0 %v1158_v19, %s1941_s3  ;;  %v542_v19 = vrot.slane %v539_v9, 7 }
 0xdd2   :  { %v1162_v21 = vpop.permute.xlu1 %1161 }
 0xdd3   :  { %v2198_v22 = vadd.f32 %v1162_v21, %v1147_v20  ;;  %v740_v20 = vmul.f32 %v2154_v55, %v2074_v63  ;;  %v960_v63 = vmul.f32 %v2178_v43, %v2132_v12 }
 0xdd4   :  { %v1164_v24 = vpop.permute.xlu0 %1163 }
 0xdd5   :  { %1865 = vtanh.f32 %v2198_v22  ;;  %v2201_v25 = vadd.f32 %v1164_v24, %v1148_v23  ;;  %v543_v23 = vsel %vm348_vm1, %v542_v19, %v538_v59  ;;  %v739_v24 = vmul.f32 %v2158_v60, %v2080_v4 }
 0xdd6   :  { %v974_v4 = vmul.f32 %v2180_v45, %v2154_v55 }
 0xdd7   :  { %1867 = vtanh.f32 %v2201_v25 }
 0xddf   :  { %v1866_v26 = vpop.eup %1865 }
 0xde0   :  { %1173 = vrot.lane.b32.xlu1 %v1866_v26, %s1940_s12 }
 0xde1   :  { %v1868_v28 = vpop.eup %1867 }
 0xde2   :  { %1175 = vrot.lane.b32.xlu0 %v1868_v28, %s1940_s12  ;;  %v964_v28 = vrot.slane %v961_v18, 7 }
 0xe52   :  { %v1174_v29 = vpop.permute.xlu1 %1173 }
 0xe53   :  { %v2206_v30 = vmul.f32 %v1862_v14, %v1174_v29  ;;  %v753_v14 = vmul.f32 %v2154_v55, %v2128_v10  ;;  %v743_v29 = vrot.slane %v740_v20, 7 }
 0xe54   :  { %v1176_v31 = vpop.permute.xlu0 %1175 }
 0xe55   :  { %v2208_v32 = vmul.f32 %v1864_v17, %v1176_v31  ;;  %v1294_v34 = vpack.c.bf16 %v2206_v30, %v2206_v30  ;;  %v752_v17 = vmul.f32 %v2158_v60, %v2132_v12  ;;  %v756_v21 = vrot.slane %v753_v14, 7 }
 0xe56   :  { %v766_v31 = vmul.f32 %v2154_v55, %v2154_v55  ;;  %v1194_v7 = vmul.f32 %v2206_v30, %v2178_v43 }
 0xe57   :  { %v1295_v35 = vpack.c.bf16 %v2208_v32, %v2208_v32  ;;  %v1298_v37 = vunpack.c.l.b16 %v1294_v34  ;;  %v757_v26 = vsel %vm348_vm1, %v756_v21, %v752_v17  ;;  %v744_v34 = vsel %vm348_vm1, %v743_v29, %v739_v24 }
 0xe59   :  { %v1299_v36 = vunpack.c.l.b16 %v1295_v35  ;;  %v765_v35 = vmul.f32 %v2158_v60, %v2158_v60 }
 0xe5b   :  { %v1300_v38 = vrot.slane %v1299_v36, 7  ;;  %v965_v36 = vsel %vm348_vm1, %v964_v28, %v960_v63 }
 0xe5d   :  { %v1301_v39 = vsel %vm348_vm1, %v1300_v38, %v1298_v37  ;;  %v769_v37 = vrot.slane %v766_v31, 7 }
 0xe5e   :  { %v1302_v40 = vpack.c.b16 %v1301_v39, %v1301_v39  ;;  %v977_v39 = vrot.slane %v974_v4, 7 }
 0xe5f   :  { %v770_v38 = vsel %vm348_vm1, %v769_v37, %v765_v35 }
 0xe60   :  { %1303 = vrot.lane.b32.xlu0 %v1302_v40, %s1941_s3  ;;  %v1182_v40 = vmul.f32 %v2208_v32, %v2154_v55 }
 0xed2   :  { %v1304_v41 = vpop.permute.xlu0 %1303 }
 0xed3   :  { %1744 = vmatmul.mubr.msk.bf16.vlgmr.msra.gmra.mrb[16].mxu0 %vm245_vm3, %v1304_v41  ;;  %v973_v41 = vmul.f32 %v2178_v43, %v2158_v60 }
 0xfa6   :  { %v1342_v44 = vpop.f32.mrb[16].mxu0 }
 0xfa7   :  { %v1349_v46 = vrot.slane %v1342_v44, 1  ;;  %v1352_v47 = vadd.f32 %v1342_v44, %v1292_v42  ;;  %v1745_v48 = vpop.f32.mrb[17].mxu0  ;;  %v978_v42 = vsel %vm348_vm1, %v977_v39, %v973_v41  ;;  %v1185_v44 = vrot.slane %v1182_v40, 7 }
 0xfa8   :  { %v1345_v50 = vpop.f32.mrb[18].mxu0 }
 0xfa9   :  { %v1353_v51 = vadd.f32 %v1349_v46, %v1293_v49  ;;  %1869 = vtanh.f32 %v1352_v47  ;;  %v1746_v52 = vpop.f32.mrb[19].mxu0  ;;  %v1598_v57 = vmul.f32 -1.442695, %v1352_v47  ;;  %v1208_v46 = vmul.f32 %v2208_v32, %v2208_v32 }
 0xfaa   :  { %v1181_v47 = vmul.f32 %v2206_v30, %v2158_v60  ;;  %v1207_v50 = vmul.f32 %v2206_v30, %v2206_v30 }
 0xfab   :  { %1871 = vtanh.f32 %v1353_v51  ;;  %v1599_v58 = vmul.f32 -1.442695, %v1353_v51  ;;  %v1211_v49 = vrot.slane %v1208_v46, 7 }
 0xfac   :  { %1873 = vpow2.f32 %v1598_v57  ;;  %v1186_v48 = vsel %vm348_vm1, %v1185_v44, %v1181_v47 }
 0xfad   :  { %1875 = vpow2.f32 %v1599_v58  ;;  %v1212_v51 = vsel %vm348_vm1, %v1211_v49, %v1207_v50 }
 0xfb3   :  { %v1870_v53 = vpop.eup %1869 }
 0xfb4   :  { %1372 = vrot.lane.b32.xlu0 %v1870_v53, %s1940_s12 }
 0xfb5   :  { %v1872_v54 = vpop.eup %1871 }
 0xfb6   :  { %1374 = vrot.lane.b32.xlu1 %v1872_v54, %s1940_s12  ;;  %v1874_v61 = vpop.eup %1873 }
 0xfb7   :  { %v1876_v62 = vpop.eup %1875  ;;  %v1360_v0 = vadd.f32 1.0, %v1874_v61 }
 0xfb8   :  { %v1361_v2 = vadd.f32 1.0, %v1876_v62  ;;  %v987_v62 = vmul.f32 %v2180_v45, %v2180_v45 }
 0xfb9   :  { %1877 = vrcp.f32 %v1360_v0 }
 0xfba   :  { %1879 = vrcp.f32 %v1361_v2  ;;  %v990_v2 = vrot.slane %v987_v62, 7 }
 0xfc3   :  { %v2219_v3 = vpop.eup %1877 }
 0xfc4   :  { %v2226_v8 = vpop.eup %1879  ;;  %v1368_v52 = vmul.f32 %v2219_v3, %v2198_v22  ;;  %v986_v22 = vmul.f32 %v2178_v43, %v2178_v43 }
 0xfc5   :  { %v1369_v57 = vmul.f32 %v2226_v8, %v2201_v25 }
 0xfc6   :  { %v991_v25 = vsel %vm348_vm1, %v990_v2, %v986_v22 }
0x1026   :  { %v1373_v5 = vpop.permute.xlu0 %1372 }
0x1027   :  { %v1378_v13 = vmul.f32 %v2219_v3, %v1373_v5  ;;  %v1195_v5 = vmul.f32 %v2208_v32, %v2180_v45 }
0x1028   :  { %v1375_v16 = vpop.permute.xlu1 %1374 }
0x1029   :  { %1382 = vrot.lane.b32.xlu0 %v1378_v13, %s1941_s3  ;;  %v1379_v56 = vmul.f32 %v2226_v8, %v1375_v16  ;;  %v1198_v13 = vrot.slane %v1195_v5, 7 }
0x102b   :  { %1384 = vrot.lane.b32.xlu1 %v1379_v56, %s1941_s3  ;;  %v1199_v16 = vsel %vm348_vm1, %v1198_v13, %v1194_v7 }
0x102d   :  { %557 = vrot.lane.b32.xlu0 %v556_v15, %s1941_s3 }
0x102f   :  { %544 = vrot.lane.b32.xlu1 %v543_v23, %s1941_s3 }
0x1031   :  { %758 = vrot.lane.b32.xlu0 %v757_v26, %s1941_s3 }
0x1033   :  { %745 = vrot.lane.b32.xlu1 %v744_v34, %s1941_s3 }
0x1035   :  { %966 = vrot.lane.b32.xlu0 %v965_v36, %s1941_s3 }
0x1037   :  { %771 = vrot.lane.b32.xlu1 %v770_v38, %s1941_s3 }
0x103b   :  { %979 = vrot.lane.b32.xlu1 %v978_v42, %s1941_s3 }
0x103f   :  { %1187 = vrot.lane.b32.xlu1 %v1186_v48, %s1941_s3 }
0x1043   :  { %1213 = vrot.lane.b32.xlu1 %v1212_v51, %s1941_s3 }
0x109b   :  { %v1383_v53 = vpop.permute.xlu0 %1382 }
0x109c   :  { %v1388_v54 = vadd.f32 %v1383_v53, %v1368_v52 }
0x109d   :  { %v1385_v58 = vpop.permute.xlu1 %1384 }
0x109e   :  { %1881 = vtanh.f32 %v1388_v54  ;;  %v1389_v61 = vadd.f32 %v1385_v58, %v1369_v57 }
0x109f   :  { %v558_v9 = vpop.permute.xlu0 %557 }
0x10a0   :  { %1883 = vtanh.f32 %v1389_v61  ;;  %v560_v14 = vsel %vm353_vm2, %v558_v9, 0.0 }
0x10a1   :  { %v545_v56 = vpop.permute.xlu1 %544 }
0x10a2   :  { %v547_v11 = vsel %vm353_vm2, %v545_v56, 0.0 }
0x10a3   :  { %v759_v18 = vpop.permute.xlu0 %758 }
0x10a4   :  { %v761_v44 = vsel %vm353_vm2, %v759_v18, 0.0  ;;  %v1238_v18 = vrot.slane %v2208_v32, 7 }
0x10a5   :  { %v746_v59 = vpop.permute.xlu1 %745 }
0x10a6   :  { %v748_v42 = vsel %vm353_vm2, %v746_v59, 0.0 }
0x10a7   :  { %v967_v20 = vpop.permute.xlu0 %966 }
0x10a8   :  { %v1882_v0 = vpop.eup %1881  ;;  %v969_v48 = vsel %vm353_vm2, %v967_v20, 0.0 }
0x10a9   :  { %1394 = vrot.lane.b32.xlu0 %v1882_v0, %s1940_s12  ;;  %v772_v15 = vpop.permute.xlu1 %771 }
0x10aa   :  { %v1884_v6 = vpop.eup %1883  ;;  %v774_v47 = vsel %vm353_vm2, %v772_v15, 0.0  ;;  %v575_v15 = vrot.slane %v2128_v10, 7 }
0x10ab   :  { %1396 = vrot.lane.b32.xlu1 %v1884_v6, %s1940_s12 }
0x10ad   :  { %992 = vrot.lane.b32.xlu0 %v991_v25, %s1941_s3  ;;  %v980_v17 = vpop.permute.xlu1 %979 }
0x10ae   :  { %v982_v49 = vsel %vm353_vm2, %v980_v17, 0.0  ;;  %v576_v17 = vsel %vm348_vm1, %v575_v15, %v2132_v12 }
0x10b1   :  { %1200 = vrot.lane.b32.xlu0 %v1199_v16, %s1941_s3  ;;  %v1188_v19 = vpop.permute.xlu1 %1187 }
0x10b2   :  { %v1190_v52 = vsel %vm353_vm2, %v1188_v19, 0.0  ;;  %v1239_v19 = vsel %vm348_vm1, %v1238_v18, %v2206_v30 }
0x10b5   :  { %v1214_v21 = vpop.permute.xlu1 %1213 }
0x10b6   :  { %v1216_v54 = vsel %vm353_vm2, %v1214_v21, 0.0 }
0x10cf   :  { %548 = vadd.xlane.f32.xlu1 %v547_v11 }
0x10d0   :  { %561 = vadd.xlane.f32.xlu0 %v560_v14  ;;  %v796_v14 = vrot.slane %v2154_v55, 7 }
0x10d2   :  { %v797_v59 = vsel %vm348_vm1, %v796_v14, %v2158_v60  ;;  %v1017_v60 = vrot.slane %v2180_v45, 7 }
0x10d4   :  { %v1018_v10 = vsel %vm348_vm1, %v1017_v60, %v2178_v43 }
0x111b   :  { %v1395_v23 = vpop.permute.xlu0 %1394 }
0x111c   :  { %v1400_v24 = vmul.f32 %v2219_v3, %v1395_v23 }
0x111d   :  { %v1397_v26 = vpop.permute.xlu1 %1396 }
0x111e   :  { %v1401_v28 = vmul.f32 %v2226_v8, %v1397_v26  ;;  %v1415_v35 = vmul.f32 %v1400_v24, %v2206_v30  ;;  %v1402_v36 = vmul.f32 %v1400_v24, %v2178_v43  ;;  %v1428_v40 = vmul.f32 %v1400_v24, %v1400_v24 }
0x111f   :  { %v993_v46 = vpop.permute.xlu0 %992 }
0x1120   :  { %v1416_v29 = vmul.f32 %v1401_v28, %v2208_v32  ;;  %v1403_v31 = vmul.f32 %v1401_v28, %v2180_v45  ;;  %v1429_v63 = vmul.f32 %v1401_v28, %v1401_v28  ;;  %v1459_v34 = vrot.slane %v1401_v28, 7 }
0x1121   :  { %v995_v50 = vsel %vm353_vm2, %v993_v46, 0.0 }
0x1122   :  { %v1419_v4 = vrot.slane %v1416_v29, 7  ;;  %v1406_v37 = vrot.slane %v1403_v31, 7  ;;  %v2308_v38 = vsel %vm348_vm1, %v1459_v34, %v1400_v24  ;;  %v1432_v8 = vrot.slane %v1429_v63, 7 }
0x1123   :  { %v1201_v51 = vpop.permute.xlu0 %1200 }
0x1124   :  { %v1420_v3 = vsel %vm348_vm1, %v1419_v4, %v1415_v35  ;;  %v1407_v39 = vsel %vm348_vm1, %v1406_v37, %v1402_v36  ;;  %v1433_v41 = vsel %vm348_vm1, %v1432_v8, %v1428_v40  ;;  %v1203_v53 = vsel %vm353_vm2, %v1201_v51, 0.0 }
0x1125   :  { %1421 = vrot.lane.b32.xlu1 %v1420_v3, %s1941_s3  ;;  %1408 = vrot.lane.b32.xlu0 %v1407_v39, %s1941_s3 }
0x1129   :  { %1434 = vrot.lane.b32.xlu0 %v1433_v41, %s1941_s3 }
0x1148   :  { %749 = vadd.xlane.f32.xlu0 %v748_v42 }
0x1149   :  { %762 = vadd.xlane.f32.xlu1 %v761_v44 }
0x114c   :  { %775 = vadd.xlane.f32.xlu0 %v774_v47 }
0x114d   :  { %970 = vadd.xlane.f32.xlu1 %v969_v48 }
0x1150   :  { %983 = vadd.xlane.f32.xlu0 %v982_v49 }
0x1151   :  { %996 = vadd.xlane.f32.xlu1 %v995_v50 }
0x1154   :  { %1191 = vadd.xlane.f32.xlu0 %v1190_v52 }
0x1155   :  { %1204 = vadd.xlane.f32.xlu1 %v1203_v53 }
0x1158   :  { %1217 = vadd.xlane.f32.xlu0 %v1216_v54 }
0x115c   :  { %v549_v57 = vpop.xlane.xlu1 %548 }
0x115d   :  { %v562_v58 = vpop.xlane.xlu0 %561  ;;  %v550_v61 = vmul.f32 0.17677669, %v549_v57 }
0x115e   :  { %v563_v62 = vmul.f32 0.17677669, %v562_v58 }
0x1160   :  { %v564_v0 = vmax.f32 %v550_v61, %v563_v62 }
0x1162   :  { %v565_v2 = vsub.f32 %v550_v61, %v564_v0  ;;  %v568_v5 = vsub.f32 %v563_v62, %v564_v0 }
0x1164   :  { %v566_v22 = vmul.f32 1.442695, %v565_v2  ;;  %v569_v6 = vmul.f32 1.442695, %v568_v5 }
0x1166   :  { %1885 = vpow2.f32 %v566_v22 }
0x1167   :  { %1887 = vpow2.f32 %v569_v6 }
0x1170   :  { %v1886_v25 = vpop.eup %1885 }
0x1171   :  { %v1888_v13 = vpop.eup %1887  ;;  %v572_v48 = vmul.f32 %v1886_v25, %v2103_v27 }
0x1172   :  { %v571_v7 = vadd.f32 %v1888_v13, %v1886_v25 }
0x1197   :  { %v1409_v16 = vpop.permute.xlu0 %1408  ;;  %v1422_v9 = vpop.permute.xlu1 %1421 }
0x1198   :  { %v1411_v56 = vsel %vm353_vm2, %v1409_v16, 0.0  ;;  %v1424_v11 = vsel %vm353_vm2, %v1422_v9, 0.0 }
0x1199   :  { %1412 = vadd.xlane.f32.xlu1 %v1411_v56  ;;  %1425 = vadd.xlane.f32.xlu0 %v1424_v11  ;;  %v2372_v56 = vld [vmem:[%s2418_s4 + $0x8] sm:$0xff]  }
0x119b   :  { %v1435_v55 = vpop.permute.xlu0 %1434 }
0x119c   :  { %v1437_v20 = vsel %vm353_vm2, %v1435_v55, 0.0 }
0x11aa   :  { %798 = vrot.lane.b32.xlu1 %v797_v59, %s1941_s3 }
0x11af   :  { %577 = vrot.lane.b32.xlu0 %v576_v17, %s1941_s3 }
0x11b3   :  { %1240 = vrot.lane.b32.xlu0 %v1239_v19, %s1941_s3 }
0x11ce   :  { %1438 = vadd.xlane.f32.xlu1 %v1437_v20 }
0x11d5   :  { %v750_v12 = vpop.xlane.xlu0 %749 }
0x11d6   :  { %v763_v32 = vpop.xlane.xlu1 %762  ;;  %v751_v21 = vmul.f32 0.17677669, %v750_v12 }
0x11d7   :  { %v764_v30 = vmul.f32 0.17677669, %v763_v32 }
0x11d9   :  { %v776_v23 = vpop.xlane.xlu0 %775  ;;  %v778_v24 = vmax.f32 %v751_v21, %v764_v30 }
0x11da   :  { %v777_v26 = vmul.f32 0.17677669, %v776_v23  ;;  %v971_v43 = vpop.xlane.xlu1 %970 }
0x11db   :  { %v972_v0 = vmul.f32 0.17677669, %v971_v43 }
0x11dc   :  { %v779_v28 = vmax.f32 %v778_v24, %v777_v26 }
0x11dd   :  { %v984_v35 = vpop.xlane.xlu0 %983 }
0x11de   :  { %v780_v29 = vsub.f32 %v751_v21, %v779_v28  ;;  %v783_v31 = vsub.f32 %v764_v30, %v779_v28  ;;  %v786_v34 = vsub.f32 %v777_v26, %v779_v28  ;;  %v997_v36 = vpop.xlane.xlu1 %996  ;;  %v985_v58 = vmul.f32 0.17677669, %v984_v35 }
0x11df   :  { %1019 = vrot.lane.b32.xlu1 %v1018_v10, %s1941_s3  ;;  %v998_v6 = vmul.f32 0.17677669, %v997_v36 }
0x11e0   :  { %v781_v63 = vmul.f32 1.442695, %v780_v29  ;;  %v784_v45 = vmul.f32 1.442695, %v783_v31  ;;  %v787_v4 = vmul.f32 1.442695, %v786_v34  ;;  %v999_v22 = vmax.f32 %v972_v0, %v985_v58 }
0x11e1   :  { %v1192_v37 = vpop.xlane.xlu0 %1191 }
0x11e2   :  { %1889 = vpow2.f32 %v781_v63  ;;  %v1205_v8 = vpop.xlane.xlu1 %1204  ;;  %v1000_v9 = vmax.f32 %v999_v22, %v998_v6 }
0x11e3   :  { %1461 = vrot.lane.b32.xlu1 %v2308_v38, %s1941_s3  ;;  %1891 = vpow2.f32 %v784_v45 }
0x11e4   :  { %1893 = vpow2.f32 %v787_v4  ;;  %v1001_v15 = vsub.f32 %v972_v0, %v1000_v9  ;;  %v1004_v17 = vsub.f32 %v985_v58, %v1000_v9  ;;  %v1007_v20 = vsub.f32 %v998_v6, %v1000_v9 }
0x11e5   :  { %v1218_v40 = vpop.xlane.xlu0 %1217  ;;  %1895 = vrcp.f32 %v571_v7  ;;  %v1206_v7 = vmul.f32 0.17677669, %v1205_v8 }
0x11e6   :  { %v1219_v14 = vmul.f32 0.17677669, %v1218_v40  ;;  %v1002_v19 = vmul.f32 1.442695, %v1001_v15  ;;  %v1005_v55 = vmul.f32 1.442695, %v1004_v17 }
0x11e7   :  { %v1008_v12 = vmul.f32 1.442695, %v1007_v20 }
0x11ec   :  { %v1890_v38 = vpop.eup %1889 }
0x11ed   :  { %v1892_v3 = vpop.eup %1891  ;;  %v791_v50 = vmul.f32 %v1890_v38, %v2103_v27  ;;  %v2363_v27 = vld [vmem:[%s2418_s4] sm:$0xff]  }
0x11ee   :  { %v789_v39 = vadd.f32 %v1892_v3, %v1890_v38  ;;  %v1894_v41 = vpop.eup %1893 }
0x11ef   :  { %v1896_v57 = vpop.eup %1895 }
0x11f0   :  { %v790_v42 = vadd.f32 %v1894_v41, %v789_v39 }
0x11f2   :  { %1897 = vrcp.f32 %v790_v42 }
0x11f3   :  { %1899 = vpow2.f32 %v1002_v19 }
0x11f4   :  { %1901 = vpow2.f32 %v1005_v55 }
0x11f5   :  { %1903 = vpow2.f32 %v1008_v12 }
0x11fc   :  { %v1898_v25 = vpop.eup %1897 }
0x11fd   :  { %v1900_v24 = vpop.eup %1899 }
0x11fe   :  { %v1902_v26 = vpop.eup %1901 }
0x11ff   :  { %v1010_v28 = vadd.f32 %v1902_v26, %v1900_v24  ;;  %v1904_v29 = vpop.eup %1903 }
0x1201   :  { %v1011_v45 = vadd.f32 %v1904_v29, %v1010_v28 }
0x1226   :  { %v2346_v44 = vpop.xlane.xlu0 %1425  ;;  %v2348_v46 = vpop.xlane.xlu1 %1412 }
0x1227   :  { %v1427_v43 = vmul.f32 0.17677669, %v2346_v44  ;;  %v1414_v35 = vmul.f32 0.17677669, %v2348_v46 }
0x1229   :  { %v1441_v39 = vmax.f32 %v1414_v35, %v1427_v43 }
0x122a   :  { %v2350_v47 = vpop.permute.xlu0 %577  ;;  %v2356_v52 = vpop.permute.xlu1 %798 }
0x122b   :  { %v580_v49 = vmul.f32 %v1888_v13, %v2350_v47  ;;  %v792_v51 = vmul.f32 %v1892_v3, %v2350_v47  ;;  %v801_v62 = vmul.f32 %v1894_v41, %v2356_v52  ;;  %v1193_v13 = vmul.f32 0.17677669, %v1192_v37 }
0x122c   :  { %v1012_v37 = vmul.f32 %v1900_v24, %v2350_v47  ;;  %v1013_v38 = vmul.f32 %v1902_v26, %v2356_v52 }
0x122d   :  { %v581_v53 = vadd.f32 %v580_v49, %v572_v48  ;;  %v793_v54 = vadd.f32 %v792_v51, %v791_v50  ;;  %v1220_v11 = vmax.f32 %v1193_v13, %v1206_v7 }
0x122e   :  { %v1014_v41 = vadd.f32 %v1013_v38, %v1012_v37  ;;  %v1241_v51 = vpop.permute.xlu0 %1240 }
0x122f   :  { %v583_v61 = vmul.f32 %v1896_v57, %v581_v53  ;;  %v802_v5 = vadd.f32 %v801_v62, %v793_v54  ;;  %v1221_v18 = vmax.f32 %v1220_v11, %v1219_v14 }
0x1231   :  { %v584_v2 = vpack.c.bf16 %v583_v61, %v583_v61  ;;  %v804_v16 = vmul.f32 %v1898_v25, %v802_v5  ;;  %v1222_v60 = vsub.f32 %v1193_v13, %v1221_v18  ;;  %v1225_v10 = vsub.f32 %v1206_v7, %v1221_v18 }
0x1232   :  { %v1228_v30 = vsub.f32 %v1219_v14, %v1221_v18 }
0x1233   :  { %1688 = vmatmul.mubr.msk.bf16.vlgmr.msra.gmra.mrb[12].mxu1 %vm245_vm3, %v584_v2  ;;  %v805_v59 = vpack.c.bf16 %v804_v16, %v804_v16  ;;  %v1223_v32 = vmul.f32 1.442695, %v1222_v60  ;;  %v1226_v21 = vmul.f32 1.442695, %v1225_v10 }
0x1234   :  { %1700 = vmatpush3.bf16.msra.mxu1 %v2363_v27  ;;  %1703 = vmatprep.mubr.msk.bf16.mxu1 %vm1938_vm0, %v1937_v1  ;;  %v1229_v23 = vmul.f32 1.442695, %v1228_v30 }
0x1235   :  { %1701 = vmatprep.subr.bf16.mxu1 %v1937_v1  ;;  %1905 = vpow2.f32 %v1223_v32 }
0x1236   :  { %1907 = vpow2.f32 %v1226_v21 }
0x1237   :  { %1909 = vpow2.f32 %v1229_v23 }
0x1238   :  { %1702 = vmatpush3.bf16.msra.mxu1 %v2372_v56  ;;  %1911 = vrcp.f32 %v1011_v45 }
0x1239   :  { %1715 = vmatprep.subr.bf16.mxu1 %v1937_v1 }
0x123b   :  { %1704 = vmatmul.mubr.msk.bf16.vlgmr.msra.gmra.mrb[16].mxu1 %vm245_vm3, %v805_v59 }
0x123c   :  { %1716 = vmatpush3.bf16.msra.mxu1 %v2363_v27  ;;  %1719 = vmatprep.mubr.msk.bf16.mxu1 %vm1938_vm0, %v1937_v1 }
0x123d   :  { %1717 = vmatprep.subr.bf16.mxu1 %v1937_v1 }
0x123f   :  { %v1906_v31 = vpop.eup %1905 }
0x1240   :  { %1718 = vmatpush3.bf16.msra.mxu1 %v2372_v56  ;;  %v1908_v63 = vpop.eup %1907  ;;  %v1233_v46 = vmul.f32 %v1906_v31, %v2356_v52 }
0x1241   :  { %1731 = vmatprep.subr.bf16.mxu1 %v1937_v1  ;;  %v1231_v34 = vadd.f32 %v1908_v63, %v1906_v31  ;;  %v1910_v4 = vpop.eup %1909 }
0x1242   :  { %v1912_v58 = vpop.eup %1911  ;;  %v1243_v0 = vmul.f32 %v1910_v4, %v1241_v51 }
0x1243   :  { %v1232_v36 = vadd.f32 %v1910_v4, %v1231_v34 }
0x1245   :  { %1913 = vrcp.f32 %v1232_v36 }
0x124f   :  { %v1914_v6 = vpop.eup %1913 }
0x125b   :  { %v1439_v3 = vpop.xlane.xlu1 %1438 }
0x125c   :  { %v1440_v8 = vmul.f32 0.17677669, %v1439_v3 }
0x125e   :  { %v1442_v40 = vmax.f32 %v1441_v39, %v1440_v8 }
0x125f   :  { %v1020_v42 = vpop.permute.xlu1 %1019 }
0x1260   :  { %v1443_v48 = vsub.f32 %v1414_v35, %v1442_v40  ;;  %v1446_v49 = vsub.f32 %v1427_v43, %v1442_v40  ;;  %v1449_v50 = vsub.f32 %v1440_v8, %v1442_v40  ;;  %v1022_v44 = vmul.f32 %v1904_v29, %v1020_v42 }
0x1261   :  { %v1234_v53 = vmul.f32 %v1908_v63, %v1020_v42 }
0x1262   :  { %v1444_v54 = vmul.f32 1.442695, %v1443_v48  ;;  %v1447_v57 = vmul.f32 1.442695, %v1446_v49  ;;  %v1023_v47 = vadd.f32 %v1022_v44, %v1014_v41  ;;  %v1450_v61 = vmul.f32 1.442695, %v1449_v50 }
0x1263   :  { %v1235_v62 = vadd.f32 %v1234_v53, %v1233_v46  ;;  %v1462_v17 = vpop.permute.xlu1 %1461  ;;  %v1943_v50 = vmov 1983009808   ;;  %v1541_v46 = vlaneseq }
0x1264   :  { %1915 = vpow2.f32 %v1444_v54  ;;  %v1025_v2 = vmul.f32 %v1912_v58, %v1023_v47  ;;  %v1539_v44 = vunpack.c.l.s4 %v1943_v50 }
0x1265   :  { %1917 = vpow2.f32 %v1447_v57  ;;  %v1244_v22 = vadd.f32 %v1243_v0, %v1235_v62  ;;  %v1542_v57 = vshrl.u32 %v1541_v46, 7 }
0x1266   :  { %v1026_v5 = vpack.c.bf16 %v1025_v2, %v1025_v2  ;;  %1919 = vpow2.f32 %v1450_v61  ;;  %v1540_v54 = vunpack.c.0.s8 %v1539_v44 }
0x1267   :  { %v1246_v52 = vmul.f32 %v1914_v6, %v1244_v22 }
0x1268   :  { %1720 = vmatmul.mubr.msk.bf16.vlgmr.msra.gmra.mrb[20].mxu1 %vm245_vm3, %v1026_v5  ;;  %v1543_v2 = vsub.s32 %v1540_v54, %v1542_v57 }
0x1269   :  { %1732 = vmatpush3.bf16.msra.mxu1 %v2363_v27  ;;  %1735 = vmatprep.mubr.msk.bf16.mxu1 %vm1938_vm0, %v1937_v1  ;;  %v1247_v13 = vpack.c.bf16 %v1246_v52, %v1246_v52 }
0x126a   :  { %1733 = vmatprep.subr.bf16.mxu1 %v1937_v1 }
0x126d   :  { %1734 = vmatpush3.bf16.msra.mxu1 %v2372_v56 }
0x126e   :  { %v1916_v25 = vpop.eup %1915  ;;  %1747 = vmatprep.subr.bf16.mxu1 %v1937_v1 }
0x126f   :  { %v1918_v7 = vpop.eup %1917  ;;  %v1454_v14 = vmul.f32 %v1916_v25, %v1020_v42 }
0x1270   :  { %v1452_v16 = vadd.f32 %v1918_v7, %v1916_v25  ;;  %1736 = vmatmul.mubr.msk.bf16.vlgmr.msra.gmra.mrb[24].mxu1 %vm245_vm3, %v1247_v13  ;;  %v1920_v9 = vpop.eup %1919  ;;  %v1455_v59 = vmul.f32 %v1918_v7, %v1241_v51 }
0x1271   :  { %1748 = vmatpush3.bf16.msra.mxu1 %v2363_v27  ;;  %1751 = vmatprep.mubr.msk.bf16.mxu1 %vm1938_vm0, %v1937_v1  ;;  %v1464_v18 = vmul.f32 %v1920_v9, %v1462_v17  ;;  %v1554_v27 = vld [vmem:[%s2419_s5] ss:$0 sm:$0xff]  ;;  %s1942_s5 = smov 96  }
0x1272   :  { %v1453_v11 = vadd.f32 %v1920_v9, %v1452_v16  ;;  %1749 = vmatprep.subr.bf16.mxu1 %v1937_v1  ;;  %v1456_v15 = vadd.f32 %v1455_v59, %v1454_v14  ;;  %v422_v48 = vadd.f32 %v1554_v27, %v2118_v33 }
0x1274   :  { %1921 = vrcp.f32 %v1453_v11  ;;  %v1465_v19 = vadd.f32 %v1464_v18, %v1456_v15 }
0x1275   :  { %1750 = vmatpush3.bf16.msra.mxu1 %v2372_v56 }
0x127e   :  { %v1922_v55 = vpop.eup %1921 }
0x127f   :  { %v1467_v20 = vmul.f32 %v1922_v55, %v1465_v19 }
0x1281   :  { %v1468_v60 = vpack.c.bf16 %v1467_v20, %v1467_v20 }
0x1283   :  { %1752 = vmatmul.mubr.msk.bf16.vlgmr.msra.gmra.mrb[28].mxu1 %vm245_vm3, %v1468_v60 }
0x1306   :  { %v622_v10 = vpop.f32.mrb[12].mxu1 }
0x1307   :  { %v623_v1 = vadd.f32 %v1554_v27, %v622_v10  ;;  %v1689_v12 = vpop.f32.mrb[13].mxu1 }
0x1308   :  { %v625_v32 = vpop.f32.mrb[14].mxu1 }
0x1309   :  { %1923 = vtanh.f32 %v623_v1  ;;  %v1690_v21 = vpop.f32.mrb[15].mxu1 }
0x130e   :  { %v843_v56 = vpop.f32.mrb[16].mxu1 }
0x130f   :  { %v844_v30 = vadd.f32 %v1554_v27, %v843_v56  ;;  %v1705_v23 = vpop.f32.mrb[17].mxu1 }
0x1310   :  { %v846_v24 = vpop.f32.mrb[18].mxu1 }
0x1311   :  { %1925 = vtanh.f32 %v844_v30  ;;  %v1706_v26 = vpop.f32.mrb[19].mxu1 }
0x1313   :  { %v1924_v28 = vpop.eup %1923 }
0x1314   :  { %1514 = vrot.lane.b32.xlu0 %v1924_v28, %s1941_s3 }
0x131b   :  { %v1926_v29 = vpop.eup %1925 }
0x131c   :  { %1518 = vrot.lane.b32.xlu1 %v1926_v29, %s1940_s12 }
0x133b   :  { %v1064_v31 = vpop.f32.mrb[20].mxu1 }
0x133c   :  { %v1065_v63 = vadd.f32 %v1554_v27, %v1064_v31  ;;  %v1721_v45 = vpop.f32.mrb[21].mxu1 }
0x133d   :  { %v1067_v34 = vpop.f32.mrb[22].mxu1 }
0x133e   :  { %1927 = vtanh.f32 %v1065_v63  ;;  %v1722_v43 = vpop.f32.mrb[23].mxu1 }
0x1343   :  { %v1285_v35 = vpop.f32.mrb[24].mxu1 }
0x1344   :  { %v1737_v4 = vpop.f32.mrb[25].mxu1  ;;  %v1286_v49 = vadd.f32 %v1554_v27, %v1285_v35 }
0x1345   :  { %v1288_v36 = vpop.f32.mrb[26].mxu1 }
0x1346   :  { %v1738_v37 = vpop.f32.mrb[27].mxu1 }
0x1348   :  { %v1928_v38 = vpop.eup %1927 }
0x1349   :  { %1522 = vrot.lane.b32.xlu0 %v1928_v38, %s1942_s5 }
0x1356   :  { %v1506_v3 = vpop.f32.mrb[28].mxu1 }
0x1357   :  { %v1507_v39 = vadd.f32 %v1554_v27, %v1506_v3  ;;  %v1753_v8 = vpop.f32.mrb[29].mxu1 }
0x1358   :  { %v1509_v40 = vpop.f32.mrb[30].mxu1 }
0x1359   :  { %1929 = vtanh.f32 %v1507_v39  ;;  %v1754_v41 = vpop.f32.mrb[31].mxu1 }
0x135a   :  { %1931 = vtanh.f32 %v422_v48 }
0x135b   :  { %1933 = vtanh.f32 %v1286_v49 }
0x1363   :  { %v1930_v42 = vpop.eup %1929 }
0x1364   :  { %1526 = vrot.lane.b32.xlu1 %v1930_v42, %s1941_s3  ;;  %v1932_v47 = vpop.eup %1931 }
0x1365   :  { %v1934_v62 = vpop.eup %1933 }
0x1386   :  { %v1515_v51 = vpop.permute.xlu0 %1514 }
0x1387   :  { %v1529_v61 = vsel %vm245_vm3, %v1932_v47, %v1515_v51 }
0x138e   :  { %v1519_v53 = vpop.permute.xlu1 %1518 }
0x138f   :  { %v1531_v0 = vsel %vm1530_vm4, %v1529_v61, %v1519_v53 }
0x13bb   :  { %v1523_v58 = vpop.permute.xlu0 %1522 }
0x13bc   :  { %v1533_v5 = vsel %vm1532_vm5, %v1531_v0, %v1523_v58 }
0x13d6   :  { %v1527_v33 = vpop.permute.xlu1 %1526 }
0x13d7   :  { %v1534_v22 = vsel %vm245_vm3, %v1934_v62, %v1527_v33 }
0x13d8   :  { %v1537_v6 = vcombine.low %v1533_v5, %v1534_v22 }
0x13da   :  { %v1544_v52 = vrot.slane %v1537_v6, %v1543_v2 }
0x13dc   :  { %1549 = vst.msk [vmem:[%s2420_s6] sm:$0xf] %vm1548_vm8, %v1544_v52 }

// kernel: hier_attn_rnn_forward.3
= control target key start
LH: loop header
LB: loop body
LE: loop exit
PB: predicated region body
PF: predicated region fallthrough
CT: control target
= control target key end

     0   :  { %s4485_s21 = smov 0   ;;  %s5863_s0 = inlined_call_operand.vmem [shape: bf16[96,16], index: 0, kind: input, shape index: {}]   ;;  %s5864_s1 = inlined_call_operand.vmem [shape: bf16[16,128], index: 1, kind: input, shape index: {}]   ;;  %s5865_s2 = inlined_call_operand.vmem [shape: bf16[32,128], index: 2, kind: input, shape index: {}]   ;;  %s5866_s3 = inlined_call_operand.vmem [shape: f32[1,128], index: 3, kind: input, shape index: {}]   ;;  %s5867_s4 = inlined_call_operand.vmem [shape: bf16[32,32], index: 4, kind: input, shape index: {}]   ;;  %s5868_s5 = inlined_call_operand.vmem [shape: f32[1,32], index: 5, kind: input, shape index: {}]   ;;  %s5869_s6 = inlined_call_operand.vmem [shape: f32[2,6,256], index: 6, kind: output, shape index: {}]  }
   0x1 LB: > { %s4491_s22 = sadd.s32 4294967295, %s4442_s21   ;;  %p3673_p0 = scmp.ge.s32.totalorder %s4442_s21, 1  ;;  %s4442_s21 = sphi %s4485_s21, %s16_s21  }
   0x2   : > { %p213_p1 = scmp.lt.s32.totalorder %s4442_s21, 3 }
   0x4   : > { %p214_p2 = pnand %p3673_p0, %p213_p1 }
   0x6   : > { %217 = sbr.rel (%p214_p2) target bundleno = 6740 (0x1a54), region = 44 }
   0xd   : > { %v3964_v0 = vld [vmem:[%s5864_s1] sm:$0xff]   ;;  %v5870_v1 = vmov 0.0   ;;  %s243_s25 = smul.u32 6, %s4491_s22  ;;  %vm4445_vm0 = vmmov 0   ;;  %v4512_v3 = vld [vmem:[%s5865_s2 + $0x8] sm:$0xff]   ;;  %vm306_vm1 = vcmask 130048  }
   0xe   : > { %3808 = vmatprep.subr.bf16.mxu0 %v5870_v1  ;;  %3822 = vmatprep.subr.bf16.mxu1 %v5870_v1  ;;  %v4504_v2 = vld [vmem:[%s5865_s2] sm:$0xff]   ;;  %v4446_v5 = vmov 0   ;;  %s4447_s12 = smov 64   ;;  %s4448_s13 = smov 32   ;;  %vm621_vm2 = vcmask 1041409   ;;  %vm624_vm3 = vcmask 1042434  }
   0xf   : > { %3809 = vmatpush3.bf16.msra.mxu0 %v3964_v0  ;;  %3810 = vmatprep.mubr.msk.bf16.mxu0 %vm4445_vm0, %v5870_v1  ;;  %p244_p3 = scmp.lt.s32.totalorder %s243_s25, 11  ;;  %v3678_v8 = vld [vmem:[%s5866_s3] ss:$0 sm:$0xff]  ;;  %vm627_vm4 = vcmask 1043459   ;;  %vm630_vm5 = vcmask 1044484   ;;  %vm633_vm6 = vcmask 1045509  }
  0x10   : > { %3823 = vmatpush3.bf16.msra.mxu1 %v4504_v2  ;;  %3826 = vmatprep.mubr.msk.bf16.mxu1 %vm4445_vm0, %v5870_v1  ;;  %vm638_vm7 = vcmask 259072   ;;  %vm402_vm8 = vcmask 261120   ;;  %s4449_s10 = smov 96   ;;  %p249_p4 = scmp.lt.s32.totalorder %s4491_s22, 1  ;;  %vm3605_vm9 = vcmask 523264   ;;  %vm3607_vm10 = vcmask 785408  }
  0x11   : > { %3824 = vmatprep.subr.bf16.mxu1 %v5870_v1  ;;  %3846 = vmatprep.subr.bf16.mxu0 %v5870_v1  ;;  %s5948_s25 = smov (!%p244_p3, %s243_s25), 11 }
  0x12   : > { %s3674_s30 = sshll.u32 %s5948_s25, 2  ;;  %s5950_s22 = smov (!%p249_p4, %s4491_s22), 1 }
  0x13   : > { %s247_s9 = scalar_lea.vmem %s5863_s0, %s3674_s30  ;;  %s3755_s11 = sshll.u32 %s5950_s22, 4 }
  0x14   : > { %3825 = vmatpush3.bf16.msra.mxu1 %v4512_v3  ;;  %v3965_v4 = vld [vmem:[%s247_s9] sm:$0xff]   ;;  %v3968_v6 = vld [vmem:[%s247_s9 + $0x8] sm:$0xff]   ;;  %v3969_v7 = vld [vmem:[%s247_s9 + $0x10] sm:$0xff]   ;;  %s253_s16 = scalar_lea.vmem %s5869_s6, %s3755_s11 }
  0x15   : > { %3830 = vmatprep.subr.bf16.mxu1 %v5870_v1  ;;  %3811 = vmatmul.mubr.msk.bf16.vlgmr.msra.gmra.mrb[0].mxu0 %vm306_vm1, %v3965_v4 }
  0x16   : > { %3814 = vmatprep.mubr.msk.bf16.mxu0 %vm4445_vm0, %v5870_v1 }
  0x17   : > { %3827 = vmatmul.mubr.bf16.vlgmr.msra.gmra.mrb[0].mxu1 %v4446_v5 }
  0x18   : > { %3834 = vmatprep.mubr.msk.bf16.mxu1 %vm4445_vm0, %v5870_v1 }
  0x1d   : > { %3815 = vmatmul.mubr.msk.bf16.gmra.mrb[4].mxu0 %vm306_vm1, %v3968_v6 }
  0x1e   : > { %3818 = vmatprep.mubr.msk.bf16.mxu0 %vm4445_vm0, %v5870_v1 }
  0x25   : > { %3819 = vmatmul.mubr.msk.bf16.gmra.mrb[8].mxu0 %vm306_vm1, %v3969_v7 }
  0x26   : > { %3850 = vmatprep.mubr.msk.bf16.mxu0 %vm4445_vm0, %v5870_v1 }
  0xe8   : > { %v350_v10 = vpop.f32.mrb[0].mxu0 }
  0xe9   : > { %v351_v12 = vadd.f32 %v3678_v8, %v350_v10  ;;  %v3812_v13 = vpop.f32.mrb[1].mxu0 }
  0xea   : > { %v440_v9 = vpop.f32.mrb[0].mxu1  ;;  %v353_v15 = vpop.f32.mrb[2].mxu0 }
  0xeb   : > { %v3828_v11 = vpop.f32.mrb[1].mxu1  ;;  %373 = vst [vmem:[#allocation2] sm:$0xff] %v351_v12  ;;  %v354_v17 = vadd.f32 %v3678_v8, %v353_v15  ;;  %v3813_v18 = vpop.f32.mrb[3].mxu0  ;;  %v447_v22 = vrot.slane %v440_v9, 1  ;;  %v448_v31 = vrot.slane %v440_v9, 2  ;;  %v449_v36 = vrot.slane %v440_v9, 3 }
  0xec   : > { %v443_v14 = vpop.f32.mrb[2].mxu1  ;;  %v450_v43 = vrot.slane %v440_v9, 4  ;;  %v451_v46 = vrot.slane %v440_v9, 5 }
  0xed   : > { %v3829_v16 = vpop.f32.mrb[3].mxu1  ;;  %375 = vst [vmem:[#allocation2 + $0x8] sm:$0xff] %v354_v17 }
  0xf0   : > { %v358_v19 = vpop.f32.mrb[4].mxu0 }
  0xf1   : > { %v359_v20 = vadd.f32 %v3678_v8, %v358_v19  ;;  %v3816_v21 = vpop.f32.mrb[5].mxu0 }
  0xf2   : > { %v361_v23 = vpop.f32.mrb[6].mxu0  ;;  %v384_v24 = vld [vmem:[#allocation2] sm:$0x1] }
  0xf3   : > { %377 = vst [vmem:[#allocation2 + $0x10] sm:$0xff] %v359_v20  ;;  %v362_v25 = vadd.f32 %v3678_v8, %v361_v23  ;;  %v458_v26 = vadd.f32 %v440_v9, %v384_v24  ;;  %v3817_v27 = vpop.f32.mrb[7].mxu0 }
  0xf4   : > { %v385_v28 = vld [vmem:[#allocation2 + $0x8] sm:$0x1] }
  0xf5   : > { %379 = vst [vmem:[#allocation2 + $0x18] sm:$0xff] %v362_v25  ;;  %3972 = vtanh.f32 %v458_v26  ;;  %v459_v29 = vadd.f32 %v447_v22, %v385_v28  ;;  %v3688_v54 = vmul.f32 -1.442695, %v458_v26 }
  0xf7   : > { %3974 = vtanh.f32 %v459_v29  ;;  %v3689_v55 = vmul.f32 -1.442695, %v459_v29 }
  0xf8   : > { %v366_v30 = vpop.f32.mrb[8].mxu0 }
  0xf9   : > { %v367_v32 = vadd.f32 %v3678_v8, %v366_v30  ;;  %v3820_v33 = vpop.f32.mrb[9].mxu0 }
  0xfa   : > { %v386_v34 = vld [vmem:[#allocation2 + $0x10] sm:$0x1]  ;;  %v369_v35 = vpop.f32.mrb[10].mxu0 }
  0xfb   : > { %v460_v37 = vadd.f32 %v448_v31, %v386_v34  ;;  %381 = vst [vmem:[#allocation2 + $0x20] sm:$0xff] %v367_v32  ;;  %v370_v38 = vadd.f32 %v3678_v8, %v369_v35  ;;  %v3821_v39 = vpop.f32.mrb[11].mxu0 }
  0xfc   : > { %v387_v40 = vld [vmem:[#allocation2 + $0x18] sm:$0x1] }
  0xfd   : > { %v461_v41 = vadd.f32 %v449_v36, %v387_v40  ;;  %3976 = vtanh.f32 %v460_v37  ;;  %383 = vst [vmem:[#allocation2 + $0x28] sm:$0xff] %v370_v38  ;;  %v3690_v56 = vmul.f32 -1.442695, %v460_v37 }
  0xff   : > { %v3973_v42 = vpop.eup %3972  ;;  %3978 = vtanh.f32 %v461_v41  ;;  %v3691_v57 = vmul.f32 -1.442695, %v461_v41 }
 0x100   : > { %518 = vrot.lane.b32.xlu1 %v3973_v42, %s4447_s12 }
 0x101   : > { %v3975_v44 = vpop.eup %3974 }
 0x102   : > { %v388_v45 = vld [vmem:[#allocation2 + $0x20] sm:$0x1]  ;;  %520 = vrot.lane.b32.xlu0 %v3975_v44, %s4447_s12 }
 0x103   : > { %v462_v47 = vadd.f32 %v450_v43, %v388_v45 }
 0x104   : > { %v389_v48 = vld [vmem:[#allocation2 + $0x28] sm:$0x1] }
 0x105   : > { %3980 = vtanh.f32 %v462_v47  ;;  %v463_v49 = vadd.f32 %v451_v46, %v389_v48  ;;  %v3692_v59 = vmul.f32 -1.442695, %v462_v47 }
 0x107   : > { %v3977_v50 = vpop.eup %3976  ;;  %3982 = vtanh.f32 %v463_v49  ;;  %v3693_v62 = vmul.f32 -1.442695, %v463_v49 }
 0x108   : > { %522 = vrot.lane.b32.xlu0 %v3977_v50, %s4447_s12  ;;  %3984 = vpow2.f32 %v3688_v54 }
 0x109   : > { %v3979_v51 = vpop.eup %3978  ;;  %3986 = vpow2.f32 %v3689_v55 }
 0x10a   : > { %524 = vrot.lane.b32.xlu1 %v3979_v51, %s4447_s12  ;;  %3988 = vpow2.f32 %v3690_v56 }
 0x10b   : > { %3990 = vpow2.f32 %v3691_v57 }
 0x10c   : > { %3992 = vpow2.f32 %v3692_v59 }
 0x10f   : > { %v3981_v52 = vpop.eup %3980 }
 0x110   : > { %526 = vrot.lane.b32.xlu0 %v3981_v52, %s4447_s12 }
 0x111   : > { %v3983_v53 = vpop.eup %3982 }
 0x112   : > { %528 = vrot.lane.b32.xlu1 %v3983_v53, %s4447_s12  ;;  %v3985_v58 = vpop.eup %3984 }
 0x113   : > { %v482_v60 = vadd.f32 1.0, %v3985_v58  ;;  %v3987_v61 = vpop.eup %3986 }
 0x114   : > { %v483_v63 = vadd.f32 1.0, %v3987_v61  ;;  %v3989_v0 = vpop.eup %3988 }
 0x115   : > { %3994 = vrcp.f32 %v482_v60  ;;  %v484_v4 = vadd.f32 1.0, %v3989_v0  ;;  %v3991_v5 = vpop.eup %3990 }
 0x116   : > { %3996 = vpow2.f32 %v3693_v62  ;;  %v485_v6 = vadd.f32 1.0, %v3991_v5  ;;  %v3993_v7 = vpop.eup %3992 }
 0x117   : > { %3998 = vrcp.f32 %v483_v63  ;;  %v486_v12 = vadd.f32 1.0, %v3993_v7 }
 0x118   : > { %4000 = vrcp.f32 %v484_v4 }
 0x119   : > { %4002 = vrcp.f32 %v485_v6 }
 0x11a   : > { %4004 = vrcp.f32 %v486_v12 }
 0x11f   : > { %v4540_v8 = vpop.eup %3994 }
 0x120   : > { %v3997_v11 = vpop.eup %3996  ;;  %v506_v29 = vmul.f32 0.0, %v4540_v8 }
 0x121   : > { %v3999_v14 = vpop.eup %3998  ;;  %v487_v16 = vadd.f32 1.0, %v3997_v11 }
 0x122   : > { %v4001_v17 = vpop.eup %4000  ;;  %v507_v32 = vmul.f32 0.0, %v3999_v14 }
 0x123   : > { %4006 = vrcp.f32 %v487_v16  ;;  %v4003_v21 = vpop.eup %4002  ;;  %v508_v35 = vmul.f32 0.0, %v4001_v17 }
 0x124   : > { %v4547_v23 = vpop.eup %4004  ;;  %v509_v38 = vmul.f32 0.0, %v4003_v21 }
 0x125   : > { %v510_v42 = vmul.f32 0.0, %v4547_v23 }
 0x12d   : > { %v4550_v26 = vpop.eup %4006 }
 0x12e   : > { %v511_v46 = vmul.f32 0.0, %v4550_v26 }
 0x172   : > { %v519_v9 = vpop.permute.xlu1 %518 }
 0x173   : > { %v536_v10 = vmul.f32 %v4540_v8, %v519_v9 }
 0x174   : > { %v521_v13 = vpop.permute.xlu0 %520 }
 0x175   : > { %548 = vrot.lane.b32.xlu0 %v536_v10, %s4448_s13  ;;  %v537_v15 = vmul.f32 %v3999_v14, %v521_v13 }
 0x179   : > { %550 = vrot.lane.b32.xlu0 %v537_v15, %s4448_s13 }
 0x17a   : > { %v523_v18 = vpop.permute.xlu0 %522 }
 0x17b   : > { %v538_v19 = vmul.f32 %v4001_v17, %v523_v18 }
 0x17c   : > { %v525_v20 = vpop.permute.xlu1 %524 }
 0x17d   : > { %552 = vrot.lane.b32.xlu1 %v538_v19, %s4448_s13  ;;  %v539_v22 = vmul.f32 %v4003_v21, %v525_v20 }
 0x181   : > { %554 = vrot.lane.b32.xlu1 %v539_v22, %s4448_s13 }
 0x182   : > { %v527_v24 = vpop.permute.xlu0 %526 }
 0x183   : > { %v540_v25 = vmul.f32 %v4547_v23, %v527_v24 }
 0x184   : > { %v529_v27 = vpop.permute.xlu1 %528 }
 0x185   : > { %556 = vrot.lane.b32.xlu0 %v540_v25, %s4448_s13  ;;  %v541_v28 = vmul.f32 %v4550_v26, %v529_v27 }
 0x187   : > { %558 = vrot.lane.b32.xlu1 %v541_v28, %s4448_s13 }
 0x1e7   : > { %v549_v30 = vpop.permute.xlu0 %548 }
 0x1e8   : > { %v4556_v31 = vadd.f32 %v549_v30, %v506_v29 }
 0x1ea   : > { %4008 = vtanh.f32 %v4556_v31 }
 0x1eb   : > { %v551_v33 = vpop.permute.xlu0 %550 }
 0x1ec   : > { %v4559_v34 = vadd.f32 %v551_v33, %v507_v32 }
 0x1ee   : > { %4010 = vtanh.f32 %v4559_v34 }
 0x1ef   : > { %v553_v36 = vpop.permute.xlu1 %552 }
 0x1f0   : > { %v4562_v37 = vadd.f32 %v553_v36, %v508_v35 }
 0x1f2   : > { %4012 = vtanh.f32 %v4562_v37 }
 0x1f3   : > { %v555_v39 = vpop.permute.xlu1 %554 }
 0x1f4   : > { %v4009_v40 = vpop.eup %4008  ;;  %v4565_v41 = vadd.f32 %v555_v39, %v509_v38 }
 0x1f5   : > { %584 = vrot.lane.b32.xlu0 %v4009_v40, %s4447_s12 }
 0x1f6   : > { %4014 = vtanh.f32 %v4565_v41 }
 0x1f7   : > { %v557_v43 = vpop.permute.xlu0 %556 }
 0x1f8   : > { %v4011_v44 = vpop.eup %4010  ;;  %v4570_v45 = vadd.f32 %v557_v43, %v510_v42 }
 0x1f9   : > { %586 = vrot.lane.b32.xlu0 %v4011_v44, %s4447_s12  ;;  %v559_v47 = vpop.permute.xlu1 %558 }
 0x1fa   : > { %4016 = vtanh.f32 %v4570_v45  ;;  %v4575_v48 = vadd.f32 %v559_v47, %v511_v46 }
 0x1fc   : > { %v4013_v49 = vpop.eup %4012  ;;  %4018 = vtanh.f32 %v4575_v48 }
 0x1fd   : > { %588 = vrot.lane.b32.xlu1 %v4013_v49, %s4447_s12 }
 0x200   : > { %v4015_v50 = vpop.eup %4014 }
 0x201   : > { %590 = vrot.lane.b32.xlu1 %v4015_v50, %s4447_s12 }
 0x204   : > { %v4017_v51 = vpop.eup %4016 }
 0x205   : > { %592 = vrot.lane.b32.xlu0 %v4017_v51, %s4447_s12 }
 0x206   : > { %v4019_v52 = vpop.eup %4018 }
 0x207   : > { %594 = vrot.lane.b32.xlu1 %v4019_v52, %s4447_s12 }
 0x267   : > { %v585_v53 = vpop.permute.xlu0 %584 }
 0x268   : > { %v4587_v58 = vmul.f32 %v4540_v8, %v585_v53 }
 0x26a   : > { %v731_v4 = vpack.c.bf16 %v4587_v58, %v4587_v58  ;;  %v608_v13 = vmul.f32 %v4587_v58, %v4587_v58 }
 0x26b   : > { %v587_v54 = vpop.permute.xlu0 %586 }
 0x26c   : > { %v4582_v55 = vmul.f32 %v3999_v14, %v587_v54  ;;  %v743_v14 = vunpack.c.l.b16 %v731_v4  ;;  %v3970_v4 = vld [vmem:[%s5867_s4] sm:$0xff]  }
 0x26d   : > { %3831 = vmatpush3.bf16.msra.mxu1 %v3970_v4  ;;  %3847 = vmatpush3.bf16.msra.mxu0 %v3970_v4 }
 0x26e   : > { %v732_v59 = vpack.c.bf16 %v4582_v55, %v4582_v55  ;;  %v609_v60 = vmul.f32 %v4582_v55, %v4582_v55  ;;  %3832 = vmatprep.subr.bf16.mxu1 %v5870_v1  ;;  %3848 = vmatprep.subr.bf16.mxu0 %v5870_v1 }
 0x26f   : > { %v589_v56 = vpop.permute.xlu1 %588 }
 0x270   : > { %v4584_v57 = vmul.f32 %v4001_v17, %v589_v56  ;;  %v744_v5 = vunpack.c.l.b16 %v732_v59  ;;  %v620_v7 = vrot.slane %v609_v60, 7  ;;  %v652_v17 = vrot.slane %v4582_v55, 7 }
 0x272   : > { %v733_v61 = vpack.c.bf16 %v4584_v57, %v4584_v57  ;;  %v610_v0 = vmul.f32 %v4584_v57, %v4584_v57  ;;  %v749_v18 = vrot.slane %v744_v5, 7  ;;  %v622_v24 = vsel %vm621_vm2, %v620_v7, %v608_v13  ;;  %v3971_v5 = vld [vmem:[%s5867_s4 + $0x8] sm:$0xff]  }
 0x273   : > { %v591_v62 = vpop.permute.xlu1 %590  ;;  %v654_v25 = vrot.slane %v4584_v57, 6  ;;  %v653_v38 = vsel %vm621_vm2, %v652_v17, %v4587_v58  ;;  %3833 = vmatpush3.bf16.msra.mxu1 %v3971_v5  ;;  %3849 = vmatpush3.bf16.msra.mxu0 %v3971_v5 }
 0x274   : > { %v4595_v63 = vmul.f32 %v4003_v21, %v591_v62  ;;  %v745_v8 = vunpack.c.l.b16 %v733_v61  ;;  %v623_v12 = vrot.slane %v610_v0, 6  ;;  %v750_v46 = vsel %vm621_vm2, %v749_v18, %v743_v14  ;;  %3838 = vmatprep.subr.bf16.mxu1 %v5870_v1  ;;  %3862 = vmatprep.subr.bf16.mxu0 %v5870_v1 }
 0x275   : > { %v655_v43 = vsel %vm624_vm3, %v654_v25, %v653_v38 }
 0x276   : > { %v611_v6 = vmul.f32 %v4595_v63, %v4595_v63  ;;  %v734_v10 = vpack.c.bf16 %v4595_v63, %v4595_v63  ;;  %v751_v22 = vrot.slane %v745_v8, 6  ;;  %v625_v27 = vsel %vm624_vm3, %v623_v12, %v622_v24  ;;  %v725_v24 = vld [vmem:[#allocation2 + $0x1] sm:$0x1] }
 0x277   : > { %v593_v9 = vpop.permute.xlu0 %592  ;;  %v656_v29 = vrot.slane %v4595_v63, 5 }
 0x278   : > { %v4606_v11 = vmul.f32 %v4547_v23, %v593_v9  ;;  %v626_v15 = vrot.slane %v611_v6, 5  ;;  %v746_v16 = vunpack.c.l.b16 %v734_v10  ;;  %v752_v49 = vsel %vm624_vm3, %v751_v22, %v750_v46 }
 0x279   : > { %v595_v19 = vpop.permute.xlu1 %594  ;;  %v657_v47 = vsel %vm627_vm4, %v656_v29, %v655_v43 }
 0x27a   : > { %v612_v20 = vmul.f32 %v4606_v11, %v4606_v11  ;;  %v735_v21 = vpack.c.bf16 %v4606_v11, %v4606_v11  ;;  %v4616_v23 = vmul.f32 %v4550_v26, %v595_v19  ;;  %v628_v33 = vsel %vm627_vm4, %v626_v15, %v625_v27 }
 0x27b   : > { %v753_v26 = vrot.slane %v746_v16, 5  ;;  %v658_v39 = vrot.slane %v4606_v11, 4 }
 0x27c   : > { %v629_v28 = vrot.slane %v612_v20, 4  ;;  %v747_v30 = vunpack.c.l.b16 %v735_v21  ;;  %v613_v32 = vmul.f32 %v4616_v23, %v4616_v23  ;;  %v736_v35 = vpack.c.bf16 %v4616_v23, %v4616_v23 }
 0x27d   : > { %v660_v51 = vrot.slane %v4616_v23, 3  ;;  %v754_v52 = vsel %vm627_vm4, %v753_v26, %v752_v49  ;;  %v659_v54 = vsel %vm630_vm5, %v658_v39, %v657_v47  ;;  %v727_v26 = vld [vmem:[#allocation2 + $0x11] sm:$0x1]  ;;  %v728_v39 = vld [vmem:[#allocation2 + $0x19] sm:$0x1] }
 0x27e   : > { %v631_v36 = vsel %vm630_vm5, %v629_v28, %v628_v33  ;;  %v755_v40 = vrot.slane %v747_v30, 4  ;;  %v632_v42 = vrot.slane %v613_v32, 3  ;;  %v748_v44 = vunpack.c.l.b16 %v736_v35  ;;  %v726_v30 = vld [vmem:[#allocation2 + $0x9] sm:$0x1] }
 0x27f   : > { %v661_v59 = vsel %vm633_vm6, %v660_v51, %v659_v54 }
 0x280   : > { %v634_v50 = vsel %vm633_vm6, %v632_v42, %v631_v36  ;;  %v757_v53 = vrot.slane %v748_v44, 3  ;;  %v756_v56 = vsel %vm630_vm5, %v755_v40, %v754_v52  ;;  %v729_v44 = vld [vmem:[#allocation2 + $0x21] sm:$0x1] }
 0x281   : > { %635 = vrot.lane.b32.xlu0 %v634_v50, %s4448_s13  ;;  %v730_v50 = vld [vmem:[#allocation2 + $0x29] sm:$0x1] }
 0x282   : > { %v758_v60 = vsel %vm633_vm6, %v757_v53, %v756_v56 }
 0x283   : > { %v759_v61 = vpack.c.b16 %v758_v60, %v758_v60 }
 0x285   : > { %662 = vrot.lane.b32.xlu0 %v661_v59, %s4448_s13 }
 0x289   : > { %760 = vrot.lane.b32.xlu0 %v759_v61, %s4448_s13 }
 0x2f3   : > { %v636_v62 = vpop.permute.xlu0 %635 }
 0x2f4   : > { %v639_v0 = vsel %vm638_vm7, %v636_v62, 0.0 }
 0x2f5   : > { %640 = vadd.xlane.f32.xlu1 %v639_v0 }
 0x2f7   : > { %v4656_v12 = vpop.permute.xlu0 %662 }
 0x2f8   : > { %5902 = vst [vmem:[#allocation3_spill] sm:$0xff] %v4656_v12 }
 0x2fb   : > { %v761_v17 = vpop.permute.xlu0 %760 }
 0x382   : > { %v641_v6 = vpop.xlane.xlu1 %640 }
 0x383   : > { %v642_v7 = vmul.f32 0.17677669, %v641_v6 }
 0x385   : > { %v643_v8 = vsub.f32 %v642_v7, %v642_v7 }
 0x387   : > { %v644_v9 = vmul.f32 1.442695, %v643_v8 }
 0x389   : > { %4020 = vpow2.f32 %v644_v9 }
 0x393   : > { %v4021_v10 = vpop.eup %4020 }
 0x394   : > { %4022 = vrcp.f32 %v4021_v10  ;;  %v665_v13 = vmul.f32 %v4021_v10, %v4656_v12 }
 0x39e   : > { %v4023_v14 = vpop.eup %4022 }
 0x39f   : > { %v667_v15 = vmul.f32 %v4023_v14, %v665_v13 }
 0x3a1   : > { %v668_v16 = vpack.c.bf16 %v667_v15, %v667_v15 }
 0x3a3   : > { %3835 = vmatmul.mubr.msk.bf16.vlgmr.msra.gmra.mrb[4].mxu1 %vm402_vm8, %v668_v16 }
 0x3a4   : > { %3839 = vmatpush3.bf16.msra.mxu1 %v4504_v2  ;;  %3842 = vmatprep.mubr.msk.bf16.mxu1 %vm4445_vm0, %v5870_v1 }
 0x3a5   : > { %3840 = vmatprep.subr.bf16.mxu1 %v5870_v1 }
 0x3a8   : > { %3841 = vmatpush3.bf16.msra.mxu1 %v4512_v3 }
 0x3a9   : > { %3854 = vmatprep.subr.bf16.mxu1 %v5870_v1 }
 0x3ab   : > { %3843 = vmatmul.mubr.msk.bf16.vlgmr.msra.gmra.mrb[8].mxu1 %vm402_vm8, %v761_v17 }
 0x3ac   : > { %3855 = vmatpush3.bf16.msra.mxu1 %v4504_v2  ;;  %3858 = vmatprep.mubr.msk.bf16.mxu1 %vm4445_vm0, %v5870_v1 }
 0x3ad   : > { %3856 = vmatprep.subr.bf16.mxu1 %v5870_v1 }
 0x3b0   : > { %3857 = vmatpush3.bf16.msra.mxu1 %v4512_v3 }
 0x3b1   : > { %3870 = vmatprep.subr.bf16.mxu1 %v5870_v1 }
 0x476   : > { %v4673_v18 = vpop.f32.mrb[4].mxu1 }
 0x477   : > { %5903 = vst [vmem:[#allocation4_spill] sm:$0xff] %v4673_v18  ;;  %v3836_v19 = vpop.f32.mrb[5].mxu1 }
 0x478   : > { %v721_v20 = vpop.f32.mrb[6].mxu1 }
 0x479   : > { %v3837_v21 = vpop.f32.mrb[7].mxu1 }
 0x47e   : > { %v799_v22 = vpop.f32.mrb[8].mxu1 }
 0x47f   : > { %v806_v25 = vrot.slane %v799_v22, 1  ;;  %v3844_v27 = vpop.f32.mrb[9].mxu1  ;;  %v817_v28 = vadd.f32 %v799_v22, %v725_v24  ;;  %v807_v33 = vrot.slane %v799_v22, 2  ;;  %v808_v36 = vrot.slane %v799_v22, 3 }
 0x480   : > { %v802_v29 = vpop.f32.mrb[10].mxu1  ;;  %v809_v40 = vrot.slane %v799_v22, 4  ;;  %v810_v46 = vrot.slane %v799_v22, 5 }
 0x481   : > { %v3845_v32 = vpop.f32.mrb[11].mxu1  ;;  %v818_v35 = vadd.f32 %v806_v25, %v726_v30  ;;  %4024 = vtanh.f32 %v817_v28  ;;  %v819_v38 = vadd.f32 %v807_v33, %v727_v26  ;;  %v820_v42 = vadd.f32 %v808_v36, %v728_v39 }
 0x482   : > { %v821_v47 = vadd.f32 %v809_v40, %v729_v44  ;;  %v822_v51 = vadd.f32 %v810_v46, %v730_v50  ;;  %v3698_v60 = vmul.f32 -1.442695, %v817_v28 }
 0x483   : > { %4026 = vtanh.f32 %v818_v35  ;;  %v3699_v59 = vmul.f32 -1.442695, %v818_v35  ;;  %v3700_v61 = vmul.f32 -1.442695, %v819_v38  ;;  %v3701_v62 = vmul.f32 -1.442695, %v820_v42 }
 0x484   : > { %4028 = vtanh.f32 %v819_v38  ;;  %v3702_v0 = vmul.f32 -1.442695, %v821_v47  ;;  %v3703_v5 = vmul.f32 -1.442695, %v822_v51 }
 0x485   : > { %4030 = vtanh.f32 %v820_v42 }
 0x486   : > { %4032 = vtanh.f32 %v821_v47 }
 0x487   : > { %4034 = vtanh.f32 %v822_v51 }
 0x488   : > { %4036 = vpow2.f32 %v3699_v59 }
 0x489   : > { %4038 = vpow2.f32 %v3698_v60 }
 0x48a   : > { %4040 = vpow2.f32 %v3700_v61 }
 0x48b   : > { %v4025_v43 = vpop.eup %4024  ;;  %4042 = vpow2.f32 %v3701_v62 }
 0x48c   : > { %877 = vrot.lane.b32.xlu0 %v4025_v43, %s4447_s12  ;;  %4044 = vpow2.f32 %v3702_v0 }
 0x48d   : > { %v4027_v49 = vpop.eup %4026  ;;  %4046 = vpow2.f32 %v3703_v5 }
 0x48e   : > { %v4029_v52 = vpop.eup %4028 }
 0x48f   : > { %v4031_v53 = vpop.eup %4030 }
 0x490   : > { %879 = vrot.lane.b32.xlu0 %v4027_v49, %s4447_s12  ;;  %v4033_v54 = vpop.eup %4032 }
 0x491   : > { %v4035_v56 = vpop.eup %4034 }
 0x492   : > { %v4037_v4 = vpop.eup %4036 }
 0x493   : > { %v4039_v6 = vpop.eup %4038  ;;  %v842_v7 = vadd.f32 1.0, %v4037_v4 }
 0x494   : > { %881 = vrot.lane.b32.xlu0 %v4029_v52, %s4447_s12  ;;  %v4041_v8 = vpop.eup %4040  ;;  %v841_v9 = vadd.f32 1.0, %v4039_v6 }
 0x495   : > { %v843_v10 = vadd.f32 1.0, %v4041_v8  ;;  %4048 = vrcp.f32 %v842_v7  ;;  %v4043_v13 = vpop.eup %4042 }
 0x496   : > { %4050 = vrcp.f32 %v841_v9  ;;  %v844_v14 = vadd.f32 1.0, %v4043_v13  ;;  %v4045_v15 = vpop.eup %4044 }
 0x497   : > { %4052 = vrcp.f32 %v843_v10  ;;  %v845_v17 = vadd.f32 1.0, %v4045_v15  ;;  %v4047_v19 = vpop.eup %4046 }
 0x498   : > { %883 = vrot.lane.b32.xlu0 %v4031_v53, %s4447_s12  ;;  %4054 = vrcp.f32 %v844_v14  ;;  %v846_v24 = vadd.f32 1.0, %v4047_v19 }
 0x499   : > { %4056 = vrcp.f32 %v845_v17 }
 0x49a   : > { %4058 = vrcp.f32 %v846_v24 }
 0x49c   : > { %885 = vrot.lane.b32.xlu0 %v4033_v54, %s4447_s12 }
 0x49f   : > { %v4681_v20 = vpop.eup %4048 }
 0x4a0   : > { %887 = vrot.lane.b32.xlu0 %v4035_v56, %s4447_s12  ;;  %v4051_v25 = vpop.eup %4050  ;;  %v866_v52 = vmul.f32 %v4681_v20, %v4559_v34 }
 0x4a1   : > { %v4053_v27 = vpop.eup %4052  ;;  %v865_v46 = vmul.f32 %v4051_v25, %v4556_v31 }
 0x4a2   : > { %v4055_v32 = vpop.eup %4054  ;;  %v867_v44 = vmul.f32 %v4053_v27, %v4562_v37 }
 0x4a3   : > { %v4057_v26 = vpop.eup %4056  ;;  %v868_v53 = vmul.f32 %v4055_v32, %v4565_v41 }
 0x4a4   : > { %v4059_v39 = vpop.eup %4058  ;;  %v869_v31 = vmul.f32 %v4057_v26, %v4570_v45 }
 0x4a5   : > { %v870_v34 = vmul.f32 %v4059_v39, %v4575_v48 }
 0x4fe   : > { %v878_v16 = vpop.permute.xlu0 %877 }
 0x4ff   : > { %v895_v29 = vmul.f32 %v4051_v25, %v878_v16 }
 0x502   : > { %v880_v21 = vpop.permute.xlu0 %879 }
 0x503   : > { %v896_v22 = vmul.f32 %v4681_v20, %v880_v21 }
 0x505   : > { %909 = vrot.lane.b32.xlu0 %v896_v22, %s4448_s13 }
 0x506   : > { %v882_v28 = vpop.permute.xlu0 %881 }
 0x507   : > { %v897_v30 = vmul.f32 %v4053_v27, %v882_v28 }
 0x509   : > { %911 = vrot.lane.b32.xlu1 %v897_v30, %s4448_s13  ;;  %907 = vrot.lane.b32.xlu0 %v895_v29, %s4448_s13 }
 0x50a   : > { %v884_v33 = vpop.permute.xlu0 %883 }
 0x50b   : > { %v898_v35 = vmul.f32 %v4055_v32, %v884_v33 }
 0x50d   : > { %913 = vrot.lane.b32.xlu0 %v898_v35, %s4448_s13 }
 0x50e   : > { %v886_v36 = vpop.permute.xlu0 %885 }
 0x50f   : > { %v899_v38 = vmul.f32 %v4057_v26, %v886_v36 }
 0x511   : > { %915 = vrot.lane.b32.xlu0 %v899_v38, %s4448_s13 }
 0x512   : > { %v888_v40 = vpop.permute.xlu0 %887 }
 0x513   : > { %v900_v42 = vmul.f32 %v4059_v39, %v888_v40 }
 0x515   : > { %917 = vrot.lane.b32.xlu0 %v900_v42, %s4448_s13 }
 0x577   : > { %v910_v43 = vpop.permute.xlu0 %909 }
 0x578   : > { %v4700_v54 = vadd.f32 %v910_v43, %v866_v52 }
 0x57b   : > { %v912_v47 = vpop.permute.xlu1 %911  ;;  %v908_v49 = vpop.permute.xlu0 %907 }
 0x57c   : > { %v4692_v50 = vadd.f32 %v912_v47, %v867_v44  ;;  %v4694_v51 = vadd.f32 %v908_v49, %v865_v46 }
 0x57e   : > { %4060 = vtanh.f32 %v4692_v50 }
 0x57f   : > { %4062 = vtanh.f32 %v4694_v51  ;;  %v914_v37 = vpop.permute.xlu0 %913 }
 0x580   : > { %v4703_v56 = vadd.f32 %v914_v37, %v868_v53 }
 0x582   : > { %4064 = vtanh.f32 %v4703_v56 }
 0x583   : > { %4066 = vtanh.f32 %v4700_v54  ;;  %v916_v59 = vpop.permute.xlu0 %915 }
 0x584   : > { %v4708_v60 = vadd.f32 %v916_v59, %v869_v31  ;;  %v1102_v31 = vld [vmem:[#allocation2 + $0x2] sm:$0x1] }
 0x586   : > { %4068 = vtanh.f32 %v4708_v60 }
 0x587   : > { %v918_v41 = vpop.permute.xlu0 %917 }
 0x588   : > { %v4061_v61 = vpop.eup %4060  ;;  %v4712_v62 = vadd.f32 %v918_v41, %v870_v34 }
 0x589   : > { %v4063_v0 = vpop.eup %4062  ;;  %947 = vrot.lane.b32.xlu0 %v4061_v61, %s4447_s12 }
 0x58a   : > { %4070 = vtanh.f32 %v4712_v62  ;;  %943 = vrot.lane.b32.xlu1 %v4063_v0, %s4447_s12  ;;  %v1103_v0 = vld [vmem:[#allocation2 + $0xa] sm:$0x1] }
 0x58c   : > { %v4065_v45 = vpop.eup %4064 }
 0x58d   : > { %v4067_v4 = vpop.eup %4066  ;;  %949 = vrot.lane.b32.xlu0 %v4065_v45, %s4447_s12 }
 0x58e   : > { %945 = vrot.lane.b32.xlu1 %v4067_v4, %s4447_s12 }
 0x590   : > { %v4069_v5 = vpop.eup %4068 }
 0x592   : > { %951 = vrot.lane.b32.xlu1 %v4069_v5, %s4447_s12 }
 0x594   : > { %v4071_v48 = vpop.eup %4070 }
 0x595   : > { %953 = vrot.lane.b32.xlu0 %v4071_v48, %s4447_s12  ;;  %v1104_v48 = vld [vmem:[#allocation2 + $0x12] sm:$0x1] }
 0x5fb   : > { %v948_v6 = vpop.permute.xlu0 %947 }
 0x5fc   : > { %v944_v7 = vpop.permute.xlu1 %943  ;;  %v4721_v8 = vmul.f32 %v4053_v27, %v948_v6 }
 0x5fd   : > { %v4723_v9 = vmul.f32 %v4051_v25, %v944_v7 }
 0x5fe   : > { %v1110_v15 = vpack.c.bf16 %v4721_v8, %v4721_v8 }
 0x5ff   : > { %v950_v10 = vpop.permute.xlu0 %949  ;;  %v1108_v19 = vpack.c.bf16 %v4723_v9, %v4723_v9 }
 0x600   : > { %v4725_v13 = vmul.f32 %v4055_v32, %v950_v10  ;;  %v946_v14 = vpop.permute.xlu1 %945  ;;  %v1122_v24 = vunpack.c.l.b16 %v1110_v15  ;;  %v1106_v10 = vld [vmem:[#allocation2 + $0x22] sm:$0x1] }
 0x601   : > { %v4730_v16 = vmul.f32 %v4681_v20, %v946_v14  ;;  %v1120_v30 = vunpack.c.l.b16 %v1108_v19  ;;  %v1105_v14 = vld [vmem:[#allocation2 + $0x1a] sm:$0x1] }
 0x602   : > { %v1111_v17 = vpack.c.bf16 %v4725_v13, %v4725_v13  ;;  %v1128_v35 = vrot.slane %v1122_v24, 6 }
 0x603   : > { %v1109_v21 = vpack.c.bf16 %v4730_v16, %v4730_v16 }
 0x604   : > { %v952_v22 = vpop.permute.xlu1 %951  ;;  %v1123_v28 = vunpack.c.l.b16 %v1111_v17 }
 0x605   : > { %v4738_v25 = vmul.f32 %v4057_v26, %v952_v22  ;;  %v1121_v27 = vunpack.c.l.b16 %v1109_v21  ;;  %v1107_v21 = vld [vmem:[#allocation2 + $0x2a] sm:$0x1] }
 0x606   : > { %v1130_v42 = vrot.slane %v1123_v28, 5 }
 0x607   : > { %v954_v29 = vpop.permute.xlu0 %953  ;;  %v1112_v20 = vpack.c.bf16 %v4738_v25, %v4738_v25  ;;  %v1126_v32 = vrot.slane %v1121_v27, 7 }
 0x608   : > { %v4742_v33 = vmul.f32 %v4059_v39, %v954_v29 }
 0x609   : > { %v1124_v36 = vunpack.c.l.b16 %v1112_v20  ;;  %v1127_v38 = vsel %vm621_vm2, %v1126_v32, %v1120_v30 }
 0x60a   : > { %v1113_v40 = vpack.c.bf16 %v4742_v33, %v4742_v33  ;;  %v1129_v26 = vsel %vm624_vm3, %v1128_v35, %v1127_v38 }
 0x60b   : > { %v1132_v43 = vrot.slane %v1124_v36, 4  ;;  %v1131_v46 = vsel %vm627_vm4, %v1130_v42, %v1129_v26 }
 0x60c   : > { %v1125_v44 = vunpack.c.l.b16 %v1113_v40 }
 0x60d   : > { %v1133_v49 = vsel %vm630_vm5, %v1132_v43, %v1131_v46 }
 0x60e   : > { %v1134_v47 = vrot.slane %v1125_v44, 3 }
 0x610   : > { %v1135_v39 = vsel %vm633_vm6, %v1134_v47, %v1133_v49 }
 0x611   : > { %v1136_v52 = vpack.c.b16 %v1135_v39, %v1135_v39 }
 0x613   : > { %1137 = vrot.lane.b32.xlu1 %v1136_v52, %s4448_s13 }
 0x685   : > { %v1138_v53 = vpop.permute.xlu1 %1137 }
 0x686   : > { %3859 = vmatmul.mubr.msk.bf16.vlgmr.msra.gmra.mrb[12].mxu1 %vm402_vm8, %v1138_v53 }
 0x687   : > { %3871 = vmatpush3.bf16.msra.mxu1 %v4504_v2  ;;  %3874 = vmatprep.mubr.msk.bf16.mxu1 %vm4445_vm0, %v5870_v1 }
 0x688   : > { %3872 = vmatprep.subr.bf16.mxu1 %v5870_v1 }
 0x68b   : > { %3873 = vmatpush3.bf16.msra.mxu1 %v4512_v3 }
 0x68c   : > { %3886 = vmatprep.subr.bf16.mxu1 %v5870_v1 }
 0x759   : > { %v1176_v37 = vpop.f32.mrb[12].mxu1 }
 0x75a   : > { %v1183_v59 = vrot.slane %v1176_v37, 1  ;;  %v3860_v34 = vpop.f32.mrb[13].mxu1  ;;  %v1194_v41 = vadd.f32 %v1176_v37, %v1102_v31  ;;  %v1184_v4 = vrot.slane %v1176_v37, 2  ;;  %v1186_v2 = vrot.slane %v1176_v37, 4 }
 0x75b   : > { %v1179_v61 = vpop.f32.mrb[14].mxu1  ;;  %v1185_v6 = vrot.slane %v1176_v37, 3  ;;  %v1187_v15 = vrot.slane %v1176_v37, 5 }
 0x75c   : > { %v3861_v45 = vpop.f32.mrb[15].mxu1  ;;  %v1195_v5 = vadd.f32 %v1183_v59, %v1103_v0  ;;  %4072 = vtanh.f32 %v1194_v41  ;;  %v1196_v7 = vadd.f32 %v1184_v4, %v1104_v48  ;;  %v1198_v3 = vadd.f32 %v1186_v2, %v1106_v10 }
 0x75d   : > { %v1197_v17 = vadd.f32 %v1185_v6, %v1105_v14  ;;  %v1199_v22 = vadd.f32 %v1187_v15, %v1107_v21  ;;  %v3706_v30 = vmul.f32 -1.442695, %v1194_v41 }
 0x75e   : > { %4074 = vtanh.f32 %v1195_v5  ;;  %v3707_v32 = vmul.f32 -1.442695, %v1195_v5  ;;  %v3708_v35 = vmul.f32 -1.442695, %v1196_v7  ;;  %v3710_v36 = vmul.f32 -1.442695, %v1198_v3 }
 0x75f   : > { %4076 = vtanh.f32 %v1196_v7  ;;  %v3709_v38 = vmul.f32 -1.442695, %v1197_v17  ;;  %v3711_v26 = vmul.f32 -1.442695, %v1199_v22 }
 0x760   : > { %4078 = vtanh.f32 %v1198_v3 }
 0x761   : > { %4080 = vtanh.f32 %v1197_v17 }
 0x762   : > { %4082 = vtanh.f32 %v1199_v22 }
 0x763   : > { %4084 = vpow2.f32 %v3706_v30 }
 0x764   : > { %4086 = vpow2.f32 %v3707_v32 }
 0x765   : > { %4088 = vpow2.f32 %v3708_v35 }
 0x766   : > { %v4073_v19 = vpop.eup %4072  ;;  %4090 = vpow2.f32 %v3710_v36 }
 0x767   : > { %1254 = vrot.lane.b32.xlu0 %v4073_v19, %s4447_s12  ;;  %4092 = vpow2.f32 %v3709_v38 }
 0x768   : > { %v4075_v24 = vpop.eup %4074  ;;  %4094 = vpow2.f32 %v3711_v26 }
 0x769   : > { %v4077_v27 = vpop.eup %4076 }
 0x76a   : > { %1258 = vrot.lane.b32.xlu1 %v4077_v27, %s4447_s12  ;;  %v4079_v28 = vpop.eup %4078 }
 0x76b   : > { %1256 = vrot.lane.b32.xlu0 %v4075_v24, %s4447_s12  ;;  %v4081_v29 = vpop.eup %4080 }
 0x76c   : > { %v4083_v20 = vpop.eup %4082 }
 0x76d   : > { %v4085_v40 = vpop.eup %4084 }
 0x76e   : > { %1260 = vrot.lane.b32.xlu1 %v4081_v29, %s4447_s12  ;;  %v1218_v42 = vadd.f32 1.0, %v4085_v40  ;;  %v4087_v43 = vpop.eup %4086 }
 0x76f   : > { %1262 = vrot.lane.b32.xlu0 %v4079_v28, %s4447_s12  ;;  %v1219_v44 = vadd.f32 1.0, %v4087_v43  ;;  %v4089_v46 = vpop.eup %4088 }
 0x770   : > { %4096 = vrcp.f32 %v1218_v42  ;;  %v4091_v47 = vpop.eup %4090  ;;  %v1220_v49 = vadd.f32 1.0, %v4089_v46 }
 0x771   : > { %4098 = vrcp.f32 %v1219_v44  ;;  %v4093_v39 = vpop.eup %4092  ;;  %v1222_v52 = vadd.f32 1.0, %v4091_v47 }
 0x772   : > { %1264 = vrot.lane.b32.xlu1 %v4083_v20, %s4447_s12  ;;  %v1221_v53 = vadd.f32 1.0, %v4093_v39  ;;  %4100 = vrcp.f32 %v1220_v49  ;;  %v4095_v37 = vpop.eup %4094 }
 0x773   : > { %4102 = vrcp.f32 %v1222_v52  ;;  %v1223_v41 = vadd.f32 1.0, %v4095_v37 }
 0x774   : > { %4104 = vrcp.f32 %v1221_v53 }
 0x775   : > { %4106 = vrcp.f32 %v1223_v41 }
 0x77a   : > { %v4765_v31 = vpop.eup %4096 }
 0x77b   : > { %v4099_v61 = vpop.eup %4098  ;;  %v1242_v21 = vmul.f32 %v4765_v31, %v4694_v51 }
 0x77c   : > { %v4101_v4 = vpop.eup %4100  ;;  %v1243_v27 = vmul.f32 %v4099_v61, %v4700_v54 }
 0x77d   : > { %v4103_v48 = vpop.eup %4102  ;;  %v1244_v20 = vmul.f32 %v4101_v4, %v4692_v50 }
 0x77e   : > { %v4105_v10 = vpop.eup %4104  ;;  %v1246_v35 = vmul.f32 %v4103_v48, %v4708_v60 }
 0x77f   : > { %v4773_v15 = vpop.eup %4106  ;;  %v1245_v36 = vmul.f32 %v4105_v10, %v4703_v56 }
 0x780   : > { %v1247_v50 = vmul.f32 %v4773_v15, %v4712_v62 }
 0x7d9   : > { %v1255_v59 = vpop.permute.xlu0 %1254 }
 0x7da   : > { %v1272_v34 = vmul.f32 %v4765_v31, %v1255_v59 }
 0x7dc   : > { %1284 = vrot.lane.b32.xlu0 %v1272_v34, %s4448_s13  ;;  %v1259_v5 = vpop.permute.xlu1 %1258 }
 0x7dd   : > { %v1257_v0 = vpop.permute.xlu0 %1256  ;;  %v1274_v2 = vmul.f32 %v4101_v4, %v1259_v5 }
 0x7de   : > { %v1273_v45 = vmul.f32 %v4099_v61, %v1257_v0 }
 0x7df   : > { %1288 = vrot.lane.b32.xlu1 %v1274_v2, %s4448_s13 }
 0x7e0   : > { %1286 = vrot.lane.b32.xlu0 %v1273_v45, %s4448_s13  ;;  %v1261_v3 = vpop.permute.xlu1 %1260 }
 0x7e1   : > { %v1263_v6 = vpop.permute.xlu0 %1262  ;;  %v1275_v14 = vmul.f32 %v4105_v10, %v1261_v3 }
 0x7e2   : > { %v1276_v7 = vmul.f32 %v4103_v48, %v1263_v6 }
 0x7e3   : > { %1290 = vrot.lane.b32.xlu1 %v1275_v14, %s4448_s13 }
 0x7e4   : > { %1292 = vrot.lane.b32.xlu0 %v1276_v7, %s4448_s13  ;;  %v1265_v17 = vpop.permute.xlu1 %1264 }
 0x7e5   : > { %v1277_v19 = vmul.f32 %v4773_v15, %v1265_v17 }
 0x7e7   : > { %1294 = vrot.lane.b32.xlu1 %v1277_v19, %s4448_s13 }
 0x84e   : > { %v1285_v22 = vpop.permute.xlu0 %1284 }
 0x84f   : > { %v4779_v24 = vadd.f32 %v1285_v22, %v1242_v21 }
 0x851   : > { %4108 = vtanh.f32 %v4779_v24  ;;  %v1289_v30 = vpop.permute.xlu1 %1288 }
 0x852   : > { %v1287_v28 = vpop.permute.xlu0 %1286  ;;  %v4787_v32 = vadd.f32 %v1289_v30, %v1244_v20 }
 0x853   : > { %v4783_v29 = vadd.f32 %v1287_v28, %v1243_v27 }
 0x855   : > { %4110 = vtanh.f32 %v4783_v29  ;;  %v1291_v54 = vpop.permute.xlu1 %1290 }
 0x856   : > { %v1293_v51 = vpop.permute.xlu0 %1292  ;;  %4112 = vtanh.f32 %v4787_v32  ;;  %v4794_v26 = vadd.f32 %v1291_v54, %v1245_v36 }
 0x857   : > { %v4792_v38 = vadd.f32 %v1293_v51, %v1246_v35 }
 0x859   : > { %4114 = vtanh.f32 %v4792_v38  ;;  %v1295_v60 = vpop.permute.xlu1 %1294 }
 0x85a   : > { %4116 = vtanh.f32 %v4794_v26  ;;  %v4801_v43 = vadd.f32 %v1295_v60, %v1247_v50  ;;  %v4845_v50 = vld [vmem:[%s5865_s2] sm:$0xff]   ;;  %v4854_v60 = vld [vmem:[%s5865_s2 + $0x8] sm:$0xff]  }
 0x85b   : > { %v4109_v40 = vpop.eup %4108 }
 0x85c   : > { %1320 = vrot.lane.b32.xlu0 %v4109_v40, %s4447_s12  ;;  %4118 = vtanh.f32 %v4801_v43 }
 0x85f   : > { %v4111_v42 = vpop.eup %4110 }
 0x860   : > { %1322 = vrot.lane.b32.xlu0 %v4111_v42, %s4447_s12  ;;  %v4113_v56 = vpop.eup %4112 }
 0x861   : > { %1324 = vrot.lane.b32.xlu1 %v4113_v56, %s4447_s12  ;;  %v1515_v56 = vld [vmem:[#allocation2 + $0x3] sm:$0x1] }
 0x863   : > { %v4115_v44 = vpop.eup %4114 }
 0x864   : > { %1328 = vrot.lane.b32.xlu0 %v4115_v44, %s4447_s12  ;;  %v4117_v46 = vpop.eup %4116 }
 0x865   : > { %1326 = vrot.lane.b32.xlu1 %v4117_v46, %s4447_s12 }
 0x866   : > { %v4119_v47 = vpop.eup %4118 }
 0x869   : > { %1330 = vrot.lane.b32.xlu1 %v4119_v47, %s4447_s12 }
 0x8ce   : > { %v1321_v62 = vpop.permute.xlu0 %1320 }
 0x8cf   : > { %v4810_v39 = vmul.f32 %v4765_v31, %v1321_v62 }
 0x8d1   : > { %v1521_v34 = vpack.c.bf16 %v4810_v39, %v4810_v39 }
 0x8d2   : > { %v1323_v49 = vpop.permute.xlu0 %1322 }
 0x8d3   : > { %v4812_v52 = vmul.f32 %v4099_v61, %v1323_v49  ;;  %v1325_v37 = vpop.permute.xlu1 %1324  ;;  %v1533_v7 = vunpack.c.l.b16 %v1521_v34  ;;  %v1516_v49 = vld [vmem:[#allocation2 + $0xb] sm:$0x1] }
 0x8d4   : > { %v4816_v59 = vmul.f32 %v4101_v4, %v1325_v37 }
 0x8d5   : > { %v1522_v53 = vpack.c.bf16 %v4812_v52, %v4812_v52 }
 0x8d6   : > { %v1329_v0 = vpop.permute.xlu0 %1328  ;;  %v1523_v5 = vpack.c.bf16 %v4816_v59, %v4816_v59 }
 0x8d7   : > { %v1534_v41 = vunpack.c.l.b16 %v1522_v53  ;;  %v4820_v45 = vmul.f32 %v4103_v48, %v1329_v0  ;;  %v1327_v2 = vpop.permute.xlu1 %1326  ;;  %v1517_v0 = vld [vmem:[#allocation2 + $0x13] sm:$0x1] }
 0x8d8   : > { %v4824_v61 = vmul.f32 %v4105_v10, %v1327_v2  ;;  %v1535_v4 = vunpack.c.l.b16 %v1523_v5  ;;  %v1519_v2 = vld [vmem:[#allocation2 + $0x23] sm:$0x1] }
 0x8d9   : > { %v1539_v31 = vrot.slane %v1534_v41, 7  ;;  %v1525_v6 = vpack.c.bf16 %v4820_v45, %v4820_v45 }
 0x8da   : > { %v1524_v3 = vpack.c.bf16 %v4824_v61, %v4824_v61  ;;  %v1541_v19 = vrot.slane %v1535_v4, 6 }
 0x8db   : > { %v1537_v14 = vunpack.c.l.b16 %v1525_v6  ;;  %v1540_v17 = vsel %vm621_vm2, %v1539_v31, %v1533_v7  ;;  %v1331_v48 = vpop.permute.xlu1 %1330  ;;  %v1518_v7 = vld [vmem:[#allocation2 + $0x1b] sm:$0x1] }
 0x8dc   : > { %v4832_v21 = vmul.f32 %v4773_v15, %v1331_v48  ;;  %v1536_v22 = vunpack.c.l.b16 %v1524_v3  ;;  %v1542_v10 = vsel %vm624_vm3, %v1541_v19, %v1540_v17  ;;  %v1520_v17 = vld [vmem:[#allocation2 + $0x2b] sm:$0x1] }
 0x8dd   : > { %v1545_v27 = vrot.slane %v1537_v14, 4 }
 0x8de   : > { %v1526_v28 = vpack.c.bf16 %v4832_v21, %v4832_v21  ;;  %v1543_v20 = vrot.slane %v1536_v22, 5 }
 0x8e0   : > { %v1538_v30 = vunpack.c.l.b16 %v1526_v28  ;;  %v1544_v35 = vsel %vm627_vm4, %v1543_v20, %v1542_v10 }
 0x8e1   : > { %v1546_v51 = vsel %vm630_vm5, %v1545_v27, %v1544_v35 }
 0x8e2   : > { %v1547_v36 = vrot.slane %v1538_v30, 3 }
 0x8e4   : > { %v1548_v54 = vsel %vm633_vm6, %v1547_v36, %v1546_v51 }
 0x8e5   : > { %v1549_v40 = vpack.c.b16 %v1548_v54, %v1548_v54 }
 0x8e7   : > { %1550 = vrot.lane.b32.xlu0 %v1549_v40, %s4448_s13 }
 0x959   : > { %v1551_v15 = vpop.permute.xlu0 %1550 }
 0x95a   : > { %3875 = vmatmul.mubr.msk.bf16.vlgmr.msra.gmra.mrb[16].mxu1 %vm402_vm8, %v1551_v15 }
 0x95b   : > { %3887 = vmatpush3.bf16.msra.mxu1 %v4845_v50  ;;  %3890 = vmatprep.mubr.msk.bf16.mxu1 %vm4445_vm0, %v5870_v1 }
 0x95c   : > { %3888 = vmatprep.subr.bf16.mxu1 %v5870_v1 }
 0x95f   : > { %3889 = vmatpush3.bf16.msra.mxu1 %v4854_v60 }
 0x960   : > { %3902 = vmatprep.subr.bf16.mxu1 %v5870_v1 }
 0xa2d   : > { %v1589_v42 = vpop.f32.mrb[16].mxu1 }
 0xa2e   : > { %v1596_v44 = vrot.slane %v1589_v42, 1  ;;  %v3876_v46 = vpop.f32.mrb[17].mxu1  ;;  %v1607_v47 = vadd.f32 %v1589_v42, %v1515_v56  ;;  %v1597_v37 = vrot.slane %v1589_v42, 2  ;;  %v1599_v41 = vrot.slane %v1589_v42, 4 }
 0xa2f   : > { %v1592_v62 = vpop.f32.mrb[18].mxu1  ;;  %v1598_v5 = vrot.slane %v1589_v42, 3  ;;  %v1600_v4 = vrot.slane %v1589_v42, 5 }
 0xa30   : > { %v3877_v53 = vpop.f32.mrb[19].mxu1  ;;  %v1608_v34 = vadd.f32 %v1596_v44, %v1516_v49  ;;  %4120 = vtanh.f32 %v1607_v47  ;;  %v1609_v31 = vadd.f32 %v1597_v37, %v1517_v0  ;;  %v1611_v6 = vadd.f32 %v1599_v41, %v1519_v2 }
 0xa31   : > { %v1610_v3 = vadd.f32 %v1598_v5, %v1518_v7  ;;  %v1612_v48 = vadd.f32 %v1600_v4, %v1520_v17  ;;  %v3714_v20 = vmul.f32 -1.442695, %v1607_v47 }
 0xa32   : > { %4122 = vtanh.f32 %v1608_v34  ;;  %v3715_v30 = vmul.f32 -1.442695, %v1608_v34  ;;  %v3716_v35 = vmul.f32 -1.442695, %v1609_v31  ;;  %v3718_v51 = vmul.f32 -1.442695, %v1611_v6 }
 0xa33   : > { %4124 = vtanh.f32 %v1609_v31  ;;  %v3717_v36 = vmul.f32 -1.442695, %v1610_v3  ;;  %v3719_v40 = vmul.f32 -1.442695, %v1612_v48 }
 0xa34   : > { %4126 = vtanh.f32 %v1611_v6 }
 0xa35   : > { %4128 = vtanh.f32 %v1610_v3 }
 0xa36   : > { %4130 = vtanh.f32 %v1612_v48 }
 0xa37   : > { %4132 = vpow2.f32 %v3714_v20 }
 0xa38   : > { %4134 = vpow2.f32 %v3715_v30 }
 0xa39   : > { %4136 = vpow2.f32 %v3716_v35 }
 0xa3a   : > { %v4121_v14 = vpop.eup %4120  ;;  %4138 = vpow2.f32 %v3718_v51 }
 0xa3b   : > { %1667 = vrot.lane.b32.xlu1 %v4121_v14, %s4447_s12  ;;  %4140 = vpow2.f32 %v3717_v36 }
 0xa3c   : > { %v4123_v19 = vpop.eup %4122  ;;  %4142 = vpow2.f32 %v3719_v40 }
 0xa3d   : > { %v4125_v22 = vpop.eup %4124 }
 0xa3e   : > { %1671 = vrot.lane.b32.xlu0 %v4125_v22, %s4447_s12  ;;  %v4127_v10 = vpop.eup %4126 }
 0xa3f   : > { %1669 = vrot.lane.b32.xlu1 %v4123_v19, %s4447_s12  ;;  %v4129_v27 = vpop.eup %4128 }
 0xa40   : > { %v4131_v28 = vpop.eup %4130 }
 0xa41   : > { %v4133_v54 = vpop.eup %4132 }
 0xa42   : > { %1673 = vrot.lane.b32.xlu0 %v4129_v27, %s4447_s12  ;;  %v1631_v15 = vadd.f32 1.0, %v4133_v54  ;;  %v4135_v42 = vpop.eup %4134 }
 0xa43   : > { %1675 = vrot.lane.b32.xlu1 %v4127_v10, %s4447_s12  ;;  %v1632_v56 = vadd.f32 1.0, %v4135_v42  ;;  %v4137_v44 = vpop.eup %4136 }
 0xa44   : > { %4144 = vrcp.f32 %v1631_v15  ;;  %v4139_v46 = vpop.eup %4138  ;;  %v1633_v62 = vadd.f32 1.0, %v4137_v44 }
 0xa45   : > { %4146 = vrcp.f32 %v1632_v56  ;;  %v4141_v47 = vpop.eup %4140  ;;  %v1635_v49 = vadd.f32 1.0, %v4139_v46 }
 0xa46   : > { %1677 = vrot.lane.b32.xlu0 %v4131_v28, %s4447_s12  ;;  %v1634_v53 = vadd.f32 1.0, %v4141_v47  ;;  %4148 = vrcp.f32 %v1633_v62  ;;  %v4143_v37 = vpop.eup %4142 }
 0xa47   : > { %4150 = vrcp.f32 %v1635_v49  ;;  %v1636_v5 = vadd.f32 1.0, %v4143_v37 }
 0xa48   : > { %4152 = vrcp.f32 %v1634_v53 }
 0xa49   : > { %4154 = vrcp.f32 %v1636_v5 }
 0xa4e   : > { %v4864_v34 = vpop.eup %4144 }
 0xa4f   : > { %v4147_v31 = vpop.eup %4146  ;;  %v1655_v30 = vmul.f32 %v4864_v34, %v4779_v24 }
 0xa50   : > { %v4149_v7 = vpop.eup %4148  ;;  %v1656_v36 = vmul.f32 %v4147_v31, %v4783_v29 }
 0xa51   : > { %v4151_v14 = vpop.eup %4150  ;;  %v1657_v15 = vmul.f32 %v4149_v7, %v4787_v32 }
 0xa52   : > { %v4153_v19 = vpop.eup %4152  ;;  %v1659_v44 = vmul.f32 %v4151_v14, %v4792_v38 }
 0xa53   : > { %v4872_v27 = vpop.eup %4154  ;;  %v1658_v46 = vmul.f32 %v4153_v19, %v4794_v26 }
 0xa54   : > { %v1660_v32 = vmul.f32 %v4872_v27, %v4801_v43 }
 0xaad   : > { %v1668_v41 = vpop.permute.xlu1 %1667 }
 0xaae   : > { %v1685_v0 = vmul.f32 %v4864_v34, %v1668_v41 }
 0xab0   : > { %1697 = vrot.lane.b32.xlu1 %v1685_v0, %s4448_s13  ;;  %v1672_v4 = vpop.permute.xlu0 %1671 }
 0xab1   : > { %v1670_v2 = vpop.permute.xlu1 %1669  ;;  %v1687_v3 = vmul.f32 %v4149_v7, %v1672_v4 }
 0xab2   : > { %v1686_v6 = vmul.f32 %v4147_v31, %v1670_v2 }
 0xab3   : > { %1701 = vrot.lane.b32.xlu0 %v1687_v3, %s4448_s13 }
 0xab4   : > { %1699 = vrot.lane.b32.xlu1 %v1686_v6, %s4448_s13  ;;  %v1674_v22 = vpop.permute.xlu0 %1673 }
 0xab5   : > { %v1676_v17 = vpop.permute.xlu1 %1675  ;;  %v1688_v10 = vmul.f32 %v4153_v19, %v1674_v22 }
 0xab6   : > { %v1689_v48 = vmul.f32 %v4151_v14, %v1676_v17 }
 0xab7   : > { %1703 = vrot.lane.b32.xlu0 %v1688_v10, %s4448_s13 }
 0xab8   : > { %1705 = vrot.lane.b32.xlu1 %v1689_v48, %s4448_s13  ;;  %v1678_v28 = vpop.permute.xlu0 %1677 }
 0xab9   : > { %v1690_v20 = vmul.f32 %v4872_v27, %v1678_v28 }
 0xabb   : > { %1707 = vrot.lane.b32.xlu0 %v1690_v20, %s4448_s13 }
 0xb22   : > { %v1698_v35 = vpop.permute.xlu1 %1697 }
 0xb23   : > { %v4878_v51 = vadd.f32 %v1698_v35, %v1655_v30 }
 0xb25   : > { %4156 = vtanh.f32 %v4878_v51  ;;  %v1702_v42 = vpop.permute.xlu0 %1701 }
 0xb26   : > { %v1700_v54 = vpop.permute.xlu1 %1699  ;;  %v4886_v56 = vadd.f32 %v1702_v42, %v1657_v15 }
 0xb27   : > { %v4882_v40 = vadd.f32 %v1700_v54, %v1656_v36 }
 0xb29   : > { %4158 = vtanh.f32 %v4882_v40  ;;  %v1704_v29 = vpop.permute.xlu0 %1703 }
 0xb2a   : > { %v1706_v24 = vpop.permute.xlu1 %1705  ;;  %4160 = vtanh.f32 %v4886_v56  ;;  %v4893_v49 = vadd.f32 %v1704_v29, %v1658_v46 }
 0xb2b   : > { %v4891_v62 = vadd.f32 %v1706_v24, %v1659_v44 }
 0xb2d   : > { %4162 = vtanh.f32 %v4891_v62  ;;  %v1708_v38 = vpop.permute.xlu0 %1707 }
 0xb2e   : > { %4164 = vtanh.f32 %v4893_v49  ;;  %v4900_v37 = vadd.f32 %v1708_v38, %v1660_v32 }
 0xb2f   : > { %v4157_v47 = vpop.eup %4156 }
 0xb30   : > { %1733 = vrot.lane.b32.xlu1 %v4157_v47, %s4447_s12  ;;  %4166 = vtanh.f32 %v4900_v37 }
 0xb33   : > { %v4159_v53 = vpop.eup %4158 }
 0xb34   : > { %1735 = vrot.lane.b32.xlu1 %v4159_v53, %s4447_s12  ;;  %v4161_v26 = vpop.eup %4160 }
 0xb35   : > { %1737 = vrot.lane.b32.xlu0 %v4161_v26, %s4447_s12 }
 0xb37   : > { %v4163_v41 = vpop.eup %4162 }
 0xb38   : > { %1741 = vrot.lane.b32.xlu1 %v4163_v41, %s4447_s12  ;;  %v4165_v0 = vpop.eup %4164 }
 0xb39   : > { %1739 = vrot.lane.b32.xlu0 %v4165_v0, %s4447_s12 }
 0xb3a   : > { %v4167_v5 = vpop.eup %4166 }
 0xb3d   : > { %1743 = vrot.lane.b32.xlu0 %v4167_v5, %s4447_s12 }
 0xba2   : > { %v1734_v43 = vpop.permute.xlu1 %1733 }
 0xba3   : > { %v4909_v6 = vmul.f32 %v4864_v34, %v1734_v43 }
 0xba5   : > { %v1934_v22 = vpack.c.bf16 %v4909_v6, %v4909_v6 }
 0xba6   : > { %v1736_v2 = vpop.permute.xlu1 %1735 }
 0xba7   : > { %v4911_v4 = vmul.f32 %v4147_v31, %v1736_v2  ;;  %v1738_v17 = vpop.permute.xlu0 %1737  ;;  %v1946_v54 = vunpack.c.l.b16 %v1934_v22 }
 0xba8   : > { %v4915_v48 = vmul.f32 %v4149_v7, %v1738_v17 }
 0xba9   : > { %v1935_v3 = vpack.c.bf16 %v4911_v4, %v4911_v4 }
 0xbaa   : > { %v1742_v28 = vpop.permute.xlu1 %1741  ;;  %v1936_v30 = vpack.c.bf16 %v4915_v48, %v4915_v48 }
 0xbab   : > { %v1947_v10 = vunpack.c.l.b16 %v1935_v3  ;;  %v4919_v20 = vmul.f32 %v4151_v14, %v1742_v28  ;;  %v1740_v35 = vpop.permute.xlu0 %1739  ;;  %v1928_v3 = vld [vmem:[#allocation2 + $0x4] sm:$0x1] }
 0xbac   : > { %v4923_v31 = vmul.f32 %v4153_v19, %v1740_v35  ;;  %v1948_v7 = vunpack.c.l.b16 %v1936_v30  ;;  %v1929_v30 = vld [vmem:[#allocation2 + $0xc] sm:$0x1] }
 0xbad   : > { %v1952_v34 = vrot.slane %v1947_v10, 7  ;;  %v1938_v36 = vpack.c.bf16 %v4919_v20, %v4919_v20 }
 0xbae   : > { %v1937_v15 = vpack.c.bf16 %v4923_v31, %v4923_v31  ;;  %v1954_v24 = vrot.slane %v1948_v7, 6  ;;  %v1930_v7 = vld [vmem:[#allocation2 + $0x14] sm:$0x1] }
 0xbaf   : > { %v1950_v42 = vunpack.c.l.b16 %v1938_v36  ;;  %v1953_v44 = vsel %vm621_vm2, %v1952_v34, %v1946_v54  ;;  %v1744_v14 = vpop.permute.xlu0 %1743 }
 0xbb0   : > { %v4931_v46 = vmul.f32 %v4872_v27, %v1744_v14  ;;  %v1949_v29 = vunpack.c.l.b16 %v1937_v15  ;;  %v1955_v19 = vsel %vm624_vm3, %v1954_v24, %v1953_v44  ;;  %v1932_v44 = vld [vmem:[#allocation2 + $0x24] sm:$0x1]  ;;  %v1931_v24 = vld [vmem:[#allocation2 + $0x1c] sm:$0x1] }
 0xbb1   : > { %v1958_v47 = vrot.slane %v1950_v42, 4 }
 0xbb2   : > { %v1939_v32 = vpack.c.bf16 %v4931_v46, %v4931_v46  ;;  %v1956_v38 = vrot.slane %v1949_v29, 5 }
 0xbb4   : > { %v1951_v53 = vunpack.c.l.b16 %v1939_v32  ;;  %v1957_v26 = vsel %vm627_vm4, %v1956_v38, %v1955_v19  ;;  %v1933_v32 = vld [vmem:[#allocation2 + $0x2c] sm:$0x1] }
 0xbb5   : > { %v1959_v41 = vsel %vm630_vm5, %v1958_v47, %v1957_v26 }
 0xbb6   : > { %v1960_v0 = vrot.slane %v1951_v53, 3 }
 0xbb8   : > { %v1961_v5 = vsel %vm633_vm6, %v1960_v0, %v1959_v41 }
 0xbb9   : > { %v1962_v43 = vpack.c.b16 %v1961_v5, %v1961_v5 }
 0xbbb   : > { %1963 = vrot.lane.b32.xlu1 %v1962_v43, %s4448_s13 }
 0xc2d   : > { %v1964_v27 = vpop.permute.xlu1 %1963 }
 0xc2e   : > { %3891 = vmatmul.mubr.msk.bf16.vlgmr.msra.gmra.mrb[20].mxu1 %vm402_vm8, %v1964_v27 }
 0xc2f   : > { %3903 = vmatpush3.bf16.msra.mxu1 %v4845_v50  ;;  %3906 = vmatprep.mubr.msk.bf16.mxu1 %vm4445_vm0, %v5870_v1 }
 0xc30   : > { %3904 = vmatprep.subr.bf16.mxu1 %v5870_v1 }
 0xc33   : > { %3905 = vmatpush3.bf16.msra.mxu1 %v4854_v60 }
 0xc34   : > { %3918 = vmatprep.subr.bf16.mxu1 %v5870_v1 }
 0xd01   : > { %v2002_v2 = vpop.f32.mrb[20].mxu1 }
 0xd02   : > { %v2009_v17 = vrot.slane %v2002_v2, 1  ;;  %v3892_v22 = vpop.f32.mrb[21].mxu1  ;;  %v2020_v10 = vadd.f32 %v2002_v2, %v1928_v3  ;;  %v2010_v35 = vrot.slane %v2002_v2, 2  ;;  %v2012_v54 = vrot.slane %v2002_v2, 4 }
 0xd03   : > { %v2005_v28 = vpop.f32.mrb[22].mxu1  ;;  %v2011_v15 = vrot.slane %v2002_v2, 3  ;;  %v2013_v29 = vrot.slane %v2002_v2, 5 }
 0xd04   : > { %v3893_v34 = vpop.f32.mrb[23].mxu1  ;;  %v2021_v36 = vadd.f32 %v2009_v17, %v1929_v30  ;;  %4168 = vtanh.f32 %v2020_v10  ;;  %v2022_v42 = vadd.f32 %v2010_v35, %v1930_v7  ;;  %v2024_v14 = vadd.f32 %v2012_v54, %v1932_v44 }
 0xd05   : > { %v2023_v19 = vadd.f32 %v2011_v15, %v1931_v24  ;;  %v2025_v38 = vadd.f32 %v2013_v29, %v1933_v32  ;;  %v3722_v43 = vmul.f32 -1.442695, %v2020_v10 }
 0xd06   : > { %4170 = vtanh.f32 %v2021_v36  ;;  %v3723_v27 = vmul.f32 -1.442695, %v2021_v36  ;;  %v3724_v2 = vmul.f32 -1.442695, %v2022_v42  ;;  %v3726_v3 = vmul.f32 -1.442695, %v2024_v14 }
 0xd07   : > { %4172 = vtanh.f32 %v2022_v42  ;;  %v3725_v17 = vmul.f32 -1.442695, %v2023_v19  ;;  %v3727_v28 = vmul.f32 -1.442695, %v2025_v38 }
 0xd08   : > { %4174 = vtanh.f32 %v2024_v14 }
 0xd09   : > { %4176 = vtanh.f32 %v2023_v19 }
 0xd0a   : > { %4178 = vtanh.f32 %v2025_v38 }
 0xd0b   : > { %4180 = vpow2.f32 %v3722_v43 }
 0xd0c   : > { %4182 = vpow2.f32 %v3723_v27 }
 0xd0d   : > { %4184 = vpow2.f32 %v3724_v2 }
 0xd0e   : > { %v4169_v47 = vpop.eup %4168  ;;  %4186 = vpow2.f32 %v3726_v3 }
 0xd0f   : > { %2080 = vrot.lane.b32.xlu0 %v4169_v47, %s4447_s12  ;;  %4188 = vpow2.f32 %v3725_v17 }
 0xd10   : > { %v4171_v53 = vpop.eup %4170  ;;  %4190 = vpow2.f32 %v3727_v28 }
 0xd11   : > { %v4173_v26 = vpop.eup %4172 }
 0xd12   : > { %2084 = vrot.lane.b32.xlu1 %v4173_v26, %s4447_s12  ;;  %v4175_v41 = vpop.eup %4174 }
 0xd13   : > { %2082 = vrot.lane.b32.xlu0 %v4171_v53, %s4447_s12  ;;  %v4177_v0 = vpop.eup %4176 }
 0xd14   : > { %v4179_v5 = vpop.eup %4178 }
 0xd15   : > { %v4181_v22 = vpop.eup %4180 }
 0xd16   : > { %2086 = vrot.lane.b32.xlu1 %v4177_v0, %s4447_s12  ;;  %v2044_v30 = vadd.f32 1.0, %v4181_v22  ;;  %v4183_v34 = vpop.eup %4182 }
 0xd17   : > { %2088 = vrot.lane.b32.xlu0 %v4175_v41, %s4447_s12  ;;  %v2045_v35 = vadd.f32 1.0, %v4183_v34  ;;  %v4185_v54 = vpop.eup %4184 }
 0xd18   : > { %4192 = vrcp.f32 %v2044_v30  ;;  %v4187_v7 = vpop.eup %4186  ;;  %v2046_v15 = vadd.f32 1.0, %v4185_v54 }
 0xd19   : > { %4194 = vrcp.f32 %v2045_v35  ;;  %v4189_v10 = vpop.eup %4188  ;;  %v2048_v36 = vadd.f32 1.0, %v4187_v7 }
 0xd1a   : > { %2090 = vrot.lane.b32.xlu1 %v4179_v5, %s4447_s12  ;;  %v2047_v44 = vadd.f32 1.0, %v4189_v10  ;;  %4196 = vrcp.f32 %v2046_v15  ;;  %v4191_v42 = vpop.eup %4190 }
 0xd1b   : > { %4198 = vrcp.f32 %v2048_v36  ;;  %v2049_v19 = vadd.f32 1.0, %v4191_v42 }
 0xd1c   : > { %4200 = vrcp.f32 %v2047_v44 }
 0xd1d   : > { %4202 = vrcp.f32 %v2049_v19 }
 0xd22   : > { %v4953_v14 = vpop.eup %4192 }
 0xd23   : > { %v4195_v47 = vpop.eup %4194  ;;  %v2068_v30 = vmul.f32 %v4953_v14, %v4878_v51 }
 0xd24   : > { %v4197_v53 = vpop.eup %4196  ;;  %v2069_v54 = vmul.f32 %v4195_v47, %v4882_v40 }
 0xd25   : > { %v4199_v0 = vpop.eup %4198  ;;  %v2070_v10 = vmul.f32 %v4197_v53, %v4886_v56 }
 0xd26   : > { %v4201_v27 = vpop.eup %4200  ;;  %v2072_v42 = vmul.f32 %v4199_v0, %v4891_v62 }
 0xd27   : > { %v4961_v17 = vpop.eup %4202 }
 0xd28   : > { %v2073_v56 = vmul.f32 %v4961_v17, %v4900_v37 }
 0xd81   : > { %v2081_v24 = vpop.permute.xlu0 %2080 }
 0xd82   : > { %v2098_v29 = vmul.f32 %v4953_v14, %v2081_v24  ;;  %v2071_v24 = vmul.f32 %v4201_v27, %v4893_v49 }
 0xd84   : > { %2110 = vrot.lane.b32.xlu0 %v2098_v29, %s4448_s13  ;;  %v2085_v26 = vpop.permute.xlu1 %2084 }
 0xd85   : > { %v2083_v32 = vpop.permute.xlu0 %2082  ;;  %v2100_v41 = vmul.f32 %v4197_v53, %v2085_v26 }
 0xd86   : > { %v2099_v38 = vmul.f32 %v4195_v47, %v2083_v32 }
 0xd87   : > { %2114 = vrot.lane.b32.xlu1 %v2100_v41, %s4448_s13 }
 0xd88   : > { %2112 = vrot.lane.b32.xlu0 %v2099_v38, %s4448_s13  ;;  %v2087_v2 = vpop.permute.xlu1 %2086 }
 0xd89   : > { %v2089_v5 = vpop.permute.xlu0 %2088  ;;  %v2101_v3 = vmul.f32 %v4201_v27, %v2087_v2 }
 0xd8a   : > { %v2102_v43 = vmul.f32 %v4199_v0, %v2089_v5 }
 0xd8b   : > { %2116 = vrot.lane.b32.xlu1 %v2101_v3, %s4448_s13 }
 0xd8c   : > { %2118 = vrot.lane.b32.xlu0 %v2102_v43, %s4448_s13  ;;  %v2091_v22 = vpop.permute.xlu1 %2090 }
 0xd8d   : > { %v2103_v28 = vmul.f32 %v4961_v17, %v2091_v22 }
 0xd8f   : > { %2120 = vrot.lane.b32.xlu1 %v2103_v28, %s4448_s13 }
 0xdf6   : > { %v2111_v34 = vpop.permute.xlu0 %2110 }
 0xdf7   : > { %v4967_v35 = vadd.f32 %v2111_v34, %v2068_v30 }
 0xdf9   : > { %4204 = vtanh.f32 %v4967_v35  ;;  %v2115_v36 = vpop.permute.xlu1 %2114 }
 0xdfa   : > { %v2113_v7 = vpop.permute.xlu0 %2112  ;;  %v4975_v44 = vadd.f32 %v2115_v36, %v2070_v10 }
 0xdfb   : > { %v4971_v15 = vadd.f32 %v2113_v7, %v2069_v54 }
 0xdfd   : > { %4206 = vtanh.f32 %v4971_v15  ;;  %v2117_v40 = vpop.permute.xlu1 %2116 }
 0xdfe   : > { %v2119_v51 = vpop.permute.xlu0 %2118  ;;  %4208 = vtanh.f32 %v4975_v44  ;;  %v4982_v32 = vadd.f32 %v2117_v40, %v2071_v24 }
 0xdff   : > { %v4980_v29 = vadd.f32 %v2119_v51, %v2072_v42 }
 0xe01   : > { %4210 = vtanh.f32 %v4980_v29  ;;  %v2121_v62 = vpop.permute.xlu1 %2120 }
 0xe02   : > { %4212 = vtanh.f32 %v4982_v32  ;;  %v4989_v26 = vadd.f32 %v2121_v62, %v2073_v56 }
 0xe03   : > { %v4205_v19 = vpop.eup %4204 }
 0xe04   : > { %2146 = vrot.lane.b32.xlu0 %v4205_v19, %s4447_s12  ;;  %4214 = vtanh.f32 %v4989_v26 }
 0xe07   : > { %v4207_v38 = vpop.eup %4206 }
 0xe08   : > { %2148 = vrot.lane.b32.xlu0 %v4207_v38, %s4447_s12  ;;  %v4209_v49 = vpop.eup %4208 }
 0xe09   : > { %2150 = vrot.lane.b32.xlu1 %v4209_v49, %s4447_s12 }
 0xe0b   : > { %v4211_v41 = vpop.eup %4210 }
 0xe0c   : > { %2154 = vrot.lane.b32.xlu0 %v4211_v41, %s4447_s12  ;;  %v4213_v5 = vpop.eup %4212 }
 0xe0d   : > { %2152 = vrot.lane.b32.xlu1 %v4213_v5, %s4447_s12 }
 0xe0e   : > { %v4215_v43 = vpop.eup %4214 }
 0xe11   : > { %2156 = vrot.lane.b32.xlu1 %v4215_v43, %s4447_s12 }
 0xe76   : > { %v2147_v37 = vpop.permute.xlu0 %2146 }
 0xe77   : > { %v4998_v3 = vmul.f32 %v4953_v14, %v2147_v37 }
 0xe79   : > { %v2347_v54 = vpack.c.bf16 %v4998_v3, %v4998_v3 }
 0xe7a   : > { %v2149_v2 = vpop.permute.xlu0 %2148 }
 0xe7b   : > { %v5000_v22 = vmul.f32 %v4195_v47, %v2149_v2  ;;  %v2151_v30 = vpop.permute.xlu1 %2150  ;;  %v2359_v40 = vunpack.c.l.b16 %v2347_v54 }
 0xe7c   : > { %v5004_v34 = vmul.f32 %v4197_v53, %v2151_v30 }
 0xe7d   : > { %v2348_v28 = vpack.c.bf16 %v5000_v22, %v5000_v22 }
 0xe7e   : > { %v2155_v10 = vpop.permute.xlu0 %2154  ;;  %v2349_v42 = vpack.c.bf16 %v5004_v34, %v5004_v34 }
 0xe7f   : > { %v2360_v7 = vunpack.c.l.b16 %v2348_v28  ;;  %v5008_v36 = vmul.f32 %v4199_v0, %v2155_v10  ;;  %v2153_v51 = vpop.permute.xlu1 %2152 }
 0xe80   : > { %v5012_v47 = vmul.f32 %v4201_v27, %v2153_v51  ;;  %v2361_v53 = vunpack.c.l.b16 %v2349_v42 }
 0xe81   : > { %5904 = vst [vmem:[#allocation5_spill] sm:$0xff] %v5008_v36  ;;  %v2365_v14 = vrot.slane %v2360_v7, 7  ;;  %v2351_v24 = vpack.c.bf16 %v5008_v36, %v5008_v36 }
 0xe82   : > { %v2350_v19 = vpack.c.bf16 %v5012_v47, %v5012_v47  ;;  %v2367_v38 = vrot.slane %v2361_v53, 6 }
 0xe83   : > { %v2363_v56 = vunpack.c.l.b16 %v2351_v24  ;;  %v2366_v62 = vsel %vm621_vm2, %v2365_v14, %v2359_v40  ;;  %v2157_v0 = vpop.permute.xlu1 %2156  ;;  %v2341_v14 = vld [vmem:[#allocation2 + $0x5] sm:$0x1] }
 0xe84   : > { %v5020_v49 = vmul.f32 %v4961_v17, %v2157_v0  ;;  %v2362_v41 = vunpack.c.l.b16 %v2350_v19  ;;  %v2368_v27 = vsel %vm624_vm3, %v2367_v38, %v2366_v62  ;;  %v2342_v19 = vld [vmem:[#allocation2 + $0xd] sm:$0x1]  ;;  %v2343_v38 = vld [vmem:[#allocation2 + $0x15] sm:$0x1] }
 0xe85   : > { %v2371_v5 = vrot.slane %v2363_v56, 4 }
 0xe86   : > { %5905 = vst [vmem:[#allocation6_spill] sm:$0xff] %v5020_v49  ;;  %v2352_v43 = vpack.c.bf16 %v5020_v49, %v5020_v49  ;;  %v2369_v37 = vrot.slane %v2362_v41, 5 }
 0xe88   : > { %v2364_v2 = vunpack.c.l.b16 %v2352_v43  ;;  %v2370_v28 = vsel %vm627_vm4, %v2369_v37, %v2368_v27  ;;  %v2344_v43 = vld [vmem:[#allocation2 + $0x1d] sm:$0x1] }
 0xe89   : > { %v2372_v30 = vsel %vm630_vm5, %v2371_v5, %v2370_v28  ;;  %v2345_v5 = vld [vmem:[#allocation2 + $0x25] sm:$0x1] }
 0xe8a   : > { %v2373_v54 = vrot.slane %v2364_v2, 3 }
 0xe8c   : > { %v2374_v7 = vsel %vm633_vm6, %v2373_v54, %v2372_v30  ;;  %v2346_v30 = vld [vmem:[#allocation2 + $0x2d] sm:$0x1] }
 0xe8d   : > { %v2375_v10 = vpack.c.b16 %v2374_v7, %v2374_v7 }
 0xe8f   : > { %2376 = vrot.lane.b32.xlu0 %v2375_v10, %s4448_s13 }
 0xf01   : > { %v2377_v17 = vpop.permute.xlu0 %2376 }
 0xf02   : > { %3907 = vmatmul.mubr.msk.bf16.vlgmr.msra.gmra.mrb[24].mxu1 %vm402_vm8, %v2377_v17 }
 0xf03   : > { %3919 = vmatpush3.bf16.msra.mxu1 %v4845_v50  ;;  %3922 = vmatprep.mubr.msk.bf16.mxu1 %vm4445_vm0, %v5870_v1 }
 0xf04   : > { %3920 = vmatprep.subr.bf16.mxu1 %v5870_v1 }
 0xf07   : > { %3921 = vmatpush3.bf16.msra.mxu1 %v4854_v60 }
 0xf08   : > { %3934 = vmatprep.subr.bf16.mxu1 %v5870_v1 }
 0xfd5   : > { %v2415_v42 = vpop.f32.mrb[24].mxu1 }
 0xfd6   : > { %v2422_v51 = vrot.slane %v2415_v42, 1  ;;  %v3908_v24 = vpop.f32.mrb[25].mxu1  ;;  %v2433_v40 = vadd.f32 %v2415_v42, %v2341_v14  ;;  %v2423_v62 = vrot.slane %v2415_v42, 2  ;;  %v2425_v50 = vrot.slane %v2415_v42, 4 }
 0xfd7   : > { %v2418_v53 = vpop.f32.mrb[26].mxu1  ;;  %v2424_v41 = vrot.slane %v2415_v42, 3  ;;  %v2426_v37 = vrot.slane %v2415_v42, 5 }
 0xfd8   : > { %v3909_v56 = vpop.f32.mrb[27].mxu1  ;;  %v2434_v0 = vadd.f32 %v2422_v51, %v2342_v19  ;;  %4216 = vtanh.f32 %v2433_v40  ;;  %v2435_v27 = vadd.f32 %v2423_v62, %v2343_v38  ;;  %v2437_v60 = vadd.f32 %v2425_v50, %v2345_v5 }
 0xfd9   : > { %v2436_v2 = vadd.f32 %v2424_v41, %v2344_v43  ;;  %v2438_v54 = vadd.f32 %v2426_v37, %v2346_v30  ;;  %v3730_v51 = vmul.f32 -1.442695, %v2433_v40 }
 0xfda   : > { %4218 = vtanh.f32 %v2434_v0  ;;  %v3731_v24 = vmul.f32 -1.442695, %v2434_v0  ;;  %v3732_v53 = vmul.f32 -1.442695, %v2435_v27  ;;  %v3734_v19 = vmul.f32 -1.442695, %v2437_v60 }
 0xfdb   : > { %4220 = vtanh.f32 %v2435_v27  ;;  %v3733_v56 = vmul.f32 -1.442695, %v2436_v2  ;;  %v3735_v50 = vmul.f32 -1.442695, %v2438_v54 }
 0xfdc   : > { %4222 = vtanh.f32 %v2437_v60 }
 0xfdd   : > { %4224 = vtanh.f32 %v2436_v2 }
 0xfde   : > { %4226 = vtanh.f32 %v2438_v54 }
 0xfdf   : > { %4228 = vpow2.f32 %v3730_v51 }
 0xfe0   : > { %4230 = vpow2.f32 %v3731_v24 }
 0xfe1   : > { %4232 = vpow2.f32 %v3732_v53 }
 0xfe2   : > { %v4217_v28 = vpop.eup %4216  ;;  %4234 = vpow2.f32 %v3734_v19 }
 0xfe3   : > { %2493 = vrot.lane.b32.xlu1 %v4217_v28, %s4447_s12  ;;  %4236 = vpow2.f32 %v3733_v56 }
 0xfe4   : > { %v4219_v7 = vpop.eup %4218  ;;  %4238 = vpow2.f32 %v3735_v50 }
 0xfe5   : > { %v4221_v10 = vpop.eup %4220 }
 0xfe6   : > { %2497 = vrot.lane.b32.xlu0 %v4221_v10, %s4447_s12  ;;  %v4223_v17 = vpop.eup %4222 }
 0xfe7   : > { %2495 = vrot.lane.b32.xlu1 %v4219_v7, %s4447_s12  ;;  %v4225_v42 = vpop.eup %4224 }
 0xfe8   : > { %v4227_v14 = vpop.eup %4226 }
 0xfe9   : > { %v4229_v62 = vpop.eup %4228 }
 0xfea   : > { %2499 = vrot.lane.b32.xlu0 %v4225_v42, %s4447_s12  ;;  %v2457_v38 = vadd.f32 1.0, %v4229_v62  ;;  %v4231_v41 = vpop.eup %4230 }
 0xfeb   : > { %2501 = vrot.lane.b32.xlu1 %v4223_v17, %s4447_s12  ;;  %v2458_v5 = vadd.f32 1.0, %v4231_v41  ;;  %v4233_v43 = vpop.eup %4232 }
 0xfec   : > { %4240 = vrcp.f32 %v2457_v38  ;;  %v4235_v37 = vpop.eup %4234  ;;  %v2459_v28 = vadd.f32 1.0, %v4233_v43 }
 0xfed   : > { %4242 = vrcp.f32 %v2458_v5  ;;  %v4237_v40 = vpop.eup %4236  ;;  %v2461_v0 = vadd.f32 1.0, %v4235_v37 }
 0xfee   : > { %2503 = vrot.lane.b32.xlu0 %v4227_v14, %s4447_s12  ;;  %v2460_v30 = vadd.f32 1.0, %v4237_v40  ;;  %4244 = vrcp.f32 %v2459_v28  ;;  %v4239_v27 = vpop.eup %4238 }
 0xfef   : > { %4246 = vrcp.f32 %v2461_v0  ;;  %v2462_v7 = vadd.f32 1.0, %v4239_v27 }
 0xff0   : > { %4248 = vrcp.f32 %v2460_v30 }
 0xff1   : > { %4250 = vrcp.f32 %v2462_v7 }
 0xff6   : > { %v5042_v60 = vpop.eup %4240 }
 0xff7   : > { %v4243_v10 = vpop.eup %4242  ;;  %v2481_v37 = vmul.f32 %v5042_v60, %v4967_v35 }
 0xff8   : > { %v4245_v14 = vpop.eup %4244  ;;  %v2482_v0 = vmul.f32 %v4243_v10, %v4971_v15 }
 0xff9   : > { %v4247_v53 = vpop.eup %4246 }
 0xffa   : > { %v4249_v62 = vpop.eup %4248 }
 0xffb   : > { %v5050_v41 = vpop.eup %4250 }
0x1055   : > { %v2494_v2 = vpop.permute.xlu1 %2493 }
0x1056   : > { %v2511_v54 = vmul.f32 %v5042_v60, %v2494_v2  ;;  %v2483_v2 = vmul.f32 %v4245_v14, %v4975_v44  ;;  %v2486_v44 = vmul.f32 %v5050_v41, %v4989_v26 }
0x1058   : > { %2523 = vrot.lane.b32.xlu1 %v2511_v54, %s4448_s13  ;;  %v2498_v51 = vpop.permute.xlu0 %2497 }
0x1059   : > { %v2496_v17 = vpop.permute.xlu1 %2495  ;;  %v2513_v24 = vmul.f32 %v4245_v14, %v2498_v51 }
0x105a   : > { %v2512_v42 = vmul.f32 %v4243_v10, %v2496_v17  ;;  %v2485_v17 = vmul.f32 %v4247_v53, %v4980_v29 }
0x105b   : > { %2527 = vrot.lane.b32.xlu0 %v2513_v24, %s4448_s13 }
0x105c   : > { %2525 = vrot.lane.b32.xlu1 %v2512_v42, %s4448_s13  ;;  %v2500_v50 = vpop.permute.xlu0 %2499  ;;  %v2484_v42 = vmul.f32 %v4249_v62, %v4982_v32 }
0x105d   : > { %v2502_v19 = vpop.permute.xlu1 %2501  ;;  %v2514_v38 = vmul.f32 %v4249_v62, %v2500_v50 }
0x105e   : > { %v2515_v56 = vmul.f32 %v4247_v53, %v2502_v19 }
0x105f   : > { %2529 = vrot.lane.b32.xlu0 %v2514_v38, %s4448_s13 }
0x1060   : > { %2531 = vrot.lane.b32.xlu1 %v2515_v56, %s4448_s13  ;;  %v2504_v5 = vpop.permute.xlu0 %2503 }
0x1061   : > { %v2516_v43 = vmul.f32 %v5050_v41, %v2504_v5 }
0x1063   : > { %2533 = vrot.lane.b32.xlu0 %v2516_v43, %s4448_s13 }
0x10ca   : > { %v2524_v28 = vpop.permute.xlu1 %2523 }
0x10cb   : > { %v5056_v40 = vadd.f32 %v2524_v28, %v2481_v37 }
0x10cd   : > { %4252 = vtanh.f32 %v5056_v40  ;;  %v2528_v54 = vpop.permute.xlu0 %2527 }
0x10ce   : > { %v2526_v30 = vpop.permute.xlu1 %2525  ;;  %v5064_v7 = vadd.f32 %v2528_v54, %v2483_v2 }
0x10cf   : > { %v5060_v27 = vadd.f32 %v2526_v30, %v2482_v0 }
0x10d1   : > { %4254 = vtanh.f32 %v5060_v27  ;;  %v2530_v15 = vpop.permute.xlu0 %2529 }
0x10d2   : > { %v2532_v35 = vpop.permute.xlu1 %2531  ;;  %4256 = vtanh.f32 %v5064_v7  ;;  %v5071_v19 = vadd.f32 %v2530_v15, %v2484_v42 }
0x10d3   : > { %v5069_v51 = vadd.f32 %v2532_v35, %v2485_v17 }
0x10d5   : > { %4258 = vtanh.f32 %v5069_v51  ;;  %v2534_v29 = vpop.permute.xlu0 %2533 }
0x10d6   : > { %4260 = vtanh.f32 %v5071_v19  ;;  %v5078_v50 = vadd.f32 %v2534_v29, %v2486_v44 }
0x10d7   : > { %v4253_v24 = vpop.eup %4252 }
0x10d8   : > { %2559 = vrot.lane.b32.xlu1 %v4253_v24, %s4447_s12  ;;  %4262 = vtanh.f32 %v5078_v50 }
0x10db   : > { %v4255_v56 = vpop.eup %4254 }
0x10dc   : > { %2561 = vrot.lane.b32.xlu1 %v4255_v56, %s4447_s12  ;;  %v4257_v32 = vpop.eup %4256 }
0x10dd   : > { %2563 = vrot.lane.b32.xlu0 %v4257_v32, %s4447_s12 }
0x10df   : > { %v4259_v38 = vpop.eup %4258 }
0x10e0   : > { %2567 = vrot.lane.b32.xlu1 %v4259_v38, %s4447_s12  ;;  %v4261_v5 = vpop.eup %4260 }
0x10e1   : > { %2565 = vrot.lane.b32.xlu0 %v4261_v5, %s4447_s12 }
0x10e2   : > { %v4263_v43 = vpop.eup %4262 }
0x10e5   : > { %2569 = vrot.lane.b32.xlu0 %v4263_v43, %s4447_s12 }
0x114a   : > { %v2560_v26 = vpop.permute.xlu1 %2559 }
0x114b   : > { %v5087_v28 = vmul.f32 %v5042_v60, %v2560_v26 }
0x114d   : > { %5906 = vst [vmem:[#allocation7_spill] sm:$0xff] %v5087_v28  ;;  %v2760_v17 = vpack.c.bf16 %v5087_v28, %v5087_v28 }
0x114e   : > { %v2562_v37 = vpop.permute.xlu1 %2561 }
0x114f   : > { %v5089_v0 = vmul.f32 %v4243_v10, %v2562_v37  ;;  %v2564_v2 = vpop.permute.xlu0 %2563  ;;  %v2772_v56 = vunpack.c.l.b16 %v2760_v17 }
0x1150   : > { %v5093_v54 = vmul.f32 %v4245_v14, %v2564_v2 }
0x1151   : > { %5907 = vst [vmem:[#allocation8_spill] sm:$0xff] %v5089_v0  ;;  %v2761_v30 = vpack.c.bf16 %v5089_v0, %v5089_v0 }
0x1152   : > { %5908 = vst [vmem:[#allocation9_spill] sm:$0xff] %v5093_v54  ;;  %v2568_v42 = vpop.permute.xlu1 %2567  ;;  %v2762_v24 = vpack.c.bf16 %v5093_v54, %v5093_v54 }
0x1153   : > { %v2773_v35 = vunpack.c.l.b16 %v2761_v30  ;;  %v5097_v15 = vmul.f32 %v4247_v53, %v2568_v42  ;;  %v2566_v44 = vpop.permute.xlu0 %2565 }
0x1154   : > { %v5101_v10 = vmul.f32 %v4249_v62, %v2566_v44  ;;  %v2774_v14 = vunpack.c.l.b16 %v2762_v24 }
0x1155   : > { %v2778_v60 = vrot.slane %v2773_v35, 7  ;;  %v2764_v29 = vpack.c.bf16 %v5097_v15, %v5097_v15 }
0x1156   : > { %5909 = vst [vmem:[#allocation10_spill] sm:$0xff] %v5101_v10  ;;  %v2763_v32 = vpack.c.bf16 %v5101_v10, %v5101_v10  ;;  %v2780_v43 = vrot.slane %v2774_v14, 6  ;;  %v4433_v14 = vld [vmem:[%s5865_s2 + $0x8] sm:$0xff]  }
0x1157   : > { %v2776_v38 = vunpack.c.l.b16 %v2764_v29  ;;  %v2779_v5 = vsel %vm621_vm2, %v2778_v60, %v2772_v56  ;;  %v2570_v53 = vpop.permute.xlu0 %2569  ;;  %v4432_v56 = vld [vmem:[%s5865_s2] sm:$0xff]  }
0x1158   : > { %v5109_v26 = vmul.f32 %v5050_v41, %v2570_v53  ;;  %v2775_v37 = vunpack.c.l.b16 %v2763_v32  ;;  %v2781_v62 = vsel %vm624_vm3, %v2780_v43, %v2779_v5 }
0x1159   : > { %v2784_v30 = vrot.slane %v2776_v38, 4  ;;  %v2754_v38 = vld [vmem:[#allocation2 + $0x6] sm:$0x1] }
0x115a   : > { %v2765_v2 = vpack.c.bf16 %v5109_v26, %v5109_v26  ;;  %v2782_v17 = vrot.slane %v2775_v37, 5 }
0x115c   : > { %v2777_v35 = vunpack.c.l.b16 %v2765_v2  ;;  %v2783_v42 = vsel %vm627_vm4, %v2782_v17, %v2781_v62  ;;  %v2755_v62 = vld [vmem:[#allocation2 + $0xe] sm:$0x1] }
0x115d   : > { %v2785_v24 = vsel %vm630_vm5, %v2784_v30, %v2783_v42  ;;  %v2756_v42 = vld [vmem:[#allocation2 + $0x16] sm:$0x1] }
0x115e   : > { %v2786_v44 = vrot.slane %v2777_v35, 3 }
0x1160   : > { %v2787_v60 = vsel %vm633_vm6, %v2786_v44, %v2785_v24 }
0x1161   : > { %v2788_v29 = vpack.c.b16 %v2787_v60, %v2787_v60  ;;  %v2758_v60 = vld [vmem:[#allocation2 + $0x26] sm:$0x1] }
0x1163   : > { %2789 = vrot.lane.b32.xlu1 %v2788_v29, %s4448_s13 }
0x11d5   : > { %v2790_v41 = vpop.permute.xlu1 %2789 }
0x11d6   : > { %3923 = vmatmul.mubr.msk.bf16.vlgmr.msra.gmra.mrb[28].mxu1 %vm402_vm8, %v2790_v41  ;;  %v2757_v41 = vld [vmem:[#allocation2 + $0x1e] sm:$0x1] }
0x11d7   : > { %3935 = vmatpush3.bf16.msra.mxu1 %v4432_v56  ;;  %3938 = vmatprep.mubr.msk.bf16.mxu1 %vm4445_vm0, %v5870_v1 }
0x11d8   : > { %3936 = vmatprep.subr.bf16.mxu1 %v5870_v1 }
0x11db   : > { %3937 = vmatpush3.bf16.msra.mxu1 %v4433_v14 }
0x12a9   : > { %v2828_v32 = vpop.f32.mrb[28].mxu1 }
0x12aa   : > { %v2835_v5 = vrot.slane %v2828_v32, 1  ;;  %v3924_v53 = vpop.f32.mrb[29].mxu1  ;;  %v2846_v43 = vadd.f32 %v2828_v32, %v2754_v38  ;;  %v2836_v2 = vrot.slane %v2828_v32, 2  ;;  %v2838_v35 = vrot.slane %v2828_v32, 4  ;;  %v2759_v38 = vld [vmem:[#allocation2 + $0x2e] sm:$0x1] }
0x12ab   : > { %v2831_v37 = vpop.f32.mrb[30].mxu1  ;;  %v2837_v24 = vrot.slane %v2828_v32, 3  ;;  %v2839_v56 = vrot.slane %v2828_v32, 5 }
0x12ac   : > { %v3925_v30 = vpop.f32.mrb[31].mxu1  ;;  %v2847_v17 = vadd.f32 %v2835_v5, %v2755_v62  ;;  %4264 = vtanh.f32 %v2846_v43  ;;  %v2848_v44 = vadd.f32 %v2836_v2, %v2756_v42  ;;  %v2850_v29 = vadd.f32 %v2838_v35, %v2758_v60 }
0x12ad   : > { %v2849_v14 = vadd.f32 %v2837_v24, %v2757_v41  ;;  %v2851_v53 = vadd.f32 %v2839_v56, %v2759_v38  ;;  %v3738_v2 = vmul.f32 -1.442695, %v2846_v43 }
0x12ae   : > { %4266 = vtanh.f32 %v2847_v17  ;;  %v3740_v35 = vmul.f32 -1.442695, %v2848_v44  ;;  %v3742_v42 = vmul.f32 -1.442695, %v2850_v29 }
0x12af   : > { %4268 = vtanh.f32 %v2848_v44  ;;  %v3741_v24 = vmul.f32 -1.442695, %v2849_v14  ;;  %v3743_v41 = vmul.f32 -1.442695, %v2851_v53 }
0x12b0   : > { %4270 = vtanh.f32 %v2850_v29 }
0x12b1   : > { %4272 = vtanh.f32 %v2849_v14 }
0x12b2   : > { %4274 = vtanh.f32 %v2851_v53 }
0x12b3   : > { %4276 = vpow2.f32 %v3738_v2 }
0x12b6   : > { %v4265_v1 = vpop.eup %4264 }
0x12b7   : > { %2906 = vrot.lane.b32.xlu0 %v4265_v1, %s4447_s12  ;;  %v3739_v1 = vmul.f32 -1.442695, %v2847_v17 }
0x12b8   : > { %v4267_v5 = vpop.eup %4266 }
0x12b9   : > { %v4269_v37 = vpop.eup %4268  ;;  %4278 = vpow2.f32 %v3739_v1 }
0x12ba   : > { %2910 = vrot.lane.b32.xlu1 %v4269_v37, %s4447_s12  ;;  %v4271_v62 = vpop.eup %4270  ;;  %4280 = vpow2.f32 %v3740_v35 }
0x12bb   : > { %2908 = vrot.lane.b32.xlu0 %v4267_v5, %s4447_s12  ;;  %v4273_v32 = vpop.eup %4272  ;;  %4282 = vpow2.f32 %v3742_v42 }
0x12bc   : > { %v4275_v30 = vpop.eup %4274  ;;  %4284 = vpow2.f32 %v3741_v24 }
0x12bd   : > { %v4277_v60 = vpop.eup %4276  ;;  %4286 = vpow2.f32 %v3743_v41 }
0x12be   : > { %2912 = vrot.lane.b32.xlu1 %v4273_v32, %s4447_s12  ;;  %v2870_v56 = vadd.f32 1.0, %v4277_v60 }
0x12bf   : > { %2914 = vrot.lane.b32.xlu0 %v4271_v62, %s4447_s12 }
0x12c0   : > { %4288 = vrcp.f32 %v2870_v56 }
0x12c2   : > { %2916 = vrot.lane.b32.xlu1 %v4275_v30, %s4447_s12 }
0x12c3   : > { %v4279_v38 = vpop.eup %4278 }
0x12c4   : > { %v2871_v5 = vadd.f32 1.0, %v4279_v38  ;;  %v4281_v37 = vpop.eup %4280 }
0x12c5   : > { %v4283_v62 = vpop.eup %4282  ;;  %v2872_v32 = vadd.f32 1.0, %v4281_v37 }
0x12c6   : > { %4290 = vrcp.f32 %v2871_v5  ;;  %v4285_v43 = vpop.eup %4284  ;;  %v2874_v17 = vadd.f32 1.0, %v4283_v62 }
0x12c7   : > { %v2873_v30 = vadd.f32 1.0, %v4285_v43  ;;  %4292 = vrcp.f32 %v2872_v32  ;;  %v4287_v44 = vpop.eup %4286 }
0x12c8   : > { %4294 = vrcp.f32 %v2874_v17  ;;  %v2875_v2 = vadd.f32 1.0, %v4287_v44 }
0x12c9   : > { %4296 = vrcp.f32 %v2873_v30 }
0x12ca   : > { %v5134_v29 = vpop.eup %4288  ;;  %4298 = vrcp.f32 %v2875_v2 }
0x12cb   : > { %v2894_v44 = vmul.f32 %v5134_v29, %v5056_v40 }
0x12d0   : > { %v4291_v1 = vpop.eup %4290 }
0x12d1   : > { %v4293_v24 = vpop.eup %4292  ;;  %v2895_v2 = vmul.f32 %v4291_v1, %v5060_v27 }
0x12d2   : > { %v4295_v56 = vpop.eup %4294 }
0x12d3   : > { %v4297_v37 = vpop.eup %4296 }
0x12d4   : > { %v5142_v43 = vpop.eup %4298 }
0x1329   : > { %v2907_v14 = vpop.permute.xlu0 %2906 }
0x132a   : > { %v2924_v53 = vmul.f32 %v5134_v29, %v2907_v14 }
0x132c   : > { %2936 = vrot.lane.b32.xlu0 %v2924_v53, %s4448_s13  ;;  %v2911_v60 = vpop.permute.xlu1 %2910 }
0x132d   : > { %v2909_v35 = vpop.permute.xlu0 %2908  ;;  %v2926_v41 = vmul.f32 %v4293_v24, %v2911_v60  ;;  %v2896_v60 = vmul.f32 %v4293_v24, %v5064_v7  ;;  %v2899_v7 = vmul.f32 %v5142_v43, %v5078_v50 }
0x132e   : > { %v2925_v42 = vmul.f32 %v4291_v1, %v2909_v35 }
0x132f   : > { %2940 = vrot.lane.b32.xlu1 %v2926_v41, %s4448_s13 }
0x1330   : > { %2938 = vrot.lane.b32.xlu0 %v2925_v42, %s4448_s13  ;;  %v2913_v62 = vpop.permute.xlu1 %2912 }
0x1331   : > { %v2915_v38 = vpop.permute.xlu0 %2914  ;;  %v2927_v32 = vmul.f32 %v4297_v37, %v2913_v62  ;;  %v2897_v62 = vmul.f32 %v4297_v37, %v5071_v19 }
0x1332   : > { %v2928_v5 = vmul.f32 %v4295_v56, %v2915_v38 }
0x1333   : > { %2942 = vrot.lane.b32.xlu1 %v2927_v32, %s4448_s13 }
0x1334   : > { %2944 = vrot.lane.b32.xlu0 %v2928_v5, %s4448_s13  ;;  %v2917_v17 = vpop.permute.xlu1 %2916  ;;  %v2898_v5 = vmul.f32 %v4295_v56, %v5069_v51 }
0x1335   : > { %v2929_v30 = vmul.f32 %v5142_v43, %v2917_v17 }
0x1337   : > { %2946 = vrot.lane.b32.xlu1 %v2929_v30, %s4448_s13 }
0x139e   : > { %v2937_v14 = vpop.permute.xlu0 %2936 }
0x139f   : > { %v5148_v53 = vadd.f32 %v2937_v14, %v2894_v44 }
0x13a1   : > { %4300 = vtanh.f32 %v5148_v53  ;;  %v2941_v41 = vpop.permute.xlu1 %2940 }
0x13a2   : > { %v2939_v35 = vpop.permute.xlu0 %2938  ;;  %v5156_v38 = vadd.f32 %v2941_v41, %v2896_v60 }
0x13a3   : > { %v5152_v42 = vadd.f32 %v2939_v35, %v2895_v2 }
0x13a5   : > { %5910 = vst [vmem:[#allocation11_spill] sm:$0xff] %v5152_v42  ;;  %4302 = vtanh.f32 %v5152_v42  ;;  %v2943_v27 = vpop.permute.xlu1 %2942 }
0x13a6   : > { %v2945_v40 = vpop.permute.xlu0 %2944  ;;  %4304 = vtanh.f32 %v5156_v38  ;;  %v5163_v30 = vadd.f32 %v2943_v27, %v2897_v62 }
0x13a7   : > { %v5161_v32 = vadd.f32 %v2945_v40, %v2898_v5 }
0x13a8   : > { %5911 = vst [vmem:[#allocation12_spill] sm:$0xff] %v5163_v30 }
0x13a9   : > { %4306 = vtanh.f32 %v5161_v32  ;;  %v2947_v51 = vpop.permute.xlu1 %2946 }
0x13aa   : > { %4308 = vtanh.f32 %v5163_v30  ;;  %v5170_v14 = vadd.f32 %v2947_v51, %v2899_v7 }
0x13ab   : > { %v4301_v17 = vpop.eup %4300 }
0x13ac   : > { %2972 = vrot.lane.b32.xlu0 %v4301_v17, %s4447_s12  ;;  %5912 = vst [vmem:[#allocation13_spill] sm:$0xff] %v5170_v14  ;;  %4310 = vtanh.f32 %v5170_v14 }
0x13af   : > { %v4303_v44 = vpop.eup %4302 }
0x13b0   : > { %2974 = vrot.lane.b32.xlu0 %v4303_v44, %s4447_s12  ;;  %v4305_v19 = vpop.eup %4304 }
0x13b1   : > { %2976 = vrot.lane.b32.xlu1 %v4305_v19, %s4447_s12 }
0x13b3   : > { %v4307_v2 = vpop.eup %4306 }
0x13b4   : > { %2980 = vrot.lane.b32.xlu0 %v4307_v2, %s4447_s12  ;;  %v4309_v35 = vpop.eup %4308 }
0x13b5   : > { %2978 = vrot.lane.b32.xlu1 %v4309_v35, %s4447_s12 }
0x13b6   : > { %v4311_v60 = vpop.eup %4310 }
0x13b9   : > { %2982 = vrot.lane.b32.xlu1 %v4311_v60, %s4447_s12 }
0x141e   : > { %v2973_v50 = vpop.permute.xlu0 %2972 }
0x141f   : > { %v5179_v5 = vmul.f32 %v5134_v29, %v2973_v50 }
0x1421   : > { %v3173_v17 = vpack.c.bf16 %v5179_v5, %v5179_v5 }
0x1422   : > { %v2975_v41 = vpop.permute.xlu0 %2974 }
0x1423   : > { %v5181_v40 = vmul.f32 %v4291_v1, %v2975_v41  ;;  %v2977_v27 = vpop.permute.xlu1 %2976  ;;  %v3185_v1 = vunpack.c.l.b16 %v3173_v17 }
0x1424   : > { %v5187_v7 = vmul.f32 %v4293_v24, %v2977_v27 }
0x1425   : > { %v3174_v62 = vpack.c.bf16 %v5181_v40, %v5181_v40 }
0x1426   : > { %v2981_v44 = vpop.permute.xlu0 %2980  ;;  %v3175_v19 = vpack.c.bf16 %v5187_v7, %v5187_v7 }
0x1427   : > { %v3186_v51 = vunpack.c.l.b16 %v3174_v62  ;;  %v5191_v35 = vmul.f32 %v4295_v56, %v2981_v44  ;;  %v2979_v29 = vpop.permute.xlu1 %2978 }
0x1428   : > { %v3187_v60 = vunpack.c.l.b16 %v3175_v19  ;;  %v5193_v50 = vmul.f32 %v4297_v37, %v2979_v29 }
0x1429   : > { %v3191_v2 = vrot.slane %v3186_v51, 7  ;;  %5913 = vst [vmem:[#allocation14_spill] sm:$0xff] %v5191_v35  ;;  %v3177_v41 = vpack.c.bf16 %v5191_v35, %v5191_v35 }
0x142a   : > { %5914 = vst [vmem:[#allocation15_spill] sm:$0xff] %v5193_v50  ;;  %v3176_v24 = vpack.c.bf16 %v5193_v50, %v5193_v50  ;;  %v3193_v12 = vrot.slane %v3187_v60, 6 }
0x142b   : > { %v3189_v27 = vunpack.c.l.b16 %v3177_v41  ;;  %v3192_v62 = vsel %vm621_vm2, %v3191_v2, %v3185_v1  ;;  %v2983_v18 = vpop.permute.xlu1 %2982 }
0x142c   : > { %v5201_v51 = vmul.f32 %v5142_v43, %v2983_v18  ;;  %v3188_v56 = vunpack.c.l.b16 %v3176_v24  ;;  %v3194_v17 = vsel %vm624_vm3, %v3193_v12, %v3192_v62  ;;  %v3167_v43 = vld [vmem:[#allocation2 + $0x7] sm:$0x1] }
0x142d   : > { %v3197_v44 = vrot.slane %v3189_v27, 4 }
0x142e   : > { %5915 = vst [vmem:[#allocation16_spill] sm:$0xff] %v5201_v51  ;;  %v3178_v37 = vpack.c.bf16 %v5201_v51, %v5201_v51  ;;  %v3195_v19 = vrot.slane %v3188_v56, 5  ;;  %v3168_v56 = vld [vmem:[#allocation2 + $0xf] sm:$0x1] }
0x1430   : > { %v3190_v29 = vunpack.c.l.b16 %v3178_v37  ;;  %v3196_v14 = vsel %vm627_vm4, %v3195_v19, %v3194_v17 }
0x1431   : > { %v3198_v41 = vsel %vm630_vm5, %v3197_v44, %v3196_v14  ;;  %v3169_v44 = vld [vmem:[#allocation2 + $0x17] sm:$0x1] }
0x1432   : > { %v3199_v30 = vrot.slane %v3190_v29, 3 }
0x1434   : > { %v3200_v2 = vsel %vm633_vm6, %v3199_v30, %v3198_v41  ;;  %v3171_v41 = vld [vmem:[#allocation2 + $0x27] sm:$0x1] }
0x1435   : > { %v3201_v1 = vpack.c.b16 %v3200_v2, %v3200_v2 }
0x1437   : > { %3202 = vrot.lane.b32.xlu0 %v3201_v1, %s4448_s13  ;;  %v968_v1 = vmul.f32 %v4730_v16, %v4582_v55 }
0x14a9   : > { %v3203_v18 = vpop.permute.xlu0 %3202 }
0x14aa   : > { %3939 = vmatmul.mubr.msk.bf16.vlgmr.msra.gmra.mrb[32].mxu1 %vm402_vm8, %v3203_v18  ;;  %v3170_v18 = vld [vmem:[#allocation2 + $0x1f] sm:$0x1] }
0x157d   : > { %v3241_v12 = vpop.f32.mrb[32].mxu1 }
0x157e   : > { %v3248_v60 = vrot.slane %v3241_v12, 1  ;;  %v3940_v24 = vpop.f32.mrb[33].mxu1  ;;  %v3259_v27 = vadd.f32 %v3241_v12, %v3167_v43  ;;  %v3249_v17 = vrot.slane %v3241_v12, 2  ;;  %v3251_v14 = vrot.slane %v3241_v12, 4 }
0x157f   : > { %v3244_v62 = vpop.f32.mrb[34].mxu1  ;;  %v3250_v30 = vrot.slane %v3241_v12, 3  ;;  %v3252_v42 = vrot.slane %v3241_v12, 5  ;;  %v970_v12 = vmul.f32 %v4725_v13, %v4595_v63 }
0x1580   : > { %v3941_v37 = vpop.f32.mrb[35].mxu1  ;;  %v3260_v19 = vadd.f32 %v3248_v60, %v3168_v56  ;;  %4312 = vtanh.f32 %v3259_v27  ;;  %v3261_v29 = vadd.f32 %v3249_v17, %v3169_v44  ;;  %v3263_v2 = vadd.f32 %v3251_v14, %v3171_v41 }
0x1581   : > { %v3262_v24 = vadd.f32 %v3250_v30, %v3170_v18  ;;  %v979_v62 = vrot.slane %v968_v1, 7  ;;  %v3172_v37 = vld [vmem:[#allocation2 + $0x2f] sm:$0x1]  ;;  %v969_v60 = vmul.f32 %v4721_v8, %v4584_v57  ;;  %v967_v17 = vmul.f32 %v4723_v9, %v4587_v58 }
0x1582   : > { %4314 = vtanh.f32 %v3260_v19  ;;  %v3264_v56 = vadd.f32 %v3252_v42, %v3172_v37  ;;  %v971_v30 = vmul.f32 %v4738_v25, %v4606_v11  ;;  %v972_v42 = vmul.f32 %v4742_v33, %v4616_v23 }
0x1583   : > { %4316 = vtanh.f32 %v3261_v29  ;;  %v980_v44 = vsel %vm621_vm2, %v979_v62, %v967_v17  ;;  %v981_v41 = vrot.slane %v969_v60, 6 }
0x1584   : > { %4318 = vtanh.f32 %v3263_v2  ;;  %v985_v37 = vrot.slane %v971_v30, 4  ;;  %v987_v17 = vrot.slane %v972_v42, 3  ;;  %v3747_v30 = vmul.f32 -1.442695, %v3260_v19 }
0x1585   : > { %4320 = vtanh.f32 %v3262_v24  ;;  %v982_v1 = vsel %vm624_vm3, %v981_v41, %v980_v44  ;;  %v3748_v41 = vmul.f32 -1.442695, %v3261_v29  ;;  %v3750_v42 = vmul.f32 -1.442695, %v3263_v2 }
0x1586   : > { %4322 = vtanh.f32 %v3264_v56  ;;  %v997_v29 = vmul.f32 %v4730_v16, %v4730_v16 }
0x158a   : > { %v4313_v43 = vpop.eup %4312 }
0x158b   : > { %3319 = vrot.lane.b32.xlu1 %v4313_v43, %s4447_s12  ;;  %v983_v43 = vrot.slane %v970_v12, 5  ;;  %v3746_v12 = vmul.f32 -1.442695, %v3259_v27 }
0x158c   : > { %v4315_v14 = vpop.eup %4314 }
0x158d   : > { %v4317_v18 = vpop.eup %4316  ;;  %v984_v62 = vsel %vm627_vm4, %v983_v43, %v982_v1  ;;  %4324 = vpow2.f32 %v3746_v12 }
0x158e   : > { %3323 = vrot.lane.b32.xlu0 %v4317_v18, %s4447_s12  ;;  %v4319_v51 = vpop.eup %4318  ;;  %v986_v60 = vsel %vm630_vm5, %v985_v37, %v984_v62  ;;  %4326 = vpow2.f32 %v3747_v30  ;;  %v3751_v18 = vmul.f32 -1.442695, %v3264_v56  ;;  %v1008_v30 = vrot.slane %v997_v29, 7 }
0x158f   : > { %3321 = vrot.lane.b32.xlu1 %v4315_v14, %s4447_s12  ;;  %v4321_v14 = vpop.eup %4320  ;;  %v988_v35 = vsel %vm633_vm6, %v987_v17, %v986_v60  ;;  %4328 = vpow2.f32 %v3748_v41  ;;  %v998_v41 = vmul.f32 %v4721_v8, %v4721_v8 }
0x1590   : > { %v4323_v44 = vpop.eup %4322  ;;  %4330 = vpow2.f32 %v3750_v42 }
0x1592   : > { %3325 = vrot.lane.b32.xlu0 %v4321_v14, %s4447_s12 }
0x1593   : > { %3327 = vrot.lane.b32.xlu1 %v4319_v51, %s4447_s12  ;;  %v3749_v51 = vmul.f32 -1.442695, %v3262_v24 }
0x1595   : > { %4332 = vpow2.f32 %v3749_v51 }
0x1596   : > { %3329 = vrot.lane.b32.xlu0 %v4323_v44, %s4447_s12  ;;  %4334 = vpow2.f32 %v3751_v18 }
0x1597   : > { %989 = vrot.lane.b32.xlu1 %v988_v35, %s4448_s13  ;;  %v4325_v1 = vpop.eup %4324 }
0x1598   : > { %v3283_v43 = vadd.f32 1.0, %v4325_v1  ;;  %v4327_v37 = vpop.eup %4326  ;;  %v996_v1 = vmul.f32 %v4723_v9, %v4723_v9 }
0x1599   : > { %v3284_v62 = vadd.f32 1.0, %v4327_v37  ;;  %v4329_v35 = vpop.eup %4328 }
0x159a   : > { %4336 = vrcp.f32 %v3283_v43  ;;  %v4331_v17 = vpop.eup %4330  ;;  %v3285_v14 = vadd.f32 1.0, %v4329_v35  ;;  %v999_v43 = vmul.f32 %v4725_v13, %v4725_v13  ;;  %v1009_v37 = vsel %vm621_vm2, %v1008_v30, %v996_v1 }
0x159b   : > { %4338 = vrcp.f32 %v3284_v62  ;;  %v3287_v19 = vadd.f32 1.0, %v4331_v17  ;;  %v1000_v62 = vmul.f32 %v4738_v25, %v4738_v25  ;;  %v1010_v35 = vrot.slane %v998_v41, 6 }
0x159c   : > { %4340 = vrcp.f32 %v3285_v14 }
0x159d   : > { %4342 = vrcp.f32 %v3287_v19 }
0x159f   : > { %v4333_v27 = vpop.eup %4332 }
0x15a0   : > { %v3286_v60 = vadd.f32 1.0, %v4333_v27  ;;  %v4335_v2 = vpop.eup %4334  ;;  %v1001_v27 = vmul.f32 %v4742_v33, %v4742_v33 }
0x15a1   : > { %v3288_v12 = vadd.f32 1.0, %v4335_v2 }
0x15a2   : > { %4344 = vrcp.f32 %v3286_v60  ;;  %v1011_v60 = vsel %vm624_vm3, %v1010_v35, %v1009_v37  ;;  %v1016_v1 = vrot.slane %v1001_v27, 3 }
0x15a3   : > { %4346 = vrcp.f32 %v3288_v12  ;;  %v1014_v12 = vrot.slane %v1000_v62, 4 }
0x15a4   : > { %v5237_v24 = vpop.eup %4336 }
0x15a5   : > { %v5243_v42 = vpop.eup %4338 }
0x15a6   : > { %5916 = vst [vmem:[#allocation17_spill] sm:$0xff] %v5243_v42  ;;  %v5254_v17 = vpop.eup %4340 }
0x15a7   : > { %v5260_v29 = vpop.eup %4342 }
0x15ac   : > { %v5264_v30 = vpop.eup %4344 }
0x15ad   : > { %5917 = vst [vmem:[#allocation18_spill] sm:$0xff] %v5264_v30 }
0x15fd   : > { %v3320_v56 = vpop.permute.xlu1 %3319 }
0x15fe   : > { %v3337_v44 = vmul.f32 %v5237_v24, %v3320_v56  ;;  %v1012_v56 = vrot.slane %v999_v43, 5  ;;  %v5271_v43 = vpop.eup %4346 }
0x15ff   : > { %5918 = vst [vmem:[#allocation19_spill] sm:$0xff] %v5271_v43 }
0x1600   : > { %3349 = vrot.lane.b32.xlu1 %v3337_v44, %s4448_s13  ;;  %v3324_v14 = vpop.permute.xlu0 %3323 }
0x1601   : > { %v3322_v51 = vpop.permute.xlu1 %3321  ;;  %v3339_v19 = vmul.f32 %v5254_v17, %v3324_v14 }
0x1602   : > { %v3338_v18 = vmul.f32 %v5243_v42, %v3322_v51  ;;  %v1013_v51 = vsel %vm627_vm4, %v1012_v56, %v1011_v60  ;;  %v1040_v60 = vrot.slane %v4730_v16, 7  ;;  %v1374_v56 = vmul.f32 %v4812_v52, %v4730_v16 }
0x1603   : > { %3353 = vrot.lane.b32.xlu0 %v3339_v19, %s4448_s13  ;;  %v1015_v37 = vsel %vm630_vm5, %v1014_v12, %v1013_v51  ;;  %v1042_v12 = vrot.slane %v4721_v8, 6 }
0x1604   : > { %3351 = vrot.lane.b32.xlu1 %v3338_v18, %s4448_s13  ;;  %v3326_v41 = vpop.permute.xlu0 %3325  ;;  %v1017_v14 = vsel %vm633_vm6, %v1016_v1, %v1015_v37  ;;  %v1044_v1 = vrot.slane %v4725_v13, 5  ;;  %v1385_v37 = vrot.slane %v1374_v56, 7 }
0x1605   : > { %v3328_v2 = vpop.permute.xlu1 %3327  ;;  %v3340_v18 = vmul.f32 %v5264_v30, %v3326_v41  ;;  %v1402_v30 = vmul.f32 %v4810_v39, %v4810_v39 }
0x1606   : > { %v3341_v44 = vmul.f32 %v5260_v29, %v3328_v2  ;;  %v1345_v2 = vmul.f32 %v4812_v52, %v4582_v55  ;;  %v1344_v55 = vmul.f32 %v4810_v39, %v4587_v58 }
0x1607   : > { %3355 = vrot.lane.b32.xlu0 %v3340_v18, %s4448_s13  ;;  %v1346_v18 = vmul.f32 %v4816_v59, %v4584_v57 }
0x1608   : > { %3357 = vrot.lane.b32.xlu1 %v3341_v44, %s4448_s13  ;;  %v3330_v35 = vpop.permute.xlu0 %3329  ;;  %v1041_v44 = vsel %vm621_vm2, %v1040_v60, %v4723_v9  ;;  %v1356_v41 = vrot.slane %v1345_v2, 7  ;;  %v1046_v60 = vrot.slane %v4738_v25, 4  ;;  %v1348_v2 = vmul.f32 %v4820_v45, %v4606_v11 }
0x1609   : > { %v3342_v62 = vmul.f32 %v5271_v43, %v3330_v35  ;;  %v990_v27 = vpop.permute.xlu1 %989  ;;  %v1043_v51 = vsel %vm624_vm3, %v1042_v12, %v1041_v44  ;;  %v1347_v35 = vmul.f32 %v4824_v61, %v4595_v63  ;;  %v1048_v63 = vrot.slane %v4742_v33, 3 }
0x160a   : > { %v992_v19 = vsel %vm638_vm7, %v990_v27, 0.0  ;;  %v1373_v27 = vmul.f32 %v4810_v39, %v4723_v9  ;;  %v1045_v57 = vsel %vm627_vm4, %v1044_v1, %v1043_v51  ;;  %v1357_v58 = vsel %vm621_vm2, %v1356_v41, %v1344_v55 }
0x160b   : > { %3359 = vrot.lane.b32.xlu0 %v3342_v62, %s4448_s13  ;;  %v1403_v62 = vmul.f32 %v4812_v52, %v4812_v52  ;;  %v1358_v56 = vrot.slane %v1346_v18, 6  ;;  %v1360_v12 = vrot.slane %v1347_v35, 5  ;;  %v1377_v1 = vmul.f32 %v4820_v45, %v4738_v25 }
0x160c   : > { %1018 = vrot.lane.b32.xlu1 %v1017_v14, %s4448_s13  ;;  %v1375_v14 = vmul.f32 %v4816_v59, %v4721_v8  ;;  %v1386_v44 = vsel %vm621_vm2, %v1385_v37, %v1373_v27  ;;  %v1404_v55 = vmul.f32 %v4816_v59, %v4816_v59  ;;  %v1349_v11 = vmul.f32 %v4832_v21, %v4616_v23 }
0x160d   : > { %v1414_v42 = vrot.slane %v1403_v62, 7  ;;  %v1359_v51 = vsel %vm624_vm3, %v1358_v56, %v1357_v58  ;;  %v1405_v37 = vmul.f32 %v4824_v61, %v4824_v61  ;;  %v1758_v35 = vmul.f32 %v4911_v4, %v4730_v16 }
0x160e   : > { %v1387_v43 = vrot.slane %v1375_v14, 6  ;;  %v1047_v14 = vsel %vm630_vm5, %v1046_v60, %v1045_v57  ;;  %v1362_v62 = vrot.slane %v1348_v2, 4  ;;  %v1787_v27 = vmul.f32 %v4911_v4, %v4812_v52 }
0x160f   : > { %v1361_v58 = vsel %vm627_vm4, %v1360_v12, %v1359_v51  ;;  %v1378_v23 = vmul.f32 %v4832_v21, %v4742_v33  ;;  %v1406_v16 = vmul.f32 %v4820_v45, %v4820_v45  ;;  %v1416_v57 = vrot.slane %v1404_v55, 6 }
0x1610   : > { %v1388_v18 = vsel %vm624_vm3, %v1387_v43, %v1386_v44  ;;  %v1415_v43 = vsel %vm621_vm2, %v1414_v42, %v1402_v30  ;;  %v1391_v44 = vrot.slane %v1377_v1, 4  ;;  %v1364_v60 = vrot.slane %v1349_v11, 3 }
0x1611   : > { %v1407_v2 = vmul.f32 %v4832_v21, %v4832_v21  ;;  %v1418_v50 = vrot.slane %v1405_v37, 5  ;;  %v1363_v12 = vsel %vm630_vm5, %v1362_v62, %v1361_v58  ;;  %v1417_v51 = vsel %vm624_vm3, %v1416_v57, %v1415_v43 }
0x1612   : > { %v1759_v42 = vmul.f32 %v4915_v48, %v4721_v8  ;;  %v1798_v30 = vrot.slane %v1787_v27, 7  ;;  %v1393_v1 = vrot.slane %v1378_v23, 3  ;;  %v1760_v55 = vmul.f32 %v4923_v31, %v4725_v13 }
0x1613   : > { %v1788_v11 = vmul.f32 %v4915_v48, %v4816_v59  ;;  %v1420_v37 = vrot.slane %v1406_v16, 4  ;;  %v1789_v8 = vmul.f32 %v4923_v31, %v4824_v61  ;;  %v1419_v62 = vsel %vm627_vm4, %v1418_v50, %v1417_v51 }
0x1614   : > { %v1761_v27 = vmul.f32 %v4919_v20, %v4738_v25  ;;  %v1422_v43 = vrot.slane %v1407_v2, 3  ;;  %v1790_v57 = vmul.f32 %v4919_v20, %v4820_v45  ;;  %v2171_v51 = vmul.f32 %v5000_v22, %v4812_v52 }
0x1615   : > { %v1421_v50 = vsel %vm630_vm5, %v1420_v37, %v1419_v62 }
0x1616   : > { %v1775_v2 = vrot.slane %v1761_v27, 4  ;;  %v2172_v27 = vmul.f32 %v5004_v34, %v4816_v59 }
0x162a   : > { %993 = vadd.xlane.f32.xlu0 %v992_v19  ;;  %v1376_v19 = vmul.f32 %v4824_v61, %v4725_v13  ;;  %v1816_v13 = vmul.f32 %v4911_v4, %v4911_v4 }
0x162c   : > { %v1389_v41 = vrot.slane %v1376_v19, 5  ;;  %v1049_v19 = vsel %vm633_vm6, %v1048_v63, %v1047_v14  ;;  %v1769_v63 = vrot.slane %v1758_v35, 7  ;;  %v1786_v35 = vmul.f32 %v4909_v6, %v4810_v39 }
0x162d   : > { %v1365_v14 = vsel %vm633_vm6, %v1364_v60, %v1363_v12  ;;  %v1802_v60 = vrot.slane %v1789_v8, 5  ;;  %v1827_v12 = vrot.slane %v1816_v13, 7  ;;  %v2182_v8 = vrot.slane %v2171_v51, 7 }
0x162e   : > { %v1390_v56 = vsel %vm627_vm4, %v1389_v41, %v1388_v18  ;;  %v1757_v41 = vmul.f32 %v4909_v6, %v4723_v9  ;;  %v1799_v58 = vsel %vm621_vm2, %v1798_v30, %v1786_v35  ;;  %v2201_v51 = vmul.f32 %v5004_v34, %v4915_v48 }
0x162f   : > { %v1392_v18 = vsel %vm630_vm5, %v1391_v44, %v1390_v56  ;;  %v1773_v56 = vrot.slane %v1760_v55, 5  ;;  %v1800_v44 = vrot.slane %v1788_v11, 6  ;;  %v1791_v55 = vmul.f32 %v4931_v46, %v4832_v21 }
0x1630   : > { %v1770_v9 = vsel %vm621_vm2, %v1769_v63, %v1757_v41  ;;  %v1394_v23 = vsel %vm633_vm6, %v1393_v1, %v1392_v18  ;;  %v1762_v63 = vmul.f32 %v4931_v46, %v4742_v33  ;;  %v1815_v1 = vmul.f32 %v4909_v6, %v4909_v6 }
0x1631   : > { %v1801_v25 = vsel %vm624_vm3, %v1800_v44, %v1799_v58  ;;  %v1818_v33 = vmul.f32 %v4923_v31, %v4923_v31  ;;  %v1423_v41 = vsel %vm633_vm6, %v1422_v43, %v1421_v50  ;;  %v1804_v18 = vrot.slane %v1790_v57, 4 }
0x1632   : > { %v1803_v11 = vsel %vm627_vm4, %v1802_v60, %v1801_v25  ;;  %v1777_v37 = vrot.slane %v1762_v63, 3  ;;  %v1828_v35 = vsel %vm621_vm2, %v1827_v12, %v1815_v1  ;;  %v2170_v58 = vmul.f32 %v4998_v3, %v4810_v39 }
0x1633   : > { %v1805_v43 = vsel %vm630_vm5, %v1804_v18, %v1803_v11  ;;  %v2174_v25 = vmul.f32 %v5008_v36, %v4820_v45  ;;  %v2184_v12 = vrot.slane %v2172_v27, 6  ;;  %v2202_v1 = vmul.f32 %v5012_v47, %v4923_v31 }
0x1634   : > { %v2183_v57 = vsel %vm621_vm2, %v2182_v8, %v2170_v58  ;;  %v2175_v11 = vmul.f32 %v5020_v49, %v4832_v21  ;;  %v2203_v8 = vmul.f32 %v5008_v36, %v4919_v20  ;;  %v2204_v58 = vmul.f32 %v5020_v49, %v4931_v46 }
0x1640   : > { %1050 = vrot.lane.b32.xlu0 %v1049_v19, %s4448_s13  ;;  %v1771_v19 = vrot.slane %v1759_v42, 6  ;;  %v1817_v42 = vmul.f32 %v4915_v48, %v4915_v48 }
0x1642   : > { %v1772_v16 = vsel %vm624_vm3, %v1771_v19, %v1770_v9  ;;  %v1819_v9 = vmul.f32 %v4919_v20, %v4919_v20  ;;  %v1829_v13 = vrot.slane %v1817_v42, 6  ;;  %v1831_v19 = vrot.slane %v1818_v33, 5 }
0x1643   : > { %v1774_v30 = vsel %vm627_vm4, %v1773_v56, %v1772_v16  ;;  %v1820_v56 = vmul.f32 %v4931_v46, %v4931_v46  ;;  %v1806_v16 = vrot.slane %v1791_v55, 3  ;;  %v2185_v33 = vsel %vm624_vm3, %v2184_v12, %v2183_v57 }
0x1644   : > { %1366 = vrot.lane.b32.xlu0 %v1365_v14, %s4448_s13  ;;  %v2200_v14 = vmul.f32 %v5000_v22, %v4911_v4  ;;  %v1776_v62 = vsel %vm630_vm5, %v1775_v2, %v1774_v30  ;;  %v1830_v44 = vsel %vm624_vm3, %v1829_v13, %v1828_v35  ;;  %v1833_v63 = vrot.slane %v1819_v9, 4 }
0x1645   : > { %v1778_v50 = vsel %vm633_vm6, %v1777_v37, %v1776_v62  ;;  %v1832_v2 = vsel %vm627_vm4, %v1831_v19, %v1830_v44  ;;  %v2199_v30 = vmul.f32 %v4998_v3, %v4909_v6  ;;  %v1835_v55 = vrot.slane %v1820_v56, 3 }
0x1646   : > { %v2211_v60 = vrot.slane %v2200_v14, 7  ;;  %v1834_v37 = vsel %vm630_vm5, %v1833_v63, %v1832_v2  ;;  %v2188_v35 = vrot.slane %v2174_v25, 4  ;;  %v2213_v14 = vrot.slane %v2201_v51, 6 }
0x1647   : > { %v2215_v9 = vrot.slane %v2202_v1, 5  ;;  %v1836_v27 = vsel %vm633_vm6, %v1835_v55, %v1834_v37  ;;  %v2190_v19 = vrot.slane %v2175_v11, 3  ;;  %v3309_v51 = vmul.f32 %v5254_v17, %v5156_v38 }
0x1648   : > { %1395 = vrot.lane.b32.xlu0 %v1394_v23, %s4448_s13  ;;  %v2173_v23 = vmul.f32 %v5012_v47, %v4824_v61  ;;  %v2212_v18 = vsel %vm621_vm2, %v2211_v60, %v2199_v30  ;;  %v3307_v60 = vmul.f32 %v5237_v24, %v5148_v53  ;;  %v2229_v2 = vmul.f32 %v5000_v22, %v5000_v22 }
0x1649   : > { %v2214_v13 = vsel %vm624_vm3, %v2213_v14, %v2212_v18  ;;  %v3311_v1 = vmul.f32 %v5260_v29, %v5161_v32  ;;  %v2230_v55 = vmul.f32 %v5004_v34, %v5004_v34  ;;  %v2228_v38 = vmul.f32 %v4998_v3, %v4998_v3 }
0x164a   : > { %v2186_v42 = vrot.slane %v2173_v23, 5  ;;  %v2216_v56 = vsel %vm627_vm4, %v2215_v9, %v2214_v13  ;;  %v2240_v53 = vrot.slane %v2229_v2, 7  ;;  %v2231_v18 = vmul.f32 %v5012_v47, %v5012_v47 }
0x164b   : > { %v2584_v37 = vmul.f32 %v5089_v0, %v4911_v4  ;;  %v2642_v32 = vmul.f32 %v5089_v0, %v5089_v0  ;;  %v2242_v9 = vrot.slane %v2230_v55, 6  ;;  %v2997_v2 = vmul.f32 %v5181_v40, %v5000_v22 }
0x164c   : > { %1424 = vrot.lane.b32.xlu0 %v1423_v41, %s4448_s13  ;;  %v1807_v41 = vsel %vm633_vm6, %v1806_v16, %v1805_v43  ;;  %v2187_v62 = vsel %vm627_vm4, %v2186_v42, %v2185_v33  ;;  %v2217_v43 = vrot.slane %v2203_v8, 4  ;;  %v2241_v14 = vsel %vm621_vm2, %v2240_v53, %v2228_v38 }
0x164d   : > { %v2189_v23 = vsel %vm630_vm5, %v2188_v35, %v2187_v62  ;;  %v2232_v62 = vmul.f32 %v5008_v36, %v5008_v36  ;;  %v2244_v13 = vrot.slane %v2231_v18, 5  ;;  %v2645_v18 = vmul.f32 %v5097_v15, %v5097_v15 }
0x164e   : > { %v2191_v44 = vsel %vm633_vm6, %v2190_v19, %v2189_v23  ;;  %v2218_v16 = vsel %vm630_vm5, %v2217_v43, %v2216_v56  ;;  %v2243_v19 = vsel %vm624_vm3, %v2242_v9, %v2241_v14  ;;  %v2653_v23 = vrot.slane %v2642_v32, 7 }
0x164f   : > { %v2233_v43 = vmul.f32 %v5020_v49, %v5020_v49  ;;  %v2583_v56 = vmul.f32 %v5087_v28, %v4909_v6  ;;  %v3026_v14 = vmul.f32 %v5181_v40, %v5089_v0  ;;  %v2998_v9 = vmul.f32 %v5187_v7, %v5004_v34 }
0x1650   : > { %1779 = vrot.lane.b32.xlu0 %v1778_v50, %s4448_s13  ;;  %v2219_v50 = vrot.slane %v2204_v58, 3  ;;  %v2585_v58 = vmul.f32 %v5093_v54, %v4915_v48 }
0x1652   : > { %v2220_v57 = vsel %vm633_vm6, %v2219_v50, %v2218_v16  ;;  %v2643_v50 = vmul.f32 %v5093_v54, %v5093_v54  ;;  %v2246_v16 = vrot.slane %v2232_v62, 4 }
0x1654   : > { %1808 = vrot.lane.b32.xlu0 %v1807_v41, %s4448_s13  ;;  %v2655_v55 = vrot.slane %v2643_v50, 6 }
0x1658   : > { %1837 = vrot.lane.b32.xlu0 %v1836_v27, %s4448_s13  ;;  %v2595_v27 = vrot.slane %v2584_v37, 7 }
0x165c   : > { %2192 = vrot.lane.b32.xlu0 %v2191_v44, %s4448_s13  ;;  %v2586_v44 = vmul.f32 %v5101_v10, %v4923_v31 }
0x165e   : > { %v2599_v53 = vrot.slane %v2586_v44, 5  ;;  %v2659_v44 = vrot.slane %v2645_v18, 4 }
0x1660   : > { %2221 = vrot.lane.b32.xlu0 %v2220_v57, %s4448_s13  ;;  %v2641_v57 = vmul.f32 %v5087_v28, %v5087_v28 }
0x1672   : > { %v3350_v63 = vpop.permute.xlu1 %3349 }
0x1673   : > { %v3367_v25 = vadd.f32 %v3350_v63, %v3307_v60  ;;  %v2644_v60 = vmul.f32 %v5101_v10, %v5101_v10 }
0x1675   : > { %4348 = vtanh.f32 %v3367_v25  ;;  %v3354_v42 = vpop.permute.xlu0 %3353  ;;  %v2245_v25 = vsel %vm627_vm4, %v2244_v13, %v2243_v19  ;;  %v2657_v37 = vrot.slane %v2644_v60, 5  ;;  %v5919_v19 = vld [vmem:[#allocation15_spill] sm:$0xff]  ;;  %v3055_v60 = vmul.f32 %v5181_v40, %v5181_v40 }
0x1676   : > { %v5436_v12 = vpop.permute.xlu1 %3351  ;;  %v3369_v30 = vadd.f32 %v3354_v42, %v3309_v51  ;;  %v2596_v51 = vsel %vm621_vm2, %v2595_v27, %v2583_v56  ;;  %v2587_v42 = vmul.f32 %v5097_v15, %v4919_v20  ;;  %v2996_v27 = vmul.f32 %v5179_v5, %v4998_v3 }
0x1678   : > { %4350 = vtanh.f32 %v3369_v30  ;;  %v2597_v30 = vrot.slane %v2585_v58, 6  ;;  %v2601_v62 = vrot.slane %v2587_v42, 4  ;;  %v2999_v58 = vmul.f32 %v5919_v19, %v5012_v47 }
0x1679   : > { %v3027_v42 = vmul.f32 %v5187_v7, %v5093_v54 }
0x167a   : > { %v3358_v33 = vpop.permute.xlu1 %3357  ;;  %v2598_v38 = vsel %vm624_vm3, %v2597_v30, %v2596_v51  ;;  %v3012_v30 = vrot.slane %v2999_v58, 5  ;;  %v3057_v58 = vmul.f32 %v5919_v19, %v5919_v19 }
0x167b   : > { %v3371_v41 = vadd.f32 %v3358_v33, %v3311_v1  ;;  %v2654_v1 = vsel %vm621_vm2, %v2653_v23, %v2641_v57  ;;  %v2600_v13 = vsel %vm627_vm4, %v2599_v53, %v2598_v38  ;;  %v3037_v57 = vrot.slane %v3026_v14, 7  ;;  %v5921_v38 = vld [vmem:[#allocation16_spill] sm:$0xff] }
0x167c   : > { %v2656_v32 = vsel %vm624_vm3, %v2655_v55, %v2654_v1  ;;  %v3025_v1 = vmul.f32 %v5179_v5, %v5087_v28  ;;  %v3001_v18 = vmul.f32 %v5921_v38, %v5020_v49  ;;  %v3039_v14 = vrot.slane %v3027_v42, 6 }
0x167d   : > { %4352 = vtanh.f32 %v3371_v41  ;;  %v2248_v41 = vrot.slane %v2233_v43, 3  ;;  %v2646_v43 = vmul.f32 %v5109_v26, %v5109_v26  ;;  %v2658_v56 = vsel %vm627_vm4, %v2657_v37, %v2656_v32 }
0x167e   : > { %v1019_v35 = vpop.permute.xlu1 %1018  ;;  %v3038_v37 = vsel %vm621_vm2, %v3037_v57, %v3025_v1 }
0x167f   : > { %v4349_v11 = vpop.eup %4348  ;;  %v1021_v8 = vsel %vm638_vm7, %v1019_v35, 0.0  ;;  %v2588_v35 = vmul.f32 %v5109_v26, %v4931_v46  ;;  %v2661_v53 = vrot.slane %v2646_v43, 3 }
0x1680   : > { %3385 = vrot.lane.b32.xlu0 %v4349_v11, %s4447_s12  ;;  %1022 = vadd.xlane.f32.xlu1 %v1021_v8  ;;  %v2247_v11 = vsel %vm630_vm5, %v2246_v16, %v2245_v25  ;;  %v3008_v8 = vrot.slane %v2997_v2, 7  ;;  %v5920_v25 = vld [vmem:[#allocation14_spill] sm:$0xff]  ;;  %v3010_v2 = vrot.slane %v2998_v9, 6 }
0x1681   : > { %v2249_v23 = vsel %vm633_vm6, %v2248_v41, %v2247_v11  ;;  %v2603_v50 = vrot.slane %v2588_v35, 3  ;;  %v3000_v51 = vmul.f32 %v5920_v25, %v5008_v36  ;;  %v2660_v41 = vsel %vm630_vm5, %v2659_v44, %v2658_v56 }
0x1682   : > { %v4351_v63 = vpop.eup %4350  ;;  %v3009_v16 = vsel %vm621_vm2, %v3008_v8, %v2996_v27  ;;  %v3066_v35 = vrot.slane %v3055_v60, 7  ;;  %v3029_v8 = vmul.f32 %v5920_v25, %v5097_v15  ;;  %v3054_v27 = vmul.f32 %v5179_v5, %v5179_v5 }
0x1683   : > { %v3011_v55 = vsel %vm624_vm3, %v3010_v2, %v3009_v16  ;;  %v3014_v32 = vrot.slane %v3000_v51, 4  ;;  %v2662_v43 = vsel %vm633_vm6, %v2661_v53, %v2660_v41  ;;  %v3016_v56 = vrot.slane %v3001_v18, 3 }
0x1684   : > { %3389 = vrot.lane.b32.xlu0 %v4351_v63, %s4447_s12  ;;  %v2602_v63 = vsel %vm630_vm5, %v2601_v62, %v2600_v13  ;;  %v3056_v62 = vmul.f32 %v5187_v7, %v5187_v7  ;;  %v3013_v9 = vsel %vm627_vm4, %v3012_v30, %v3011_v55  ;;  %v3030_v44 = vmul.f32 %v5921_v38, %v5109_v26 }
0x1685   : > { %v2604_v11 = vsel %vm633_vm6, %v2603_v50, %v2602_v63  ;;  %v3067_v50 = vsel %vm621_vm2, %v3066_v35, %v3054_v27  ;;  %v3015_v16 = vsel %vm630_vm5, %v3014_v32, %v3013_v9  ;;  %v3043_v57 = vrot.slane %v3029_v8, 4  ;;  %v3356_v32 = vpop.permute.xlu0 %3355  ;;  %v5923_v27 = vld [vmem:[#allocation11_spill] sm:$0xff] }
0x1686   : > { %v3058_v60 = vmul.f32 %v5920_v25, %v5920_v25  ;;  %v3068_v63 = vrot.slane %v3056_v62, 6  ;;  %v3070_v2 = vrot.slane %v3057_v58, 5  ;;  %v3017_v30 = vsel %vm633_vm6, %v3016_v56, %v3015_v16  ;;  %v5924_v58 = vld [vmem:[#allocation17_spill] sm:$0xff]  ;;  %v5925_v56 = vld [vmem:[#allocation12_spill] sm:$0xff] }
0x1687   : > { %v4353_v33 = vpop.eup %4352  ;;  %v3045_v1 = vrot.slane %v3030_v44, 3  ;;  %v5926_v44 = vld [vmem:[#allocation18_spill] sm:$0xff]  ;;  %v2613_v16 = vmul.f32 %v5089_v0, %v5000_v22 }
0x1688   : > { %3393 = vrot.lane.b32.xlu0 %v4353_v33, %s4447_s12  ;;  %v3028_v33 = vmul.f32 %v5919_v19, %v5101_v10  ;;  %v3069_v42 = vsel %vm624_vm3, %v3068_v63, %v3067_v50  ;;  %v3072_v53 = vrot.slane %v3058_v60, 4  ;;  %v3310_v50 = vmul.f32 %v5926_v44, %v5925_v56 }
0x1689   : > { %v3071_v55 = vsel %vm627_vm4, %v3070_v2, %v3069_v42  ;;  %v3360_v8 = vpop.permute.xlu0 %3359  ;;  %v2624_v60 = vrot.slane %v2613_v16, 7  ;;  %v2614_v63 = vmul.f32 %v5093_v54, %v5004_v34  ;;  %v2615_v2 = vmul.f32 %v5101_v10, %v5012_v47  ;;  %v5928_v42 = vld [vmem:[#allocation19_spill] sm:$0xff] }
0x168a   : > { %v3041_v13 = vrot.slane %v3028_v33, 5  ;;  %v3059_v33 = vmul.f32 %v5921_v38, %v5921_v38 }
0x168c   : > { %2250 = vrot.lane.b32.xlu0 %v2249_v23, %s4448_s13  ;;  %v3040_v23 = vsel %vm624_vm3, %v3039_v14, %v3038_v37  ;;  %v3074_v18 = vrot.slane %v3059_v33, 3  ;;  %v3073_v37 = vsel %vm630_vm5, %v3072_v53, %v3071_v55  ;;  %v2616_v33 = vmul.f32 %v5097_v15, %v5008_v36 }
0x168d   : > { %v3042_v51 = vsel %vm627_vm4, %v3041_v13, %v3040_v23  ;;  %v3308_v23 = vmul.f32 %v5924_v58, %v5923_v27  ;;  %v2628_v55 = vrot.slane %v2615_v2, 5 }
0x168e   : > { %v3044_v41 = vsel %vm630_vm5, %v3043_v57, %v3042_v51  ;;  %v3075_v35 = vsel %vm633_vm6, %v3074_v18, %v3073_v37  ;;  %v3370_v57 = vadd.f32 %v3356_v32, %v3310_v50  ;;  %v2612_v51 = vmul.f32 %v5087_v28, %v4998_v3 }
0x168f   : > { %v2617_v37 = vmul.f32 %v5109_v26, %v5020_v49 }
0x1690   : > { %2605 = vrot.lane.b32.xlu0 %v2604_v11, %s4448_s13  ;;  %v3046_v11 = vsel %vm633_vm6, %v3045_v1, %v3044_v41  ;;  %v2625_v1 = vsel %vm621_vm2, %v2624_v60, %v2612_v51  ;;  %v2626_v41 = vrot.slane %v2614_v63, 6 }
0x1694   : > { %2663 = vrot.lane.b32.xlu0 %v2662_v43, %s4448_s13  ;;  %v3368_v43 = vadd.f32 %v5436_v12, %v3308_v23  ;;  %v5927_v12 = vld [vmem:[#allocation13_spill] sm:$0xff] }
0x1696   : > { %4354 = vtanh.f32 %v3368_v43 }
0x1697   : > { %4356 = vtanh.f32 %v3370_v57 }
0x1698   : > { %3018 = vrot.lane.b32.xlu0 %v3017_v30, %s4448_s13  ;;  %v3312_v30 = vmul.f32 %v5928_v42, %v5927_v12 }
0x169a   : > { %v3372_v53 = vadd.f32 %v3360_v8, %v3312_v30 }
0x169c   : > { %3047 = vrot.lane.b32.xlu0 %v3046_v11, %s4448_s13  ;;  %v2627_v11 = vsel %vm624_vm3, %v2626_v41, %v2625_v1  ;;  %4358 = vtanh.f32 %v3372_v53  ;;  %v5929_v41 = vld [vmem:[#allocation3_spill] sm:$0xff] }
0x169d   : > { %v2629_v32 = vsel %vm627_vm4, %v2628_v55, %v2627_v11 }
0x16a0   : > { %3076 = vrot.lane.b32.xlu0 %v3075_v35, %s4448_s13  ;;  %v4355_v18 = vpop.eup %4354  ;;  %v2630_v35 = vrot.slane %v2616_v33, 4 }
0x16a2   : > { %v2631_v27 = vsel %vm630_vm5, %v2630_v35, %v2629_v32 }
0x16b7   : > { %v994_v14 = vpop.xlane.xlu0 %993 }
0x16b8   : > { %v995_v56 = vmul.f32 0.17677669, %v994_v14 }
0x16bb   : > { %v5554_v62 = vpop.permute.xlu0 %1050 }
0x16bc   : > { %5922 = vst [vmem:[#allocation15_spill] sm:$0xff] %v5554_v62 }
0x16bf   : > { %v1367_v9 = vpop.permute.xlu0 %1366 }
0x16c0   : > { %v1369_v13 = vsel %vm638_vm7, %v1367_v9, 0.0  ;;  %v4357_v9 = vpop.eup %4356 }
0x16c1   : > { %1370 = vadd.xlane.f32.xlu1 %v1369_v13  ;;  %v2632_v13 = vrot.slane %v2617_v37, 3  ;;  %v4359_v23 = vpop.eup %4358 }
0x16c3   : > { %v2633_v8 = vsel %vm633_vm6, %v2632_v13, %v2631_v27  ;;  %v5585_v2 = vpop.permute.xlu0 %1395  ;;  %v5931_v13 = vmov 0.0  }
0x16c7   : > { %v5587_v33 = vpop.permute.xlu0 %1424 }
0x16cb   : > { %v5591_v55 = vpop.permute.xlu0 %1779 }
0x16cf   : > { %v5593_v35 = vpop.permute.xlu0 %1808 }
0x16d2   : > { %3387 = vrot.lane.b32.xlu1 %v4355_v18, %s4447_s12 }
0x16d3   : > { %v5605_v27 = vpop.permute.xlu0 %1837 }
0x16d6   : > { %3391 = vrot.lane.b32.xlu1 %v4357_v9, %s4447_s12  ;;  %v5599_v9 = vld [vmem:[%s5867_s4] sm:$0xff]  }
0x16d7   : > { %5930 = vst [vmem:[#allocation14_spill] sm:$0xff] %v5599_v9 }
0x16da   : > { %2634 = vrot.lane.b32.xlu1 %v2633_v8, %s4448_s13  ;;  %v5610_v8 = vld [vmem:[%s5867_s4 + $0x8] sm:$0xff]  }
0x16db   : > { %5932 = vst [vmem:[#allocation16_spill] sm:$0xff] %v5610_v8 }
0x16de   : > { %3395 = vrot.lane.b32.xlu1 %v4359_v23, %s4447_s12  ;;  %v5614_v23 = vpop.permute.xlu0 %2192 }
0x170d   : > { %v1023_v43 = vpop.xlane.xlu1 %1022 }
0x170e   : > { %v1024_v50 = vmul.f32 0.17677669, %v1023_v43  ;;  %v5616_v43 = vpop.permute.xlu0 %2221 }
0x1710   : > { %v1025_v16 = vmax.f32 %v995_v56, %v1024_v50 }
0x1712   : > { %v1026_v57 = vsub.f32 %v995_v56, %v1025_v16  ;;  %v1029_v60 = vsub.f32 %v1024_v50, %v1025_v16  ;;  %v3386_v56 = vpop.permute.xlu0 %3385 }
0x1714   : > { %v1027_v63 = vmul.f32 1.442695, %v1026_v57  ;;  %v1030_v51 = vmul.f32 1.442695, %v1029_v60  ;;  %v3403_v60 = vmul.f32 %v5237_v24, %v3386_v56 }
0x1716   : > { %4360 = vpow2.f32 %v1027_v63  ;;  %v3390_v50 = vpop.permute.xlu0 %3389 }
0x1717   : > { %4362 = vpow2.f32 %v1030_v51  ;;  %v3405_v63 = vmul.f32 %v5254_v17, %v3390_v50 }
0x171a   : > { %v3394_v57 = vpop.permute.xlu0 %3393 }
0x171b   : > { %v3407_v51 = vmul.f32 %v5260_v29, %v3394_v57 }
0x171d   : > { %v3471_v24 = vmul.f32 %v3407_v51, %v3407_v51 }
0x1720   : > { %v4361_v12 = vpop.eup %4360 }
0x1721   : > { %v4363_v30 = vpop.eup %4362  ;;  %v1033_v53 = vmul.f32 %v4361_v12, %v5929_v41 }
0x1722   : > { %v1032_v1 = vadd.f32 %v4363_v30, %v4361_v12  ;;  %v1053_v14 = vmul.f32 %v4363_v30, %v5554_v62 }
0x1724   : > { %4364 = vrcp.f32 %v1032_v1  ;;  %v1054_v11 = vadd.f32 %v1053_v14, %v1033_v53  ;;  %v3409_v1 = vmul.f32 %v3403_v60, %v5087_v28  ;;  %v3520_v28 = vrot.slane %v3405_v63, 6 }
0x172e   : > { %v4365_v18 = vpop.eup %4364 }
0x172f   : > { %v1056_v37 = vmul.f32 %v4365_v18, %v1054_v11 }
0x1731   : > { %v1057_v32 = vpack.c.bf16 %v1056_v37, %v1056_v37  ;;  %v3438_v37 = vmul.f32 %v3403_v60, %v5179_v5 }
0x1733   : > { %3851 = vmatmul.mubr.msk.bf16.vlgmr.msra.gmra.mrb[12].mxu0 %vm402_vm8, %v1057_v32  ;;  %v3467_v32 = vmul.f32 %v3403_v60, %v3403_v60 }
0x1734   : > { %3863 = vmatpush3.bf16.msra.mxu0 %v5599_v9  ;;  %3866 = vmatprep.mubr.msk.bf16.mxu0 %vm4445_vm0, %v5931_v13 }
0x1735   : > { %3864 = vmatprep.subr.bf16.mxu0 %v5931_v13 }
0x1738   : > { %3865 = vmatpush3.bf16.msra.mxu0 %v5610_v8  ;;  %v3469_v8 = vmul.f32 %v3405_v63, %v3405_v63 }
0x1739   : > { %3878 = vmatprep.subr.bf16.mxu0 %v5931_v13 }
0x173a   : > { %v3481_v41 = vrot.slane %v3469_v8, 6 }
0x174e   : > { %v5618_v16 = vpop.xlane.xlu1 %1370 }
0x174f   : > { %5933 = vst [vmem:[#allocation11_spill] sm:$0xff] %v5618_v16  ;;  %v3524_v16 = vrot.slane %v3407_v51, 4 }
0x1752   : > { %v3388_v12 = vpop.permute.xlu1 %3387 }
0x1753   : > { %v3404_v30 = vmul.f32 %v5924_v58, %v3388_v12  ;;  %v3411_v58 = vmul.f32 %v3405_v63, %v5093_v54  ;;  %v3440_v12 = vmul.f32 %v3405_v63, %v5187_v7 }
0x1755   : > { %v3410_v53 = vmul.f32 %v3404_v30, %v5089_v0  ;;  %v3439_v14 = vmul.f32 %v3404_v30, %v5181_v40  ;;  %v3468_v11 = vmul.f32 %v3404_v30, %v3404_v30  ;;  %v3518_v18 = vrot.slane %v3404_v30, 7 }
0x1756   : > { %v3392_v56 = vpop.permute.xlu1 %3391  ;;  %v3423_v8 = vrot.slane %v3411_v58, 6  ;;  %v3452_v49 = vrot.slane %v3440_v12, 6 }
0x1757   : > { %v3421_v17 = vrot.slane %v3410_v53, 7  ;;  %v3450_v50 = vrot.slane %v3439_v14, 7  ;;  %v3479_v29 = vrot.slane %v3468_v11, 7  ;;  %v3406_v57 = vmul.f32 %v5926_v44, %v3392_v56 }
0x1758   : > { %v3519_v0 = vsel %vm621_vm2, %v3518_v18, %v3403_v60  ;;  %v3485_v11 = vrot.slane %v3471_v24, 4 }
0x1759   : > { %v3412_v30 = vmul.f32 %v3406_v57, %v5101_v10  ;;  %v3441_v13 = vmul.f32 %v3406_v57, %v5919_v19  ;;  %v3470_v9 = vmul.f32 %v3406_v57, %v3406_v57  ;;  %v3522_v62 = vrot.slane %v3406_v57, 5 }
0x175a   : > { %v5634_v53 = vpop.permute.xlu1 %2634  ;;  %v3480_v14 = vsel %vm621_vm2, %v3479_v29, %v3467_v32  ;;  %v3521_v44 = vsel %vm624_vm3, %v3520_v28, %v3519_v0  ;;  %v3451_v63 = vsel %vm621_vm2, %v3450_v50, %v3438_v37  ;;  %v3422_v60 = vsel %vm621_vm2, %v3421_v17, %v3409_v1 }
0x175b   : > { %v3483_v56 = vrot.slane %v3470_v9, 5  ;;  %v3425_v18 = vrot.slane %v3412_v30, 5  ;;  %v3454_v10 = vrot.slane %v3441_v13, 5  ;;  %v3482_v54 = vsel %vm624_vm3, %v3481_v41, %v3480_v14 }
0x175c   : > { %v3523_v57 = vsel %vm627_vm4, %v3522_v62, %v3521_v44  ;;  %v3413_v28 = vmul.f32 %v3407_v51, %v5097_v15  ;;  %v3442_v0 = vmul.f32 %v3407_v51, %v5920_v25  ;;  %v3453_v13 = vsel %vm624_vm3, %v3452_v49, %v3451_v63 }
0x175d   : > { %v3484_v36 = vsel %vm627_vm4, %v3483_v56, %v3482_v54  ;;  %v3525_v32 = vsel %vm630_vm5, %v3524_v16, %v3523_v57  ;;  %v3424_v41 = vsel %vm624_vm3, %v3423_v8, %v3422_v60  ;;  %v3455_v62 = vsel %vm627_vm4, %v3454_v10, %v3453_v13 }
0x175e   : > { %v3396_v9 = vpop.permute.xlu1 %3395  ;;  %v3486_v37 = vsel %vm630_vm5, %v3485_v11, %v3484_v36  ;;  %v3426_v24 = vsel %vm627_vm4, %v3425_v18, %v3424_v41  ;;  %v3427_v51 = vrot.slane %v3413_v28, 4  ;;  %v3456_v29 = vrot.slane %v3442_v0, 4 }
0x175f   : > { %v3408_v1 = vmul.f32 %v5928_v42, %v3396_v9  ;;  %v1398_v11 = vsel %vm638_vm7, %v5585_v2, 0.0  ;;  %v1427_v56 = vsel %vm638_vm7, %v5587_v33, 0.0  ;;  %v1453_v63 = vrot.slane %v4812_v52, 7  ;;  %v2251_v52 = vpop.permute.xlu0 %2250 }
0x1760   : > { %v3457_v49 = vsel %vm630_vm5, %v3456_v29, %v3455_v62  ;;  %v3428_v10 = vsel %vm630_vm5, %v3427_v51, %v3426_v24  ;;  %v1782_v60 = vsel %vm638_vm7, %v5591_v55, 0.0  ;;  %v1455_v57 = vrot.slane %v4816_v59, 6 }
0x1761   : > { %v3443_v54 = vmul.f32 %v3408_v1, %v5921_v38  ;;  %v3414_v16 = vmul.f32 %v3408_v1, %v5109_v26  ;;  %v3472_v17 = vmul.f32 %v3408_v1, %v3408_v1  ;;  %v3526_v50 = vrot.slane %v3408_v1, 3 }
0x1762   : > { %v1454_v18 = vsel %vm621_vm2, %v1453_v63, %v4810_v39  ;;  %v1457_v8 = vrot.slane %v4824_v61, 5  ;;  %v1811_v2 = vsel %vm638_vm7, %v5593_v35, 0.0  ;;  %v1459_v33 = vrot.slane %v4820_v45, 4  ;;  %v5934_v63 = vld [vmem:[#allocation5_spill] sm:$0xff] }
0x1763   : > { %v3458_v58 = vrot.slane %v3443_v54, 3  ;;  %v3429_v36 = vrot.slane %v3414_v16, 3  ;;  %v3487_v12 = vrot.slane %v3472_v17, 3  ;;  %v5655_v42 = vsel %vm633_vm6, %v3526_v50, %v3525_v32  ;;  %v2606_v35 = vpop.permute.xlu0 %2605 }
0x1764   : > { %v1456_v32 = vsel %vm624_vm3, %v1455_v57, %v1454_v18  ;;  %v1840_v55 = vsel %vm638_vm7, %v5605_v27, 0.0  ;;  %v1461_v39 = vrot.slane %v4832_v21, 3  ;;  %v2195_v61 = vsel %vm638_vm7, %v5614_v23, 0.0  ;;  %v5935_v18 = vld [vmem:[#allocation6_spill] sm:$0xff] }
0x1765   : > { %v3459_v30 = vsel %vm633_vm6, %v3458_v58, %v3457_v49  ;;  %v3430_v14 = vsel %vm633_vm6, %v3429_v36, %v3428_v10  ;;  %v3488_v44 = vsel %vm633_vm6, %v3487_v12, %v3486_v37  ;;  %v1458_v28 = vsel %vm627_vm4, %v1457_v8, %v1456_v32 }
0x1766   : > { %3460 = vrot.lane.b32.xlu0 %v3459_v30, %s4448_s13  ;;  %3431 = vrot.lane.b32.xlu1 %v3430_v14, %s4448_s13  ;;  %v1460_v59 = vsel %vm630_vm5, %v1459_v33, %v1458_v28  ;;  %v2253_v45 = vsel %vm638_vm7, %v2251_v52, 0.0  ;;  %v2608_v27 = vsel %vm638_vm7, %v2606_v35, 0.0  ;;  %v2637_v21 = vsel %vm638_vm7, %v5634_v53, 0.0 }
0x1767   : > { %v1462_v0 = vsel %vm633_vm6, %v1461_v39, %v1460_v59  ;;  %v2664_v9 = vpop.permute.xlu0 %2663  ;;  %v2224_v54 = vsel %vm638_vm7, %v5616_v43, 0.0  ;;  %v1866_v17 = vrot.slane %v4911_v4, 7  ;;  %v3105_v51 = vrot.slane %v5181_v40, 7  ;;  %v5936_v59 = vld [vmem:[#allocation11_spill] sm:$0xff] }
0x1768   : > { %v2666_v23 = vsel %vm638_vm7, %v2664_v9, 0.0  ;;  %v1868_v29 = vrot.slane %v4915_v48, 6  ;;  %v1870_v58 = vrot.slane %v4923_v31, 5  ;;  %v1872_v49 = vrot.slane %v4919_v20, 4 }
0x1769   : > { %v1867_v50 = vsel %vm621_vm2, %v1866_v17, %v4909_v6  ;;  %v3106_v12 = vsel %vm621_vm2, %v3105_v51, %v5179_v5  ;;  %v3107_v10 = vrot.slane %v5187_v7, 6  ;;  %v3109_v6 = vrot.slane %v5919_v19, 5 }
0x176a   : > { %v1869_v43 = vsel %vm624_vm3, %v1868_v29, %v1867_v50  ;;  %v1874_v31 = vrot.slane %v4931_v46, 3  ;;  %v2279_v30 = vrot.slane %v5000_v22, 7  ;;  %v3111_v5 = vrot.slane %v5920_v25, 4 }
0x176b   : > { %v3019_v37 = vpop.permute.xlu0 %3018  ;;  %v1871_v4 = vsel %vm627_vm4, %v1870_v58, %v1869_v43  ;;  %v3108_v48 = vsel %vm624_vm3, %v3107_v10, %v3106_v12  ;;  %v2281_v46 = vrot.slane %v5004_v34, 6  ;;  %v2283_v22 = vrot.slane %v5012_v47, 5  ;;  %v5740_v34 = vld [vmem:[%s5868_s5] ss:$0 sm:$0xff]  ;;  %v5937_v43 = vld [vmem:[#allocation3_spill] sm:$0xff] }
0x176c   : > { %v3021_v13 = vsel %vm638_vm7, %v3019_v37, 0.0  ;;  %v1873_v14 = vsel %vm630_vm5, %v1872_v49, %v1871_v4  ;;  %v3110_v20 = vsel %vm627_vm4, %v3109_v6, %v3108_v48  ;;  %v2280_v19 = vsel %vm621_vm2, %v2279_v30, %v4998_v3  ;;  %v5938_v12 = vld [vmem:[#allocation15_spill] sm:$0xff] }
0x176d   : > { %v1875_v7 = vsel %vm633_vm6, %v1874_v31, %v1873_v14  ;;  %v2287_v3 = vrot.slane %v5935_v18, 3 }
0x176f   : > { %v3048_v1 = vpop.permute.xlu0 %3047 }
0x1770   : > { %v3050_v41 = vsel %vm638_vm7, %v3048_v1, 0.0 }
0x1773   : > { %v3077_v62 = vpop.permute.xlu0 %3076 }
0x1774   : > { %v3079_v24 = vsel %vm638_vm7, %v3077_v62, 0.0 }
0x1785   : > { %1399 = vadd.xlane.f32.xlu0 %v1398_v11  ;;  %v3112_v11 = vsel %vm630_vm5, %v3111_v5, %v3110_v20 }
0x178a   : > { %1428 = vadd.xlane.f32.xlu1 %v1427_v56  ;;  %v2282_v56 = vsel %vm624_vm3, %v2281_v46, %v2280_v19 }
0x178e   : > { %1783 = vadd.xlane.f32.xlu1 %v1782_v60  ;;  %v2285_v60 = vrot.slane %v5934_v63, 4 }
0x1792   : > { %1812 = vadd.xlane.f32.xlu1 %v1811_v2 }
0x1796   : > { %1841 = vadd.xlane.f32.xlu1 %v1840_v55 }
0x179a   : > { %2196 = vadd.xlane.f32.xlu1 %v2195_v61  ;;  %v1372_v61 = vmul.f32 0.17677669, %v5936_v59 }
0x179b   : > { %1463 = vrot.lane.b32.xlu0 %v1462_v0, %s4448_s13 }
0x179e   : > { %2254 = vadd.xlane.f32.xlu1 %v2253_v45 }
0x17a2   : > { %2609 = vadd.xlane.f32.xlu1 %v2608_v27 }
0x17a6   : > { %2638 = vadd.xlane.f32.xlu1 %v2637_v21 }
0x17aa   : > { %2667 = vadd.xlane.f32.xlu1 %v2666_v23 }
0x17ae   : > { %3022 = vadd.xlane.f32.xlu1 %v3021_v13 }
0x17b2   : > { %3051 = vadd.xlane.f32.xlu1 %v3050_v41 }
0x17b6   : > { %3080 = vadd.xlane.f32.xlu1 %v3079_v24 }
0x17ba   : > { %2225 = vadd.xlane.f32.xlu0 %v2224_v54 }
0x17c7   : > { %3489 = vrot.lane.b32.xlu1 %v3488_v44, %s4448_s13  ;;  %v3113_v44 = vrot.slane %v5921_v38, 3  ;;  %v2284_v38 = vsel %vm627_vm4, %v2283_v22, %v2282_v56 }
0x17c8   : > { %v2286_v57 = vsel %vm630_vm5, %v2285_v60, %v2284_v38 }
0x17c9   : > { %v3114_v25 = vsel %vm633_vm6, %v3113_v44, %v3112_v11  ;;  %v2288_v8 = vsel %vm633_vm6, %v2287_v3, %v2286_v57 }
0x17d8   : > { %v3461_v53 = vpop.permute.xlu0 %3460  ;;  %v3432_v36 = vpop.permute.xlu1 %3431 }
0x17d9   : > { %v3463_v16 = vsel %vm638_vm7, %v3461_v53, 0.0  ;;  %v3434_v40 = vsel %vm638_vm7, %v3432_v36, 0.0 }
0x17da   : > { %3464 = vadd.xlane.f32.xlu0 %v3463_v16 }
0x17eb   : > { %3435 = vadd.xlane.f32.xlu1 %v3434_v40 }
0x17f0   : > { %1876 = vrot.lane.b32.xlu0 %v1875_v7, %s4448_s13 }
0x17f4   : > { %3115 = vrot.lane.b32.xlu0 %v3114_v25, %s4448_s13 }
0x17fc   : > { %2289 = vrot.lane.b32.xlu1 %v2288_v8, %s4448_s13 }
0x1806   : > { %v1095_v47 = vpop.f32.mrb[12].mxu0 }
0x1807   : > { %v1096_v2 = vadd.f32 %v5740_v34, %v1095_v47  ;;  %v3852_v32 = vpop.f32.mrb[13].mxu0 }
0x1808   : > { %v1098_v33 = vpop.f32.mrb[14].mxu0 }
0x1809   : > { %4366 = vtanh.f32 %v1096_v2  ;;  %v3853_v52 = vpop.f32.mrb[15].mxu0  ;;  %v5939_v33 = vld [vmem:[#allocation14_spill] sm:$0xff] }
0x180a   : > { %v5940_v52 = vmov 0.0  }
0x1812   : > { %v1400_v55 = vpop.xlane.xlu0 %1399 }
0x1813   : > { %v4367_v28 = vpop.eup %4366  ;;  %v1401_v39 = vmul.f32 0.17677669, %v1400_v55 }
0x1814   : > { %3581 = vrot.lane.b32.xlu0 %v4367_v28, %s4448_s13 }
0x1815   : > { %v1431_v0 = vmax.f32 %v1372_v61, %v1401_v39 }
0x1816   : > { %v5751_v48 = vpop.permute.xlu0 %1463 }
0x1817   : > { %v1429_v35 = vpop.xlane.xlu1 %1428 }
0x1818   : > { %v1430_v45 = vmul.f32 0.17677669, %v1429_v35 }
0x181a   : > { %v1432_v9 = vmax.f32 %v1431_v0, %v1430_v45 }
0x181b   : > { %v1784_v27 = vpop.xlane.xlu1 %1783 }
0x181c   : > { %v1433_v21 = vsub.f32 %v1372_v61, %v1432_v9  ;;  %v1436_v37 = vsub.f32 %v1401_v39, %v1432_v9  ;;  %v1439_v23 = vsub.f32 %v1430_v45, %v1432_v9  ;;  %v1785_v63 = vmul.f32 0.17677669, %v1784_v27  ;;  %v5941_v61 = vld [vmem:[#allocation16_spill] sm:$0xff] }
0x181e   : > { %v1434_v1 = vmul.f32 1.442695, %v1433_v21  ;;  %v1437_v13 = vmul.f32 1.442695, %v1436_v37  ;;  %v1440_v41 = vmul.f32 1.442695, %v1439_v23 }
0x181f   : > { %v1813_v62 = vpop.xlane.xlu1 %1812 }
0x1820   : > { %4368 = vpow2.f32 %v1434_v1  ;;  %v1814_v46 = vmul.f32 0.17677669, %v1813_v62 }
0x1821   : > { %4370 = vpow2.f32 %v1437_v13  ;;  %v5942_v13 = vld [vmem:[#allocation8_spill] sm:$0xff] }
0x1822   : > { %4372 = vpow2.f32 %v1440_v41  ;;  %v1844_v47 = vmax.f32 %v1785_v63, %v1814_v46  ;;  %v2692_v41 = vrot.slane %v5942_v13, 7 }
0x1823   : > { %v1842_v24 = vpop.xlane.xlu1 %1841 }
0x1824   : > { %v1843_v38 = vmul.f32 0.17677669, %v1842_v24 }
0x1826   : > { %v1845_v28 = vmax.f32 %v1844_v47, %v1843_v38 }
0x1827   : > { %v5745_v54 = vpop.xlane.xlu1 %2196 }
0x1828   : > { %v1846_v35 = vsub.f32 %v1785_v63, %v1845_v28  ;;  %v1849_v9 = vsub.f32 %v1814_v46, %v1845_v28 }
0x182a   : > { %v4369_v53 = vpop.eup %4368  ;;  %v1847_v24 = vmul.f32 1.442695, %v1846_v35 }
0x182b   : > { %v4371_v16 = vpop.eup %4370  ;;  %v5747_v17 = vpop.xlane.xlu1 %2254  ;;  %v1444_v36 = vmul.f32 %v4369_v53, %v5937_v43 }
0x182c   : > { %v1442_v50 = vadd.f32 %v4371_v16, %v4369_v53  ;;  %v4373_v51 = vpop.eup %4372  ;;  %v1445_v49 = vmul.f32 %v4371_v16, %v5938_v12 }
0x182d   : > { %v1466_v30 = vmul.f32 %v4373_v51, %v5751_v48 }
0x182e   : > { %v1443_v29 = vadd.f32 %v4373_v51, %v1442_v50  ;;  %v1446_v40 = vadd.f32 %v1445_v49, %v1444_v36  ;;  %v5943_v49 = vld [vmem:[#allocation7_spill] sm:$0xff] }
0x182f   : > { %v2610_v58 = vpop.xlane.xlu1 %2609 }
0x1830   : > { %4374 = vrcp.f32 %v1443_v29  ;;  %v2611_v4 = vmul.f32 0.17677669, %v2610_v58  ;;  %v1467_v20 = vadd.f32 %v1466_v30, %v1446_v40  ;;  %v1850_v29 = vmul.f32 1.442695, %v1849_v9 }
0x1833   : > { %v2639_v10 = vpop.xlane.xlu1 %2638 }
0x1834   : > { %v2640_v6 = vmul.f32 0.17677669, %v2639_v10  ;;  %v2693_v10 = vsel %vm621_vm2, %v2692_v41, %v5943_v49 }
0x1836   : > { %v2670_v31 = vmax.f32 %v2611_v4, %v2640_v6 }
0x1837   : > { %v2668_v14 = vpop.xlane.xlu1 %2667 }
0x1838   : > { %v2669_v5 = vmul.f32 0.17677669, %v2668_v14 }
0x183a   : > { %v4375_v7 = vpop.eup %4374  ;;  %v2671_v44 = vmax.f32 %v2670_v31, %v2669_v5  ;;  %v5944_v31 = vld [vmem:[#allocation9_spill] sm:$0xff] }
0x183b   : > { %v3023_v19 = vpop.xlane.xlu1 %3022  ;;  %v1469_v11 = vmul.f32 %v4375_v7, %v1467_v20  ;;  %v2694_v30 = vrot.slane %v5944_v31, 6 }
0x183c   : > { %v2672_v22 = vsub.f32 %v2611_v4, %v2671_v44  ;;  %v2675_v56 = vsub.f32 %v2640_v6, %v2671_v44  ;;  %v2678_v25 = vsub.f32 %v2669_v5, %v2671_v44  ;;  %v3024_v2 = vmul.f32 0.17677669, %v3023_v19  ;;  %v5945_v5 = vld [vmem:[#allocation10_spill] sm:$0xff] }
0x183d   : > { %v1470_v60 = vpack.c.bf16 %v1469_v11, %v1469_v11  ;;  %v1852_v4 = vsub.f32 %v1843_v38, %v1845_v28  ;;  %v2198_v6 = vmul.f32 0.17677669, %v5745_v54  ;;  %v2696_v20 = vrot.slane %v5945_v5, 5 }
0x183e   : > { %v2673_v18 = vmul.f32 1.442695, %v2672_v22  ;;  %v2676_v3 = vmul.f32 1.442695, %v2675_v56  ;;  %v2679_v57 = vmul.f32 1.442695, %v2678_v25  ;;  %v2695_v7 = vsel %vm624_vm3, %v2694_v30, %v2693_v10 }
0x183f   : > { %3867 = vmatmul.mubr.msk.bf16.vlgmr.msra.gmra.mrb[16].mxu0 %vm402_vm8, %v1470_v60  ;;  %v3052_v8 = vpop.xlane.xlu1 %3051  ;;  %v1853_v44 = vmul.f32 1.442695, %v1852_v4  ;;  %v2256_v19 = vmul.f32 0.17677669, %v5747_v17  ;;  %v2698_v11 = vrot.slane %v5097_v15, 4  ;;  %v2697_v54 = vsel %vm627_vm4, %v2696_v20, %v2695_v7 }
0x1840   : > { %4376 = vpow2.f32 %v2673_v18  ;;  %v3053_v32 = vmul.f32 0.17677669, %v3052_v8  ;;  %3879 = vmatpush3.bf16.msra.mxu0 %v5939_v33  ;;  %3882 = vmatprep.mubr.msk.bf16.mxu0 %vm4445_vm0, %v5940_v52  ;;  %v2700_v56 = vrot.slane %v5109_v26, 3 }
0x1841   : > { %4378 = vpow2.f32 %v2676_v3  ;;  %3880 = vmatprep.subr.bf16.mxu0 %v5940_v52  ;;  %v2699_v63 = vsel %vm630_vm5, %v2698_v11, %v2697_v54 }
0x1842   : > { %v3083_v55 = vmax.f32 %v3024_v2, %v3053_v32  ;;  %4380 = vpow2.f32 %v2679_v57  ;;  %v2701_v8 = vsel %vm633_vm6, %v2700_v56, %v2699_v63 }
0x1843   : > { %v3081_v39 = vpop.xlane.xlu1 %3080 }
0x1844   : > { %v3082_v59 = vmul.f32 0.17677669, %v3081_v39  ;;  %3881 = vmatpush3.bf16.msra.mxu0 %v5941_v61 }
0x1845   : > { %3894 = vmatprep.subr.bf16.mxu0 %v5940_v52 }
0x1846   : > { %v3084_v0 = vmax.f32 %v3083_v55, %v3082_v59 }
0x1847   : > { %v3490_v45 = vpop.permute.xlu1 %3489  ;;  %v2226_v23 = vpop.xlane.xlu0 %2225 }
0x1848   : > { %v3085_v27 = vsub.f32 %v3024_v2, %v3084_v0  ;;  %v3088_v21 = vsub.f32 %v3053_v32, %v3084_v0  ;;  %v3091_v37 = vsub.f32 %v3082_v59, %v3084_v0  ;;  %v3492_v1 = vsel %vm638_vm7, %v3490_v45, 0.0 }
0x1849   : > { %3493 = vadd.xlane.f32.xlu1 %v3492_v1  ;;  %v2227_v43 = vmul.f32 0.17677669, %v2226_v23 }
0x184a   : > { %v5763_v62 = vpop.eup %4376  ;;  %v3086_v53 = vmul.f32 1.442695, %v3085_v27  ;;  %v3089_v16 = vmul.f32 1.442695, %v3088_v21  ;;  %v3092_v51 = vmul.f32 1.442695, %v3091_v37 }
0x184b   : > { %v5765_v50 = vpop.eup %4378  ;;  %v2257_v14 = vmax.f32 %v2198_v6, %v2227_v43 }
0x184c   : > { %v2681_v58 = vadd.f32 %v5765_v50, %v5763_v62  ;;  %4382 = vpow2.f32 %v3086_v53  ;;  %v5769_v36 = vpop.eup %4380 }
0x184d   : > { %4384 = vpow2.f32 %v3089_v16  ;;  %v2258_v46 = vmax.f32 %v2257_v14, %v2256_v19 }
0x184e   : > { %4386 = vpow2.f32 %v1847_v24  ;;  %v5775_v40 = vadd.f32 %v5769_v36, %v2681_v58 }
0x184f   : > { %4388 = vpow2.f32 %v3092_v51  ;;  %v2259_v18 = vsub.f32 %v2198_v6, %v2258_v46  ;;  %v2262_v15 = vsub.f32 %v2227_v43, %v2258_v46  ;;  %v2265_v32 = vsub.f32 %v2256_v19, %v2258_v46 }
0x1850   : > { %4390 = vpow2.f32 %v1850_v29 }
0x1851   : > { %4392 = vpow2.f32 %v1853_v44  ;;  %v2260_v26 = vmul.f32 1.442695, %v2259_v18  ;;  %v2263_v2 = vmul.f32 1.442695, %v2262_v15  ;;  %v2266_v39 = vmul.f32 1.442695, %v2265_v32 }
0x1853   : > { %4394 = vpow2.f32 %v2260_v26 }
0x1854   : > { %4396 = vpow2.f32 %v2263_v2 }
0x1856   : > { %v5783_v22 = vpop.eup %4382 }
0x1857   : > { %v5786_v25 = vpop.eup %4384 }
0x1858   : > { %v4387_v60 = vpop.eup %4386  ;;  %v3094_v38 = vadd.f32 %v5786_v25, %v5783_v22 }
0x1859   : > { %v5791_v17 = vpop.eup %4388  ;;  %v1857_v35 = vmul.f32 %v4387_v60, %v5938_v12 }
0x185a   : > { %v4391_v3 = vpop.eup %4390  ;;  %v3095_v57 = vadd.f32 %v5791_v17, %v3094_v38  ;;  %2702 = vrot.lane.b32.xlu1 %v2701_v8, %s4448_s13 }
0x185b   : > { %v1855_v47 = vadd.f32 %v4391_v3, %v4387_v60  ;;  %v4393_v28 = vpop.eup %4392  ;;  %v1858_v0 = vmul.f32 %v4391_v3, %v5751_v48 }
0x185d   : > { %v1856_v55 = vadd.f32 %v4393_v28, %v1855_v47  ;;  %v4395_v45 = vpop.eup %4394  ;;  %v1859_v21 = vadd.f32 %v1858_v0, %v1857_v35 }
0x185e   : > { %3528 = vrot.lane.b32.xlu1 %v5655_v42, %s4448_s13  ;;  %v4397_v9 = vpop.eup %4396  ;;  %v2270_v58 = vmul.f32 %v4395_v45, %v5751_v48 }
0x185f   : > { %4398 = vrcp.f32 %v1856_v55  ;;  %v2268_v42 = vadd.f32 %v4397_v9, %v4395_v45 }
0x1860   : > { %4400 = vpow2.f32 %v2266_v39 }
0x1867   : > { %v3465_v59 = vpop.xlane.xlu0 %3464 }
0x1868   : > { %v3466_v51 = vmul.f32 0.17677669, %v3465_v59 }
0x1869   : > { %v4399_v13 = vpop.eup %4398 }
0x186a   : > { %v4401_v24 = vpop.eup %4400 }
0x186b   : > { %v1877_v27 = vpop.permute.xlu0 %1876  ;;  %v2269_v53 = vadd.f32 %v4401_v24, %v2268_v42 }
0x186c   : > { %v1879_v37 = vmul.f32 %v4393_v28, %v1877_v27  ;;  %v2683_v23 = vmul.f32 %v5763_v62, %v1877_v27  ;;  %v2271_v62 = vmul.f32 %v4397_v9, %v1877_v27 }
0x186d   : > { %4402 = vrcp.f32 %v2269_v53 }
0x186e   : > { %v1880_v1 = vadd.f32 %v1879_v37, %v1859_v21  ;;  %v2272_v10 = vadd.f32 %v2271_v62, %v2270_v58  ;;  %4404 = vrcp.f32 %v5775_v40 }
0x186f   : > { %4406 = vrcp.f32 %v3095_v57  ;;  %v3116_v19 = vpop.permute.xlu0 %3115 }
0x1870   : > { %v1882_v41 = vmul.f32 %v4399_v13, %v1880_v1  ;;  %v3118_v57 = vmul.f32 %v5791_v17, %v3116_v19 }
0x1872   : > { %v1883_v16 = vpack.c.bf16 %v1882_v41, %v1882_v41 }
0x1874   : > { %3883 = vmatmul.mubr.msk.bf16.vlgmr.msra.gmra.mrb[20].mxu0 %vm402_vm8, %v1883_v16 }
0x1875   : > { %3895 = vmatpush3.bf16.msra.mxu0 %v5939_v33  ;;  %3898 = vmatprep.mubr.msk.bf16.mxu0 %vm4445_vm0, %v5940_v52 }
0x1876   : > { %3896 = vmatprep.subr.bf16.mxu0 %v5940_v52 }
0x1877   : > { %v4403_v14 = vpop.eup %4402 }
0x1878   : > { %v3436_v12 = vpop.xlane.xlu1 %3435  ;;  %v4405_v40 = vpop.eup %4404 }
0x1879   : > { %v3437_v29 = vmul.f32 0.17677669, %v3436_v12  ;;  %3897 = vmatpush3.bf16.msra.mxu0 %v5941_v61  ;;  %v4407_v2 = vpop.eup %4406 }
0x187a   : > { %3910 = vmatprep.subr.bf16.mxu0 %v5940_v52 }
0x187b   : > { %v3496_v43 = vmax.f32 %v3437_v29, %v3466_v51 }
0x187c   : > { %v2290_v49 = vpop.permute.xlu1 %2289 }
0x187d   : > { %v2292_v4 = vmul.f32 %v4401_v24, %v2290_v49  ;;  %v2684_v6 = vmul.f32 %v5765_v50, %v2290_v49  ;;  %v3096_v63 = vmul.f32 %v5783_v22, %v2290_v49  ;;  %v5946_v49 = vld [vmem:[#allocation4_spill] sm:$0xff] }
0x187f   : > { %v2293_v31 = vadd.f32 %v2292_v4, %v2272_v10  ;;  %v2685_v30 = vadd.f32 %v2684_v6, %v2683_v23  ;;  %v719_v10 = vadd.f32 %v5740_v34, %v5946_v49 }
0x1881   : > { %v2295_v5 = vmul.f32 %v4403_v14, %v2293_v31 }
0x1883   : > { %v2296_v20 = vpack.c.bf16 %v2295_v5, %v2295_v5 }
0x1885   : > { %3899 = vmatmul.mubr.msk.bf16.vlgmr.msra.gmra.mrb[24].mxu0 %vm402_vm8, %v2296_v20 }
0x1886   : > { %3911 = vmatpush3.bf16.msra.mxu0 %v5939_v33  ;;  %3914 = vmatprep.mubr.msk.bf16.mxu0 %vm4445_vm0, %v5940_v52 }
0x1887   : > { %3912 = vmatprep.subr.bf16.mxu0 %v5940_v52 }
0x188a   : > { %3913 = vmatpush3.bf16.msra.mxu0 %v5941_v61 }
0x188b   : > { %3926 = vmatprep.subr.bf16.mxu0 %v5940_v52 }
0x18d6   : > { %v3494_v48 = vpop.xlane.xlu1 %3493 }
0x18d7   : > { %v3495_v50 = vmul.f32 0.17677669, %v3494_v48 }
0x18d9   : > { %v3497_v7 = vmax.f32 %v3496_v43, %v3495_v50 }
0x18da   : > { %v2703_v44 = vpop.permute.xlu1 %2702 }
0x18db   : > { %v3498_v11 = vsub.f32 %v3437_v29, %v3497_v7  ;;  %v3501_v46 = vsub.f32 %v3466_v51, %v3497_v7  ;;  %v3504_v54 = vsub.f32 %v3495_v50, %v3497_v7  ;;  %v2705_v56 = vmul.f32 %v5769_v36, %v2703_v44 }
0x18dc   : > { %v3097_v60 = vmul.f32 %v5786_v25, %v2703_v44 }
0x18dd   : > { %v3499_v38 = vmul.f32 1.442695, %v3498_v11  ;;  %v3502_v18 = vmul.f32 1.442695, %v3501_v46  ;;  %v3505_v15 = vmul.f32 1.442695, %v3504_v54  ;;  %v2706_v3 = vadd.f32 %v2705_v56, %v2685_v30 }
0x18de   : > { %v3098_v8 = vadd.f32 %v3097_v60, %v3096_v63  ;;  %v3529_v35 = vpop.permute.xlu1 %3528 }
0x18df   : > { %4408 = vpow2.f32 %v3499_v38  ;;  %v2708_v26 = vmul.f32 %v4405_v40, %v2706_v3 }
0x18e0   : > { %4410 = vpow2.f32 %v3502_v18  ;;  %v3119_v47 = vadd.f32 %v3118_v57, %v3098_v8 }
0x18e1   : > { %4412 = vpow2.f32 %v3505_v15  ;;  %v2709_v32 = vpack.c.bf16 %v2708_v26, %v2708_v26 }
0x18e2   : > { %v3121_v36 = vmul.f32 %v4407_v2, %v3119_v47 }
0x18e3   : > { %3915 = vmatmul.mubr.msk.bf16.vlgmr.msra.gmra.mrb[28].mxu0 %vm402_vm8, %v2709_v32 }
0x18e4   : > { %3927 = vmatpush3.bf16.msra.mxu0 %v5939_v33  ;;  %3930 = vmatprep.mubr.msk.bf16.mxu0 %vm4445_vm0, %v5940_v52  ;;  %v3122_v25 = vpack.c.bf16 %v3121_v36, %v3121_v36 }
0x18e5   : > { %3928 = vmatprep.subr.bf16.mxu0 %v5940_v52 }
0x18e8   : > { %3929 = vmatpush3.bf16.msra.mxu0 %v5941_v61 }
0x18e9   : > { %v4409_v22 = vpop.eup %4408  ;;  %3942 = vmatprep.subr.bf16.mxu0 %v5940_v52 }
0x18ea   : > { %v4411_v17 = vpop.eup %4410  ;;  %v3509_v28 = vmul.f32 %v4409_v22, %v2703_v44  ;;  %v3582_v44 = vpop.permute.xlu0 %3581 }
0x18eb   : > { %v4413_v55 = vpop.eup %4412  ;;  %v3507_v39 = vadd.f32 %v4411_v17, %v4409_v22  ;;  %v3510_v59 = vmul.f32 %v4411_v17, %v3116_v19  ;;  %3931 = vmatmul.mubr.msk.bf16.vlgmr.msra.gmra.mrb[32].mxu0 %vm402_vm8, %v3122_v25 }
0x18ec   : > { %3943 = vmatpush3.bf16.msra.mxu0 %v5939_v33  ;;  %3946 = vmatprep.mubr.msk.bf16.mxu0 %vm4445_vm0, %v5940_v52  ;;  %v3531_v9 = vmul.f32 %v4413_v55, %v3529_v35 }
0x18ed   : > { %v3508_v0 = vadd.f32 %v4413_v55, %v3507_v39  ;;  %v3511_v45 = vadd.f32 %v3510_v59, %v3509_v28  ;;  %3944 = vmatprep.subr.bf16.mxu0 %v5940_v52 }
0x18ef   : > { %4414 = vrcp.f32 %v3508_v0  ;;  %v3532_v27 = vadd.f32 %v3531_v9, %v3511_v45 }
0x18f0   : > { %3945 = vmatpush3.bf16.msra.mxu0 %v5941_v61 }
0x18f9   : > { %v4415_v21 = vpop.eup %4414 }
0x18fa   : > { %v3534_v37 = vmul.f32 %v4415_v21, %v3532_v27 }
0x18fc   : > { %v3535_v23 = vpack.c.bf16 %v3534_v37, %v3534_v37 }
0x18fe   : > { %3947 = vmatmul.mubr.msk.bf16.vlgmr.msra.gmra.mrb[36].mxu0 %vm402_vm8, %v3535_v23 }
0x1912   : > { %v1508_v42 = vpop.f32.mrb[16].mxu0 }
0x1913   : > { %v1509_v33 = vadd.f32 %v5740_v34, %v1508_v42  ;;  %v3868_v1 = vpop.f32.mrb[17].mxu0 }
0x1914   : > { %v1511_v13 = vpop.f32.mrb[18].mxu0 }
0x1915   : > { %4416 = vtanh.f32 %v1509_v33  ;;  %v3869_v41 = vpop.f32.mrb[19].mxu0 }
0x191f   : > { %v4417_v24 = vpop.eup %4416 }
0x1920   : > { %3585 = vrot.lane.b32.xlu1 %v4417_v24, %s4447_s12 }
0x1947   : > { %v1921_v52 = vpop.f32.mrb[20].mxu0 }
0x1948   : > { %v1922_v53 = vadd.f32 %v5740_v34, %v1921_v52  ;;  %v3884_v16 = vpop.f32.mrb[21].mxu0 }
0x1949   : > { %v1924_v61 = vpop.f32.mrb[22].mxu0 }
0x194a   : > { %4418 = vtanh.f32 %v1922_v53  ;;  %v3885_v12 = vpop.f32.mrb[23].mxu0 }
0x1954   : > { %v4419_v51 = vpop.eup %4418 }
0x1955   : > { %3589 = vrot.lane.b32.xlu0 %v4419_v51, %s4449_s10 }
0x1958   : > { %v2334_v62 = vpop.f32.mrb[24].mxu0 }
0x1959   : > { %v3900_v29 = vpop.f32.mrb[25].mxu0  ;;  %v2335_v26 = vadd.f32 %v5740_v34, %v2334_v62 }
0x195a   : > { %v2337_v58 = vpop.f32.mrb[26].mxu0 }
0x195b   : > { %v3901_v43 = vpop.f32.mrb[27].mxu0 }
0x1992   : > { %v3586_v11 = vpop.permute.xlu1 %3585 }
0x19b6   : > { %v2747_v4 = vpop.f32.mrb[28].mxu0 }
0x19b7   : > { %v2748_v6 = vadd.f32 %v5740_v34, %v2747_v4  ;;  %v3916_v31 = vpop.f32.mrb[29].mxu0 }
0x19b8   : > { %v2750_v30 = vpop.f32.mrb[30].mxu0 }
0x19b9   : > { %4420 = vtanh.f32 %v2748_v6  ;;  %v3917_v14 = vpop.f32.mrb[31].mxu0 }
0x19ba   : > { %4422 = vtanh.f32 %v719_v10 }
0x19be   : > { %v3160_v5 = vpop.f32.mrb[32].mxu0 }
0x19bf   : > { %v3161_v20 = vadd.f32 %v5740_v34, %v3160_v5  ;;  %v3932_v48 = vpop.f32.mrb[33].mxu0 }
0x19c0   : > { %v3163_v50 = vpop.f32.mrb[34].mxu0 }
0x19c1   : > { %4424 = vtanh.f32 %v3161_v20  ;;  %v3933_v7 = vpop.f32.mrb[35].mxu0 }
0x19c3   : > { %v4421_v19 = vpop.eup %4420 }
0x19c4   : > { %v4423_v46 = vpop.eup %4422  ;;  %3593 = vrot.lane.b32.xlu1 %v4421_v19, %s4448_s13 }
0x19c5   : > { %v3604_v54 = vsel %vm402_vm8, %v4423_v46, %v3582_v44 }
0x19c6   : > { %v3606_v56 = vsel %vm3605_vm9, %v3604_v54, %v3586_v11 }
0x19c7   : > { %v3590_v63 = vpop.permute.xlu0 %3589 }
0x19c8   : > { %v3608_v60 = vsel %vm3607_vm10, %v3606_v56, %v3590_v63 }
0x19c9   : > { %3612 = vst [vmem:[%s253_s16] sm:$0x3f] %v3608_v60 }
0x19cb   : > { %v4425_v38 = vpop.eup %4424 }
0x19cc   : > { %3597 = vrot.lane.b32.xlu0 %v4425_v38, %s4447_s12 }
0x19d1   : > { %v3573_v18 = vpop.f32.mrb[36].mxu0 }
0x19d2   : > { %v3574_v15 = vadd.f32 %v5740_v34, %v3573_v18  ;;  %v3948_v3 = vpop.f32.mrb[37].mxu0 }
0x19d3   : > { %v3576_v40 = vpop.f32.mrb[38].mxu0 }
0x19d4   : > { %4426 = vtanh.f32 %v3574_v15  ;;  %v3949_v57 = vpop.f32.mrb[39].mxu0 }
0x19d5   : > { %4428 = vtanh.f32 %v2335_v26 }
0x19de   : > { %v4427_v8 = vpop.eup %4426 }
0x19df   : > { %3601 = vrot.lane.b32.xlu1 %v4427_v8, %s4449_s10  ;;  %v4429_v32 = vpop.eup %4428 }
0x1a36   : > { %v3594_v47 = vpop.permute.xlu1 %3593 }
0x1a37   : > { %v3609_v36 = vsel %vm402_vm8, %v4429_v32, %v3594_v47 }
0x1a3e   : > { %v3598_v2 = vpop.permute.xlu0 %3597 }
0x1a3f   : > { %v3610_v22 = vsel %vm3605_vm9, %v3609_v36, %v3598_v2 }
0x1a51   : > { %v3602_v25 = vpop.permute.xlu1 %3601 }
0x1a52   : > { %v3611_v17 = vsel %vm3607_vm10, %v3610_v22, %v3602_v25 }
0x1a53   : > { %3613 = vst [vmem:[%s253_s16 + $0x8] sm:$0x3f] %v3611_v17 }
0x1a54 PF: > { %s16_s21 = sadd.s32 1, %s4442_s21  }
0x1a55   : > { %p13_p5 = scmp.ge.s32.totalorder %s16_s21, 4  }
0x1a57   :  { %15 = sbr.rel (!%p13_p5) target bundleno = 1 (0x1), region = 79 }

</bundles_post_ra>
